<compile_context>
chip_gen: v5e
topology: v5e:2x2
jax: 0.10.0
libtpu: 0.0.40
codegen_flags: <defaults>
</compile_context>

<pallas_src>
import math

import jax
import jax.numpy as jnp
from jax import lax
from jax.experimental import pallas as pl
from jax.experimental.pallas import tpu as pltpu

# ----- model hyper-parameters (consistent with the module) -----
D_MODEL = 128            # num_model
NUM_HEADS = 8            # num_heads
HEAD_DIM = D_MODEL // NUM_HEADS
DFF = 256                # dff
NUM_LAYERS = 2           # module default is 8; kept small for the demo
VOCAB = 40               # stand-in for len(vocab)+2 (no corpus file in-script)
VOCAB_PAD = 128          # logits padded to a lane-dense last dim
LN_EPS = 1e-6            # nn.LayerNorm(d_model, eps=1e-06) in the module
NEG_INF = -1e30          # additive mask value (PyTorch uses -inf masked_fill)

# Per-layer parameter names; each is stacked over layers into a single array so
# the full weight stack is a small, VMEM-resident set of operands.
ENC_KEYS = ("wq", "wk", "wv", "bq", "bk", "bv", "wo", "bo",
            "ln1g", "ln1b", "w1", "b1", "w2", "b2", "ln2g", "ln2b")
DEC_KEYS = ("wq1", "wk1", "wv1", "bq1", "bk1", "bv1", "wo1", "bo1", "ln1g", "ln1b",
            "wq2", "wk2", "wv2", "bq2", "bk2", "bv2", "wo2", "bo2", "ln2g", "ln2b",
            "w1", "b1", "w2", "b2", "ln3g", "ln3b")
N_ENC = len(ENC_KEYS)
N_DEC = len(DEC_KEYS)


# --------------------------- in-kernel helpers ---------------------------

def _mm_nt(a, b):
    """(M, K) x (N, K) -> (M, N)  (nn.Linear: x @ w.T)."""
    return lax.dot_general(a, b, (((1,), (1,)), ((), ())),
                           preferred_element_type=jnp.float32)


def _bmm_nt(a, b):
    """(H, M, K) x (H, N, K) -> (H, M, N)  (batched, contract minor dims)."""
    return lax.dot_general(a, b, (((2,), (2,)), ((0,), (0,))),
                           preferred_element_type=jnp.float32)


def _bmm_nn(a, b):
    """(H, M, K) x (H, K, N) -> (H, M, N)  (batched, standard matmul)."""
    return lax.dot_general(a, b, (((2,), (1,)), ((0,), (0,))),
                           preferred_element_type=jnp.float32)


def _layer_norm(z, g, b):
    """LayerNorm with eps=1e-6 (biased variance, as in nn.LayerNorm)."""
    mean = jnp.mean(z, axis=-1, keepdims=True)
    c = z - mean
    var = jnp.mean(c * c, axis=-1, keepdims=True)
    return c * lax.rsqrt(var + LN_EPS) * g + b


def _mha(x, kv, wq, wk, wv, bq, bk, bv, wo, bo, mask=None):
    """Multi-head attention with heads batched on a leading axis.

    x : (Lq, D)     kv: (Lk, D)
    wq/wk/wv: (H, HEAD_DIM, D)     bq/bk/bv: (H, 1, HEAD_DIM)
    wo: (H, HEAD_DIM, D)           bo: (1, D)
    """
    Lq = x.shape[0]
    Lk = kv.shape[0]
    xb = jnp.broadcast_to(x[None, :, :], (NUM_HEADS, Lq, D_MODEL))
    kvb = jnp.broadcast_to(kv[None, :, :], (NUM_HEADS, Lk, D_MODEL))

    q = _bmm_nt(xb, wq) + bq            # (H, Lq, hd)
    k = _bmm_nt(kvb, wk) + bk           # (H, Lk, hd)
    v = _bmm_nt(kvb, wv) + bv           # (H, Lk, hd)

    s = _bmm_nt(q, k) * (1.0 / math.sqrt(HEAD_DIM))   # (H, Lq, Lk)
    if mask is not None:                              # additive (Lq, Lk) mask
        s = s + mask
    s = s - jnp.max(s, axis=-1, keepdims=True)        # stable softmax
    p = jnp.exp(s)
    p = p * pl.reciprocal(jnp.sum(p, axis=-1, keepdims=True), approx=True)

    ctx = _bmm_nn(p, v)                 # (H, Lq, hd)
    outh = _bmm_nn(ctx, wo)             # (H, Lq, D)  per-head output projection
    return jnp.sum(outh, axis=0) + bo   # (Lq, D)


def _ffn(x, w1, b1, w2, b2):
    """Linear(D->DFF) -> ReLU -> Linear(DFF->D)."""
    h = jnp.maximum(_mm_nt(x, w1) + b1, 0.0)
    return _mm_nt(h, w2) + b2


# --------------------------- the fused kernel ---------------------------

def _fused_transformer_kernel(*refs):
    # ref layout: [enc_x, dec_x, look_ahead,
    #              *enc_weights (ENC_KEYS), *dec_weights (DEC_KEYS),
    #              final_w, final_b, out]
    enc_x_ref, dec_x_ref, la_ref = refs[0], refs[1], refs[2]
    off = 3
    enc_w = dict(zip(ENC_KEYS, refs[off:off + N_ENC])); off += N_ENC
    dec_w = dict(zip(DEC_KEYS, refs[off:off + N_DEC])); off += N_DEC
    fw_ref, fb_ref = refs[off], refs[off + 1]
    out_ref = refs[off + 2]

    la = la_ref[...]                          # (T, T) additive look-ahead mask

    # ---- encoder stack (mask is None in the reference forward()) ----
    enc = enc_x_ref[0].astype(jnp.float32)    # (S, D)
    for l in range(NUM_LAYERS):
        w = {k: enc_w[k][l] for k in ENC_KEYS}
        attn = _mha(enc, enc, w["wq"], w["wk"], w["wv"],
                    w["bq"], w["bk"], w["bv"], w["wo"], w["bo"], mask=None)
        out1 = _layer_norm(enc + attn, w["ln1g"], w["ln1b"])
        ff = _ffn(out1, w["w1"], w["b1"], w["w2"], w["b2"])
        enc = _layer_norm(out1 + ff, w["ln2g"], w["ln2b"])

    # ---- decoder stack (look-ahead mask on self-attn; no cross mask) ----
    dec = dec_x_ref[0].astype(jnp.float32)    # (T, D)
    for l in range(NUM_LAYERS):
        w = {k: dec_w[k][l] for k in DEC_KEYS}
        a1 = _mha(dec, dec, w["wq1"], w["wk1"], w["wv1"],
                  w["bq1"], w["bk1"], w["bv1"], w["wo1"], w["bo1"], mask=la)
        o1 = _layer_norm(dec + a1, w["ln1g"], w["ln1b"])
        a2 = _mha(o1, enc, w["wq2"], w["wk2"], w["wv2"],
                  w["bq2"], w["bk2"], w["bv2"], w["wo2"], w["bo2"], mask=None)
        o2 = _layer_norm(o1 + a2, w["ln2g"], w["ln2b"])
        ff = _ffn(o2, w["w1"], w["b1"], w["w2"], w["b2"])
        dec = _layer_norm(o2 + ff, w["ln3g"], w["ln3b"])

    # ---- final projection (vocab padded to lane-dense 128 columns) ----
    logits = _mm_nt(dec, fw_ref[...]) + fb_ref[...]   # (T, VOCAB_PAD)
    out_ref[0] = logits.astype(out_ref.dtype)


# --------------------------- wrapper (one pallas_call) ---------------------------

def transformer_forward(params, inp, tar):
    B, S = inp.shape
    T = tar.shape[1]
    D = D_MODEL

    # Embedding lookups are gathers -> plain JAX glue outside the kernel.
    enc_x = jnp.take(params["enc_emb"], inp, axis=0)    # (B, S, D)
    dec_x = jnp.take(params["dec_emb"], tar, axis=0)    # (B, T, D)

    # create_masks(): only the look-ahead mask is consumed by forward();
    # encoder mask / decoder padding mask are passed as None -> skipped.
    look_ahead = jnp.triu(jnp.full((T, T), NEG_INF, jnp.float32), k=1)

    enc_w = [params["enc"][k] for k in ENC_KEYS]
    dec_w = [params["dec"][k] for k in DEC_KEYS]

    def act_spec(L):
        return pl.BlockSpec((1, L, D), lambda b: (b, 0, 0))

    def full_spec(arr):
        nd = arr.ndim
        return pl.BlockSpec(arr.shape, lambda b, _nd=nd: (0,) * _nd)

    args = [enc_x, dec_x, look_ahead] + enc_w + dec_w \
         + [params["final_w"], params["final_b"]]
    in_specs = [act_spec(S), act_spec(T), full_spec(look_ahead)] \
             + [full_spec(a) for a in enc_w + dec_w] \
             + [full_spec(params["final_w"]), full_spec(params["final_b"])]

    logits_pad = pl.pallas_call(
        _fused_transformer_kernel,
        out_shape=jax.ShapeDtypeStruct((B, T, VOCAB_PAD), jnp.float32),
        grid=(B,),
        in_specs=in_specs,
        out_specs=pl.BlockSpec((1, T, VOCAB_PAD), lambda b: (b, 0, 0)),
        compiler_params=pltpu.CompilerParams(
            dimension_semantics=("parallel",),       # shard batch over v7x's 2 TCs
            vmem_limit_bytes=32 * 1024 * 1024,       # headroom over 16 MiB default
        ),
    )(*args)

    return logits_pad[..., :VOCAB]                   # (B, T, VOCAB)


# --------------------------- parameters ---------------------------

def init_params(key):
    keys = iter(jax.random.split(key, 256))

    def nrm(shape, scale=0.02):
        return (scale * jax.random.normal(next(keys), shape)).astype(jnp.float32)

    def attn_params(suffix=""):
        # Per-head ("heads batched") weight layout, prepared outside the kernel:
        #   w{q,k,v}[h, e, d] = W[h*hd + e, d]        (shape (H, hd, D))
        #   b{q,k,v}[h, 0, e] = b[h*hd + e]           (shape (H, 1, hd))
        #   wo[h, e, m]       = Wo[m, h*hd + e]       (shape (H, hd, D))
        wq = nrm((D_MODEL, D_MODEL)); wk = nrm((D_MODEL, D_MODEL))
        wv = nrm((D_MODEL, D_MODEL)); wo = nrm((D_MODEL, D_MODEL))
        d = {
            "wq": wq.reshape(NUM_HEADS, HEAD_DIM, D_MODEL),
            "wk": wk.reshape(NUM_HEADS, HEAD_DIM, D_MODEL),
            "wv": wv.reshape(NUM_HEADS, HEAD_DIM, D_MODEL),
            "bq": jnp.zeros((NUM_HEADS, 1, HEAD_DIM), jnp.float32),
            "bk": jnp.zeros((NUM_HEADS, 1, HEAD_DIM), jnp.float32),
            "bv": jnp.zeros((NUM_HEADS, 1, HEAD_DIM), jnp.float32),
            "wo": wo.T.reshape(NUM_HEADS, HEAD_DIM, D_MODEL),
            "bo": jnp.zeros((1, D_MODEL), jnp.float32),
        }
        return {k + suffix: v for k, v in d.items()}

    def ln_params(name):
        return {name + "g": jnp.ones((1, D_MODEL), jnp.float32),
                name + "b": jnp.zeros((1, D_MODEL), jnp.float32)}

    def ffn_params():
        return {"w1": nrm((DFF, D_MODEL)), "b1": jnp.zeros((1, DFF), jnp.float32),
                "w2": nrm((D_MODEL, DFF)), "b2": jnp.zeros((1, D_MODEL), jnp.float32)}

    def enc_layer():
        p = {}
        p.update(attn_params(""))
        p.update(ln_params("ln1")); p.update(ffn_params()); p.update(ln_params("ln2"))
        return p

    def dec_layer():
        p = {}
        p.update(attn_params("1")); p.update(ln_params("ln1"))
        p.update(attn_params("2")); p.update(ln_params("ln2"))
        p.update(ffn_params()); p.update(ln_params("ln3"))
        return p

    enc_layers = [enc_layer() for _ in range(NUM_LAYERS)]
    dec_layers = [dec_layer() for _ in range(NUM_LAYERS)]

    # Stack each per-layer parameter along a leading layer axis.
    enc = {k: jnp.stack([lp[k] for lp in enc_layers]) for k in ENC_KEYS}
    dec = {k: jnp.stack([lp[k] for lp in dec_layers]) for k in DEC_KEYS}

    # Final projection, zero-padded to a lane-dense 128-wide output.
    final_w = jnp.zeros((VOCAB_PAD, D_MODEL), jnp.float32).at[:VOCAB].set(
        nrm((VOCAB, D_MODEL)))
    final_b = jnp.zeros((1, VOCAB_PAD), jnp.float32)

    return {
        "enc_emb": nrm((VOCAB, D_MODEL), 1.0),
        "dec_emb": nrm((VOCAB, D_MODEL), 1.0),
        "enc": enc,
        "dec": dec,
        "final_w": final_w,
        "final_b": final_b,
    }


# --------------------------- main ---------------------------

if __name__ == "__main__":
    key = jax.random.PRNGKey(0)
    pkey, ikey, tkey = jax.random.split(key, 3)
    params = init_params(pkey)

    B, S, T = 2, 8, 8
    inp = jax.random.randint(ikey, (B, S), 1, VOCAB, dtype=jnp.int32)
    tar = jax.random.randint(tkey, (B, T), 1, VOCAB, dtype=jnp.int32)

    fwd = jax.jit(transformer_forward)
    out = fwd(params, inp, tar)
    jax.block_until_ready(out)

    assert out.shape == (B, T, VOCAB), out.shape
    assert bool(jnp.all(jnp.isfinite(out)))
    print("KERNEL_OK")
</pallas_src>

<mosaic_0001>
module attributes {stable_mosaic.version = 11 : i64} {
  func.func @_fused_transformer_kernel(%arg0: i32, %arg1: memref<1x8x128xf32, #tpu.memory_space<vmem>>, %arg2: memref<1x8x128xf32, #tpu.memory_space<vmem>>, %arg3: memref<8x8xf32, #tpu.memory_space<vmem>>, %arg4: memref<2x8x16x128xf32, #tpu.memory_space<vmem>>, %arg5: memref<2x8x16x128xf32, #tpu.memory_space<vmem>>, %arg6: memref<2x8x16x128xf32, #tpu.memory_space<vmem>>, %arg7: memref<2x8x1x16xf32, #tpu.memory_space<vmem>>, %arg8: memref<2x8x1x16xf32, #tpu.memory_space<vmem>>, %arg9: memref<2x8x1x16xf32, #tpu.memory_space<vmem>>, %arg10: memref<2x8x16x128xf32, #tpu.memory_space<vmem>>, %arg11: memref<2x1x128xf32, #tpu.memory_space<vmem>>, %arg12: memref<2x1x128xf32, #tpu.memory_space<vmem>>, %arg13: memref<2x1x128xf32, #tpu.memory_space<vmem>>, %arg14: memref<2x256x128xf32, #tpu.memory_space<vmem>>, %arg15: memref<2x1x256xf32, #tpu.memory_space<vmem>>, %arg16: memref<2x128x256xf32, #tpu.memory_space<vmem>>, %arg17: memref<2x1x128xf32, #tpu.memory_space<vmem>>, %arg18: memref<2x1x128xf32, #tpu.memory_space<vmem>>, %arg19: memref<2x1x128xf32, #tpu.memory_space<vmem>>, %arg20: memref<2x8x16x128xf32, #tpu.memory_space<vmem>>, %arg21: memref<2x8x16x128xf32, #tpu.memory_space<vmem>>, %arg22: memref<2x8x16x128xf32, #tpu.memory_space<vmem>>, %arg23: memref<2x8x1x16xf32, #tpu.memory_space<vmem>>, %arg24: memref<2x8x1x16xf32, #tpu.memory_space<vmem>>, %arg25: memref<2x8x1x16xf32, #tpu.memory_space<vmem>>, %arg26: memref<2x8x16x128xf32, #tpu.memory_space<vmem>>, %arg27: memref<2x1x128xf32, #tpu.memory_space<vmem>>, %arg28: memref<2x1x128xf32, #tpu.memory_space<vmem>>, %arg29: memref<2x1x128xf32, #tpu.memory_space<vmem>>, %arg30: memref<2x8x16x128xf32, #tpu.memory_space<vmem>>, %arg31: memref<2x8x16x128xf32, #tpu.memory_space<vmem>>, %arg32: memref<2x8x16x128xf32, #tpu.memory_space<vmem>>, %arg33: memref<2x8x1x16xf32, #tpu.memory_space<vmem>>, %arg34: memref<2x8x1x16xf32, #tpu.memory_space<vmem>>, %arg35: memref<2x8x1x16xf32, #tpu.memory_space<vmem>>, %arg36: memref<2x8x16x128xf32, #tpu.memory_space<vmem>>, %arg37: memref<2x1x128xf32, #tpu.memory_space<vmem>>, %arg38: memref<2x1x128xf32, #tpu.memory_space<vmem>>, %arg39: memref<2x1x128xf32, #tpu.memory_space<vmem>>, %arg40: memref<2x256x128xf32, #tpu.memory_space<vmem>>, %arg41: memref<2x1x256xf32, #tpu.memory_space<vmem>>, %arg42: memref<2x128x256xf32, #tpu.memory_space<vmem>>, %arg43: memref<2x1x128xf32, #tpu.memory_space<vmem>>, %arg44: memref<2x1x128xf32, #tpu.memory_space<vmem>>, %arg45: memref<2x1x128xf32, #tpu.memory_space<vmem>>, %arg46: memref<128x128xf32, #tpu.memory_space<vmem>>, %arg47: memref<1x128xf32, #tpu.memory_space<vmem>>, %arg48: memref<1x8x128xf32, #tpu.memory_space<vmem>>) attributes {dimension_semantics = [#tpu.dimension_semantics<parallel>], iteration_bounds = array<i64: 2>, scalar_prefetch = 0 : i64, scratch_operands = 0 : i64, tpu.core_type = #tpu.core_type<tc>, window_params = [{transform_indices = @transform_0, window_bounds = array<i64: 1, 8, 128>}, {transform_indices = @transform_1, window_bounds = array<i64: 1, 8, 128>}, {pipeline_mode = #tpu.pipeline_mode<synchronous>, transform_indices = @transform_2, window_bounds = array<i64: 8, 8>}, {pipeline_mode = #tpu.pipeline_mode<synchronous>, transform_indices = @transform_3, window_bounds = array<i64: 2, 8, 16, 128>}, {pipeline_mode = #tpu.pipeline_mode<synchronous>, transform_indices = @transform_4, window_bounds = array<i64: 2, 8, 16, 128>}, {pipeline_mode = #tpu.pipeline_mode<synchronous>, transform_indices = @transform_5, window_bounds = array<i64: 2, 8, 16, 128>}, {pipeline_mode = #tpu.pipeline_mode<synchronous>, transform_indices = @transform_6, window_bounds = array<i64: 2, 8, 1, 16>}, {pipeline_mode = #tpu.pipeline_mode<synchronous>, transform_indices = @transform_7, window_bounds = array<i64: 2, 8, 1, 16>}, {pipeline_mode = #tpu.pipeline_mode<synchronous>, transform_indices = @transform_8, window_bounds = array<i64: 2, 8, 1, 16>}, {pipeline_mode = #tpu.pipeline_mode<synchronous>, transform_indices = @transform_9, window_bounds = array<i64: 2, 8, 16, 128>}, {pipeline_mode = #tpu.pipeline_mode<synchronous>, transform_indices = @transform_10, window_bounds = array<i64: 2, 1, 128>}, {pipeline_mode = #tpu.pipeline_mode<synchronous>, transform_indices = @transform_11, window_bounds = array<i64: 2, 1, 128>}, {pipeline_mode = #tpu.pipeline_mode<synchronous>, transform_indices = @transform_12, window_bounds = array<i64: 2, 1, 128>}, {pipeline_mode = #tpu.pipeline_mode<synchronous>, transform_indices = @transform_13, window_bounds = array<i64: 2, 256, 128>}, {pipeline_mode = #tpu.pipeline_mode<synchronous>, transform_indices = @transform_14, window_bounds = array<i64: 2, 1, 256>}, {pipeline_mode = #tpu.pipeline_mode<synchronous>, transform_indices = @transform_15, window_bounds = array<i64: 2, 128, 256>}, {pipeline_mode = #tpu.pipeline_mode<synchronous>, transform_indices = @transform_16, window_bounds = array<i64: 2, 1, 128>}, {pipeline_mode = #tpu.pipeline_mode<synchronous>, transform_indices = @transform_17, window_bounds = array<i64: 2, 1, 128>}, {pipeline_mode = #tpu.pipeline_mode<synchronous>, transform_indices = @transform_18, window_bounds = array<i64: 2, 1, 128>}, {pipeline_mode = #tpu.pipeline_mode<synchronous>, transform_indices = @transform_19, window_bounds = array<i64: 2, 8, 16, 128>}, {pipeline_mode = #tpu.pipeline_mode<synchronous>, transform_indices = @transform_20, window_bounds = array<i64: 2, 8, 16, 128>}, {pipeline_mode = #tpu.pipeline_mode<synchronous>, transform_indices = @transform_21, window_bounds = array<i64: 2, 8, 16, 128>}, {pipeline_mode = #tpu.pipeline_mode<synchronous>, transform_indices = @transform_22, window_bounds = array<i64: 2, 8, 1, 16>}, {pipeline_mode = #tpu.pipeline_mode<synchronous>, transform_indices = @transform_23, window_bounds = array<i64: 2, 8, 1, 16>}, {pipeline_mode = #tpu.pipeline_mode<synchronous>, transform_indices = @transform_24, window_bounds = array<i64: 2, 8, 1, 16>}, {pipeline_mode = #tpu.pipeline_mode<synchronous>, transform_indices = @transform_25, window_bounds = array<i64: 2, 8, 16, 128>}, {pipeline_mode = #tpu.pipeline_mode<synchronous>, transform_indices = @transform_26, window_bounds = array<i64: 2, 1, 128>}, {pipeline_mode = #tpu.pipeline_mode<synchronous>, transform_indices = @transform_27, window_bounds = array<i64: 2, 1, 128>}, {pipeline_mode = #tpu.pipeline_mode<synchronous>, transform_indices = @transform_28, window_bounds = array<i64: 2, 1, 128>}, {pipeline_mode = #tpu.pipeline_mode<synchronous>, transform_indices = @transform_29, window_bounds = array<i64: 2, 8, 16, 128>}, {pipeline_mode = #tpu.pipeline_mode<synchronous>, transform_indices = @transform_30, window_bounds = array<i64: 2, 8, 16, 128>}, {pipeline_mode = #tpu.pipeline_mode<synchronous>, transform_indices = @transform_31, window_bounds = array<i64: 2, 8, 16, 128>}, {pipeline_mode = #tpu.pipeline_mode<synchronous>, transform_indices = @transform_32, window_bounds = array<i64: 2, 8, 1, 16>}, {pipeline_mode = #tpu.pipeline_mode<synchronous>, transform_indices = @transform_33, window_bounds = array<i64: 2, 8, 1, 16>}, {pipeline_mode = #tpu.pipeline_mode<synchronous>, transform_indices = @transform_34, window_bounds = array<i64: 2, 8, 1, 16>}, {pipeline_mode = #tpu.pipeline_mode<synchronous>, transform_indices = @transform_35, window_bounds = array<i64: 2, 8, 16, 128>}, {pipeline_mode = #tpu.pipeline_mode<synchronous>, transform_indices = @transform_36, window_bounds = array<i64: 2, 1, 128>}, {pipeline_mode = #tpu.pipeline_mode<synchronous>, transform_indices = @transform_37, window_bounds = array<i64: 2, 1, 128>}, {pipeline_mode = #tpu.pipeline_mode<synchronous>, transform_indices = @transform_38, window_bounds = array<i64: 2, 1, 128>}, {pipeline_mode = #tpu.pipeline_mode<synchronous>, transform_indices = @transform_39, window_bounds = array<i64: 2, 256, 128>}, {pipeline_mode = #tpu.pipeline_mode<synchronous>, transform_indices = @transform_40, window_bounds = array<i64: 2, 1, 256>}, {pipeline_mode = #tpu.pipeline_mode<synchronous>, transform_indices = @transform_41, window_bounds = array<i64: 2, 128, 256>}, {pipeline_mode = #tpu.pipeline_mode<synchronous>, transform_indices = @transform_42, window_bounds = array<i64: 2, 1, 128>}, {pipeline_mode = #tpu.pipeline_mode<synchronous>, transform_indices = @transform_43, window_bounds = array<i64: 2, 1, 128>}, {pipeline_mode = #tpu.pipeline_mode<synchronous>, transform_indices = @transform_44, window_bounds = array<i64: 2, 1, 128>}, {pipeline_mode = #tpu.pipeline_mode<synchronous>, transform_indices = @transform_45, window_bounds = array<i64: 128, 128>}, {pipeline_mode = #tpu.pipeline_mode<synchronous>, transform_indices = @transform_46, window_bounds = array<i64: 1, 128>}, {transform_indices = @transform_47, window_bounds = array<i64: 1, 8, 128>}]} {
    %c0 = arith.constant 0 : index
    %c0_0 = arith.constant 0 : index
    %0 = vector.load %arg3[%c0, %c0_0] : memref<8x8xf32, #tpu.memory_space<vmem>>, vector<8x8xf32>
    %c0_1 = arith.constant 0 : index
    %c0_2 = arith.constant 0 : index
    %c0_3 = arith.constant 0 : index
    %1 = vector.load %arg1[%c0_1, %c0_2, %c0_3] : memref<1x8x128xf32, #tpu.memory_space<vmem>>, vector<1x8x128xf32>
    %2 = vector.shape_cast %1 : vector<1x8x128xf32> to vector<8x128xf32>
    %c0_4 = arith.constant 0 : index
    %c0_5 = arith.constant 0 : index
    %c0_6 = arith.constant 0 : index
    %c0_7 = arith.constant 0 : index
    %3 = vector.load %arg4[%c0_4, %c0_5, %c0_6, %c0_7] : memref<2x8x16x128xf32, #tpu.memory_space<vmem>>, vector<1x8x16x128xf32>
    %4 = vector.shape_cast %3 : vector<1x8x16x128xf32> to vector<8x16x128xf32>
    %c0_8 = arith.constant 0 : index
    %c0_9 = arith.constant 0 : index
    %c0_10 = arith.constant 0 : index
    %c0_11 = arith.constant 0 : index
    %5 = vector.load %arg5[%c0_8, %c0_9, %c0_10, %c0_11] : memref<2x8x16x128xf32, #tpu.memory_space<vmem>>, vector<1x8x16x128xf32>
    %6 = vector.shape_cast %5 : vector<1x8x16x128xf32> to vector<8x16x128xf32>
    %c0_12 = arith.constant 0 : index
    %c0_13 = arith.constant 0 : index
    %c0_14 = arith.constant 0 : index
    %c0_15 = arith.constant 0 : index
    %7 = vector.load %arg6[%c0_12, %c0_13, %c0_14, %c0_15] : memref<2x8x16x128xf32, #tpu.memory_space<vmem>>, vector<1x8x16x128xf32>
    %8 = vector.shape_cast %7 : vector<1x8x16x128xf32> to vector<8x16x128xf32>
    %c0_16 = arith.constant 0 : index
    %c0_17 = arith.constant 0 : index
    %c0_18 = arith.constant 0 : index
    %c0_19 = arith.constant 0 : index
    %9 = vector.load %arg7[%c0_16, %c0_17, %c0_18, %c0_19] : memref<2x8x1x16xf32, #tpu.memory_space<vmem>>, vector<1x8x1x16xf32>
    %10 = vector.shape_cast %9 : vector<1x8x1x16xf32> to vector<8x1x16xf32>
    %c0_20 = arith.constant 0 : index
    %c0_21 = arith.constant 0 : index
    %c0_22 = arith.constant 0 : index
    %c0_23 = arith.constant 0 : index
    %11 = vector.load %arg8[%c0_20, %c0_21, %c0_22, %c0_23] : memref<2x8x1x16xf32, #tpu.memory_space<vmem>>, vector<1x8x1x16xf32>
    %12 = vector.shape_cast %11 : vector<1x8x1x16xf32> to vector<8x1x16xf32>
    %c0_24 = arith.constant 0 : index
    %c0_25 = arith.constant 0 : index
    %c0_26 = arith.constant 0 : index
    %c0_27 = arith.constant 0 : index
    %13 = vector.load %arg9[%c0_24, %c0_25, %c0_26, %c0_27] : memref<2x8x1x16xf32, #tpu.memory_space<vmem>>, vector<1x8x1x16xf32>
    %14 = vector.shape_cast %13 : vector<1x8x1x16xf32> to vector<8x1x16xf32>
    %c0_28 = arith.constant 0 : index
    %c0_29 = arith.constant 0 : index
    %c0_30 = arith.constant 0 : index
    %c0_31 = arith.constant 0 : index
    %15 = vector.load %arg10[%c0_28, %c0_29, %c0_30, %c0_31] : memref<2x8x16x128xf32, #tpu.memory_space<vmem>>, vector<1x8x16x128xf32>
    %16 = vector.shape_cast %15 : vector<1x8x16x128xf32> to vector<8x16x128xf32>
    %c0_32 = arith.constant 0 : index
    %c0_33 = arith.constant 0 : index
    %c0_34 = arith.constant 0 : index
    %17 = vector.load %arg11[%c0_32, %c0_33, %c0_34] : memref<2x1x128xf32, #tpu.memory_space<vmem>>, vector<1x1x128xf32>
    %18 = vector.shape_cast %17 : vector<1x1x128xf32> to vector<1x128xf32>
    %c0_35 = arith.constant 0 : index
    %c0_36 = arith.constant 0 : index
    %c0_37 = arith.constant 0 : index
    %19 = vector.load %arg12[%c0_35, %c0_36, %c0_37] : memref<2x1x128xf32, #tpu.memory_space<vmem>>, vector<1x1x128xf32>
    %20 = vector.shape_cast %19 : vector<1x1x128xf32> to vector<1x128xf32>
    %c0_38 = arith.constant 0 : index
    %c0_39 = arith.constant 0 : index
    %c0_40 = arith.constant 0 : index
    %21 = vector.load %arg13[%c0_38, %c0_39, %c0_40] : memref<2x1x128xf32, #tpu.memory_space<vmem>>, vector<1x1x128xf32>
    %22 = vector.shape_cast %21 : vector<1x1x128xf32> to vector<1x128xf32>
    %c0_41 = arith.constant 0 : index
    %c0_42 = arith.constant 0 : index
    %c0_43 = arith.constant 0 : index
    %23 = vector.load %arg14[%c0_41, %c0_42, %c0_43] : memref<2x256x128xf32, #tpu.memory_space<vmem>>, vector<1x256x128xf32>
    %24 = vector.shape_cast %23 : vector<1x256x128xf32> to vector<256x128xf32>
    %c0_44 = arith.constant 0 : index
    %c0_45 = arith.constant 0 : index
    %c0_46 = arith.constant 0 : index
    %25 = vector.load %arg15[%c0_44, %c0_45, %c0_46] : memref<2x1x256xf32, #tpu.memory_space<vmem>>, vector<1x1x256xf32>
    %26 = vector.shape_cast %25 : vector<1x1x256xf32> to vector<1x256xf32>
    %c0_47 = arith.constant 0 : index
    %c0_48 = arith.constant 0 : index
    %c0_49 = arith.constant 0 : index
    %27 = vector.load %arg16[%c0_47, %c0_48, %c0_49] : memref<2x128x256xf32, #tpu.memory_space<vmem>>, vector<1x128x256xf32>
    %28 = vector.shape_cast %27 : vector<1x128x256xf32> to vector<128x256xf32>
    %c0_50 = arith.constant 0 : index
    %c0_51 = arith.constant 0 : index
    %c0_52 = arith.constant 0 : index
    %29 = vector.load %arg17[%c0_50, %c0_51, %c0_52] : memref<2x1x128xf32, #tpu.memory_space<vmem>>, vector<1x1x128xf32>
    %30 = vector.shape_cast %29 : vector<1x1x128xf32> to vector<1x128xf32>
    %c0_53 = arith.constant 0 : index
    %c0_54 = arith.constant 0 : index
    %c0_55 = arith.constant 0 : index
    %31 = vector.load %arg18[%c0_53, %c0_54, %c0_55] : memref<2x1x128xf32, #tpu.memory_space<vmem>>, vector<1x1x128xf32>
    %32 = vector.shape_cast %31 : vector<1x1x128xf32> to vector<1x128xf32>
    %c0_56 = arith.constant 0 : index
    %c0_57 = arith.constant 0 : index
    %c0_58 = arith.constant 0 : index
    %33 = vector.load %arg19[%c0_56, %c0_57, %c0_58] : memref<2x1x128xf32, #tpu.memory_space<vmem>>, vector<1x1x128xf32>
    %34 = vector.shape_cast %33 : vector<1x1x128xf32> to vector<1x128xf32>
    %35 = vector.shape_cast %2 : vector<8x128xf32> to vector<1x8x128xf32>
    %36 = vector.shape_cast %35 : vector<1x8x128xf32> to vector<1x8x128xf32>
    %37 = vector.broadcast %36 : vector<1x8x128xf32> to vector<8x8x128xf32>
    %38 = vector.shape_cast %2 : vector<8x128xf32> to vector<1x8x128xf32>
    %39 = vector.shape_cast %38 : vector<1x8x128xf32> to vector<1x8x128xf32>
    %40 = vector.broadcast %39 : vector<1x8x128xf32> to vector<8x8x128xf32>
    %cst = arith.constant dense<0.000000e+00> : vector<8x8x16xf32>
    %41 = tpu.matmul %37, %4, %cst {dimension_numbers = #tpu.dot_dimension_numbers<[2], [2], [1], [1], [0, 0, 0, 1, 1, 1], [0], [0]>} : vector<8x8x128xf32>, vector<8x16x128xf32>, vector<8x8x16xf32> -> vector<8x8x16xf32>
    %42 = vector.broadcast %10 : vector<8x1x16xf32> to vector<8x8x16xf32>
    %43 = arith.addf %41, %42 : vector<8x8x16xf32>
    %cst_59 = arith.constant dense<0.000000e+00> : vector<8x8x16xf32>
    %44 = tpu.matmul %40, %6, %cst_59 {dimension_numbers = #tpu.dot_dimension_numbers<[2], [2], [1], [1], [0, 0, 0, 1, 1, 1], [0], [0]>} : vector<8x8x128xf32>, vector<8x16x128xf32>, vector<8x8x16xf32> -> vector<8x8x16xf32>
    %45 = vector.broadcast %12 : vector<8x1x16xf32> to vector<8x8x16xf32>
    %46 = arith.addf %44, %45 : vector<8x8x16xf32>
    %cst_60 = arith.constant dense<0.000000e+00> : vector<8x8x16xf32>
    %47 = tpu.matmul %40, %8, %cst_60 {dimension_numbers = #tpu.dot_dimension_numbers<[2], [2], [1], [1], [0, 0, 0, 1, 1, 1], [0], [0]>} : vector<8x8x128xf32>, vector<8x16x128xf32>, vector<8x8x16xf32> -> vector<8x8x16xf32>
    %48 = vector.broadcast %14 : vector<8x1x16xf32> to vector<8x8x16xf32>
    %49 = arith.addf %47, %48 : vector<8x8x16xf32>
    %cst_61 = arith.constant dense<0.000000e+00> : vector<8x8x8xf32>
    %50 = tpu.matmul %43, %46, %cst_61 {dimension_numbers = #tpu.dot_dimension_numbers<[2], [2], [1], [1], [0, 0, 0, 1, 1, 1], [0], [0]>} : vector<8x8x16xf32>, vector<8x8x16xf32>, vector<8x8x8xf32> -> vector<8x8x8xf32>
    %cst_62 = arith.constant 2.500000e-01 : f32
    %51 = vector.broadcast %cst_62 : f32 to vector<8x8x8xf32>
    %52 = arith.mulf %50, %51 : vector<8x8x8xf32>
    %cst_63 = arith.constant dense<0xFF800000> : vector<8x8xf32>
    %53 = vector.multi_reduction <maximumf>, %52, %cst_63 [2] : vector<8x8x8xf32> to vector<8x8xf32>
    %54 = vector.shape_cast %53 : vector<8x8xf32> to vector<8x8x1xf32>
    %55 = vector.broadcast %54 : vector<8x8x1xf32> to vector<8x8x8xf32>
    %56 = arith.subf %52, %55 : vector<8x8x8xf32>
    %57 = math.exp %56 : vector<8x8x8xf32>
    %cst_64 = arith.constant dense<0.000000e+00> : vector<8x8xf32>
    %58 = vector.multi_reduction <add>, %57, %cst_64 [2] : vector<8x8x8xf32> to vector<8x8xf32>
    %59 = vector.shape_cast %58 : vector<8x8xf32> to vector<8x8x1xf32>
    %60 = tpu.reciprocal %59 {approx = true} : vector<8x8x1xf32> -> vector<8x8x1xf32>
    %61 = vector.broadcast %60 : vector<8x8x1xf32> to vector<8x8x8xf32>
    %62 = arith.mulf %57, %61 : vector<8x8x8xf32>
    %cst_65 = arith.constant dense<0.000000e+00> : vector<8x8x16xf32>
    %63 = tpu.matmul %62, %49, %cst_65 {dimension_numbers = #tpu.dot_dimension_numbers<[2], [1], [1], [2], [0, 0, 0, 1, 1, 2], [0], [0]>} : vector<8x8x8xf32>, vector<8x8x16xf32>, vector<8x8x16xf32> -> vector<8x8x16xf32>
    %cst_66 = arith.constant dense<0.000000e+00> : vector<8x8x128xf32>
    %64 = tpu.matmul %63, %16, %cst_66 {dimension_numbers = #tpu.dot_dimension_numbers<[2], [1], [1], [2], [0, 0, 0, 1, 1, 2], [0], [0]>} : vector<8x8x16xf32>, vector<8x16x128xf32>, vector<8x8x128xf32> -> vector<8x8x128xf32>
    %cst_67 = arith.constant dense<0.000000e+00> : vector<8x128xf32>
    %65 = vector.multi_reduction <add>, %64, %cst_67 [0] : vector<8x8x128xf32> to vector<8x128xf32>
    %66 = vector.broadcast %18 : vector<1x128xf32> to vector<8x128xf32>
    %67 = arith.addf %65, %66 : vector<8x128xf32>
    %68 = arith.addf %2, %67 : vector<8x128xf32>
    %cst_68 = arith.constant dense<0.000000e+00> : vector<8xf32>
    %69 = vector.multi_reduction <add>, %68, %cst_68 [1] : vector<8x128xf32> to vector<8xf32>
    %70 = vector.shape_cast %69 : vector<8xf32> to vector<8x1xf32>
    %cst_69 = arith.constant 1.280000e+02 : f32
    %71 = vector.broadcast %cst_69 : f32 to vector<8x1xf32>
    %72 = arith.divf %70, %71 : vector<8x1xf32>
    %73 = vector.broadcast %72 : vector<8x1xf32> to vector<8x128xf32>
    %74 = arith.subf %68, %73 : vector<8x128xf32>
    %75 = arith.mulf %74, %74 : vector<8x128xf32>
    %cst_70 = arith.constant dense<0.000000e+00> : vector<8xf32>
    %76 = vector.multi_reduction <add>, %75, %cst_70 [1] : vector<8x128xf32> to vector<8xf32>
    %77 = vector.shape_cast %76 : vector<8xf32> to vector<8x1xf32>
    %cst_71 = arith.constant 1.280000e+02 : f32
    %78 = vector.broadcast %cst_71 : f32 to vector<8x1xf32>
    %79 = arith.divf %77, %78 : vector<8x1xf32>
    %cst_72 = arith.constant 9.99999997E-7 : f32
    %80 = vector.broadcast %cst_72 : f32 to vector<8x1xf32>
    %81 = arith.addf %79, %80 : vector<8x1xf32>
    %82 = math.rsqrt %81 : vector<8x1xf32>
    %83 = vector.broadcast %82 : vector<8x1xf32> to vector<8x128xf32>
    %84 = arith.mulf %74, %83 : vector<8x128xf32>
    %85 = vector.broadcast %20 : vector<1x128xf32> to vector<8x128xf32>
    %86 = arith.mulf %84, %85 : vector<8x128xf32>
    %87 = vector.broadcast %22 : vector<1x128xf32> to vector<8x128xf32>
    %88 = arith.addf %86, %87 : vector<8x128xf32>
    %cst_73 = arith.constant dense<0.000000e+00> : vector<8x256xf32>
    %89 = tpu.matmul %88, %24, %cst_73 {dimension_numbers = #tpu.dot_dimension_numbers<[1], [1], [0], [0], [0, 0, 1, 0], [], []>} : vector<8x128xf32>, vector<256x128xf32>, vector<8x256xf32> -> vector<8x256xf32>
    %90 = vector.broadcast %26 : vector<1x256xf32> to vector<8x256xf32>
    %91 = arith.addf %89, %90 : vector<8x256xf32>
    %cst_74 = arith.constant 0.000000e+00 : f32
    %92 = vector.broadcast %cst_74 : f32 to vector<8x256xf32>
    %93 = arith.maximumf %91, %92 : vector<8x256xf32>
    %cst_75 = arith.constant dense<0.000000e+00> : vector<8x128xf32>
    %94 = tpu.matmul %93, %28, %cst_75 {dimension_numbers = #tpu.dot_dimension_numbers<[1], [1], [0], [0], [0, 0, 1, 0], [], []>} : vector<8x256xf32>, vector<128x256xf32>, vector<8x128xf32> -> vector<8x128xf32>
    %95 = vector.broadcast %30 : vector<1x128xf32> to vector<8x128xf32>
    %96 = arith.addf %94, %95 : vector<8x128xf32>
    %97 = arith.addf %88, %96 : vector<8x128xf32>
    %cst_76 = arith.constant dense<0.000000e+00> : vector<8xf32>
    %98 = vector.multi_reduction <add>, %97, %cst_76 [1] : vector<8x128xf32> to vector<8xf32>
    %99 = vector.shape_cast %98 : vector<8xf32> to vector<8x1xf32>
    %cst_77 = arith.constant 1.280000e+02 : f32
    %100 = vector.broadcast %cst_77 : f32 to vector<8x1xf32>
    %101 = arith.divf %99, %100 : vector<8x1xf32>
    %102 = vector.broadcast %101 : vector<8x1xf32> to vector<8x128xf32>
    %103 = arith.subf %97, %102 : vector<8x128xf32>
    %104 = arith.mulf %103, %103 : vector<8x128xf32>
    %cst_78 = arith.constant dense<0.000000e+00> : vector<8xf32>
    %105 = vector.multi_reduction <add>, %104, %cst_78 [1] : vector<8x128xf32> to vector<8xf32>
    %106 = vector.shape_cast %105 : vector<8xf32> to vector<8x1xf32>
    %cst_79 = arith.constant 1.280000e+02 : f32
    %107 = vector.broadcast %cst_79 : f32 to vector<8x1xf32>
    %108 = arith.divf %106, %107 : vector<8x1xf32>
    %cst_80 = arith.constant 9.99999997E-7 : f32
    %109 = vector.broadcast %cst_80 : f32 to vector<8x1xf32>
    %110 = arith.addf %108, %109 : vector<8x1xf32>
    %111 = math.rsqrt %110 : vector<8x1xf32>
    %112 = vector.broadcast %111 : vector<8x1xf32> to vector<8x128xf32>
    %113 = arith.mulf %103, %112 : vector<8x128xf32>
    %114 = vector.broadcast %32 : vector<1x128xf32> to vector<8x128xf32>
    %115 = arith.mulf %113, %114 : vector<8x128xf32>
    %116 = vector.broadcast %34 : vector<1x128xf32> to vector<8x128xf32>
    %117 = arith.addf %115, %116 : vector<8x128xf32>
    %c1 = arith.constant 1 : index
    %c0_81 = arith.constant 0 : index
    %c0_82 = arith.constant 0 : index
    %c0_83 = arith.constant 0 : index
    %118 = vector.load %arg4[%c1, %c0_81, %c0_82, %c0_83] : memref<2x8x16x128xf32, #tpu.memory_space<vmem>>, vector<1x8x16x128xf32>
    %119 = vector.shape_cast %118 : vector<1x8x16x128xf32> to vector<8x16x128xf32>
    %c1_84 = arith.constant 1 : index
    %c0_85 = arith.constant 0 : index
    %c0_86 = arith.constant 0 : index
    %c0_87 = arith.constant 0 : index
    %120 = vector.load %arg5[%c1_84, %c0_85, %c0_86, %c0_87] : memref<2x8x16x128xf32, #tpu.memory_space<vmem>>, vector<1x8x16x128xf32>
    %121 = vector.shape_cast %120 : vector<1x8x16x128xf32> to vector<8x16x128xf32>
    %c1_88 = arith.constant 1 : index
    %c0_89 = arith.constant 0 : index
    %c0_90 = arith.constant 0 : index
    %c0_91 = arith.constant 0 : index
    %122 = vector.load %arg6[%c1_88, %c0_89, %c0_90, %c0_91] : memref<2x8x16x128xf32, #tpu.memory_space<vmem>>, vector<1x8x16x128xf32>
    %123 = vector.shape_cast %122 : vector<1x8x16x128xf32> to vector<8x16x128xf32>
    %c1_92 = arith.constant 1 : index
    %c0_93 = arith.constant 0 : index
    %c0_94 = arith.constant 0 : index
    %c0_95 = arith.constant 0 : index
    %124 = vector.load %arg7[%c1_92, %c0_93, %c0_94, %c0_95] : memref<2x8x1x16xf32, #tpu.memory_space<vmem>>, vector<1x8x1x16xf32>
    %125 = vector.shape_cast %124 : vector<1x8x1x16xf32> to vector<8x1x16xf32>
    %c1_96 = arith.constant 1 : index
    %c0_97 = arith.constant 0 : index
    %c0_98 = arith.constant 0 : index
    %c0_99 = arith.constant 0 : index
    %126 = vector.load %arg8[%c1_96, %c0_97, %c0_98, %c0_99] : memref<2x8x1x16xf32, #tpu.memory_space<vmem>>, vector<1x8x1x16xf32>
    %127 = vector.shape_cast %126 : vector<1x8x1x16xf32> to vector<8x1x16xf32>
    %c1_100 = arith.constant 1 : index
    %c0_101 = arith.constant 0 : index
    %c0_102 = arith.constant 0 : index
    %c0_103 = arith.constant 0 : index
    %128 = vector.load %arg9[%c1_100, %c0_101, %c0_102, %c0_103] : memref<2x8x1x16xf32, #tpu.memory_space<vmem>>, vector<1x8x1x16xf32>
    %129 = vector.shape_cast %128 : vector<1x8x1x16xf32> to vector<8x1x16xf32>
    %c1_104 = arith.constant 1 : index
    %c0_105 = arith.constant 0 : index
    %c0_106 = arith.constant 0 : index
    %c0_107 = arith.constant 0 : index
    %130 = vector.load %arg10[%c1_104, %c0_105, %c0_106, %c0_107] : memref<2x8x16x128xf32, #tpu.memory_space<vmem>>, vector<1x8x16x128xf32>
    %131 = vector.shape_cast %130 : vector<1x8x16x128xf32> to vector<8x16x128xf32>
    %c1_108 = arith.constant 1 : index
    %c0_109 = arith.constant 0 : index
    %c0_110 = arith.constant 0 : index
    %132 = vector.load %arg11[%c1_108, %c0_109, %c0_110] : memref<2x1x128xf32, #tpu.memory_space<vmem>>, vector<1x1x128xf32>
    %133 = vector.shape_cast %132 : vector<1x1x128xf32> to vector<1x128xf32>
    %c1_111 = arith.constant 1 : index
    %c0_112 = arith.constant 0 : index
    %c0_113 = arith.constant 0 : index
    %134 = vector.load %arg12[%c1_111, %c0_112, %c0_113] : memref<2x1x128xf32, #tpu.memory_space<vmem>>, vector<1x1x128xf32>
    %135 = vector.shape_cast %134 : vector<1x1x128xf32> to vector<1x128xf32>
    %c1_114 = arith.constant 1 : index
    %c0_115 = arith.constant 0 : index
    %c0_116 = arith.constant 0 : index
    %136 = vector.load %arg13[%c1_114, %c0_115, %c0_116] : memref<2x1x128xf32, #tpu.memory_space<vmem>>, vector<1x1x128xf32>
    %137 = vector.shape_cast %136 : vector<1x1x128xf32> to vector<1x128xf32>
    %c1_117 = arith.constant 1 : index
    %c0_118 = arith.constant 0 : index
    %c0_119 = arith.constant 0 : index
    %138 = vector.load %arg14[%c1_117, %c0_118, %c0_119] : memref<2x256x128xf32, #tpu.memory_space<vmem>>, vector<1x256x128xf32>
    %139 = vector.shape_cast %138 : vector<1x256x128xf32> to vector<256x128xf32>
    %c1_120 = arith.constant 1 : index
    %c0_121 = arith.constant 0 : index
    %c0_122 = arith.constant 0 : index
    %140 = vector.load %arg15[%c1_120, %c0_121, %c0_122] : memref<2x1x256xf32, #tpu.memory_space<vmem>>, vector<1x1x256xf32>
    %141 = vector.shape_cast %140 : vector<1x1x256xf32> to vector<1x256xf32>
    %c1_123 = arith.constant 1 : index
    %c0_124 = arith.constant 0 : index
    %c0_125 = arith.constant 0 : index
    %142 = vector.load %arg16[%c1_123, %c0_124, %c0_125] : memref<2x128x256xf32, #tpu.memory_space<vmem>>, vector<1x128x256xf32>
    %143 = vector.shape_cast %142 : vector<1x128x256xf32> to vector<128x256xf32>
    %c1_126 = arith.constant 1 : index
    %c0_127 = arith.constant 0 : index
    %c0_128 = arith.constant 0 : index
    %144 = vector.load %arg17[%c1_126, %c0_127, %c0_128] : memref<2x1x128xf32, #tpu.memory_space<vmem>>, vector<1x1x128xf32>
    %145 = vector.shape_cast %144 : vector<1x1x128xf32> to vector<1x128xf32>
    %c1_129 = arith.constant 1 : index
    %c0_130 = arith.constant 0 : index
    %c0_131 = arith.constant 0 : index
    %146 = vector.load %arg18[%c1_129, %c0_130, %c0_131] : memref<2x1x128xf32, #tpu.memory_space<vmem>>, vector<1x1x128xf32>
    %147 = vector.shape_cast %146 : vector<1x1x128xf32> to vector<1x128xf32>
    %c1_132 = arith.constant 1 : index
    %c0_133 = arith.constant 0 : index
    %c0_134 = arith.constant 0 : index
    %148 = vector.load %arg19[%c1_132, %c0_133, %c0_134] : memref<2x1x128xf32, #tpu.memory_space<vmem>>, vector<1x1x128xf32>
    %149 = vector.shape_cast %148 : vector<1x1x128xf32> to vector<1x128xf32>
    %150 = vector.shape_cast %117 : vector<8x128xf32> to vector<1x8x128xf32>
    %151 = vector.shape_cast %150 : vector<1x8x128xf32> to vector<1x8x128xf32>
    %152 = vector.broadcast %151 : vector<1x8x128xf32> to vector<8x8x128xf32>
    %153 = vector.shape_cast %117 : vector<8x128xf32> to vector<1x8x128xf32>
    %154 = vector.shape_cast %153 : vector<1x8x128xf32> to vector<1x8x128xf32>
    %155 = vector.broadcast %154 : vector<1x8x128xf32> to vector<8x8x128xf32>
    %cst_135 = arith.constant dense<0.000000e+00> : vector<8x8x16xf32>
    %156 = tpu.matmul %152, %119, %cst_135 {dimension_numbers = #tpu.dot_dimension_numbers<[2], [2], [1], [1], [0, 0, 0, 1, 1, 1], [0], [0]>} : vector<8x8x128xf32>, vector<8x16x128xf32>, vector<8x8x16xf32> -> vector<8x8x16xf32>
    %157 = vector.broadcast %125 : vector<8x1x16xf32> to vector<8x8x16xf32>
    %158 = arith.addf %156, %157 : vector<8x8x16xf32>
    %cst_136 = arith.constant dense<0.000000e+00> : vector<8x8x16xf32>
    %159 = tpu.matmul %155, %121, %cst_136 {dimension_numbers = #tpu.dot_dimension_numbers<[2], [2], [1], [1], [0, 0, 0, 1, 1, 1], [0], [0]>} : vector<8x8x128xf32>, vector<8x16x128xf32>, vector<8x8x16xf32> -> vector<8x8x16xf32>
    %160 = vector.broadcast %127 : vector<8x1x16xf32> to vector<8x8x16xf32>
    %161 = arith.addf %159, %160 : vector<8x8x16xf32>
    %cst_137 = arith.constant dense<0.000000e+00> : vector<8x8x16xf32>
    %162 = tpu.matmul %155, %123, %cst_137 {dimension_numbers = #tpu.dot_dimension_numbers<[2], [2], [1], [1], [0, 0, 0, 1, 1, 1], [0], [0]>} : vector<8x8x128xf32>, vector<8x16x128xf32>, vector<8x8x16xf32> -> vector<8x8x16xf32>
    %163 = vector.broadcast %129 : vector<8x1x16xf32> to vector<8x8x16xf32>
    %164 = arith.addf %162, %163 : vector<8x8x16xf32>
    %cst_138 = arith.constant dense<0.000000e+00> : vector<8x8x8xf32>
    %165 = tpu.matmul %158, %161, %cst_138 {dimension_numbers = #tpu.dot_dimension_numbers<[2], [2], [1], [1], [0, 0, 0, 1, 1, 1], [0], [0]>} : vector<8x8x16xf32>, vector<8x8x16xf32>, vector<8x8x8xf32> -> vector<8x8x8xf32>
    %cst_139 = arith.constant 2.500000e-01 : f32
    %166 = vector.broadcast %cst_139 : f32 to vector<8x8x8xf32>
    %167 = arith.mulf %165, %166 : vector<8x8x8xf32>
    %cst_140 = arith.constant dense<0xFF800000> : vector<8x8xf32>
    %168 = vector.multi_reduction <maximumf>, %167, %cst_140 [2] : vector<8x8x8xf32> to vector<8x8xf32>
    %169 = vector.shape_cast %168 : vector<8x8xf32> to vector<8x8x1xf32>
    %170 = vector.broadcast %169 : vector<8x8x1xf32> to vector<8x8x8xf32>
    %171 = arith.subf %167, %170 : vector<8x8x8xf32>
    %172 = math.exp %171 : vector<8x8x8xf32>
    %cst_141 = arith.constant dense<0.000000e+00> : vector<8x8xf32>
    %173 = vector.multi_reduction <add>, %172, %cst_141 [2] : vector<8x8x8xf32> to vector<8x8xf32>
    %174 = vector.shape_cast %173 : vector<8x8xf32> to vector<8x8x1xf32>
    %175 = tpu.reciprocal %174 {approx = true} : vector<8x8x1xf32> -> vector<8x8x1xf32>
    %176 = vector.broadcast %175 : vector<8x8x1xf32> to vector<8x8x8xf32>
    %177 = arith.mulf %172, %176 : vector<8x8x8xf32>
    %cst_142 = arith.constant dense<0.000000e+00> : vector<8x8x16xf32>
    %178 = tpu.matmul %177, %164, %cst_142 {dimension_numbers = #tpu.dot_dimension_numbers<[2], [1], [1], [2], [0, 0, 0, 1, 1, 2], [0], [0]>} : vector<8x8x8xf32>, vector<8x8x16xf32>, vector<8x8x16xf32> -> vector<8x8x16xf32>
    %cst_143 = arith.constant dense<0.000000e+00> : vector<8x8x128xf32>
    %179 = tpu.matmul %178, %131, %cst_143 {dimension_numbers = #tpu.dot_dimension_numbers<[2], [1], [1], [2], [0, 0, 0, 1, 1, 2], [0], [0]>} : vector<8x8x16xf32>, vector<8x16x128xf32>, vector<8x8x128xf32> -> vector<8x8x128xf32>
    %cst_144 = arith.constant dense<0.000000e+00> : vector<8x128xf32>
    %180 = vector.multi_reduction <add>, %179, %cst_144 [0] : vector<8x8x128xf32> to vector<8x128xf32>
    %181 = vector.broadcast %133 : vector<1x128xf32> to vector<8x128xf32>
    %182 = arith.addf %180, %181 : vector<8x128xf32>
    %183 = arith.addf %117, %182 : vector<8x128xf32>
    %cst_145 = arith.constant dense<0.000000e+00> : vector<8xf32>
    %184 = vector.multi_reduction <add>, %183, %cst_145 [1] : vector<8x128xf32> to vector<8xf32>
    %185 = vector.shape_cast %184 : vector<8xf32> to vector<8x1xf32>
    %cst_146 = arith.constant 1.280000e+02 : f32
    %186 = vector.broadcast %cst_146 : f32 to vector<8x1xf32>
    %187 = arith.divf %185, %186 : vector<8x1xf32>
    %188 = vector.broadcast %187 : vector<8x1xf32> to vector<8x128xf32>
    %189 = arith.subf %183, %188 : vector<8x128xf32>
    %190 = arith.mulf %189, %189 : vector<8x128xf32>
    %cst_147 = arith.constant dense<0.000000e+00> : vector<8xf32>
    %191 = vector.multi_reduction <add>, %190, %cst_147 [1] : vector<8x128xf32> to vector<8xf32>
    %192 = vector.shape_cast %191 : vector<8xf32> to vector<8x1xf32>
    %cst_148 = arith.constant 1.280000e+02 : f32
    %193 = vector.broadcast %cst_148 : f32 to vector<8x1xf32>
    %194 = arith.divf %192, %193 : vector<8x1xf32>
    %cst_149 = arith.constant 9.99999997E-7 : f32
    %195 = vector.broadcast %cst_149 : f32 to vector<8x1xf32>
    %196 = arith.addf %194, %195 : vector<8x1xf32>
    %197 = math.rsqrt %196 : vector<8x1xf32>
    %198 = vector.broadcast %197 : vector<8x1xf32> to vector<8x128xf32>
    %199 = arith.mulf %189, %198 : vector<8x128xf32>
    %200 = vector.broadcast %135 : vector<1x128xf32> to vector<8x128xf32>
    %201 = arith.mulf %199, %200 : vector<8x128xf32>
    %202 = vector.broadcast %137 : vector<1x128xf32> to vector<8x128xf32>
    %203 = arith.addf %201, %202 : vector<8x128xf32>
    %cst_150 = arith.constant dense<0.000000e+00> : vector<8x256xf32>
    %204 = tpu.matmul %203, %139, %cst_150 {dimension_numbers = #tpu.dot_dimension_numbers<[1], [1], [0], [0], [0, 0, 1, 0], [], []>} : vector<8x128xf32>, vector<256x128xf32>, vector<8x256xf32> -> vector<8x256xf32>
    %205 = vector.broadcast %141 : vector<1x256xf32> to vector<8x256xf32>
    %206 = arith.addf %204, %205 : vector<8x256xf32>
    %cst_151 = arith.constant 0.000000e+00 : f32
    %207 = vector.broadcast %cst_151 : f32 to vector<8x256xf32>
    %208 = arith.maximumf %206, %207 : vector<8x256xf32>
    %cst_152 = arith.constant dense<0.000000e+00> : vector<8x128xf32>
    %209 = tpu.matmul %208, %143, %cst_152 {dimension_numbers = #tpu.dot_dimension_numbers<[1], [1], [0], [0], [0, 0, 1, 0], [], []>} : vector<8x256xf32>, vector<128x256xf32>, vector<8x128xf32> -> vector<8x128xf32>
    %210 = vector.broadcast %145 : vector<1x128xf32> to vector<8x128xf32>
    %211 = arith.addf %209, %210 : vector<8x128xf32>
    %212 = arith.addf %203, %211 : vector<8x128xf32>
    %cst_153 = arith.constant dense<0.000000e+00> : vector<8xf32>
    %213 = vector.multi_reduction <add>, %212, %cst_153 [1] : vector<8x128xf32> to vector<8xf32>
    %214 = vector.shape_cast %213 : vector<8xf32> to vector<8x1xf32>
    %cst_154 = arith.constant 1.280000e+02 : f32
    %215 = vector.broadcast %cst_154 : f32 to vector<8x1xf32>
    %216 = arith.divf %214, %215 : vector<8x1xf32>
    %217 = vector.broadcast %216 : vector<8x1xf32> to vector<8x128xf32>
    %218 = arith.subf %212, %217 : vector<8x128xf32>
    %219 = arith.mulf %218, %218 : vector<8x128xf32>
    %cst_155 = arith.constant dense<0.000000e+00> : vector<8xf32>
    %220 = vector.multi_reduction <add>, %219, %cst_155 [1] : vector<8x128xf32> to vector<8xf32>
    %221 = vector.shape_cast %220 : vector<8xf32> to vector<8x1xf32>
    %cst_156 = arith.constant 1.280000e+02 : f32
    %222 = vector.broadcast %cst_156 : f32 to vector<8x1xf32>
    %223 = arith.divf %221, %222 : vector<8x1xf32>
    %cst_157 = arith.constant 9.99999997E-7 : f32
    %224 = vector.broadcast %cst_157 : f32 to vector<8x1xf32>
    %225 = arith.addf %223, %224 : vector<8x1xf32>
    %226 = math.rsqrt %225 : vector<8x1xf32>
    %227 = vector.broadcast %226 : vector<8x1xf32> to vector<8x128xf32>
    %228 = arith.mulf %218, %227 : vector<8x128xf32>
    %229 = vector.broadcast %147 : vector<1x128xf32> to vector<8x128xf32>
    %230 = arith.mulf %228, %229 : vector<8x128xf32>
    %231 = vector.broadcast %149 : vector<1x128xf32> to vector<8x128xf32>
    %232 = arith.addf %230, %231 : vector<8x128xf32>
    %c0_158 = arith.constant 0 : index
    %c0_159 = arith.constant 0 : index
    %c0_160 = arith.constant 0 : index
    %233 = vector.load %arg2[%c0_158, %c0_159, %c0_160] : memref<1x8x128xf32, #tpu.memory_space<vmem>>, vector<1x8x128xf32>
    %234 = vector.shape_cast %233 : vector<1x8x128xf32> to vector<8x128xf32>
    %c0_161 = arith.constant 0 : index
    %c0_162 = arith.constant 0 : index
    %c0_163 = arith.constant 0 : index
    %c0_164 = arith.constant 0 : index
    %235 = vector.load %arg20[%c0_161, %c0_162, %c0_163, %c0_164] : memref<2x8x16x128xf32, #tpu.memory_space<vmem>>, vector<1x8x16x128xf32>
    %236 = vector.shape_cast %235 : vector<1x8x16x128xf32> to vector<8x16x128xf32>
    %c0_165 = arith.constant 0 : index
    %c0_166 = arith.constant 0 : index
    %c0_167 = arith.constant 0 : index
    %c0_168 = arith.constant 0 : index
    %237 = vector.load %arg21[%c0_165, %c0_166, %c0_167, %c0_168] : memref<2x8x16x128xf32, #tpu.memory_space<vmem>>, vector<1x8x16x128xf32>
    %238 = vector.shape_cast %237 : vector<1x8x16x128xf32> to vector<8x16x128xf32>
    %c0_169 = arith.constant 0 : index
    %c0_170 = arith.constant 0 : index
    %c0_171 = arith.constant 0 : index
    %c0_172 = arith.constant 0 : index
    %239 = vector.load %arg22[%c0_169, %c0_170, %c0_171, %c0_172] : memref<2x8x16x128xf32, #tpu.memory_space<vmem>>, vector<1x8x16x128xf32>
    %240 = vector.shape_cast %239 : vector<1x8x16x128xf32> to vector<8x16x128xf32>
    %c0_173 = arith.constant 0 : index
    %c0_174 = arith.constant 0 : index
    %c0_175 = arith.constant 0 : index
    %c0_176 = arith.constant 0 : index
    %241 = vector.load %arg23[%c0_173, %c0_174, %c0_175, %c0_176] : memref<2x8x1x16xf32, #tpu.memory_space<vmem>>, vector<1x8x1x16xf32>
    %242 = vector.shape_cast %241 : vector<1x8x1x16xf32> to vector<8x1x16xf32>
    %c0_177 = arith.constant 0 : index
    %c0_178 = arith.constant 0 : index
    %c0_179 = arith.constant 0 : index
    %c0_180 = arith.constant 0 : index
    %243 = vector.load %arg24[%c0_177, %c0_178, %c0_179, %c0_180] : memref<2x8x1x16xf32, #tpu.memory_space<vmem>>, vector<1x8x1x16xf32>
    %244 = vector.shape_cast %243 : vector<1x8x1x16xf32> to vector<8x1x16xf32>
    %c0_181 = arith.constant 0 : index
    %c0_182 = arith.constant 0 : index
    %c0_183 = arith.constant 0 : index
    %c0_184 = arith.constant 0 : index
    %245 = vector.load %arg25[%c0_181, %c0_182, %c0_183, %c0_184] : memref<2x8x1x16xf32, #tpu.memory_space<vmem>>, vector<1x8x1x16xf32>
    %246 = vector.shape_cast %245 : vector<1x8x1x16xf32> to vector<8x1x16xf32>
    %c0_185 = arith.constant 0 : index
    %c0_186 = arith.constant 0 : index
    %c0_187 = arith.constant 0 : index
    %c0_188 = arith.constant 0 : index
    %247 = vector.load %arg26[%c0_185, %c0_186, %c0_187, %c0_188] : memref<2x8x16x128xf32, #tpu.memory_space<vmem>>, vector<1x8x16x128xf32>
    %248 = vector.shape_cast %247 : vector<1x8x16x128xf32> to vector<8x16x128xf32>
    %c0_189 = arith.constant 0 : index
    %c0_190 = arith.constant 0 : index
    %c0_191 = arith.constant 0 : index
    %249 = vector.load %arg27[%c0_189, %c0_190, %c0_191] : memref<2x1x128xf32, #tpu.memory_space<vmem>>, vector<1x1x128xf32>
    %250 = vector.shape_cast %249 : vector<1x1x128xf32> to vector<1x128xf32>
    %c0_192 = arith.constant 0 : index
    %c0_193 = arith.constant 0 : index
    %c0_194 = arith.constant 0 : index
    %251 = vector.load %arg28[%c0_192, %c0_193, %c0_194] : memref<2x1x128xf32, #tpu.memory_space<vmem>>, vector<1x1x128xf32>
    %252 = vector.shape_cast %251 : vector<1x1x128xf32> to vector<1x128xf32>
    %c0_195 = arith.constant 0 : index
    %c0_196 = arith.constant 0 : index
    %c0_197 = arith.constant 0 : index
    %253 = vector.load %arg29[%c0_195, %c0_196, %c0_197] : memref<2x1x128xf32, #tpu.memory_space<vmem>>, vector<1x1x128xf32>
    %254 = vector.shape_cast %253 : vector<1x1x128xf32> to vector<1x128xf32>
    %c0_198 = arith.constant 0 : index
    %c0_199 = arith.constant 0 : index
    %c0_200 = arith.constant 0 : index
    %c0_201 = arith.constant 0 : index
    %255 = vector.load %arg30[%c0_198, %c0_199, %c0_200, %c0_201] : memref<2x8x16x128xf32, #tpu.memory_space<vmem>>, vector<1x8x16x128xf32>
    %256 = vector.shape_cast %255 : vector<1x8x16x128xf32> to vector<8x16x128xf32>
    %c0_202 = arith.constant 0 : index
    %c0_203 = arith.constant 0 : index
    %c0_204 = arith.constant 0 : index
    %c0_205 = arith.constant 0 : index
    %257 = vector.load %arg31[%c0_202, %c0_203, %c0_204, %c0_205] : memref<2x8x16x128xf32, #tpu.memory_space<vmem>>, vector<1x8x16x128xf32>
    %258 = vector.shape_cast %257 : vector<1x8x16x128xf32> to vector<8x16x128xf32>
    %c0_206 = arith.constant 0 : index
    %c0_207 = arith.constant 0 : index
    %c0_208 = arith.constant 0 : index
    %c0_209 = arith.constant 0 : index
    %259 = vector.load %arg32[%c0_206, %c0_207, %c0_208, %c0_209] : memref<2x8x16x128xf32, #tpu.memory_space<vmem>>, vector<1x8x16x128xf32>
    %260 = vector.shape_cast %259 : vector<1x8x16x128xf32> to vector<8x16x128xf32>
    %c0_210 = arith.constant 0 : index
    %c0_211 = arith.constant 0 : index
    %c0_212 = arith.constant 0 : index
    %c0_213 = arith.constant 0 : index
    %261 = vector.load %arg33[%c0_210, %c0_211, %c0_212, %c0_213] : memref<2x8x1x16xf32, #tpu.memory_space<vmem>>, vector<1x8x1x16xf32>
    %262 = vector.shape_cast %261 : vector<1x8x1x16xf32> to vector<8x1x16xf32>
    %c0_214 = arith.constant 0 : index
    %c0_215 = arith.constant 0 : index
    %c0_216 = arith.constant 0 : index
    %c0_217 = arith.constant 0 : index
    %263 = vector.load %arg34[%c0_214, %c0_215, %c0_216, %c0_217] : memref<2x8x1x16xf32, #tpu.memory_space<vmem>>, vector<1x8x1x16xf32>
    %264 = vector.shape_cast %263 : vector<1x8x1x16xf32> to vector<8x1x16xf32>
    %c0_218 = arith.constant 0 : index
    %c0_219 = arith.constant 0 : index
    %c0_220 = arith.constant 0 : index
    %c0_221 = arith.constant 0 : index
    %265 = vector.load %arg35[%c0_218, %c0_219, %c0_220, %c0_221] : memref<2x8x1x16xf32, #tpu.memory_space<vmem>>, vector<1x8x1x16xf32>
    %266 = vector.shape_cast %265 : vector<1x8x1x16xf32> to vector<8x1x16xf32>
    %c0_222 = arith.constant 0 : index
    %c0_223 = arith.constant 0 : index
    %c0_224 = arith.constant 0 : index
    %c0_225 = arith.constant 0 : index
    %267 = vector.load %arg36[%c0_222, %c0_223, %c0_224, %c0_225] : memref<2x8x16x128xf32, #tpu.memory_space<vmem>>, vector<1x8x16x128xf32>
    %268 = vector.shape_cast %267 : vector<1x8x16x128xf32> to vector<8x16x128xf32>
    %c0_226 = arith.constant 0 : index
    %c0_227 = arith.constant 0 : index
    %c0_228 = arith.constant 0 : index
    %269 = vector.load %arg37[%c0_226, %c0_227, %c0_228] : memref<2x1x128xf32, #tpu.memory_space<vmem>>, vector<1x1x128xf32>
    %270 = vector.shape_cast %269 : vector<1x1x128xf32> to vector<1x128xf32>
    %c0_229 = arith.constant 0 : index
    %c0_230 = arith.constant 0 : index
    %c0_231 = arith.constant 0 : index
    %271 = vector.load %arg38[%c0_229, %c0_230, %c0_231] : memref<2x1x128xf32, #tpu.memory_space<vmem>>, vector<1x1x128xf32>
    %272 = vector.shape_cast %271 : vector<1x1x128xf32> to vector<1x128xf32>
    %c0_232 = arith.constant 0 : index
    %c0_233 = arith.constant 0 : index
    %c0_234 = arith.constant 0 : index
    %273 = vector.load %arg39[%c0_232, %c0_233, %c0_234] : memref<2x1x128xf32, #tpu.memory_space<vmem>>, vector<1x1x128xf32>
    %274 = vector.shape_cast %273 : vector<1x1x128xf32> to vector<1x128xf32>
    %c0_235 = arith.constant 0 : index
    %c0_236 = arith.constant 0 : index
    %c0_237 = arith.constant 0 : index
    %275 = vector.load %arg40[%c0_235, %c0_236, %c0_237] : memref<2x256x128xf32, #tpu.memory_space<vmem>>, vector<1x256x128xf32>
    %276 = vector.shape_cast %275 : vector<1x256x128xf32> to vector<256x128xf32>
    %c0_238 = arith.constant 0 : index
    %c0_239 = arith.constant 0 : index
    %c0_240 = arith.constant 0 : index
    %277 = vector.load %arg41[%c0_238, %c0_239, %c0_240] : memref<2x1x256xf32, #tpu.memory_space<vmem>>, vector<1x1x256xf32>
    %278 = vector.shape_cast %277 : vector<1x1x256xf32> to vector<1x256xf32>
    %c0_241 = arith.constant 0 : index
    %c0_242 = arith.constant 0 : index
    %c0_243 = arith.constant 0 : index
    %279 = vector.load %arg42[%c0_241, %c0_242, %c0_243] : memref<2x128x256xf32, #tpu.memory_space<vmem>>, vector<1x128x256xf32>
    %280 = vector.shape_cast %279 : vector<1x128x256xf32> to vector<128x256xf32>
    %c0_244 = arith.constant 0 : index
    %c0_245 = arith.constant 0 : index
    %c0_246 = arith.constant 0 : index
    %281 = vector.load %arg43[%c0_244, %c0_245, %c0_246] : memref<2x1x128xf32, #tpu.memory_space<vmem>>, vector<1x1x128xf32>
    %282 = vector.shape_cast %281 : vector<1x1x128xf32> to vector<1x128xf32>
    %c0_247 = arith.constant 0 : index
    %c0_248 = arith.constant 0 : index
    %c0_249 = arith.constant 0 : index
    %283 = vector.load %arg44[%c0_247, %c0_248, %c0_249] : memref<2x1x128xf32, #tpu.memory_space<vmem>>, vector<1x1x128xf32>
    %284 = vector.shape_cast %283 : vector<1x1x128xf32> to vector<1x128xf32>
    %c0_250 = arith.constant 0 : index
    %c0_251 = arith.constant 0 : index
    %c0_252 = arith.constant 0 : index
    %285 = vector.load %arg45[%c0_250, %c0_251, %c0_252] : memref<2x1x128xf32, #tpu.memory_space<vmem>>, vector<1x1x128xf32>
    %286 = vector.shape_cast %285 : vector<1x1x128xf32> to vector<1x128xf32>
    %287 = vector.shape_cast %234 : vector<8x128xf32> to vector<1x8x128xf32>
    %288 = vector.shape_cast %287 : vector<1x8x128xf32> to vector<1x8x128xf32>
    %289 = vector.broadcast %288 : vector<1x8x128xf32> to vector<8x8x128xf32>
    %290 = vector.shape_cast %234 : vector<8x128xf32> to vector<1x8x128xf32>
    %291 = vector.shape_cast %290 : vector<1x8x128xf32> to vector<1x8x128xf32>
    %292 = vector.broadcast %291 : vector<1x8x128xf32> to vector<8x8x128xf32>
    %cst_253 = arith.constant dense<0.000000e+00> : vector<8x8x16xf32>
    %293 = tpu.matmul %289, %236, %cst_253 {dimension_numbers = #tpu.dot_dimension_numbers<[2], [2], [1], [1], [0, 0, 0, 1, 1, 1], [0], [0]>} : vector<8x8x128xf32>, vector<8x16x128xf32>, vector<8x8x16xf32> -> vector<8x8x16xf32>
    %294 = vector.broadcast %242 : vector<8x1x16xf32> to vector<8x8x16xf32>
    %295 = arith.addf %293, %294 : vector<8x8x16xf32>
    %cst_254 = arith.constant dense<0.000000e+00> : vector<8x8x16xf32>
    %296 = tpu.matmul %292, %238, %cst_254 {dimension_numbers = #tpu.dot_dimension_numbers<[2], [2], [1], [1], [0, 0, 0, 1, 1, 1], [0], [0]>} : vector<8x8x128xf32>, vector<8x16x128xf32>, vector<8x8x16xf32> -> vector<8x8x16xf32>
    %297 = vector.broadcast %244 : vector<8x1x16xf32> to vector<8x8x16xf32>
    %298 = arith.addf %296, %297 : vector<8x8x16xf32>
    %cst_255 = arith.constant dense<0.000000e+00> : vector<8x8x16xf32>
    %299 = tpu.matmul %292, %240, %cst_255 {dimension_numbers = #tpu.dot_dimension_numbers<[2], [2], [1], [1], [0, 0, 0, 1, 1, 1], [0], [0]>} : vector<8x8x128xf32>, vector<8x16x128xf32>, vector<8x8x16xf32> -> vector<8x8x16xf32>
    %300 = vector.broadcast %246 : vector<8x1x16xf32> to vector<8x8x16xf32>
    %301 = arith.addf %299, %300 : vector<8x8x16xf32>
    %cst_256 = arith.constant dense<0.000000e+00> : vector<8x8x8xf32>
    %302 = tpu.matmul %295, %298, %cst_256 {dimension_numbers = #tpu.dot_dimension_numbers<[2], [2], [1], [1], [0, 0, 0, 1, 1, 1], [0], [0]>} : vector<8x8x16xf32>, vector<8x8x16xf32>, vector<8x8x8xf32> -> vector<8x8x8xf32>
    %cst_257 = arith.constant 2.500000e-01 : f32
    %303 = vector.broadcast %cst_257 : f32 to vector<8x8x8xf32>
    %304 = arith.mulf %302, %303 : vector<8x8x8xf32>
    %305 = vector.shape_cast %0 : vector<8x8xf32> to vector<1x8x8xf32>
    %306 = vector.broadcast %305 : vector<1x8x8xf32> to vector<8x8x8xf32>
    %307 = arith.addf %304, %306 : vector<8x8x8xf32>
    %cst_258 = arith.constant dense<0xFF800000> : vector<8x8xf32>
    %308 = vector.multi_reduction <maximumf>, %307, %cst_258 [2] : vector<8x8x8xf32> to vector<8x8xf32>
    %309 = vector.shape_cast %308 : vector<8x8xf32> to vector<8x8x1xf32>
    %310 = vector.broadcast %309 : vector<8x8x1xf32> to vector<8x8x8xf32>
    %311 = arith.subf %307, %310 : vector<8x8x8xf32>
    %312 = math.exp %311 : vector<8x8x8xf32>
    %cst_259 = arith.constant dense<0.000000e+00> : vector<8x8xf32>
    %313 = vector.multi_reduction <add>, %312, %cst_259 [2] : vector<8x8x8xf32> to vector<8x8xf32>
    %314 = vector.shape_cast %313 : vector<8x8xf32> to vector<8x8x1xf32>
    %315 = tpu.reciprocal %314 {approx = true} : vector<8x8x1xf32> -> vector<8x8x1xf32>
    %316 = vector.broadcast %315 : vector<8x8x1xf32> to vector<8x8x8xf32>
    %317 = arith.mulf %312, %316 : vector<8x8x8xf32>
    %cst_260 = arith.constant dense<0.000000e+00> : vector<8x8x16xf32>
    %318 = tpu.matmul %317, %301, %cst_260 {dimension_numbers = #tpu.dot_dimension_numbers<[2], [1], [1], [2], [0, 0, 0, 1, 1, 2], [0], [0]>} : vector<8x8x8xf32>, vector<8x8x16xf32>, vector<8x8x16xf32> -> vector<8x8x16xf32>
    %cst_261 = arith.constant dense<0.000000e+00> : vector<8x8x128xf32>
    %319 = tpu.matmul %318, %248, %cst_261 {dimension_numbers = #tpu.dot_dimension_numbers<[2], [1], [1], [2], [0, 0, 0, 1, 1, 2], [0], [0]>} : vector<8x8x16xf32>, vector<8x16x128xf32>, vector<8x8x128xf32> -> vector<8x8x128xf32>
    %cst_262 = arith.constant dense<0.000000e+00> : vector<8x128xf32>
    %320 = vector.multi_reduction <add>, %319, %cst_262 [0] : vector<8x8x128xf32> to vector<8x128xf32>
    %321 = vector.broadcast %250 : vector<1x128xf32> to vector<8x128xf32>
    %322 = arith.addf %320, %321 : vector<8x128xf32>
    %323 = arith.addf %234, %322 : vector<8x128xf32>
    %cst_263 = arith.constant dense<0.000000e+00> : vector<8xf32>
    %324 = vector.multi_reduction <add>, %323, %cst_263 [1] : vector<8x128xf32> to vector<8xf32>
    %325 = vector.shape_cast %324 : vector<8xf32> to vector<8x1xf32>
    %cst_264 = arith.constant 1.280000e+02 : f32
    %326 = vector.broadcast %cst_264 : f32 to vector<8x1xf32>
    %327 = arith.divf %325, %326 : vector<8x1xf32>
    %328 = vector.broadcast %327 : vector<8x1xf32> to vector<8x128xf32>
    %329 = arith.subf %323, %328 : vector<8x128xf32>
    %330 = arith.mulf %329, %329 : vector<8x128xf32>
    %cst_265 = arith.constant dense<0.000000e+00> : vector<8xf32>
    %331 = vector.multi_reduction <add>, %330, %cst_265 [1] : vector<8x128xf32> to vector<8xf32>
    %332 = vector.shape_cast %331 : vector<8xf32> to vector<8x1xf32>
    %cst_266 = arith.constant 1.280000e+02 : f32
    %333 = vector.broadcast %cst_266 : f32 to vector<8x1xf32>
    %334 = arith.divf %332, %333 : vector<8x1xf32>
    %cst_267 = arith.constant 9.99999997E-7 : f32
    %335 = vector.broadcast %cst_267 : f32 to vector<8x1xf32>
    %336 = arith.addf %334, %335 : vector<8x1xf32>
    %337 = math.rsqrt %336 : vector<8x1xf32>
    %338 = vector.broadcast %337 : vector<8x1xf32> to vector<8x128xf32>
    %339 = arith.mulf %329, %338 : vector<8x128xf32>
    %340 = vector.broadcast %252 : vector<1x128xf32> to vector<8x128xf32>
    %341 = arith.mulf %339, %340 : vector<8x128xf32>
    %342 = vector.broadcast %254 : vector<1x128xf32> to vector<8x128xf32>
    %343 = arith.addf %341, %342 : vector<8x128xf32>
    %344 = vector.shape_cast %343 : vector<8x128xf32> to vector<1x8x128xf32>
    %345 = vector.shape_cast %344 : vector<1x8x128xf32> to vector<1x8x128xf32>
    %346 = vector.broadcast %345 : vector<1x8x128xf32> to vector<8x8x128xf32>
    %347 = vector.shape_cast %232 : vector<8x128xf32> to vector<1x8x128xf32>
    %348 = vector.shape_cast %347 : vector<1x8x128xf32> to vector<1x8x128xf32>
    %349 = vector.broadcast %348 : vector<1x8x128xf32> to vector<8x8x128xf32>
    %cst_268 = arith.constant dense<0.000000e+00> : vector<8x8x16xf32>
    %350 = tpu.matmul %346, %256, %cst_268 {dimension_numbers = #tpu.dot_dimension_numbers<[2], [2], [1], [1], [0, 0, 0, 1, 1, 1], [0], [0]>} : vector<8x8x128xf32>, vector<8x16x128xf32>, vector<8x8x16xf32> -> vector<8x8x16xf32>
    %351 = vector.broadcast %262 : vector<8x1x16xf32> to vector<8x8x16xf32>
    %352 = arith.addf %350, %351 : vector<8x8x16xf32>
    %cst_269 = arith.constant dense<0.000000e+00> : vector<8x8x16xf32>
    %353 = tpu.matmul %349, %258, %cst_269 {dimension_numbers = #tpu.dot_dimension_numbers<[2], [2], [1], [1], [0, 0, 0, 1, 1, 1], [0], [0]>} : vector<8x8x128xf32>, vector<8x16x128xf32>, vector<8x8x16xf32> -> vector<8x8x16xf32>
    %354 = vector.broadcast %264 : vector<8x1x16xf32> to vector<8x8x16xf32>
    %355 = arith.addf %353, %354 : vector<8x8x16xf32>
    %cst_270 = arith.constant dense<0.000000e+00> : vector<8x8x16xf32>
    %356 = tpu.matmul %349, %260, %cst_270 {dimension_numbers = #tpu.dot_dimension_numbers<[2], [2], [1], [1], [0, 0, 0, 1, 1, 1], [0], [0]>} : vector<8x8x128xf32>, vector<8x16x128xf32>, vector<8x8x16xf32> -> vector<8x8x16xf32>
    %357 = vector.broadcast %266 : vector<8x1x16xf32> to vector<8x8x16xf32>
    %358 = arith.addf %356, %357 : vector<8x8x16xf32>
    %cst_271 = arith.constant dense<0.000000e+00> : vector<8x8x8xf32>
    %359 = tpu.matmul %352, %355, %cst_271 {dimension_numbers = #tpu.dot_dimension_numbers<[2], [2], [1], [1], [0, 0, 0, 1, 1, 1], [0], [0]>} : vector<8x8x16xf32>, vector<8x8x16xf32>, vector<8x8x8xf32> -> vector<8x8x8xf32>
    %cst_272 = arith.constant 2.500000e-01 : f32
    %360 = vector.broadcast %cst_272 : f32 to vector<8x8x8xf32>
    %361 = arith.mulf %359, %360 : vector<8x8x8xf32>
    %cst_273 = arith.constant dense<0xFF800000> : vector<8x8xf32>
    %362 = vector.multi_reduction <maximumf>, %361, %cst_273 [2] : vector<8x8x8xf32> to vector<8x8xf32>
    %363 = vector.shape_cast %362 : vector<8x8xf32> to vector<8x8x1xf32>
    %364 = vector.broadcast %363 : vector<8x8x1xf32> to vector<8x8x8xf32>
    %365 = arith.subf %361, %364 : vector<8x8x8xf32>
    %366 = math.exp %365 : vector<8x8x8xf32>
    %cst_274 = arith.constant dense<0.000000e+00> : vector<8x8xf32>
    %367 = vector.multi_reduction <add>, %366, %cst_274 [2] : vector<8x8x8xf32> to vector<8x8xf32>
    %368 = vector.shape_cast %367 : vector<8x8xf32> to vector<8x8x1xf32>
    %369 = tpu.reciprocal %368 {approx = true} : vector<8x8x1xf32> -> vector<8x8x1xf32>
    %370 = vector.broadcast %369 : vector<8x8x1xf32> to vector<8x8x8xf32>
    %371 = arith.mulf %366, %370 : vector<8x8x8xf32>
    %cst_275 = arith.constant dense<0.000000e+00> : vector<8x8x16xf32>
    %372 = tpu.matmul %371, %358, %cst_275 {dimension_numbers = #tpu.dot_dimension_numbers<[2], [1], [1], [2], [0, 0, 0, 1, 1, 2], [0], [0]>} : vector<8x8x8xf32>, vector<8x8x16xf32>, vector<8x8x16xf32> -> vector<8x8x16xf32>
    %cst_276 = arith.constant dense<0.000000e+00> : vector<8x8x128xf32>
    %373 = tpu.matmul %372, %268, %cst_276 {dimension_numbers = #tpu.dot_dimension_numbers<[2], [1], [1], [2], [0, 0, 0, 1, 1, 2], [0], [0]>} : vector<8x8x16xf32>, vector<8x16x128xf32>, vector<8x8x128xf32> -> vector<8x8x128xf32>
    %cst_277 = arith.constant dense<0.000000e+00> : vector<8x128xf32>
    %374 = vector.multi_reduction <add>, %373, %cst_277 [0] : vector<8x8x128xf32> to vector<8x128xf32>
    %375 = vector.broadcast %270 : vector<1x128xf32> to vector<8x128xf32>
    %376 = arith.addf %374, %375 : vector<8x128xf32>
    %377 = arith.addf %343, %376 : vector<8x128xf32>
    %cst_278 = arith.constant dense<0.000000e+00> : vector<8xf32>
    %378 = vector.multi_reduction <add>, %377, %cst_278 [1] : vector<8x128xf32> to vector<8xf32>
    %379 = vector.shape_cast %378 : vector<8xf32> to vector<8x1xf32>
    %cst_279 = arith.constant 1.280000e+02 : f32
    %380 = vector.broadcast %cst_279 : f32 to vector<8x1xf32>
    %381 = arith.divf %379, %380 : vector<8x1xf32>
    %382 = vector.broadcast %381 : vector<8x1xf32> to vector<8x128xf32>
    %383 = arith.subf %377, %382 : vector<8x128xf32>
    %384 = arith.mulf %383, %383 : vector<8x128xf32>
    %cst_280 = arith.constant dense<0.000000e+00> : vector<8xf32>
    %385 = vector.multi_reduction <add>, %384, %cst_280 [1] : vector<8x128xf32> to vector<8xf32>
    %386 = vector.shape_cast %385 : vector<8xf32> to vector<8x1xf32>
    %cst_281 = arith.constant 1.280000e+02 : f32
    %387 = vector.broadcast %cst_281 : f32 to vector<8x1xf32>
    %388 = arith.divf %386, %387 : vector<8x1xf32>
    %cst_282 = arith.constant 9.99999997E-7 : f32
    %389 = vector.broadcast %cst_282 : f32 to vector<8x1xf32>
    %390 = arith.addf %388, %389 : vector<8x1xf32>
    %391 = math.rsqrt %390 : vector<8x1xf32>
    %392 = vector.broadcast %391 : vector<8x1xf32> to vector<8x128xf32>
    %393 = arith.mulf %383, %392 : vector<8x128xf32>
    %394 = vector.broadcast %272 : vector<1x128xf32> to vector<8x128xf32>
    %395 = arith.mulf %393, %394 : vector<8x128xf32>
    %396 = vector.broadcast %274 : vector<1x128xf32> to vector<8x128xf32>
    %397 = arith.addf %395, %396 : vector<8x128xf32>
    %cst_283 = arith.constant dense<0.000000e+00> : vector<8x256xf32>
    %398 = tpu.matmul %397, %276, %cst_283 {dimension_numbers = #tpu.dot_dimension_numbers<[1], [1], [0], [0], [0, 0, 1, 0], [], []>} : vector<8x128xf32>, vector<256x128xf32>, vector<8x256xf32> -> vector<8x256xf32>
    %399 = vector.broadcast %278 : vector<1x256xf32> to vector<8x256xf32>
    %400 = arith.addf %398, %399 : vector<8x256xf32>
    %cst_284 = arith.constant 0.000000e+00 : f32
    %401 = vector.broadcast %cst_284 : f32 to vector<8x256xf32>
    %402 = arith.maximumf %400, %401 : vector<8x256xf32>
    %cst_285 = arith.constant dense<0.000000e+00> : vector<8x128xf32>
    %403 = tpu.matmul %402, %280, %cst_285 {dimension_numbers = #tpu.dot_dimension_numbers<[1], [1], [0], [0], [0, 0, 1, 0], [], []>} : vector<8x256xf32>, vector<128x256xf32>, vector<8x128xf32> -> vector<8x128xf32>
    %404 = vector.broadcast %282 : vector<1x128xf32> to vector<8x128xf32>
    %405 = arith.addf %403, %404 : vector<8x128xf32>
    %406 = arith.addf %397, %405 : vector<8x128xf32>
    %cst_286 = arith.constant dense<0.000000e+00> : vector<8xf32>
    %407 = vector.multi_reduction <add>, %406, %cst_286 [1] : vector<8x128xf32> to vector<8xf32>
    %408 = vector.shape_cast %407 : vector<8xf32> to vector<8x1xf32>
    %cst_287 = arith.constant 1.280000e+02 : f32
    %409 = vector.broadcast %cst_287 : f32 to vector<8x1xf32>
    %410 = arith.divf %408, %409 : vector<8x1xf32>
    %411 = vector.broadcast %410 : vector<8x1xf32> to vector<8x128xf32>
    %412 = arith.subf %406, %411 : vector<8x128xf32>
    %413 = arith.mulf %412, %412 : vector<8x128xf32>
    %cst_288 = arith.constant dense<0.000000e+00> : vector<8xf32>
    %414 = vector.multi_reduction <add>, %413, %cst_288 [1] : vector<8x128xf32> to vector<8xf32>
    %415 = vector.shape_cast %414 : vector<8xf32> to vector<8x1xf32>
    %cst_289 = arith.constant 1.280000e+02 : f32
    %416 = vector.broadcast %cst_289 : f32 to vector<8x1xf32>
    %417 = arith.divf %415, %416 : vector<8x1xf32>
    %cst_290 = arith.constant 9.99999997E-7 : f32
    %418 = vector.broadcast %cst_290 : f32 to vector<8x1xf32>
    %419 = arith.addf %417, %418 : vector<8x1xf32>
    %420 = math.rsqrt %419 : vector<8x1xf32>
    %421 = vector.broadcast %420 : vector<8x1xf32> to vector<8x128xf32>
    %422 = arith.mulf %412, %421 : vector<8x128xf32>
    %423 = vector.broadcast %284 : vector<1x128xf32> to vector<8x128xf32>
    %424 = arith.mulf %422, %423 : vector<8x128xf32>
    %425 = vector.broadcast %286 : vector<1x128xf32> to vector<8x128xf32>
    %426 = arith.addf %424, %425 : vector<8x128xf32>
    %c1_291 = arith.constant 1 : index
    %c0_292 = arith.constant 0 : index
    %c0_293 = arith.constant 0 : index
    %c0_294 = arith.constant 0 : index
    %427 = vector.load %arg20[%c1_291, %c0_292, %c0_293, %c0_294] : memref<2x8x16x128xf32, #tpu.memory_space<vmem>>, vector<1x8x16x128xf32>
    %428 = vector.shape_cast %427 : vector<1x8x16x128xf32> to vector<8x16x128xf32>
    %c1_295 = arith.constant 1 : index
    %c0_296 = arith.constant 0 : index
    %c0_297 = arith.constant 0 : index
    %c0_298 = arith.constant 0 : index
    %429 = vector.load %arg21[%c1_295, %c0_296, %c0_297, %c0_298] : memref<2x8x16x128xf32, #tpu.memory_space<vmem>>, vector<1x8x16x128xf32>
    %430 = vector.shape_cast %429 : vector<1x8x16x128xf32> to vector<8x16x128xf32>
    %c1_299 = arith.constant 1 : index
    %c0_300 = arith.constant 0 : index
    %c0_301 = arith.constant 0 : index
    %c0_302 = arith.constant 0 : index
    %431 = vector.load %arg22[%c1_299, %c0_300, %c0_301, %c0_302] : memref<2x8x16x128xf32, #tpu.memory_space<vmem>>, vector<1x8x16x128xf32>
    %432 = vector.shape_cast %431 : vector<1x8x16x128xf32> to vector<8x16x128xf32>
    %c1_303 = arith.constant 1 : index
    %c0_304 = arith.constant 0 : index
    %c0_305 = arith.constant 0 : index
    %c0_306 = arith.constant 0 : index
    %433 = vector.load %arg23[%c1_303, %c0_304, %c0_305, %c0_306] : memref<2x8x1x16xf32, #tpu.memory_space<vmem>>, vector<1x8x1x16xf32>
    %434 = vector.shape_cast %433 : vector<1x8x1x16xf32> to vector<8x1x16xf32>
    %c1_307 = arith.constant 1 : index
    %c0_308 = arith.constant 0 : index
    %c0_309 = arith.constant 0 : index
    %c0_310 = arith.constant 0 : index
    %435 = vector.load %arg24[%c1_307, %c0_308, %c0_309, %c0_310] : memref<2x8x1x16xf32, #tpu.memory_space<vmem>>, vector<1x8x1x16xf32>
    %436 = vector.shape_cast %435 : vector<1x8x1x16xf32> to vector<8x1x16xf32>
    %c1_311 = arith.constant 1 : index
    %c0_312 = arith.constant 0 : index
    %c0_313 = arith.constant 0 : index
    %c0_314 = arith.constant 0 : index
    %437 = vector.load %arg25[%c1_311, %c0_312, %c0_313, %c0_314] : memref<2x8x1x16xf32, #tpu.memory_space<vmem>>, vector<1x8x1x16xf32>
    %438 = vector.shape_cast %437 : vector<1x8x1x16xf32> to vector<8x1x16xf32>
    %c1_315 = arith.constant 1 : index
    %c0_316 = arith.constant 0 : index
    %c0_317 = arith.constant 0 : index
    %c0_318 = arith.constant 0 : index
    %439 = vector.load %arg26[%c1_315, %c0_316, %c0_317, %c0_318] : memref<2x8x16x128xf32, #tpu.memory_space<vmem>>, vector<1x8x16x128xf32>
    %440 = vector.shape_cast %439 : vector<1x8x16x128xf32> to vector<8x16x128xf32>
    %c1_319 = arith.constant 1 : index
    %c0_320 = arith.constant 0 : index
    %c0_321 = arith.constant 0 : index
    %441 = vector.load %arg27[%c1_319, %c0_320, %c0_321] : memref<2x1x128xf32, #tpu.memory_space<vmem>>, vector<1x1x128xf32>
    %442 = vector.shape_cast %441 : vector<1x1x128xf32> to vector<1x128xf32>
    %c1_322 = arith.constant 1 : index
    %c0_323 = arith.constant 0 : index
    %c0_324 = arith.constant 0 : index
    %443 = vector.load %arg28[%c1_322, %c0_323, %c0_324] : memref<2x1x128xf32, #tpu.memory_space<vmem>>, vector<1x1x128xf32>
    %444 = vector.shape_cast %443 : vector<1x1x128xf32> to vector<1x128xf32>
    %c1_325 = arith.constant 1 : index
    %c0_326 = arith.constant 0 : index
    %c0_327 = arith.constant 0 : index
    %445 = vector.load %arg29[%c1_325, %c0_326, %c0_327] : memref<2x1x128xf32, #tpu.memory_space<vmem>>, vector<1x1x128xf32>
    %446 = vector.shape_cast %445 : vector<1x1x128xf32> to vector<1x128xf32>
    %c1_328 = arith.constant 1 : index
    %c0_329 = arith.constant 0 : index
    %c0_330 = arith.constant 0 : index
    %c0_331 = arith.constant 0 : index
    %447 = vector.load %arg30[%c1_328, %c0_329, %c0_330, %c0_331] : memref<2x8x16x128xf32, #tpu.memory_space<vmem>>, vector<1x8x16x128xf32>
    %448 = vector.shape_cast %447 : vector<1x8x16x128xf32> to vector<8x16x128xf32>
    %c1_332 = arith.constant 1 : index
    %c0_333 = arith.constant 0 : index
    %c0_334 = arith.constant 0 : index
    %c0_335 = arith.constant 0 : index
    %449 = vector.load %arg31[%c1_332, %c0_333, %c0_334, %c0_335] : memref<2x8x16x128xf32, #tpu.memory_space<vmem>>, vector<1x8x16x128xf32>
    %450 = vector.shape_cast %449 : vector<1x8x16x128xf32> to vector<8x16x128xf32>
    %c1_336 = arith.constant 1 : index
    %c0_337 = arith.constant 0 : index
    %c0_338 = arith.constant 0 : index
    %c0_339 = arith.constant 0 : index
    %451 = vector.load %arg32[%c1_336, %c0_337, %c0_338, %c0_339] : memref<2x8x16x128xf32, #tpu.memory_space<vmem>>, vector<1x8x16x128xf32>
    %452 = vector.shape_cast %451 : vector<1x8x16x128xf32> to vector<8x16x128xf32>
    %c1_340 = arith.constant 1 : index
    %c0_341 = arith.constant 0 : index
    %c0_342 = arith.constant 0 : index
    %c0_343 = arith.constant 0 : index
    %453 = vector.load %arg33[%c1_340, %c0_341, %c0_342, %c0_343] : memref<2x8x1x16xf32, #tpu.memory_space<vmem>>, vector<1x8x1x16xf32>
    %454 = vector.shape_cast %453 : vector<1x8x1x16xf32> to vector<8x1x16xf32>
    %c1_344 = arith.constant 1 : index
    %c0_345 = arith.constant 0 : index
    %c0_346 = arith.constant 0 : index
    %c0_347 = arith.constant 0 : index
    %455 = vector.load %arg34[%c1_344, %c0_345, %c0_346, %c0_347] : memref<2x8x1x16xf32, #tpu.memory_space<vmem>>, vector<1x8x1x16xf32>
    %456 = vector.shape_cast %455 : vector<1x8x1x16xf32> to vector<8x1x16xf32>
    %c1_348 = arith.constant 1 : index
    %c0_349 = arith.constant 0 : index
    %c0_350 = arith.constant 0 : index
    %c0_351 = arith.constant 0 : index
    %457 = vector.load %arg35[%c1_348, %c0_349, %c0_350, %c0_351] : memref<2x8x1x16xf32, #tpu.memory_space<vmem>>, vector<1x8x1x16xf32>
    %458 = vector.shape_cast %457 : vector<1x8x1x16xf32> to vector<8x1x16xf32>
    %c1_352 = arith.constant 1 : index
    %c0_353 = arith.constant 0 : index
    %c0_354 = arith.constant 0 : index
    %c0_355 = arith.constant 0 : index
    %459 = vector.load %arg36[%c1_352, %c0_353, %c0_354, %c0_355] : memref<2x8x16x128xf32, #tpu.memory_space<vmem>>, vector<1x8x16x128xf32>
    %460 = vector.shape_cast %459 : vector<1x8x16x128xf32> to vector<8x16x128xf32>
    %c1_356 = arith.constant 1 : index
    %c0_357 = arith.constant 0 : index
    %c0_358 = arith.constant 0 : index
    %461 = vector.load %arg37[%c1_356, %c0_357, %c0_358] : memref<2x1x128xf32, #tpu.memory_space<vmem>>, vector<1x1x128xf32>
    %462 = vector.shape_cast %461 : vector<1x1x128xf32> to vector<1x128xf32>
    %c1_359 = arith.constant 1 : index
    %c0_360 = arith.constant 0 : index
    %c0_361 = arith.constant 0 : index
    %463 = vector.load %arg38[%c1_359, %c0_360, %c0_361] : memref<2x1x128xf32, #tpu.memory_space<vmem>>, vector<1x1x128xf32>
    %464 = vector.shape_cast %463 : vector<1x1x128xf32> to vector<1x128xf32>
    %c1_362 = arith.constant 1 : index
    %c0_363 = arith.constant 0 : index
    %c0_364 = arith.constant 0 : index
    %465 = vector.load %arg39[%c1_362, %c0_363, %c0_364] : memref<2x1x128xf32, #tpu.memory_space<vmem>>, vector<1x1x128xf32>
    %466 = vector.shape_cast %465 : vector<1x1x128xf32> to vector<1x128xf32>
    %c1_365 = arith.constant 1 : index
    %c0_366 = arith.constant 0 : index
    %c0_367 = arith.constant 0 : index
    %467 = vector.load %arg40[%c1_365, %c0_366, %c0_367] : memref<2x256x128xf32, #tpu.memory_space<vmem>>, vector<1x256x128xf32>
    %468 = vector.shape_cast %467 : vector<1x256x128xf32> to vector<256x128xf32>
    %c1_368 = arith.constant 1 : index
    %c0_369 = arith.constant 0 : index
    %c0_370 = arith.constant 0 : index
    %469 = vector.load %arg41[%c1_368, %c0_369, %c0_370] : memref<2x1x256xf32, #tpu.memory_space<vmem>>, vector<1x1x256xf32>
    %470 = vector.shape_cast %469 : vector<1x1x256xf32> to vector<1x256xf32>
    %c1_371 = arith.constant 1 : index
    %c0_372 = arith.constant 0 : index
    %c0_373 = arith.constant 0 : index
    %471 = vector.load %arg42[%c1_371, %c0_372, %c0_373] : memref<2x128x256xf32, #tpu.memory_space<vmem>>, vector<1x128x256xf32>
    %472 = vector.shape_cast %471 : vector<1x128x256xf32> to vector<128x256xf32>
    %c1_374 = arith.constant 1 : index
    %c0_375 = arith.constant 0 : index
    %c0_376 = arith.constant 0 : index
    %473 = vector.load %arg43[%c1_374, %c0_375, %c0_376] : memref<2x1x128xf32, #tpu.memory_space<vmem>>, vector<1x1x128xf32>
    %474 = vector.shape_cast %473 : vector<1x1x128xf32> to vector<1x128xf32>
    %c1_377 = arith.constant 1 : index
    %c0_378 = arith.constant 0 : index
    %c0_379 = arith.constant 0 : index
    %475 = vector.load %arg44[%c1_377, %c0_378, %c0_379] : memref<2x1x128xf32, #tpu.memory_space<vmem>>, vector<1x1x128xf32>
    %476 = vector.shape_cast %475 : vector<1x1x128xf32> to vector<1x128xf32>
    %c1_380 = arith.constant 1 : index
    %c0_381 = arith.constant 0 : index
    %c0_382 = arith.constant 0 : index
    %477 = vector.load %arg45[%c1_380, %c0_381, %c0_382] : memref<2x1x128xf32, #tpu.memory_space<vmem>>, vector<1x1x128xf32>
    %478 = vector.shape_cast %477 : vector<1x1x128xf32> to vector<1x128xf32>
    %479 = vector.shape_cast %426 : vector<8x128xf32> to vector<1x8x128xf32>
    %480 = vector.shape_cast %479 : vector<1x8x128xf32> to vector<1x8x128xf32>
    %481 = vector.broadcast %480 : vector<1x8x128xf32> to vector<8x8x128xf32>
    %482 = vector.shape_cast %426 : vector<8x128xf32> to vector<1x8x128xf32>
    %483 = vector.shape_cast %482 : vector<1x8x128xf32> to vector<1x8x128xf32>
    %484 = vector.broadcast %483 : vector<1x8x128xf32> to vector<8x8x128xf32>
    %cst_383 = arith.constant dense<0.000000e+00> : vector<8x8x16xf32>
    %485 = tpu.matmul %481, %428, %cst_383 {dimension_numbers = #tpu.dot_dimension_numbers<[2], [2], [1], [1], [0, 0, 0, 1, 1, 1], [0], [0]>} : vector<8x8x128xf32>, vector<8x16x128xf32>, vector<8x8x16xf32> -> vector<8x8x16xf32>
    %486 = vector.broadcast %434 : vector<8x1x16xf32> to vector<8x8x16xf32>
    %487 = arith.addf %485, %486 : vector<8x8x16xf32>
    %cst_384 = arith.constant dense<0.000000e+00> : vector<8x8x16xf32>
    %488 = tpu.matmul %484, %430, %cst_384 {dimension_numbers = #tpu.dot_dimension_numbers<[2], [2], [1], [1], [0, 0, 0, 1, 1, 1], [0], [0]>} : vector<8x8x128xf32>, vector<8x16x128xf32>, vector<8x8x16xf32> -> vector<8x8x16xf32>
    %489 = vector.broadcast %436 : vector<8x1x16xf32> to vector<8x8x16xf32>
    %490 = arith.addf %488, %489 : vector<8x8x16xf32>
    %cst_385 = arith.constant dense<0.000000e+00> : vector<8x8x16xf32>
    %491 = tpu.matmul %484, %432, %cst_385 {dimension_numbers = #tpu.dot_dimension_numbers<[2], [2], [1], [1], [0, 0, 0, 1, 1, 1], [0], [0]>} : vector<8x8x128xf32>, vector<8x16x128xf32>, vector<8x8x16xf32> -> vector<8x8x16xf32>
    %492 = vector.broadcast %438 : vector<8x1x16xf32> to vector<8x8x16xf32>
    %493 = arith.addf %491, %492 : vector<8x8x16xf32>
    %cst_386 = arith.constant dense<0.000000e+00> : vector<8x8x8xf32>
    %494 = tpu.matmul %487, %490, %cst_386 {dimension_numbers = #tpu.dot_dimension_numbers<[2], [2], [1], [1], [0, 0, 0, 1, 1, 1], [0], [0]>} : vector<8x8x16xf32>, vector<8x8x16xf32>, vector<8x8x8xf32> -> vector<8x8x8xf32>
    %cst_387 = arith.constant 2.500000e-01 : f32
    %495 = vector.broadcast %cst_387 : f32 to vector<8x8x8xf32>
    %496 = arith.mulf %494, %495 : vector<8x8x8xf32>
    %497 = vector.shape_cast %0 : vector<8x8xf32> to vector<1x8x8xf32>
    %498 = vector.broadcast %497 : vector<1x8x8xf32> to vector<8x8x8xf32>
    %499 = arith.addf %496, %498 : vector<8x8x8xf32>
    %cst_388 = arith.constant dense<0xFF800000> : vector<8x8xf32>
    %500 = vector.multi_reduction <maximumf>, %499, %cst_388 [2] : vector<8x8x8xf32> to vector<8x8xf32>
    %501 = vector.shape_cast %500 : vector<8x8xf32> to vector<8x8x1xf32>
    %502 = vector.broadcast %501 : vector<8x8x1xf32> to vector<8x8x8xf32>
    %503 = arith.subf %499, %502 : vector<8x8x8xf32>
    %504 = math.exp %503 : vector<8x8x8xf32>
    %cst_389 = arith.constant dense<0.000000e+00> : vector<8x8xf32>
    %505 = vector.multi_reduction <add>, %504, %cst_389 [2] : vector<8x8x8xf32> to vector<8x8xf32>
    %506 = vector.shape_cast %505 : vector<8x8xf32> to vector<8x8x1xf32>
    %507 = tpu.reciprocal %506 {approx = true} : vector<8x8x1xf32> -> vector<8x8x1xf32>
    %508 = vector.broadcast %507 : vector<8x8x1xf32> to vector<8x8x8xf32>
    %509 = arith.mulf %504, %508 : vector<8x8x8xf32>
    %cst_390 = arith.constant dense<0.000000e+00> : vector<8x8x16xf32>
    %510 = tpu.matmul %509, %493, %cst_390 {dimension_numbers = #tpu.dot_dimension_numbers<[2], [1], [1], [2], [0, 0, 0, 1, 1, 2], [0], [0]>} : vector<8x8x8xf32>, vector<8x8x16xf32>, vector<8x8x16xf32> -> vector<8x8x16xf32>
    %cst_391 = arith.constant dense<0.000000e+00> : vector<8x8x128xf32>
    %511 = tpu.matmul %510, %440, %cst_391 {dimension_numbers = #tpu.dot_dimension_numbers<[2], [1], [1], [2], [0, 0, 0, 1, 1, 2], [0], [0]>} : vector<8x8x16xf32>, vector<8x16x128xf32>, vector<8x8x128xf32> -> vector<8x8x128xf32>
    %cst_392 = arith.constant dense<0.000000e+00> : vector<8x128xf32>
    %512 = vector.multi_reduction <add>, %511, %cst_392 [0] : vector<8x8x128xf32> to vector<8x128xf32>
    %513 = vector.broadcast %442 : vector<1x128xf32> to vector<8x128xf32>
    %514 = arith.addf %512, %513 : vector<8x128xf32>
    %515 = arith.addf %426, %514 : vector<8x128xf32>
    %cst_393 = arith.constant dense<0.000000e+00> : vector<8xf32>
    %516 = vector.multi_reduction <add>, %515, %cst_393 [1] : vector<8x128xf32> to vector<8xf32>
    %517 = vector.shape_cast %516 : vector<8xf32> to vector<8x1xf32>
    %cst_394 = arith.constant 1.280000e+02 : f32
    %518 = vector.broadcast %cst_394 : f32 to vector<8x1xf32>
    %519 = arith.divf %517, %518 : vector<8x1xf32>
    %520 = vector.broadcast %519 : vector<8x1xf32> to vector<8x128xf32>
    %521 = arith.subf %515, %520 : vector<8x128xf32>
    %522 = arith.mulf %521, %521 : vector<8x128xf32>
    %cst_395 = arith.constant dense<0.000000e+00> : vector<8xf32>
    %523 = vector.multi_reduction <add>, %522, %cst_395 [1] : vector<8x128xf32> to vector<8xf32>
    %524 = vector.shape_cast %523 : vector<8xf32> to vector<8x1xf32>
    %cst_396 = arith.constant 1.280000e+02 : f32
    %525 = vector.broadcast %cst_396 : f32 to vector<8x1xf32>
    %526 = arith.divf %524, %525 : vector<8x1xf32>
    %cst_397 = arith.constant 9.99999997E-7 : f32
    %527 = vector.broadcast %cst_397 : f32 to vector<8x1xf32>
    %528 = arith.addf %526, %527 : vector<8x1xf32>
    %529 = math.rsqrt %528 : vector<8x1xf32>
    %530 = vector.broadcast %529 : vector<8x1xf32> to vector<8x128xf32>
    %531 = arith.mulf %521, %530 : vector<8x128xf32>
    %532 = vector.broadcast %444 : vector<1x128xf32> to vector<8x128xf32>
    %533 = arith.mulf %531, %532 : vector<8x128xf32>
    %534 = vector.broadcast %446 : vector<1x128xf32> to vector<8x128xf32>
    %535 = arith.addf %533, %534 : vector<8x128xf32>
    %536 = vector.shape_cast %535 : vector<8x128xf32> to vector<1x8x128xf32>
    %537 = vector.shape_cast %536 : vector<1x8x128xf32> to vector<1x8x128xf32>
    %538 = vector.broadcast %537 : vector<1x8x128xf32> to vector<8x8x128xf32>
    %539 = vector.shape_cast %232 : vector<8x128xf32> to vector<1x8x128xf32>
    %540 = vector.shape_cast %539 : vector<1x8x128xf32> to vector<1x8x128xf32>
    %541 = vector.broadcast %540 : vector<1x8x128xf32> to vector<8x8x128xf32>
    %cst_398 = arith.constant dense<0.000000e+00> : vector<8x8x16xf32>
    %542 = tpu.matmul %538, %448, %cst_398 {dimension_numbers = #tpu.dot_dimension_numbers<[2], [2], [1], [1], [0, 0, 0, 1, 1, 1], [0], [0]>} : vector<8x8x128xf32>, vector<8x16x128xf32>, vector<8x8x16xf32> -> vector<8x8x16xf32>
    %543 = vector.broadcast %454 : vector<8x1x16xf32> to vector<8x8x16xf32>
    %544 = arith.addf %542, %543 : vector<8x8x16xf32>
    %cst_399 = arith.constant dense<0.000000e+00> : vector<8x8x16xf32>
    %545 = tpu.matmul %541, %450, %cst_399 {dimension_numbers = #tpu.dot_dimension_numbers<[2], [2], [1], [1], [0, 0, 0, 1, 1, 1], [0], [0]>} : vector<8x8x128xf32>, vector<8x16x128xf32>, vector<8x8x16xf32> -> vector<8x8x16xf32>
    %546 = vector.broadcast %456 : vector<8x1x16xf32> to vector<8x8x16xf32>
    %547 = arith.addf %545, %546 : vector<8x8x16xf32>
    %cst_400 = arith.constant dense<0.000000e+00> : vector<8x8x16xf32>
    %548 = tpu.matmul %541, %452, %cst_400 {dimension_numbers = #tpu.dot_dimension_numbers<[2], [2], [1], [1], [0, 0, 0, 1, 1, 1], [0], [0]>} : vector<8x8x128xf32>, vector<8x16x128xf32>, vector<8x8x16xf32> -> vector<8x8x16xf32>
    %549 = vector.broadcast %458 : vector<8x1x16xf32> to vector<8x8x16xf32>
    %550 = arith.addf %548, %549 : vector<8x8x16xf32>
    %cst_401 = arith.constant dense<0.000000e+00> : vector<8x8x8xf32>
    %551 = tpu.matmul %544, %547, %cst_401 {dimension_numbers = #tpu.dot_dimension_numbers<[2], [2], [1], [1], [0, 0, 0, 1, 1, 1], [0], [0]>} : vector<8x8x16xf32>, vector<8x8x16xf32>, vector<8x8x8xf32> -> vector<8x8x8xf32>
    %cst_402 = arith.constant 2.500000e-01 : f32
    %552 = vector.broadcast %cst_402 : f32 to vector<8x8x8xf32>
    %553 = arith.mulf %551, %552 : vector<8x8x8xf32>
    %cst_403 = arith.constant dense<0xFF800000> : vector<8x8xf32>
    %554 = vector.multi_reduction <maximumf>, %553, %cst_403 [2] : vector<8x8x8xf32> to vector<8x8xf32>
    %555 = vector.shape_cast %554 : vector<8x8xf32> to vector<8x8x1xf32>
    %556 = vector.broadcast %555 : vector<8x8x1xf32> to vector<8x8x8xf32>
    %557 = arith.subf %553, %556 : vector<8x8x8xf32>
    %558 = math.exp %557 : vector<8x8x8xf32>
    %cst_404 = arith.constant dense<0.000000e+00> : vector<8x8xf32>
    %559 = vector.multi_reduction <add>, %558, %cst_404 [2] : vector<8x8x8xf32> to vector<8x8xf32>
    %560 = vector.shape_cast %559 : vector<8x8xf32> to vector<8x8x1xf32>
    %561 = tpu.reciprocal %560 {approx = true} : vector<8x8x1xf32> -> vector<8x8x1xf32>
    %562 = vector.broadcast %561 : vector<8x8x1xf32> to vector<8x8x8xf32>
    %563 = arith.mulf %558, %562 : vector<8x8x8xf32>
    %cst_405 = arith.constant dense<0.000000e+00> : vector<8x8x16xf32>
    %564 = tpu.matmul %563, %550, %cst_405 {dimension_numbers = #tpu.dot_dimension_numbers<[2], [1], [1], [2], [0, 0, 0, 1, 1, 2], [0], [0]>} : vector<8x8x8xf32>, vector<8x8x16xf32>, vector<8x8x16xf32> -> vector<8x8x16xf32>
    %cst_406 = arith.constant dense<0.000000e+00> : vector<8x8x128xf32>
    %565 = tpu.matmul %564, %460, %cst_406 {dimension_numbers = #tpu.dot_dimension_numbers<[2], [1], [1], [2], [0, 0, 0, 1, 1, 2], [0], [0]>} : vector<8x8x16xf32>, vector<8x16x128xf32>, vector<8x8x128xf32> -> vector<8x8x128xf32>
    %cst_407 = arith.constant dense<0.000000e+00> : vector<8x128xf32>
    %566 = vector.multi_reduction <add>, %565, %cst_407 [0] : vector<8x8x128xf32> to vector<8x128xf32>
    %567 = vector.broadcast %462 : vector<1x128xf32> to vector<8x128xf32>
    %568 = arith.addf %566, %567 : vector<8x128xf32>
    %569 = arith.addf %535, %568 : vector<8x128xf32>
    %cst_408 = arith.constant dense<0.000000e+00> : vector<8xf32>
    %570 = vector.multi_reduction <add>, %569, %cst_408 [1] : vector<8x128xf32> to vector<8xf32>
    %571 = vector.shape_cast %570 : vector<8xf32> to vector<8x1xf32>
    %cst_409 = arith.constant 1.280000e+02 : f32
    %572 = vector.broadcast %cst_409 : f32 to vector<8x1xf32>
    %573 = arith.divf %571, %572 : vector<8x1xf32>
    %574 = vector.broadcast %573 : vector<8x1xf32> to vector<8x128xf32>
    %575 = arith.subf %569, %574 : vector<8x128xf32>
    %576 = arith.mulf %575, %575 : vector<8x128xf32>
    %cst_410 = arith.constant dense<0.000000e+00> : vector<8xf32>
    %577 = vector.multi_reduction <add>, %576, %cst_410 [1] : vector<8x128xf32> to vector<8xf32>
    %578 = vector.shape_cast %577 : vector<8xf32> to vector<8x1xf32>
    %cst_411 = arith.constant 1.280000e+02 : f32
    %579 = vector.broadcast %cst_411 : f32 to vector<8x1xf32>
    %580 = arith.divf %578, %579 : vector<8x1xf32>
    %cst_412 = arith.constant 9.99999997E-7 : f32
    %581 = vector.broadcast %cst_412 : f32 to vector<8x1xf32>
    %582 = arith.addf %580, %581 : vector<8x1xf32>
    %583 = math.rsqrt %582 : vector<8x1xf32>
    %584 = vector.broadcast %583 : vector<8x1xf32> to vector<8x128xf32>
    %585 = arith.mulf %575, %584 : vector<8x128xf32>
    %586 = vector.broadcast %464 : vector<1x128xf32> to vector<8x128xf32>
    %587 = arith.mulf %585, %586 : vector<8x128xf32>
    %588 = vector.broadcast %466 : vector<1x128xf32> to vector<8x128xf32>
    %589 = arith.addf %587, %588 : vector<8x128xf32>
    %cst_413 = arith.constant dense<0.000000e+00> : vector<8x256xf32>
    %590 = tpu.matmul %589, %468, %cst_413 {dimension_numbers = #tpu.dot_dimension_numbers<[1], [1], [0], [0], [0, 0, 1, 0], [], []>} : vector<8x128xf32>, vector<256x128xf32>, vector<8x256xf32> -> vector<8x256xf32>
    %591 = vector.broadcast %470 : vector<1x256xf32> to vector<8x256xf32>
    %592 = arith.addf %590, %591 : vector<8x256xf32>
    %cst_414 = arith.constant 0.000000e+00 : f32
    %593 = vector.broadcast %cst_414 : f32 to vector<8x256xf32>
    %594 = arith.maximumf %592, %593 : vector<8x256xf32>
    %cst_415 = arith.constant dense<0.000000e+00> : vector<8x128xf32>
    %595 = tpu.matmul %594, %472, %cst_415 {dimension_numbers = #tpu.dot_dimension_numbers<[1], [1], [0], [0], [0, 0, 1, 0], [], []>} : vector<8x256xf32>, vector<128x256xf32>, vector<8x128xf32> -> vector<8x128xf32>
    %596 = vector.broadcast %474 : vector<1x128xf32> to vector<8x128xf32>
    %597 = arith.addf %595, %596 : vector<8x128xf32>
    %598 = arith.addf %589, %597 : vector<8x128xf32>
    %cst_416 = arith.constant dense<0.000000e+00> : vector<8xf32>
    %599 = vector.multi_reduction <add>, %598, %cst_416 [1] : vector<8x128xf32> to vector<8xf32>
    %600 = vector.shape_cast %599 : vector<8xf32> to vector<8x1xf32>
    %cst_417 = arith.constant 1.280000e+02 : f32
    %601 = vector.broadcast %cst_417 : f32 to vector<8x1xf32>
    %602 = arith.divf %600, %601 : vector<8x1xf32>
    %603 = vector.broadcast %602 : vector<8x1xf32> to vector<8x128xf32>
    %604 = arith.subf %598, %603 : vector<8x128xf32>
    %605 = arith.mulf %604, %604 : vector<8x128xf32>
    %cst_418 = arith.constant dense<0.000000e+00> : vector<8xf32>
    %606 = vector.multi_reduction <add>, %605, %cst_418 [1] : vector<8x128xf32> to vector<8xf32>
    %607 = vector.shape_cast %606 : vector<8xf32> to vector<8x1xf32>
    %cst_419 = arith.constant 1.280000e+02 : f32
    %608 = vector.broadcast %cst_419 : f32 to vector<8x1xf32>
    %609 = arith.divf %607, %608 : vector<8x1xf32>
    %cst_420 = arith.constant 9.99999997E-7 : f32
    %610 = vector.broadcast %cst_420 : f32 to vector<8x1xf32>
    %611 = arith.addf %609, %610 : vector<8x1xf32>
    %612 = math.rsqrt %611 : vector<8x1xf32>
    %613 = vector.broadcast %612 : vector<8x1xf32> to vector<8x128xf32>
    %614 = arith.mulf %604, %613 : vector<8x128xf32>
    %615 = vector.broadcast %476 : vector<1x128xf32> to vector<8x128xf32>
    %616 = arith.mulf %614, %615 : vector<8x128xf32>
    %617 = vector.broadcast %478 : vector<1x128xf32> to vector<8x128xf32>
    %618 = arith.addf %616, %617 : vector<8x128xf32>
    %c0_421 = arith.constant 0 : index
    %c0_422 = arith.constant 0 : index
    %619 = vector.load %arg46[%c0_421, %c0_422] : memref<128x128xf32, #tpu.memory_space<vmem>>, vector<128x128xf32>
    %cst_423 = arith.constant dense<0.000000e+00> : vector<8x128xf32>
    %620 = tpu.matmul %618, %619, %cst_423 {dimension_numbers = #tpu.dot_dimension_numbers<[1], [1], [0], [0], [0, 0, 1, 0], [], []>} : vector<8x128xf32>, vector<128x128xf32>, vector<8x128xf32> -> vector<8x128xf32>
    %c0_424 = arith.constant 0 : index
    %c0_425 = arith.constant 0 : index
    %621 = vector.load %arg47[%c0_424, %c0_425] : memref<1x128xf32, #tpu.memory_space<vmem>>, vector<1x128xf32>
    %622 = vector.broadcast %621 : vector<1x128xf32> to vector<8x128xf32>
    %623 = arith.addf %620, %622 : vector<8x128xf32>
    %c0_426 = arith.constant 0 : index
    %c0_427 = arith.constant 0 : index
    %c0_428 = arith.constant 0 : index
    %624 = vector.load %arg48[%c0_426, %c0_427, %c0_428] : memref<1x8x128xf32, #tpu.memory_space<vmem>>, vector<1x8x128xf32>
    %625 = vector.shape_cast %624 : vector<1x8x128xf32> to vector<8x128xf32>
    %626 = vector.shape_cast %623 : vector<8x128xf32> to vector<1x8x128xf32>
    tpu.vector_store %arg48[%c0_426, %c0_427, %c0_428], %626 {strides = array<i32>} : memref<1x8x128xf32, #tpu.memory_space<vmem>>, vector<1x8x128xf32>,
    return
  }
  func.func @transform_0(%arg0: i32) -> (i32, i32, i32) {
    %c0_i32 = arith.constant 0 : i32
    %c0_i32_0 = arith.constant 0 : i32
    %c0_i32_1 = arith.constant 0 : i32
    return %arg0, %c0_i32, %c0_i32_0 : i32, i32, i32
  }
  func.func @transform_1(%arg0: i32) -> (i32, i32, i32) {
    %c0_i32 = arith.constant 0 : i32
    %c0_i32_0 = arith.constant 0 : i32
    %c0_i32_1 = arith.constant 0 : i32
    return %arg0, %c0_i32, %c0_i32_0 : i32, i32, i32
  }
  func.func @transform_2(%arg0: i32) -> (i32, i32) {
    %c0_i32 = arith.constant 0 : i32
    %c0_i32_0 = arith.constant 0 : i32
    %c0_i32_1 = arith.constant 0 : i32
    return %c0_i32, %c0_i32_0 : i32, i32
  }
  func.func @transform_3(%arg0: i32) -> (i32, i32, i32, i32) {
    %c0_i32 = arith.constant 0 : i32
    %c0_i32_0 = arith.constant 0 : i32
    %c0_i32_1 = arith.constant 0 : i32
    %c0_i32_2 = arith.constant 0 : i32
    %c0_i32_3 = arith.constant 0 : i32
    return %c0_i32, %c0_i32_0, %c0_i32_1, %c0_i32_2 : i32, i32, i32, i32
  }
  func.func @transform_4(%arg0: i32) -> (i32, i32, i32, i32) {
    %c0_i32 = arith.constant 0 : i32
    %c0_i32_0 = arith.constant 0 : i32
    %c0_i32_1 = arith.constant 0 : i32
    %c0_i32_2 = arith.constant 0 : i32
    %c0_i32_3 = arith.constant 0 : i32
    return %c0_i32, %c0_i32_0, %c0_i32_1, %c0_i32_2 : i32, i32, i32, i32
  }
  func.func @transform_5(%arg0: i32) -> (i32, i32, i32, i32) {
    %c0_i32 = arith.constant 0 : i32
    %c0_i32_0 = arith.constant 0 : i32
    %c0_i32_1 = arith.constant 0 : i32
    %c0_i32_2 = arith.constant 0 : i32
    %c0_i32_3 = arith.constant 0 : i32
    return %c0_i32, %c0_i32_0, %c0_i32_1, %c0_i32_2 : i32, i32, i32, i32
  }
  func.func @transform_6(%arg0: i32) -> (i32, i32, i32, i32) {
    %c0_i32 = arith.constant 0 : i32
    %c0_i32_0 = arith.constant 0 : i32
    %c0_i32_1 = arith.constant 0 : i32
    %c0_i32_2 = arith.constant 0 : i32
    %c0_i32_3 = arith.constant 0 : i32
    return %c0_i32, %c0_i32_0, %c0_i32_1, %c0_i32_2 : i32, i32, i32, i32
  }
  func.func @transform_7(%arg0: i32) -> (i32, i32, i32, i32) {
    %c0_i32 = arith.constant 0 : i32
    %c0_i32_0 = arith.constant 0 : i32
    %c0_i32_1 = arith.constant 0 : i32
    %c0_i32_2 = arith.constant 0 : i32
    %c0_i32_3 = arith.constant 0 : i32
    return %c0_i32, %c0_i32_0, %c0_i32_1, %c0_i32_2 : i32, i32, i32, i32
  }
  func.func @transform_8(%arg0: i32) -> (i32, i32, i32, i32) {
    %c0_i32 = arith.constant 0 : i32
    %c0_i32_0 = arith.constant 0 : i32
    %c0_i32_1 = arith.constant 0 : i32
    %c0_i32_2 = arith.constant 0 : i32
    %c0_i32_3 = arith.constant 0 : i32
    return %c0_i32, %c0_i32_0, %c0_i32_1, %c0_i32_2 : i32, i32, i32, i32
  }
  func.func @transform_9(%arg0: i32) -> (i32, i32, i32, i32) {
    %c0_i32 = arith.constant 0 : i32
    %c0_i32_0 = arith.constant 0 : i32
    %c0_i32_1 = arith.constant 0 : i32
    %c0_i32_2 = arith.constant 0 : i32
    %c0_i32_3 = arith.constant 0 : i32
    return %c0_i32, %c0_i32_0, %c0_i32_1, %c0_i32_2 : i32, i32, i32, i32
  }
  func.func @transform_10(%arg0: i32) -> (i32, i32, i32) {
    %c0_i32 = arith.constant 0 : i32
    %c0_i32_0 = arith.constant 0 : i32
    %c0_i32_1 = arith.constant 0 : i32
    %c0_i32_2 = arith.constant 0 : i32
    return %c0_i32, %c0_i32_0, %c0_i32_1 : i32, i32, i32
  }
  func.func @transform_11(%arg0: i32) -> (i32, i32, i32) {
    %c0_i32 = arith.constant 0 : i32
    %c0_i32_0 = arith.constant 0 : i32
    %c0_i32_1 = arith.constant 0 : i32
    %c0_i32_2 = arith.constant 0 : i32
    return %c0_i32, %c0_i32_0, %c0_i32_1 : i32, i32, i32
  }
  func.func @transform_12(%arg0: i32) -> (i32, i32, i32) {
    %c0_i32 = arith.constant 0 : i32
    %c0_i32_0 = arith.constant 0 : i32
    %c0_i32_1 = arith.constant 0 : i32
    %c0_i32_2 = arith.constant 0 : i32
    return %c0_i32, %c0_i32_0, %c0_i32_1 : i32, i32, i32
  }
  func.func @transform_13(%arg0: i32) -> (i32, i32, i32) {
    %c0_i32 = arith.constant 0 : i32
    %c0_i32_0 = arith.constant 0 : i32
    %c0_i32_1 = arith.constant 0 : i32
    %c0_i32_2 = arith.constant 0 : i32
    return %c0_i32, %c0_i32_0, %c0_i32_1 : i32, i32, i32
  }
  func.func @transform_14(%arg0: i32) -> (i32, i32, i32) {
    %c0_i32 = arith.constant 0 : i32
    %c0_i32_0 = arith.constant 0 : i32
    %c0_i32_1 = arith.constant 0 : i32
    %c0_i32_2 = arith.constant 0 : i32
    return %c0_i32, %c0_i32_0, %c0_i32_1 : i32, i32, i32
  }
  func.func @transform_15(%arg0: i32) -> (i32, i32, i32) {
    %c0_i32 = arith.constant 0 : i32
    %c0_i32_0 = arith.constant 0 : i32
    %c0_i32_1 = arith.constant 0 : i32
    %c0_i32_2 = arith.constant 0 : i32
    return %c0_i32, %c0_i32_0, %c0_i32_1 : i32, i32, i32
  }
  func.func @transform_16(%arg0: i32) -> (i32, i32, i32) {
    %c0_i32 = arith.constant 0 : i32
    %c0_i32_0 = arith.constant 0 : i32
    %c0_i32_1 = arith.constant 0 : i32
    %c0_i32_2 = arith.constant 0 : i32
    return %c0_i32, %c0_i32_0, %c0_i32_1 : i32, i32, i32
  }
  func.func @transform_17(%arg0: i32) -> (i32, i32, i32) {
    %c0_i32 = arith.constant 0 : i32
    %c0_i32_0 = arith.constant 0 : i32
    %c0_i32_1 = arith.constant 0 : i32
    %c0_i32_2 = arith.constant 0 : i32
    return %c0_i32, %c0_i32_0, %c0_i32_1 : i32, i32, i32
  }
  func.func @transform_18(%arg0: i32) -> (i32, i32, i32) {
    %c0_i32 = arith.constant 0 : i32
    %c0_i32_0 = arith.constant 0 : i32
    %c0_i32_1 = arith.constant 0 : i32
    %c0_i32_2 = arith.constant 0 : i32
    return %c0_i32, %c0_i32_0, %c0_i32_1 : i32, i32, i32
  }
  func.func @transform_19(%arg0: i32) -> (i32, i32, i32, i32) {
    %c0_i32 = arith.constant 0 : i32
    %c0_i32_0 = arith.constant 0 : i32
    %c0_i32_1 = arith.constant 0 : i32
    %c0_i32_2 = arith.constant 0 : i32
    %c0_i32_3 = arith.constant 0 : i32
    return %c0_i32, %c0_i32_0, %c0_i32_1, %c0_i32_2 : i32, i32, i32, i32
  }
  func.func @transform_20(%arg0: i32) -> (i32, i32, i32, i32) {
    %c0_i32 = arith.constant 0 : i32
    %c0_i32_0 = arith.constant 0 : i32
    %c0_i32_1 = arith.constant 0 : i32
    %c0_i32_2 = arith.constant 0 : i32
    %c0_i32_3 = arith.constant 0 : i32
    return %c0_i32, %c0_i32_0, %c0_i32_1, %c0_i32_2 : i32, i32, i32, i32
  }
  func.func @transform_21(%arg0: i32) -> (i32, i32, i32, i32) {
    %c0_i32 = arith.constant 0 : i32
    %c0_i32_0 = arith.constant 0 : i32
    %c0_i32_1 = arith.constant 0 : i32
    %c0_i32_2 = arith.constant 0 : i32
    %c0_i32_3 = arith.constant 0 : i32
    return %c0_i32, %c0_i32_0, %c0_i32_1, %c0_i32_2 : i32, i32, i32, i32
  }
  func.func @transform_22(%arg0: i32) -> (i32, i32, i32, i32) {
    %c0_i32 = arith.constant 0 : i32
    %c0_i32_0 = arith.constant 0 : i32
    %c0_i32_1 = arith.constant 0 : i32
    %c0_i32_2 = arith.constant 0 : i32
    %c0_i32_3 = arith.constant 0 : i32
    return %c0_i32, %c0_i32_0, %c0_i32_1, %c0_i32_2 : i32, i32, i32, i32
  }
  func.func @transform_23(%arg0: i32) -> (i32, i32, i32, i32) {
    %c0_i32 = arith.constant 0 : i32
    %c0_i32_0 = arith.constant 0 : i32
    %c0_i32_1 = arith.constant 0 : i32
    %c0_i32_2 = arith.constant 0 : i32
    %c0_i32_3 = arith.constant 0 : i32
    return %c0_i32, %c0_i32_0, %c0_i32_1, %c0_i32_2 : i32, i32, i32, i32
  }
  func.func @transform_24(%arg0: i32) -> (i32, i32, i32, i32) {
    %c0_i32 = arith.constant 0 : i32
    %c0_i32_0 = arith.constant 0 : i32
    %c0_i32_1 = arith.constant 0 : i32
    %c0_i32_2 = arith.constant 0 : i32
    %c0_i32_3 = arith.constant 0 : i32
    return %c0_i32, %c0_i32_0, %c0_i32_1, %c0_i32_2 : i32, i32, i32, i32
  }
  func.func @transform_25(%arg0: i32) -> (i32, i32, i32, i32) {
    %c0_i32 = arith.constant 0 : i32
    %c0_i32_0 = arith.constant 0 : i32
    %c0_i32_1 = arith.constant 0 : i32
    %c0_i32_2 = arith.constant 0 : i32
    %c0_i32_3 = arith.constant 0 : i32
    return %c0_i32, %c0_i32_0, %c0_i32_1, %c0_i32_2 : i32, i32, i32, i32
  }
  func.func @transform_26(%arg0: i32) -> (i32, i32, i32) {
    %c0_i32 = arith.constant 0 : i32
    %c0_i32_0 = arith.constant 0 : i32
    %c0_i32_1 = arith.constant 0 : i32
    %c0_i32_2 = arith.constant 0 : i32
    return %c0_i32, %c0_i32_0, %c0_i32_1 : i32, i32, i32
  }
  func.func @transform_27(%arg0: i32) -> (i32, i32, i32) {
    %c0_i32 = arith.constant 0 : i32
    %c0_i32_0 = arith.constant 0 : i32
    %c0_i32_1 = arith.constant 0 : i32
    %c0_i32_2 = arith.constant 0 : i32
    return %c0_i32, %c0_i32_0, %c0_i32_1 : i32, i32, i32
  }
  func.func @transform_28(%arg0: i32) -> (i32, i32, i32) {
    %c0_i32 = arith.constant 0 : i32
    %c0_i32_0 = arith.constant 0 : i32
    %c0_i32_1 = arith.constant 0 : i32
    %c0_i32_2 = arith.constant 0 : i32
    return %c0_i32, %c0_i32_0, %c0_i32_1 : i32, i32, i32
  }
  func.func @transform_29(%arg0: i32) -> (i32, i32, i32, i32) {
    %c0_i32 = arith.constant 0 : i32
    %c0_i32_0 = arith.constant 0 : i32
    %c0_i32_1 = arith.constant 0 : i32
    %c0_i32_2 = arith.constant 0 : i32
    %c0_i32_3 = arith.constant 0 : i32
    return %c0_i32, %c0_i32_0, %c0_i32_1, %c0_i32_2 : i32, i32, i32, i32
  }
  func.func @transform_30(%arg0: i32) -> (i32, i32, i32, i32) {
    %c0_i32 = arith.constant 0 : i32
    %c0_i32_0 = arith.constant 0 : i32
    %c0_i32_1 = arith.constant 0 : i32
    %c0_i32_2 = arith.constant 0 : i32
    %c0_i32_3 = arith.constant 0 : i32
    return %c0_i32, %c0_i32_0, %c0_i32_1, %c0_i32_2 : i32, i32, i32, i32
  }
  func.func @transform_31(%arg0: i32) -> (i32, i32, i32, i32) {
    %c0_i32 = arith.constant 0 : i32
    %c0_i32_0 = arith.constant 0 : i32
    %c0_i32_1 = arith.constant 0 : i32
    %c0_i32_2 = arith.constant 0 : i32
    %c0_i32_3 = arith.constant 0 : i32
    return %c0_i32, %c0_i32_0, %c0_i32_1, %c0_i32_2 : i32, i32, i32, i32
  }
  func.func @transform_32(%arg0: i32) -> (i32, i32, i32, i32) {
    %c0_i32 = arith.constant 0 : i32
    %c0_i32_0 = arith.constant 0 : i32
    %c0_i32_1 = arith.constant 0 : i32
    %c0_i32_2 = arith.constant 0 : i32
    %c0_i32_3 = arith.constant 0 : i32
    return %c0_i32, %c0_i32_0, %c0_i32_1, %c0_i32_2 : i32, i32, i32, i32
  }
  func.func @transform_33(%arg0: i32) -> (i32, i32, i32, i32) {
    %c0_i32 = arith.constant 0 : i32
    %c0_i32_0 = arith.constant 0 : i32
    %c0_i32_1 = arith.constant 0 : i32
    %c0_i32_2 = arith.constant 0 : i32
    %c0_i32_3 = arith.constant 0 : i32
    return %c0_i32, %c0_i32_0, %c0_i32_1, %c0_i32_2 : i32, i32, i32, i32
  }
  func.func @transform_34(%arg0: i32) -> (i32, i32, i32, i32) {
    %c0_i32 = arith.constant 0 : i32
    %c0_i32_0 = arith.constant 0 : i32
    %c0_i32_1 = arith.constant 0 : i32
    %c0_i32_2 = arith.constant 0 : i32
    %c0_i32_3 = arith.constant 0 : i32
    return %c0_i32, %c0_i32_0, %c0_i32_1, %c0_i32_2 : i32, i32, i32, i32
  }
  func.func @transform_35(%arg0: i32) -> (i32, i32, i32, i32) {
    %c0_i32 = arith.constant 0 : i32
    %c0_i32_0 = arith.constant 0 : i32
    %c0_i32_1 = arith.constant 0 : i32
    %c0_i32_2 = arith.constant 0 : i32
    %c0_i32_3 = arith.constant 0 : i32
    return %c0_i32, %c0_i32_0, %c0_i32_1, %c0_i32_2 : i32, i32, i32, i32
  }
  func.func @transform_36(%arg0: i32) -> (i32, i32, i32) {
    %c0_i32 = arith.constant 0 : i32
    %c0_i32_0 = arith.constant 0 : i32
    %c0_i32_1 = arith.constant 0 : i32
    %c0_i32_2 = arith.constant 0 : i32
    return %c0_i32, %c0_i32_0, %c0_i32_1 : i32, i32, i32
  }
  func.func @transform_37(%arg0: i32) -> (i32, i32, i32) {
    %c0_i32 = arith.constant 0 : i32
    %c0_i32_0 = arith.constant 0 : i32
    %c0_i32_1 = arith.constant 0 : i32
    %c0_i32_2 = arith.constant 0 : i32
    return %c0_i32, %c0_i32_0, %c0_i32_1 : i32, i32, i32
  }
  func.func @transform_38(%arg0: i32) -> (i32, i32, i32) {
    %c0_i32 = arith.constant 0 : i32
    %c0_i32_0 = arith.constant 0 : i32
    %c0_i32_1 = arith.constant 0 : i32
    %c0_i32_2 = arith.constant 0 : i32
    return %c0_i32, %c0_i32_0, %c0_i32_1 : i32, i32, i32
  }
  func.func @transform_39(%arg0: i32) -> (i32, i32, i32) {
    %c0_i32 = arith.constant 0 : i32
    %c0_i32_0 = arith.constant 0 : i32
    %c0_i32_1 = arith.constant 0 : i32
    %c0_i32_2 = arith.constant 0 : i32
    return %c0_i32, %c0_i32_0, %c0_i32_1 : i32, i32, i32
  }
  func.func @transform_40(%arg0: i32) -> (i32, i32, i32) {
    %c0_i32 = arith.constant 0 : i32
    %c0_i32_0 = arith.constant 0 : i32
    %c0_i32_1 = arith.constant 0 : i32
    %c0_i32_2 = arith.constant 0 : i32
    return %c0_i32, %c0_i32_0, %c0_i32_1 : i32, i32, i32
  }
  func.func @transform_41(%arg0: i32) -> (i32, i32, i32) {
    %c0_i32 = arith.constant 0 : i32
    %c0_i32_0 = arith.constant 0 : i32
    %c0_i32_1 = arith.constant 0 : i32
    %c0_i32_2 = arith.constant 0 : i32
    return %c0_i32, %c0_i32_0, %c0_i32_1 : i32, i32, i32
  }
  func.func @transform_42(%arg0: i32) -> (i32, i32, i32) {
    %c0_i32 = arith.constant 0 : i32
    %c0_i32_0 = arith.constant 0 : i32
    %c0_i32_1 = arith.constant 0 : i32
    %c0_i32_2 = arith.constant 0 : i32
    return %c0_i32, %c0_i32_0, %c0_i32_1 : i32, i32, i32
  }
  func.func @transform_43(%arg0: i32) -> (i32, i32, i32) {
    %c0_i32 = arith.constant 0 : i32
    %c0_i32_0 = arith.constant 0 : i32
    %c0_i32_1 = arith.constant 0 : i32
    %c0_i32_2 = arith.constant 0 : i32
    return %c0_i32, %c0_i32_0, %c0_i32_1 : i32, i32, i32
  }
  func.func @transform_44(%arg0: i32) -> (i32, i32, i32) {
    %c0_i32 = arith.constant 0 : i32
    %c0_i32_0 = arith.constant 0 : i32
    %c0_i32_1 = arith.constant 0 : i32
    %c0_i32_2 = arith.constant 0 : i32
    return %c0_i32, %c0_i32_0, %c0_i32_1 : i32, i32, i32
  }
  func.func @transform_45(%arg0: i32) -> (i32, i32) {
    %c0_i32 = arith.constant 0 : i32
    %c0_i32_0 = arith.constant 0 : i32
    %c0_i32_1 = arith.constant 0 : i32
    return %c0_i32, %c0_i32_0 : i32, i32
  }
  func.func @transform_46(%arg0: i32) -> (i32, i32) {
    %c0_i32 = arith.constant 0 : i32
    %c0_i32_0 = arith.constant 0 : i32
    %c0_i32_1 = arith.constant 0 : i32
    return %c0_i32, %c0_i32_0 : i32, i32
  }
  func.func @transform_47(%arg0: i32) -> (i32, i32, i32) {
    %c0_i32 = arith.constant 0 : i32
    %c0_i32_0 = arith.constant 0 : i32
    %c0_i32_1 = arith.constant 0 : i32
    return %arg0, %c0_i32, %c0_i32_0 : i32, i32, i32
  }
}

</mosaic_0001>

<bundles_post_ra>
// kernel: transformer_forward.1
= control target key start
LH: loop header
LB: loop body
LE: loop exit
PB: predicated region body
PF: predicated region fallthrough
CT: control target
= control target key end

     0   :  { %s13125_s6 = smov 1   ;;  %s13126_s10 = smov 2   ;;  %s14646_s0 = inlined_call_operand.smem [shape: u32[48], index: -1, kind: input, shape index: {}] }
   0x1   :  { %s13213_s5 = sld [smem:[%s14646_s0]]   ;;  %s13127_s14 = smov 3  }
   0x2   :  { %s13218_s9 = sld [smem:[%s14646_s0 + %s13125_s6]]   ;;  %s13128_s18 = smov 4  }
   0x3   :  { %s13223_s13 = sld [smem:[%s14646_s0 + %s13126_s10]]   ;;  %s13129_s22 = smov 5  }
   0x4   :  { %s13228_s17 = sld [smem:[%s14646_s0 + %s13127_s14]]   ;;  %s13130_s26 = smov 6  }
   0x5   :  { %s13233_s21 = sld [smem:[%s14646_s0 + %s13128_s18]]   ;;  %s13131_s30 = smov 7  }
   0x6   :  { %s13238_s25 = sld [smem:[%s14646_s0 + %s13129_s22]]   ;;  %s13132_s4 = smov 8  }
   0x7   :  { %14721 = sst [smem:[#allocation60_spill]] %s13213_s5  ;;  %s13133_s10 = smov 9  }
   0x8   :  { %14722 = sst [smem:[#allocation61_spill]] %s13218_s9  ;;  %s13134_s15 = smov 10  }
   0x9   :  { %14723 = sst [smem:[#allocation62_spill]] %s13223_s13  ;;  %s13135_s20 = smov 11  }
   0xa   :  { %14724 = sst [smem:[#allocation63_spill]] %s13228_s17  ;;  %s13137_s1 = smov 13  }
   0xb   :  { %s13243_s29 = sld [smem:[%s14646_s0 + %s13130_s26]]   ;;  %s13136_s26 = smov 12  }
   0xc   :  { %14725 = sst [smem:[#allocation64_spill]] %s13238_s25  ;;  %s13138_s7 = smov 14  }
   0xd   :  { %s13248_s3 = sld [smem:[%s14646_s0 + %s13131_s30]]   ;;  %s13140_s22 = smov 16  }
   0xe   :  { %s13253_s8 = sld [smem:[%s14646_s0 + %s13132_s4]]   ;;  %s13141_s28 = smov 17  }
   0xf   :  { %s13258_s14 = sld [smem:[%s14646_s0 + %s13133_s10]]  }
  0x10   :  { %s13263_s19 = sld [smem:[%s14646_s0 + %s13134_s15]]   ;;  %s13139_s15 = smov 15  }
  0x11   :  { %14726 = sst [smem:[#allocation65_spill]] %s13243_s29 }
  0x12   :  { %s13268_s24 = sld [smem:[%s14646_s0 + %s13135_s20]]  }
  0x13   :  { %14727 = sst [smem:[#allocation66_spill]] %s13248_s3 }
  0x14   :  { %14728 = sst [smem:[#allocation67_spill]] %s13253_s8 }
  0x15   :  { %s13273_s30 = sld [smem:[%s14646_s0 + %s13136_s26]]  }
  0x16   :  { %14729 = sst [smem:[#allocation68_spill]] %s13263_s19 }
  0x17   :  { %s13278_s6 = sld [smem:[%s14646_s0 + %s13137_s1]]  }
  0x18   :  { %14730 = sst [smem:[#allocation69_spill]] %s13268_s24 }
  0x19   :  { %s13283_s12 = sld [smem:[%s14646_s0 + %s13138_s7]]   ;;  %s13142_s7 = smov 18  }
  0x1a   :  { %s13288_s20 = sld [smem:[%s14646_s0 + %s13139_s15]]   ;;  %s13143_s15 = smov 19  }
  0x1b   :  { %14731 = sst [smem:[#allocation70_spill]] %s13273_s30 }
  0x1c   :  { %s13293_s27 = sld [smem:[%s14646_s0 + %s13140_s22]]   ;;  %s13144_s22 = smov 20  }
  0x1d   :  { %14732 = sst [smem:[#allocation71_spill]] %s13278_s6 }
  0x1e   :  { %s13298_s4 = sld [smem:[%s14646_s0 + %s13141_s28]]   ;;  %s13145_s28 = smov 21  }
  0x1f   :  { %14733 = sst [smem:[#allocation72_spill]] %s13283_s12 }
  0x20   :  { %14734 = sst [smem:[#allocation73_spill]] %s13288_s20 }
  0x21   :  { %s13303_s13 = sld [smem:[%s14646_s0 + %s13142_s7]]   ;;  %s13146_s7 = smov 22  }
  0x22   :  { %14735 = sst [smem:[#allocation74_spill]] %s13293_s27 }
  0x23   :  { %s13308_s9 = sld [smem:[%s14646_s0 + %s13143_s15]]   ;;  %s13147_s15 = smov 23  }
  0x24   :  { %14736 = sst [smem:[#allocation75_spill]] %s13298_s4 }
  0x25   :  { %s13313_s27 = sld [smem:[%s14646_s0 + %s13144_s22]]   ;;  %s13148_s22 = smov 24  }
  0x26   :  { %s13318_s4 = sld [smem:[%s14646_s0 + %s13145_s28]]   ;;  %s13149_s28 = smov 25  }
  0x27   :  { %14737 = sst [smem:[#allocation76_spill]] %s13303_s13 }
  0x28   :  { %s13323_s13 = sld [smem:[%s14646_s0 + %s13146_s7]]   ;;  %s13150_s7 = smov 26  }
  0x29   :  { %14738 = sst [smem:[#allocation77_spill]] %s13308_s9 }
  0x2a   :  { %s13328_s12 = sld [smem:[%s14646_s0 + %s13147_s15]]   ;;  %s13151_s15 = smov 27  }
  0x2b   :  { %14739 = sst [smem:[#allocation78_spill]] %s13313_s27 }
  0x2c   :  { %14740 = sst [smem:[#allocation79_spill]] %s13318_s4 }
  0x2d   :  { %s13333_s30 = sld [smem:[%s14646_s0 + %s13148_s22]]   ;;  %s13152_s22 = smov 28  }
  0x2e   :  { %14741 = sst [smem:[#allocation80_spill]] %s13323_s13 }
  0x2f   :  { %s13338_s24 = sld [smem:[%s14646_s0 + %s13149_s28]]   ;;  %s13153_s28 = smov 29  }
  0x30   :  { %14742 = sst [smem:[#allocation81_spill]] %s13328_s12 }
  0x31   :  { %s13343_s13 = sld [smem:[%s14646_s0 + %s13150_s7]]   ;;  %s13154_s7 = smov 30  }
  0x32   :  { %s13348_s12 = sld [smem:[%s14646_s0 + %s13151_s15]]   ;;  %s13155_s15 = smov 31  }
  0x33   :  { %14743 = sst [smem:[#allocation82_spill]] %s13333_s30 }
  0x34   :  { %s13353_s30 = sld [smem:[%s14646_s0 + %s13152_s22]]   ;;  %s13156_s22 = smov 32  }
  0x35   :  { %14744 = sst [smem:[#allocation83_spill]] %s13338_s24 }
  0x36   :  { %s13358_s19 = sld [smem:[%s14646_s0 + %s13153_s28]]   ;;  %s13157_s28 = smov 33  }
  0x37   :  { %s13363_s8 = sld [smem:[%s14646_s0 + %s13154_s7]]   ;;  %s13158_s7 = smov 34  }
  0x38   :  { %14745 = sst [smem:[#allocation84_spill]] %s13348_s12 }
  0x39   :  { %s13368_s29 = sld [smem:[%s14646_s0 + %s13155_s15]]   ;;  %s13159_s15 = smov 35  }
  0x3a   :  { %s13373_s3 = sld [smem:[%s14646_s0 + %s13156_s22]]   ;;  %s13160_s22 = smov 36  }
  0x3b   :  { %s13378_s5 = sld [smem:[%s14646_s0 + %s13157_s28]]   ;;  %s13161_s28 = smov 37  }
  0x3c   :  { %14746 = sst [smem:[#allocation85_spill]] %s13358_s19 }
  0x3d   :  { %14747 = sst [smem:[#allocation86_spill]] %s13363_s8 }
  0x3e   :  { %s13383_s17 = sld [smem:[%s14646_s0 + %s13158_s7]]   ;;  %s13162_s7 = smov 38  }
  0x3f   :  { %14748 = sst [smem:[#allocation87_spill]] %s13368_s29 }
  0x40   :  { %14749 = sst [smem:[#allocation88_spill]] %s13373_s3 }
  0x41   :  { %14750 = sst [smem:[#allocation89_spill]] %s13378_s5 }
  0x42   :  { %s13388_s29 = sld [smem:[%s14646_s0 + %s13159_s15]]   ;;  %s13163_s15 = smov 39  }
  0x43   :  { %s13393_s19 = sld [smem:[%s14646_s0 + %s13160_s22]]   ;;  %s13164_s22 = smov 40  }
  0x44   :  { %s13398_s5 = sld [smem:[%s14646_s0 + %s13161_s28]]   ;;  %s13165_s28 = smov 41  }
  0x45   :  { %s13403_s12 = sld [smem:[%s14646_s0 + %s13162_s7]]   ;;  %s13166_s7 = smov 42  }
  0x46   :  { %s13413_s24 = sld [smem:[%s14646_s0 + %s13164_s22]]   ;;  %s13168_s22 = smov 44  }
  0x47   :  { %s13423_s27 = sld [smem:[%s14646_s0 + %s13166_s7]]   ;;  %s13170_s7 = smov 46  }
  0x48   :  { %14751 = sst [smem:[#allocation90_spill]] %s13388_s29 }
  0x49   :  { %s13408_s29 = sld [smem:[%s14646_s0 + %s13163_s15]]   ;;  %s13167_s15 = smov 43  }
  0x4a   :  { %14752 = sst [smem:[#allocation91_spill]] %s13398_s5 }
  0x4b   :  { %s13418_s5 = sld [smem:[%s14646_s0 + %s13165_s28]]   ;;  %s13169_s28 = smov 45  }
  0x4c   :  { %14754 = sst [smem:[#allocation93_spill]] %s13413_s24 }
  0x4d   :  { %14756 = sst [smem:[#allocation95_spill]] %s13423_s27 }
  0x4e   :  { %s13433_s24 = sld [smem:[%s14646_s0 + %s13168_s22]]  }
  0x4f   :  { %14753 = sst [smem:[#allocation92_spill]] %s13408_s29 }
  0x50   :  { %s13428_s29 = sld [smem:[%s14646_s0 + %s13167_s15]]   ;;  %s13171_s15 = smov 47  }
  0x51   :  { %14755 = sst [smem:[#allocation94_spill]] %s13418_s5 }
  0x52   :  { %s13438_s20 = sld [smem:[%s14646_s0 + %s13169_s28]]  }
  0x53   :  { %s13443_s27 = sld [smem:[%s14646_s0 + %s13170_s7]]  }
  0x56   :  { %14757 = sst [smem:[#allocation96_spill]] %s13428_s29 }
  0x57   :  { %s13448_s29 = sld [smem:[%s14646_s0 + %s13171_s15]]  }
  0x58   :  { %100 = vsyncpa [#allocation3], 0 }
  0x59   :  { %101 = vsyncpa [#allocation6], 0 }
  0x5a   :  { %102 = vsyncpa [#allocation9], 0 }
  0x5b   :  { %103 = vsyncpa [#allocation12], 0 }
  0x5c   :  { %104 = vsyncpa [#allocation15], 0 }
  0x5d   :  { %105 = vsyncpa [#allocation18], 0 }
  0x5e   :  { %106 = vsyncpa [#allocation21], 0 }
  0x5f   :  { %107 = vsyncpa [#allocation24], 0 }
  0x60   :  { %108 = vsyncpa [#allocation27], 0 }
  0x61   :  { %109 = vsyncpa [#allocation30], 0 }
  0x62   :  { %110 = vsyncpa [#allocation33], 0 }
  0x63   :  { %111 = vsyncpa [#allocation36], 0 }
  0x64   :  { %112 = vsyncpa [#allocation39], 0 }
  0x65   :  { %113 = vsyncpa [#allocation42], 0 }
  0x66   :  { %114 = vsyncpa [#allocation4], 0 }
  0x67   :  { %116 = vsyncpa [#allocation4 + $0x1], 0  ;;  %s13450_s22 = smov 0   ;;  %s13452_s0 = smov 0  }
  0x68   :  { %s13454_s23 = smov 0   ;;  %s13456_s26 = smov 0  }
  0x69   :  { %14758 = sst [smem:[#allocation97_spill]] %s13456_s26 }
  0x6a LB: > { %s14760_s9 = sld [smem:[#allocation77_spill]]  ;;  %s1126_s7 = sadd.s32 1, %s13119_s23  ;;  %s13119_s23 = sphi %s13454_s23, %s14828_s23   ;;  %s13115_s0 = sphi %s13452_s0, %s14830_s0   ;;  %s13111_s22 = sphi %s13450_s22, %s14829_s22  }
  0x6b   : > { %s14761_s8 = sld [smem:[#allocation86_spill]]  ;;  %p1136_p0 = scmp.ne.s32.totalorder %s13119_s23, %s13115_s0 }
  0x6c   : > { %s14762_s5 = sld [smem:[#allocation94_spill]]  ;;  %p1142_p3 = scmp.ne.s32.totalorder %s13115_s0, %s13111_s22 }
  0x6d   : > { %s14763_s3 = sld [smem:[#allocation88_spill]] }
  0x6e   : > { %s14764_s6 = sld [smem:[#allocation71_spill]] }
  0x6f   : > { %s14765_s4 = sld [smem:[#allocation79_spill]] }
  0x70   : > { %s14766_s25 = sld [smem:[#allocation64_spill]] }
  0x71   : > { %s14767_s26 = sld [smem:[#allocation97_spill]] }
  0x72   : > { %14768 = sst [smem:[#allocation97_spill]] %s13111_s22 }
  0x73   : > { %14769 = sst [smem:[#allocation98_spill]] %s13119_s23 }
  0x77   : > { %14770 = sst [smem:[#allocation99_spill]] %s14767_s26  ;;  %s13471_s28 = sadd.s32 4294967295, %s14767_s26  }
  0x78   : > { %s11247_s1 = sadd.s32 4294967294, %s14767_s26   ;;  %s13475_s2 = sadd.s32 1, %s14767_s26  }
  0x79   : > { %14771 = sst [smem:[#allocation100_spill]] %s13475_s2  ;;  %s1123_s10 = ssub.s32 %s14767_s26, %s13475_s2 }
  0x7a   : > { %p1124_p1 = scmp.eq.s32.totalorder %s1123_s10, 0  ;;  %p1137_p2 = scmp.eq.s32.totalorder %s13471_s28, 1 }
  0x7b   : > { %p1143_p4 = scmp.eq.s32.totalorder %s11247_s1, 1  ;;  %p11248_p7 = scmp.ge.s32.totalorder %s14767_s26, 1 }
  0x7c   : > { %s13486_s11 = scalar_select %p1124_p1, %s13119_s23, %s1126_s7  }
  0x7d   : > { %p13488_p5 = por %p1137_p2, %p1136_p0  ;;  %p13492_p6 = por %p1143_p4, %p1142_p3 }
  0x7e   : > { %14772 = sst [smem:[#allocation101_spill]] %s13486_s11  ;;  %p1150_p8 = scmp.lt.s32.totalorder %s14767_s26, 3 }
  0x7f   : > { %s14773_s15 = scalar_select %p13488_p5, 1, 0 }
  0x80   : > { %s14775_s16 = scalar_select %p13492_p6, 1, 0 }
  0x81   : > { %14774 = sst [smem:[#allocation102_spill]] %s14773_s15  ;;  %p13498_p9 = pnand %p11248_p7, %p1150_p8 }
  0x82   : > { %14776 = sst [smem:[#allocation103_spill]] %s14775_s16  ;;  %p11691_p10 = scmp.eq.s32.totalorder (!%p13498_p9), %s13471_s28, 0 }
  0x83   : > { %1154 = sbr.rel (%p13498_p9) target bundleno = 488 (0x1e8), region = 12  ;;  %s1181_s1 = sshll.u32 (!%p13498_p9), %s14766_s25, 4  ;;  %s1182_s1 = int_to_ptr.hbm [resolvable:$true] %s1181_s1 }
  0x84   : > { %s13172_s7 = smov (!%p13498_p9), [#allocation5]   ;;  %s1227_s11 = sshll.u32 (!%p13498_p9), %s14764_s6, 4  ;;  %s13507_s11 = int_to_ptr.hbm [resolvable:$true] %s1227_s11 }
  0x85   : > { %s1183_s10 = sshll.u32 (!%p13498_p9), %s13172_s7, 4  ;;  %s12249_s23 = sshra.s32 (!%p13498_p9), %s1182_s1, 4  ;;  %s1184_s10 = int_to_ptr.vmem [resolvable:$true] %s1183_s10  ;;  %s12250_s23 = int_to_ptr.hbm [resolvable:$true] %s12249_s23 }
  0x86   : > { %s12251_s2 = scalar_lea.hbm (!%p13498_p9), %s12250_s23, 256  ;;  %s12255_s16 = scalar_lea.hbm (!%p13498_p9), %s14766_s25, 256 }
  0x87   : > { %p12252_p11 = scmp.ne.s32.totalorder (!%p13498_p9), %s12250_s23, %s12251_s2  ;;  %p12256_p0 = scmp.lt.s32.totalorder (!%p13498_p9), %s12250_s23, %s14766_s25 }
  0x88   : > { %p12257_p1 = scmp.lt.s32.totalorder %s12255_s16, %s12251_s2 }
  0x89   : > { %p12253_p12 = pnand %p12252_p11, %p11691_p10 }
  0x8a   : > { %p12258_p2 = por %p12257_p1, %p12256_p0 }
  0x8b   : > { %p12254_p13 = pneg %p12253_p12 }
  0x8d   : > { %p12259_p3 = pnand %p12258_p2, %p12254_p13 }
  0x8f   : > { %12262 = shalt.err (!%p12259_p3)
}
  0x90   : > { %s14684_s22 = smov 128   ;;  %s14686_s7 = smov 8  }
  0x91   : > { %11580 = dma.hbm_to_vmem [thread:$0]  (%p11691_p10), %s1182_s1, 4096, %s1184_s10, [#allocation6], %s14684_s22, %s14684_s22, %s14686_s7  }
  0x92   : > { %s1267_s26 = sshll.u32 %s14760_s9, 4  ;;  %s13175_s15 = smov [#allocation8]   ;;  %s13519_s26 = int_to_ptr.hbm [resolvable:$true] %s1267_s26 }
  0x93   : > { %s1229_s23 = sshll.u32 %s13175_s15, 4  ;;  %s12277_s2 = sshra.s32 %s13507_s11, 4  ;;  %s1230_s23 = int_to_ptr.vmem [resolvable:$true] %s1229_s23  ;;  %s12278_s2 = int_to_ptr.hbm [resolvable:$true] %s12277_s2 }
  0x94   : > { %s12279_s16 = scalar_lea.hbm %s12278_s2, 512  ;;  %s12283_s25 = scalar_lea.hbm %s14764_s6, 512 }
  0x95   : > { %p12280_p4 = scmp.ne.s32.totalorder %s12278_s2, %s12279_s16  ;;  %p12284_p11 = scmp.lt.s32.totalorder %s12278_s2, %s14764_s6 }
  0x96   : > { %p12285_p12 = scmp.lt.s32.totalorder %s12283_s25, %s12279_s16 }
  0x97   : > { %p12281_p7 = pnand %p12280_p4, %p11691_p10 }
  0x98   : > { %p12286_p13 = por %p12285_p12, %p12284_p11 }
  0x99   : > { %p12282_p8 = pneg %p12281_p7 }
  0x9b   : > { %p12287_p0 = pnand %p12286_p13, %p12282_p8 }
  0x9d   : > { %12290 = shalt.err (!%p12287_p0)
}
  0x9e   : > { %11584 = dma.hbm_to_vmem [thread:$0]  (%p11691_p10), %s13507_s11, 8192, %s1230_s23, [#allocation9], %s14684_s22, %s14684_s22, %s14686_s7  }
  0x9f   : > { %s13176_s15 = smov [#allocation11]   ;;  %s1295_s10 = sshll.u32 %s14765_s4, 4  ;;  %s13533_s10 = int_to_ptr.hbm [resolvable:$true] %s1295_s10 }
  0xa0   : > { %s1269_s1 = sshll.u32 %s13176_s15, 4  ;;  %s12305_s25 = sshra.s32 %s13519_s26, 4  ;;  %s1270_s1 = int_to_ptr.vmem [resolvable:$true] %s1269_s1  ;;  %s12306_s25 = int_to_ptr.hbm [resolvable:$true] %s12305_s25 }
  0xa1   : > { %s12307_s2 = scalar_lea.hbm %s12306_s25, 256  ;;  %s12311_s16 = scalar_lea.hbm %s14760_s9, 256 }
  0xa2   : > { %p12308_p1 = scmp.ne.s32.totalorder %s12306_s25, %s12307_s2  ;;  %p12312_p4 = scmp.lt.s32.totalorder %s12306_s25, %s14760_s9 }
  0xa3   : > { %p12313_p7 = scmp.lt.s32.totalorder %s12311_s16, %s12307_s2 }
  0xa4   : > { %p12309_p2 = pnand %p12308_p1, %p11691_p10 }
  0xa5   : > { %p12314_p8 = por %p12313_p7, %p12312_p4 }
  0xa6   : > { %p12310_p3 = pneg %p12309_p2 }
  0xa8   : > { %p12315_p11 = pnand %p12314_p8, %p12310_p3 }
  0xaa   : > { %12318 = shalt.err (!%p12315_p11)
}
  0xab   : > { %11588 = dma.hbm_to_vmem [thread:$0]  (%p11691_p10), %s13519_s26, 4096, %s1270_s1, [#allocation12], %s14684_s22, %s14684_s22, %s14686_s7  }
  0xac   : > { %s13177_s11 = smov [#allocation14]   ;;  %s1332_s15 = sshll.u32 %s13343_s13, 4  ;;  %s13547_s15 = int_to_ptr.hbm [resolvable:$true] %s1332_s15 }
  0xad   : > { %s1297_s23 = sshll.u32 %s13177_s11, 4  ;;  %s12333_s25 = sshra.s32 %s13533_s10, 4  ;;  %s1298_s23 = int_to_ptr.vmem [resolvable:$true] %s1297_s23  ;;  %s12334_s25 = int_to_ptr.hbm [resolvable:$true] %s12333_s25 }
  0xae   : > { %s12335_s2 = scalar_lea.hbm %s12334_s25, 256  ;;  %s12339_s16 = scalar_lea.hbm %s14765_s4, 256 }
  0xaf   : > { %p12336_p12 = scmp.ne.s32.totalorder %s12334_s25, %s12335_s2  ;;  %p12340_p1 = scmp.lt.s32.totalorder %s12334_s25, %s14765_s4 }
  0xb0   : > { %p12341_p2 = scmp.lt.s32.totalorder %s12339_s16, %s12335_s2 }
  0xb1   : > { %p12337_p13 = pnand %p12336_p12, %p11691_p10 }
  0xb2   : > { %p12342_p3 = por %p12341_p2, %p12340_p1 }
  0xb3   : > { %p12338_p0 = pneg %p12337_p13 }
  0xb5   : > { %p12343_p4 = pnand %p12342_p3, %p12338_p0 }
  0xb7   : > { %12346 = shalt.err (!%p12343_p4)
}
  0xb8   : > { %11592 = dma.hbm_to_vmem [thread:$0]  (%p11691_p10), %s13533_s10, 4096, %s1298_s23, [#allocation15], %s14684_s22, %s14684_s22, %s14686_s7  }
  0xb9   : > { %s13178_s26 = smov [#allocation17]   ;;  %s1360_s11 = sshll.u32 %s13353_s30, 4  ;;  %s13561_s11 = int_to_ptr.hbm [resolvable:$true] %s1360_s11 }
  0xba   : > { %s1334_s1 = sshll.u32 %s13178_s26, 4  ;;  %s12361_s25 = sshra.s32 %s13547_s15, 4  ;;  %s1335_s1 = int_to_ptr.vmem [resolvable:$true] %s1334_s1  ;;  %s12362_s25 = int_to_ptr.hbm [resolvable:$true] %s12361_s25 }
  0xbb   : > { %s12363_s2 = scalar_lea.hbm %s12362_s25, 2  ;;  %s12367_s16 = scalar_lea.hbm %s13343_s13, 2 }
  0xbc   : > { %p12364_p7 = scmp.ne.s32.totalorder %s12362_s25, %s12363_s2  ;;  %p12368_p12 = scmp.lt.s32.totalorder %s12362_s25, %s13343_s13 }
  0xbd   : > { %p12369_p13 = scmp.lt.s32.totalorder %s12367_s16, %s12363_s2 }
  0xbe   : > { %p12365_p8 = pnand %p12364_p7, %p11691_p10 }
  0xbf   : > { %p12370_p0 = por %p12369_p13, %p12368_p12 }
  0xc0   : > { %p12366_p11 = pneg %p12365_p8 }
  0xc2   : > { %p12371_p1 = pnand %p12370_p0, %p12366_p11 }
  0xc4   : > { %12374 = shalt.err (!%p12371_p1)
}
  0xc5   : > { %s14688_s10 = smov 16   ;;  %s14690_s23 = smov 1  }
  0xc6   : > { %11596 = dma.hbm_to_vmem [thread:$0]  (%p11691_p10), %s13547_s15, 32, %s1335_s1, [#allocation18], %s14688_s10, %s14688_s10, %s14690_s23  }
  0xc7   : > { %s1388_s26 = sshll.u32 %s14761_s8, 4  ;;  %s13181_s25 = smov [#allocation20]   ;;  %s13575_s26 = int_to_ptr.hbm [resolvable:$true] %s1388_s26 }
  0xc8   : > { %s1362_s2 = sshll.u32 %s13181_s25, 4  ;;  %s12389_s16 = sshra.s32 %s13561_s11, 4  ;;  %s1363_s2 = int_to_ptr.vmem [resolvable:$true] %s1362_s2  ;;  %s12390_s16 = int_to_ptr.hbm [resolvable:$true] %s12389_s16 }
  0xc9   : > { %s12391_s22 = scalar_lea.hbm %s12390_s16, 2  ;;  %s12395_s7 = scalar_lea.hbm %s13353_s30, 2 }
  0xca   : > { %p12392_p2 = scmp.ne.s32.totalorder %s12390_s16, %s12391_s22  ;;  %p12396_p7 = scmp.lt.s32.totalorder %s12390_s16, %s13353_s30 }
  0xcb   : > { %p12397_p8 = scmp.lt.s32.totalorder %s12395_s7, %s12391_s22 }
  0xcc   : > { %p12393_p3 = pnand %p12392_p2, %p11691_p10 }
  0xcd   : > { %p12398_p11 = por %p12397_p8, %p12396_p7 }
  0xce   : > { %p12394_p4 = pneg %p12393_p3 }
  0xd0   : > { %p12399_p12 = pnand %p12398_p11, %p12394_p4 }
  0xd2   : > { %12402 = shalt.err (!%p12399_p12)
}
  0xd3   : > { %11600 = dma.hbm_to_vmem [thread:$0]  (%p11691_p10), %s13561_s11, 32, %s1363_s2, [#allocation21], %s14688_s10, %s14688_s10, %s14690_s23  }
  0xd4   : > { %s13182_s15 = smov [#allocation23]   ;;  %s1416_s25 = sshll.u32 %s14763_s3, 4  ;;  %s13589_s25 = int_to_ptr.hbm [resolvable:$true] %s1416_s25 }
  0xd5   : > { %s1390_s1 = sshll.u32 %s13182_s15, 4  ;;  %s12417_s22 = sshra.s32 %s13575_s26, 4  ;;  %s1391_s1 = int_to_ptr.vmem [resolvable:$true] %s1390_s1  ;;  %s12418_s22 = int_to_ptr.hbm [resolvable:$true] %s12417_s22 }
  0xd6   : > { %s12419_s7 = scalar_lea.hbm %s12418_s22, 256  ;;  %s12423_s16 = scalar_lea.hbm %s14761_s8, 256 }
  0xd7   : > { %p12420_p13 = scmp.ne.s32.totalorder %s12418_s22, %s12419_s7  ;;  %p12424_p2 = scmp.lt.s32.totalorder %s12418_s22, %s14761_s8 }
  0xd8   : > { %p12425_p3 = scmp.lt.s32.totalorder %s12423_s16, %s12419_s7 }
  0xd9   : > { %p12421_p0 = pnand %p12420_p13, %p11691_p10 }
  0xda   : > { %p12426_p4 = por %p12425_p3, %p12424_p2 }
  0xdb   : > { %p12422_p1 = pneg %p12421_p0 }
  0xdd   : > { %p12427_p7 = pnand %p12426_p4, %p12422_p1 }
  0xdf   : > { %12430 = shalt.err (!%p12427_p7)
}
  0xe0   : > { %s14778_s11 = smov 8   ;;  %s14779_s2 = smov 128  }
  0xe1   : > { %11604 = dma.hbm_to_vmem [thread:$0]  (%p11691_p10), %s13575_s26, 4096, %s1391_s1, [#allocation24], %s14779_s2, %s14779_s2, %s14778_s11  }
  0xe2   : > { %s1444_s15 = sshll.u32 %s13383_s17, 4  ;;  %s13183_s10 = smov [#allocation26]   ;;  %s13603_s15 = int_to_ptr.hbm [resolvable:$true] %s1444_s15 }
  0xe3   : > { %s1418_s23 = sshll.u32 %s13183_s10, 4  ;;  %s12445_s22 = sshra.s32 %s13589_s25, 4  ;;  %s1419_s23 = int_to_ptr.vmem [resolvable:$true] %s1418_s23  ;;  %s12446_s22 = int_to_ptr.hbm [resolvable:$true] %s12445_s22 }
  0xe4   : > { %s12447_s7 = scalar_lea.hbm %s12446_s22, 16  ;;  %s12451_s16 = scalar_lea.hbm %s14763_s3, 16 }
  0xe5   : > { %p12448_p8 = scmp.ne.s32.totalorder %s12446_s22, %s12447_s7  ;;  %p12452_p13 = scmp.lt.s32.totalorder %s12446_s22, %s14763_s3 }
  0xe6   : > { %p12453_p0 = scmp.lt.s32.totalorder %s12451_s16, %s12447_s7 }
  0xe7   : > { %p12449_p11 = pnand %p12448_p8, %p11691_p10 }
  0xe8   : > { %p12454_p1 = por %p12453_p0, %p12452_p13 }
  0xe9   : > { %p12450_p12 = pneg %p12449_p11 }
  0xeb   : > { %p12455_p2 = pnand %p12454_p1, %p12450_p12 }
  0xed   : > { %12458 = shalt.err (!%p12455_p2)
}
  0xee   : > { %s14780_s26 = smov 1   ;;  %s14781_s10 = smov 16  }
  0xef   : > { %11608 = dma.hbm_to_vmem [thread:$0]  (%p11691_p10), %s13589_s25, 256, %s1419_s23, [#allocation27], %s14781_s10, %s14781_s10, %s14780_s26  }
  0xf0   : > { %s13184_s1 = smov [#allocation29]   ;;  %s1472_s6 = sshll.u32 %s13393_s19, 4  ;;  %s13617_s6 = int_to_ptr.hbm [resolvable:$true] %s1472_s6 }
  0xf1   : > { %s1446_s4 = sshll.u32 %s13184_s1, 4  ;;  %s12473_s22 = sshra.s32 %s13603_s15, 4  ;;  %s1447_s4 = int_to_ptr.vmem [resolvable:$true] %s1446_s4  ;;  %s12474_s22 = int_to_ptr.hbm [resolvable:$true] %s12473_s22 }
  0xf2   : > { %s12475_s7 = scalar_lea.hbm %s12474_s22, 16  ;;  %s12479_s16 = scalar_lea.hbm %s13383_s17, 16 }
  0xf3   : > { %p12476_p3 = scmp.ne.s32.totalorder %s12474_s22, %s12475_s7  ;;  %p12480_p8 = scmp.lt.s32.totalorder %s12474_s22, %s13383_s17 }
  0xf4   : > { %p12481_p11 = scmp.lt.s32.totalorder %s12479_s16, %s12475_s7 }
  0xf5   : > { %p12477_p4 = pnand %p12476_p3, %p11691_p10 }
  0xf6   : > { %p12482_p12 = por %p12481_p11, %p12480_p8 }
  0xf7   : > { %p12478_p7 = pneg %p12477_p4 }
  0xf9   : > { %p12483_p13 = pnand %p12482_p12, %p12478_p7 }
  0xfb   : > { %12486 = shalt.err (!%p12483_p13)
}
  0xfc   : > { %11612 = dma.hbm_to_vmem [thread:$0]  (%p11691_p10), %s13603_s15, 256, %s1447_s4, [#allocation30], %s14781_s10, %s14781_s10, %s14780_s26  }
  0xfd   : > { %s1500_s23 = sshll.u32 %s13403_s12, 4  ;;  %s13185_s25 = smov [#allocation32]   ;;  %s13631_s23 = int_to_ptr.hbm [resolvable:$true] %s1500_s23 }
  0xfe   : > { %s1474_s1 = sshll.u32 %s13185_s25, 4  ;;  %s12501_s22 = sshra.s32 %s13617_s6, 4  ;;  %s1475_s1 = int_to_ptr.vmem [resolvable:$true] %s1474_s1  ;;  %s12502_s22 = int_to_ptr.hbm [resolvable:$true] %s12501_s22 }
  0xff   : > { %s12503_s7 = scalar_lea.hbm %s12502_s22, 2  ;;  %s12507_s16 = scalar_lea.hbm %s13393_s19, 2 }
 0x100   : > { %p12504_p0 = scmp.ne.s32.totalorder %s12502_s22, %s12503_s7  ;;  %p12508_p3 = scmp.lt.s32.totalorder %s12502_s22, %s13393_s19 }
 0x101   : > { %p12509_p4 = scmp.lt.s32.totalorder %s12507_s16, %s12503_s7 }
 0x102   : > { %p12505_p1 = pnand %p12504_p0, %p11691_p10 }
 0x103   : > { %p12510_p7 = por %p12509_p4, %p12508_p3 }
 0x104   : > { %p12506_p2 = pneg %p12505_p1 }
 0x106   : > { %p12511_p8 = pnand %p12510_p7, %p12506_p2 }
 0x108   : > { %12514 = shalt.err (!%p12511_p8)
}
 0x109   : > { %11616 = dma.hbm_to_vmem [thread:$0]  (%p11691_p10), %s13617_s6, 32, %s1475_s1, [#allocation33], %s14781_s10, %s14781_s10, %s14780_s26  }
 0x10a   : > { %s13186_s4 = smov [#allocation35]   ;;  %s1531_s25 = sshll.u32 %s14762_s5, 4  ;;  %s1532_s25 = int_to_ptr.hbm [resolvable:$true] %s1531_s25 }
 0x10b   : > { %s1502_s15 = sshll.u32 %s13186_s4, 4  ;;  %s12529_s22 = sshra.s32 %s13631_s23, 4  ;;  %s1503_s15 = int_to_ptr.vmem [resolvable:$true] %s1502_s15  ;;  %s12530_s22 = int_to_ptr.hbm [resolvable:$true] %s12529_s22 }
 0x10c   : > { %s12531_s7 = scalar_lea.hbm %s12530_s22, 2  ;;  %s12535_s16 = scalar_lea.hbm %s13403_s12, 2 }
 0x10d   : > { %p12532_p11 = scmp.ne.s32.totalorder %s12530_s22, %s12531_s7  ;;  %p12536_p0 = scmp.lt.s32.totalorder %s12530_s22, %s13403_s12 }
 0x10e   : > { %p12537_p1 = scmp.lt.s32.totalorder %s12535_s16, %s12531_s7 }
 0x10f   : > { %p12533_p12 = pnand %p12532_p11, %p11691_p10 }
 0x110   : > { %p12538_p2 = por %p12537_p1, %p12536_p0 }
 0x111   : > { %p12534_p13 = pneg %p12533_p12 }
 0x113   : > { %p12539_p3 = pnand %p12538_p2, %p12534_p13 }
 0x115   : > { %12542 = shalt.err (!%p12539_p3)
}
 0x116   : > { %11620 = dma.hbm_to_vmem [thread:$0]  (%p11691_p10), %s13631_s23, 32, %s1503_s15, [#allocation36], %s14781_s10, %s14781_s10, %s14780_s26  }
 0x117   : > { %s13187_s6 = smov [#allocation38]   ;;  %s1562_s4 = sshll.u32 %s13433_s24, 4  ;;  %s13657_s4 = int_to_ptr.hbm [resolvable:$true] %s1562_s4 }
 0x118   : > { %s1533_s1 = sshll.u32 %s13187_s6, 4  ;;  %s12557_s22 = sshra.s32 %s1532_s25, 4  ;;  %s1534_s1 = int_to_ptr.vmem [resolvable:$true] %s1533_s1  ;;  %s12558_s22 = int_to_ptr.hbm [resolvable:$true] %s12557_s22 }
 0x119   : > { %s12559_s7 = scalar_lea.hbm %s12558_s22, 512  ;;  %s12563_s16 = scalar_lea.hbm %s14762_s5, 512 }
 0x11a   : > { %p12560_p4 = scmp.ne.s32.totalorder %s12558_s22, %s12559_s7  ;;  %p12564_p11 = scmp.lt.s32.totalorder %s12558_s22, %s14762_s5 }
 0x11b   : > { %p12565_p12 = scmp.lt.s32.totalorder %s12563_s16, %s12559_s7 }
 0x11c   : > { %p12561_p7 = pnand %p12560_p4, %p11691_p10 }
 0x11d   : > { %p12566_p13 = por %p12565_p12, %p12564_p11 }
 0x11e   : > { %p12562_p8 = pneg %p12561_p7 }
 0x120   : > { %p12567_p0 = pnand %p12566_p13, %p12562_p8 }
 0x122   : > { %12570 = shalt.err (!%p12567_p0)
}
 0x123   : > { %s14695_s23 = smov 256   ;;  %s13189_s15 = smov [#allocation41]  }
 0x124   : > { %11624 = dma.hbm_to_vmem [thread:$0]  (%p11691_p10), %s1532_s25, 8192, %s1534_s1, [#allocation39], %s14695_s23, %s14695_s23, %s14781_s10  }
 0x125   : > { %s1564_s6 = sshll.u32 %s13189_s15, 4  ;;  %s1167_s3 = sshll.u32 %s13233_s21, 4  ;;  %s1565_s6 = int_to_ptr.vmem [resolvable:$true] %s1564_s6  ;;  %s13669_s3 = int_to_ptr.hbm [resolvable:$true] %s1167_s3 }
 0x126   : > { %s12585_s22 = sshra.s32 %s13657_s4, 4  ;;  %s12591_s16 = scalar_lea.hbm %s13433_s24, 2  ;;  %s12586_s22 = int_to_ptr.hbm [resolvable:$true] %s12585_s22 }
 0x127   : > { %s12587_s7 = scalar_lea.hbm %s12586_s22, 2  ;;  %p12592_p4 = scmp.lt.s32.totalorder %s12586_s22, %s13433_s24 }
 0x128   : > { %p12588_p1 = scmp.ne.s32.totalorder %s12586_s22, %s12587_s7  ;;  %p12593_p7 = scmp.lt.s32.totalorder %s12591_s16, %s12587_s7 }
 0x12a   : > { %p12589_p2 = pnand %p12588_p1, %p11691_p10  ;;  %p12594_p8 = por %p12593_p7, %p12592_p4 }
 0x12c   : > { %p12590_p3 = pneg %p12589_p2 }
 0x12e   : > { %p12595_p11 = pnand %p12594_p8, %p12590_p3 }
 0x130   : > { %12598 = shalt.err (!%p12595_p11)
}
 0x131   : > { %11628 = dma.hbm_to_vmem [thread:$0]  (%p11691_p10), %s13657_s4, 32, %s1565_s6, [#allocation42], %s14781_s10, %s14781_s10, %s14780_s26  }
 0x132   : > { %s1204_s25 = sshll.u32 %s13258_s14, 4  ;;  %s13190_s1 = smov [#allocation2]   ;;  %s13683_s25 = int_to_ptr.hbm [resolvable:$true] %s1204_s25 }
 0x133   : > { %s1169_s15 = sshll.u32 %s13190_s1, 4  ;;  %s12613_s22 = sshra.s32 %s13669_s3, 4  ;;  %s1170_s15 = int_to_ptr.vmem [resolvable:$true] %s1169_s15  ;;  %s12614_s22 = int_to_ptr.hbm [resolvable:$true] %s12613_s22 }
 0x134   : > { %s12615_s7 = scalar_lea.hbm %s12614_s22, 256  ;;  %s12619_s16 = scalar_lea.hbm %s13233_s21, 256 }
 0x135   : > { %p12616_p12 = scmp.ne.s32.totalorder %s12614_s22, %s12615_s7  ;;  %p12620_p1 = scmp.lt.s32.totalorder %s12614_s22, %s13233_s21 }
 0x136   : > { %p12621_p2 = scmp.lt.s32.totalorder %s12619_s16, %s12615_s7 }
 0x137   : > { %p12617_p13 = pnand %p12616_p12, %p11691_p10 }
 0x138   : > { %p12622_p3 = por %p12621_p2, %p12620_p1 }
 0x139   : > { %p12618_p0 = pneg %p12617_p13 }
 0x13b   : > { %p12623_p4 = pnand %p12622_p3, %p12618_p0 }
 0x13d   : > { %12626 = shalt.err (!%p12623_p4)
}
 0x13e   : > { %s14782_s4 = sld [smem:[#allocation73_spill]]  ;;  %s13191_s6 = smov [#allocation7]  }
 0x13f   : > { %11578 = dma.hbm_to_vmem [thread:$0]  (%p11691_p10), %s13669_s3, 4096, %s1170_s15, [#allocation3], %s14779_s2, %s14779_s2, %s14778_s11  }
 0x140   : > { %s1206_s1 = sshll.u32 %s13191_s6, 4  ;;  %s12641_s22 = sshra.s32 %s13683_s25, 4  ;;  %s1207_s1 = int_to_ptr.vmem [resolvable:$true] %s1206_s1  ;;  %s12642_s22 = int_to_ptr.hbm [resolvable:$true] %s12641_s22 }
 0x141   : > { %s12643_s7 = scalar_lea.hbm %s12642_s22, 256  ;;  %s12647_s16 = scalar_lea.hbm %s13258_s14, 256 }
 0x142   : > { %p12644_p7 = scmp.ne.s32.totalorder %s12642_s22, %s12643_s7  ;;  %p12648_p12 = scmp.lt.s32.totalorder %s12642_s22, %s13258_s14 }
 0x143   : > { %p12649_p13 = scmp.lt.s32.totalorder %s12647_s16, %s12643_s7 }
 0x144   : > { %s1244_s23 = sshll.u32 %s14782_s4, 4  ;;  %p12645_p8 = pnand %p12644_p7, %p11691_p10  ;;  %s13697_s23 = int_to_ptr.hbm [resolvable:$true] %s1244_s23 }
 0x145   : > { %p12650_p0 = por %p12649_p13, %p12648_p12 }
 0x146   : > { %p12646_p11 = pneg %p12645_p8 }
 0x148   : > { %p12651_p1 = pnand %p12650_p0, %p12646_p11 }
 0x14a   : > { %12654 = shalt.err (!%p12651_p1)
}
 0x14b   : > { %s14783_s3 = sld [smem:[#allocation78_spill]]  ;;  %s13192_s6 = smov [#allocation10]  }
 0x14c   : > { %11582 = dma.hbm_to_vmem [thread:$0]  (%p11691_p10), %s13683_s25, 4096, %s1207_s1, [#allocation6], %s14779_s2, %s14779_s2, %s14778_s11  }
 0x14d   : > { %s1246_s5 = sshll.u32 %s13192_s6, 4  ;;  %s12669_s22 = sshra.s32 %s13697_s23, 4  ;;  %s1247_s5 = int_to_ptr.vmem [resolvable:$true] %s1246_s5  ;;  %s12670_s22 = int_to_ptr.hbm [resolvable:$true] %s12669_s22 }
 0x14e   : > { %s12671_s7 = scalar_lea.hbm %s12670_s22, 512  ;;  %s12675_s16 = scalar_lea.hbm %s14782_s4, 512 }
 0x14f   : > { %p12672_p2 = scmp.ne.s32.totalorder %s12670_s22, %s12671_s7  ;;  %p12676_p7 = scmp.lt.s32.totalorder %s12670_s22, %s14782_s4 }
 0x150   : > { %p12677_p8 = scmp.lt.s32.totalorder %s12675_s16, %s12671_s7 }
 0x151   : > { %s1281_s15 = sshll.u32 %s14783_s3, 4  ;;  %p12673_p3 = pnand %p12672_p2, %p11691_p10  ;;  %s13711_s15 = int_to_ptr.hbm [resolvable:$true] %s1281_s15 }
 0x152   : > { %p12678_p11 = por %p12677_p8, %p12676_p7 }
 0x153   : > { %p12674_p4 = pneg %p12673_p3 }
 0x155   : > { %p12679_p12 = pnand %p12678_p11, %p12674_p4 }
 0x157   : > { %12682 = shalt.err (!%p12679_p12)
}
 0x158   : > { %s14784_s25 = smov 256   ;;  %s14785_s1 = sld [smem:[#allocation83_spill]] }
 0x159   : > { %11586 = dma.hbm_to_vmem [thread:$0]  (%p11691_p10), %s13697_s23, 8192, %s1247_s5, [#allocation9], %s14784_s25, %s14784_s25, %s14781_s10  }
 0x15a   : > { %s13193_s6 = smov [#allocation13]   ;;  %s12697_s22 = sshra.s32 %s13711_s15, 4  ;;  %s12698_s22 = int_to_ptr.hbm [resolvable:$true] %s12697_s22 }
 0x15b   : > { %s1283_s8 = sshll.u32 %s13193_s6, 4  ;;  %s12699_s7 = scalar_lea.hbm %s12698_s22, 256  ;;  %s1284_s8 = int_to_ptr.vmem [resolvable:$true] %s1283_s8 }
 0x15c   : > { %p12700_p13 = scmp.ne.s32.totalorder %s12698_s22, %s12699_s7  ;;  %s12703_s16 = scalar_lea.hbm %s14783_s3, 256 }
 0x15d   : > { %p12704_p2 = scmp.lt.s32.totalorder %s12698_s22, %s14783_s3  ;;  %p12705_p3 = scmp.lt.s32.totalorder %s12703_s16, %s12699_s7 }
 0x15e   : > { %s1318_s9 = sshll.u32 %s14785_s1, 4  ;;  %p12701_p0 = pnand %p12700_p13, %p11691_p10  ;;  %s13725_s9 = int_to_ptr.hbm [resolvable:$true] %s1318_s9 }
 0x15f   : > { %p12706_p4 = por %p12705_p3, %p12704_p2 }
 0x160   : > { %p12702_p1 = pneg %p12701_p0 }
 0x162   : > { %p12707_p7 = pnand %p12706_p4, %p12702_p1 }
 0x164   : > { %12710 = shalt.err (!%p12707_p7)
}
 0x165   : > { %s14786_s5 = sld [smem:[#allocation84_spill]]  ;;  %s13194_s25 = smov [#allocation16]  }
 0x166   : > { %11590 = dma.hbm_to_vmem [thread:$0]  (%p11691_p10), %s13711_s15, 4096, %s1284_s8, [#allocation12], %s14779_s2, %s14779_s2, %s14778_s11  }
 0x167   : > { %s1320_s6 = sshll.u32 %s13194_s25, 4  ;;  %s12725_s22 = sshra.s32 %s13725_s9, 4  ;;  %s1321_s6 = int_to_ptr.vmem [resolvable:$true] %s1320_s6  ;;  %s12726_s22 = int_to_ptr.hbm [resolvable:$true] %s12725_s22 }
 0x168   : > { %s12727_s7 = scalar_lea.hbm %s12726_s22, 256  ;;  %s12731_s16 = scalar_lea.hbm %s14785_s1, 256 }
 0x169   : > { %p12728_p8 = scmp.ne.s32.totalorder %s12726_s22, %s12727_s7  ;;  %p12732_p13 = scmp.lt.s32.totalorder %s12726_s22, %s14785_s1 }
 0x16a   : > { %p12733_p0 = scmp.lt.s32.totalorder %s12731_s16, %s12727_s7 }
 0x16b   : > { %s1346_s23 = sshll.u32 %s14786_s5, 4  ;;  %p12729_p11 = pnand %p12728_p8, %p11691_p10  ;;  %s13739_s23 = int_to_ptr.hbm [resolvable:$true] %s1346_s23 }
 0x16c   : > { %p12734_p1 = por %p12733_p0, %p12732_p13 }
 0x16d   : > { %p12730_p12 = pneg %p12729_p11 }
 0x16f   : > { %p12735_p2 = pnand %p12734_p1, %p12730_p12 }
 0x171   : > { %12738 = shalt.err (!%p12735_p2)
}
 0x172   : > { %s14787_s8 = sld [smem:[#allocation85_spill]]  ;;  %s13195_s15 = smov [#allocation19]  }
 0x173   : > { %11594 = dma.hbm_to_vmem [thread:$0]  (%p11691_p10), %s13725_s9, 4096, %s1321_s6, [#allocation15], %s14779_s2, %s14779_s2, %s14778_s11  }
 0x174   : > { %s1348_s25 = sshll.u32 %s13195_s15, 4  ;;  %s12753_s22 = sshra.s32 %s13739_s23, 4  ;;  %s1349_s25 = int_to_ptr.vmem [resolvable:$true] %s1348_s25  ;;  %s12754_s22 = int_to_ptr.hbm [resolvable:$true] %s12753_s22 }
 0x175   : > { %s12755_s7 = scalar_lea.hbm %s12754_s22, 2  ;;  %s12759_s16 = scalar_lea.hbm %s14786_s5, 2 }
 0x176   : > { %p12756_p3 = scmp.ne.s32.totalorder %s12754_s22, %s12755_s7  ;;  %p12760_p8 = scmp.lt.s32.totalorder %s12754_s22, %s14786_s5 }
 0x177   : > { %p12761_p11 = scmp.lt.s32.totalorder %s12759_s16, %s12755_s7 }
 0x178   : > { %s1374_s3 = sshll.u32 %s14787_s8, 4  ;;  %p12757_p4 = pnand %p12756_p3, %p11691_p10  ;;  %s13753_s3 = int_to_ptr.hbm [resolvable:$true] %s1374_s3 }
 0x179   : > { %p12762_p12 = por %p12761_p11, %p12760_p8 }
 0x17a   : > { %p12758_p7 = pneg %p12757_p4 }
 0x17c   : > { %p12763_p13 = pnand %p12762_p12, %p12758_p7 }
 0x17e   : > { %12766 = shalt.err (!%p12763_p13)
}
 0x17f   : > { %s14788_s9 = sld [smem:[#allocation87_spill]]  ;;  %s13196_s15 = smov [#allocation22]  }
 0x180   : > { %11598 = dma.hbm_to_vmem [thread:$0]  (%p11691_p10), %s13739_s23, 32, %s1349_s25, [#allocation18], %s14781_s10, %s14781_s10, %s14780_s26  }
 0x181   : > { %s1376_s1 = sshll.u32 %s13196_s15, 4  ;;  %s12781_s22 = sshra.s32 %s13753_s3, 4  ;;  %s1377_s1 = int_to_ptr.vmem [resolvable:$true] %s1376_s1  ;;  %s12782_s22 = int_to_ptr.hbm [resolvable:$true] %s12781_s22 }
 0x182   : > { %s12783_s7 = scalar_lea.hbm %s12782_s22, 256  ;;  %s12787_s16 = scalar_lea.hbm %s14787_s8, 256 }
 0x183   : > { %p12784_p0 = scmp.ne.s32.totalorder %s12782_s22, %s12783_s7  ;;  %p12788_p3 = scmp.lt.s32.totalorder %s12782_s22, %s14787_s8 }
 0x184   : > { %p12789_p4 = scmp.lt.s32.totalorder %s12787_s16, %s12783_s7 }
 0x185   : > { %s1402_s6 = sshll.u32 %s14788_s9, 4  ;;  %p12785_p1 = pnand %p12784_p0, %p11691_p10  ;;  %s13767_s6 = int_to_ptr.hbm [resolvable:$true] %s1402_s6 }
 0x186   : > { %p12790_p7 = por %p12789_p4, %p12788_p3 }
 0x187   : > { %p12786_p2 = pneg %p12785_p1 }
 0x189   : > { %p12791_p8 = pnand %p12790_p7, %p12786_p2 }
 0x18b   : > { %12794 = shalt.err (!%p12791_p8)
}
 0x18c   : > { %s14789_s23 = sld [smem:[#allocation89_spill]]  ;;  %s13197_s15 = smov [#allocation25]  }
 0x18d   : > { %11602 = dma.hbm_to_vmem [thread:$0]  (%p11691_p10), %s13753_s3, 4096, %s1377_s1, [#allocation21], %s14779_s2, %s14779_s2, %s14778_s11  }
 0x18e   : > { %s1404_s4 = sshll.u32 %s13197_s15, 4  ;;  %s12809_s22 = sshra.s32 %s13767_s6, 4  ;;  %s1405_s4 = int_to_ptr.vmem [resolvable:$true] %s1404_s4  ;;  %s12810_s22 = int_to_ptr.hbm [resolvable:$true] %s12809_s22 }
 0x18f   : > { %s12811_s7 = scalar_lea.hbm %s12810_s22, 256  ;;  %s12815_s16 = scalar_lea.hbm %s14788_s9, 256 }
 0x190   : > { %p12812_p11 = scmp.ne.s32.totalorder %s12810_s22, %s12811_s7  ;;  %p12816_p0 = scmp.lt.s32.totalorder %s12810_s22, %s14788_s9 }
 0x191   : > { %p12817_p1 = scmp.lt.s32.totalorder %s12815_s16, %s12811_s7 }
 0x192   : > { %s14790_s25 = smov %s14789_s23  ;;  %s1430_s5 = sshll.u32 %s14789_s23, 4  ;;  %s13781_s5 = int_to_ptr.hbm [resolvable:$true] %s1430_s5 }
 0x193   : > { %p12813_p12 = pnand %p12812_p11, %p11691_p10  ;;  %p12818_p2 = por %p12817_p1, %p12816_p0 }
 0x195   : > { %p12814_p13 = pneg %p12813_p12 }
 0x197   : > { %p12819_p3 = pnand %p12818_p2, %p12814_p13 }
 0x199   : > { %12822 = shalt.err (!%p12819_p3)
}
 0x19a   : > { %s14791_s3 = sld [smem:[#allocation90_spill]]  ;;  %s13198_s23 = smov [#allocation28]  }
 0x19b   : > { %11606 = dma.hbm_to_vmem [thread:$0]  (%p11691_p10), %s13767_s6, 4096, %s1405_s4, [#allocation24], %s14779_s2, %s14779_s2, %s14778_s11  }
 0x19c   : > { %s1432_s15 = sshll.u32 %s13198_s23, 4  ;;  %s12837_s22 = sshra.s32 %s13781_s5, 4  ;;  %s1433_s15 = int_to_ptr.vmem [resolvable:$true] %s1432_s15  ;;  %s12838_s22 = int_to_ptr.hbm [resolvable:$true] %s12837_s22 }
 0x19d   : > { %s12839_s7 = scalar_lea.hbm %s12838_s22, 16  ;;  %s12843_s16 = scalar_lea.hbm %s14790_s25, 16 }
 0x19e   : > { %p12840_p4 = scmp.ne.s32.totalorder %s12838_s22, %s12839_s7  ;;  %p12844_p11 = scmp.lt.s32.totalorder %s12838_s22, %s14790_s25 }
 0x19f   : > { %p12845_p12 = scmp.lt.s32.totalorder %s12843_s16, %s12839_s7 }
 0x1a0   : > { %s1458_s1 = sshll.u32 %s14791_s3, 4  ;;  %p12841_p7 = pnand %p12840_p4, %p11691_p10  ;;  %s13795_s1 = int_to_ptr.hbm [resolvable:$true] %s1458_s1 }
 0x1a1   : > { %p12846_p13 = por %p12845_p12, %p12844_p11 }
 0x1a2   : > { %p12842_p8 = pneg %p12841_p7 }
 0x1a4   : > { %p12847_p0 = pnand %p12846_p13, %p12842_p8 }
 0x1a6   : > { %12850 = shalt.err (!%p12847_p0)
}
 0x1a7   : > { %s14792_s4 = sld [smem:[#allocation91_spill]]  ;;  %s13199_s6 = smov [#allocation31]  }
 0x1a8   : > { %11610 = dma.hbm_to_vmem [thread:$0]  (%p11691_p10), %s13781_s5, 256, %s1433_s15, [#allocation27], %s14781_s10, %s14781_s10, %s14780_s26  }
 0x1a9   : > { %s1460_s23 = sshll.u32 %s13199_s6, 4  ;;  %s12865_s22 = sshra.s32 %s13795_s1, 4  ;;  %s1461_s23 = int_to_ptr.vmem [resolvable:$true] %s1460_s23  ;;  %s12866_s22 = int_to_ptr.hbm [resolvable:$true] %s12865_s22 }
 0x1aa   : > { %s12867_s7 = scalar_lea.hbm %s12866_s22, 256  ;;  %s12871_s16 = scalar_lea.hbm %s14791_s3, 256 }
 0x1ab   : > { %p12868_p1 = scmp.ne.s32.totalorder %s12866_s22, %s12867_s7  ;;  %p12872_p4 = scmp.lt.s32.totalorder %s12866_s22, %s14791_s3 }
 0x1ac   : > { %p12873_p7 = scmp.lt.s32.totalorder %s12871_s16, %s12867_s7 }
 0x1ad   : > { %s1486_s8 = sshll.u32 %s14792_s4, 4  ;;  %p12869_p2 = pnand %p12868_p1, %p11691_p10  ;;  %s13809_s8 = int_to_ptr.hbm [resolvable:$true] %s1486_s8 }
 0x1ae   : > { %p12874_p8 = por %p12873_p7, %p12872_p4 }
 0x1af   : > { %p12870_p3 = pneg %p12869_p2 }
 0x1b1   : > { %p12875_p11 = pnand %p12874_p8, %p12870_p3 }
 0x1b3   : > { %12878 = shalt.err (!%p12875_p11)
}
 0x1b4   : > { %s14793_s5 = sld [smem:[#allocation92_spill]]  ;;  %s13200_s6 = smov [#allocation34]  }
 0x1b5   : > { %11614 = dma.hbm_to_vmem [thread:$0]  (%p11691_p10), %s13795_s1, 4096, %s1461_s23, [#allocation30], %s14779_s2, %s14779_s2, %s14778_s11  }
 0x1b6   : > { %s1488_s9 = sshll.u32 %s13200_s6, 4  ;;  %s12893_s22 = sshra.s32 %s13809_s8, 4  ;;  %s1489_s9 = int_to_ptr.vmem [resolvable:$true] %s1488_s9  ;;  %s12894_s22 = int_to_ptr.hbm [resolvable:$true] %s12893_s22 }
 0x1b7   : > { %s12895_s7 = scalar_lea.hbm %s12894_s22, 2  ;;  %s12899_s16 = scalar_lea.hbm %s14792_s4, 2 }
 0x1b8   : > { %p12896_p12 = scmp.ne.s32.totalorder %s12894_s22, %s12895_s7  ;;  %p12900_p1 = scmp.lt.s32.totalorder %s12894_s22, %s14792_s4 }
 0x1b9   : > { %p12901_p2 = scmp.lt.s32.totalorder %s12899_s16, %s12895_s7 }
 0x1ba   : > { %s1514_s15 = sshll.u32 %s14793_s5, 4  ;;  %p12897_p13 = pnand %p12896_p12, %p11691_p10  ;;  %s13823_s15 = int_to_ptr.hbm [resolvable:$true] %s1514_s15 }
 0x1bb   : > { %p12902_p3 = por %p12901_p2, %p12900_p1 }
 0x1bc   : > { %p12898_p0 = pneg %p12897_p13 }
 0x1be   : > { %p12903_p4 = pnand %p12902_p3, %p12898_p0 }
 0x1c0   : > { %12906 = shalt.err (!%p12903_p4)
}
 0x1c1   : > { %s14794_s1 = sld [smem:[#allocation95_spill]]  ;;  %s13201_s23 = smov [#allocation37]  }
 0x1c2   : > { %11618 = dma.hbm_to_vmem [thread:$0]  (%p11691_p10), %s13809_s8, 32, %s1489_s9, [#allocation33], %s14781_s10, %s14781_s10, %s14780_s26  }
 0x1c3   : > { %s1516_s6 = sshll.u32 %s13201_s23, 4  ;;  %s12921_s22 = sshra.s32 %s13823_s15, 4  ;;  %s1517_s6 = int_to_ptr.vmem [resolvable:$true] %s1516_s6  ;;  %s12922_s22 = int_to_ptr.hbm [resolvable:$true] %s12921_s22 }
 0x1c4   : > { %s12923_s7 = scalar_lea.hbm %s12922_s22, 512  ;;  %s12927_s16 = scalar_lea.hbm %s14793_s5, 512 }
 0x1c5   : > { %p12924_p7 = scmp.ne.s32.totalorder %s12922_s22, %s12923_s7  ;;  %p12928_p12 = scmp.lt.s32.totalorder %s12922_s22, %s14793_s5 }
 0x1c6   : > { %p12929_p13 = scmp.lt.s32.totalorder %s12927_s16, %s12923_s7 }
 0x1c7   : > { %s1545_s3 = sshll.u32 %s14794_s1, 4  ;;  %p12925_p8 = pnand %p12924_p7, %p11691_p10  ;;  %s13837_s3 = int_to_ptr.hbm [resolvable:$true] %s1545_s3 }
 0x1c8   : > { %p12930_p0 = por %p12929_p13, %p12928_p12 }
 0x1c9   : > { %p12926_p11 = pneg %p12925_p8 }
 0x1cb   : > { %p12931_p1 = pnand %p12930_p0, %p12926_p11 }
 0x1cd   : > { %12934 = shalt.err (!%p12931_p1)
}
 0x1ce   : > { %11622 = dma.hbm_to_vmem [thread:$0]  (%p11691_p10), %s13823_s15, 8192, %s1517_s6, [#allocation36], %s14779_s2, %s14779_s2, %s14778_s11  }
 0x1cf   : > { %s1576_s8 = sshll.u32 %s13438_s20, 4  ;;  %s13202_s9 = smov [#allocation40]   ;;  %s13851_s8 = int_to_ptr.hbm [resolvable:$true] %s1576_s8 }
 0x1d0   : > { %s1547_s23 = sshll.u32 %s13202_s9, 4  ;;  %s12949_s22 = sshra.s32 %s13837_s3, 4  ;;  %s1548_s23 = int_to_ptr.vmem [resolvable:$true] %s1547_s23  ;;  %s12950_s22 = int_to_ptr.hbm [resolvable:$true] %s12949_s22 }
 0x1d1   : > { %s12951_s7 = scalar_lea.hbm %s12950_s22, 2  ;;  %s12955_s16 = scalar_lea.hbm %s14794_s1, 2 }
 0x1d2   : > { %p12952_p2 = scmp.ne.s32.totalorder %s12950_s22, %s12951_s7  ;;  %p12956_p7 = scmp.lt.s32.totalorder %s12950_s22, %s14794_s1 }
 0x1d3   : > { %p12957_p8 = scmp.lt.s32.totalorder %s12955_s16, %s12951_s7 }
 0x1d4   : > { %p12953_p3 = pnand %p12952_p2, %p11691_p10 }
 0x1d5   : > { %p12958_p11 = por %p12957_p8, %p12956_p7 }
 0x1d6   : > { %p12954_p4 = pneg %p12953_p3 }
 0x1d8   : > { %p12959_p12 = pnand %p12958_p11, %p12954_p4 }
 0x1da   : > { %12962 = shalt.err (!%p12959_p12)
}
 0x1db   : > { %11626 = dma.hbm_to_vmem [thread:$0]  (%p11691_p10), %s13837_s3, 32, %s1548_s23, [#allocation39], %s14781_s10, %s14781_s10, %s14780_s26  }
 0x1dc   : > { %s13203_s15 = smov [#allocation43]   ;;  %s12977_s9 = sshra.s32 %s13851_s8, 4  ;;  %s12978_s9 = int_to_ptr.hbm [resolvable:$true] %s12977_s9 }
 0x1dd   : > { %s1578_s6 = sshll.u32 %s13203_s15, 4  ;;  %s12979_s22 = scalar_lea.hbm %s12978_s9, 128  ;;  %s1579_s6 = int_to_ptr.vmem [resolvable:$true] %s1578_s6 }
 0x1de   : > { %p12980_p13 = scmp.ne.s32.totalorder %s12978_s9, %s12979_s22  ;;  %s12983_s7 = scalar_lea.hbm %s13438_s20, 128 }
 0x1df   : > { %p12984_p2 = scmp.lt.s32.totalorder %s12978_s9, %s13438_s20  ;;  %p12985_p3 = scmp.lt.s32.totalorder %s12983_s7, %s12979_s22 }
 0x1e0   : > { %p12981_p0 = pnand %p12980_p13, %p11691_p10 }
 0x1e1   : > { %p12986_p4 = por %p12985_p3, %p12984_p2 }
 0x1e2   : > { %p12982_p1 = pneg %p12981_p0 }
 0x1e4   : > { %p12987_p7 = pnand %p12986_p4, %p12982_p1 }
 0x1e6   : > { %12990 = shalt.err (!%p12987_p7)
}
 0x1e7   : > { %11630 = dma.hbm_to_vmem [thread:$0]  (%p11691_p10), %s13851_s8, 2048, %s1579_s6, [#allocation42], %s14779_s2, %s14779_s2, %s14778_s11  }
 0x1e8 PF: > { %1611 = sbr.rel (%p13498_p9) target bundleno = 8959 (0x22ff), region = 208  ;;  %p11718_p8 = scmp.eq.s32.totalorder (!%p13498_p9), %s13471_s28, 0 }
 0x1ed   : > { %13050 = dma.done.wait (%p11718_p8), [#allocation3], 4096  }
 0x1ee   : > { %13052 = vsyncadd (%p11718_p8), [#allocation3], 4294963200 }
 0x1ef   : > { %13054 = dma.done.wait (%p11718_p8), [#allocation6], 8192  }
 0x1f0   : > { %13056 = vsyncadd (%p11718_p8), [#allocation6], 4294959104 }
 0x1f1   : > { %13058 = dma.done.wait (%p11718_p8), [#allocation9], 16384  }
 0x1f2   : > { %13060 = vsyncadd (%p11718_p8), [#allocation9], 4294950912 }
 0x1f3   : > { %13062 = dma.done.wait (%p11718_p8), [#allocation12], 8192  }
 0x1f4   : > { %13064 = vsyncadd (%p11718_p8), [#allocation12], 4294959104 }
 0x1f5   : > { %13066 = dma.done.wait (%p11718_p8), [#allocation15], 8192  }
 0x1f6   : > { %13068 = vsyncadd (%p11718_p8), [#allocation15], 4294959104 }
 0x1f7   : > { %13070 = dma.done.wait (%p11718_p8), [#allocation18], 64  }
 0x1f8   : > { %13072 = vsyncadd (%p11718_p8), [#allocation18], 4294967232 }
 0x1f9   : > { %13074 = dma.done.wait (%p11718_p8), [#allocation21], 4128  }
 0x1fa   : > { %13076 = vsyncadd (%p11718_p8), [#allocation21], 4294963168 }
 0x1fb   : > { %13078 = dma.done.wait (%p11718_p8), [#allocation24], 8192  }
 0x1fc   : > { %13080 = vsyncadd (%p11718_p8), [#allocation24], 4294959104 }
 0x1fd   : > { %13082 = dma.done.wait (%p11718_p8), [#allocation27], 512  }
 0x1fe   : > { %13084 = vsyncadd (%p11718_p8), [#allocation27], 4294966784 }
 0x1ff   : > { %13086 = dma.done.wait (%p11718_p8), [#allocation30], 4352  }
 0x200   : > { %13088 = vsyncadd (%p11718_p8), [#allocation30], 4294962944 }
 0x201   : > { %13090 = dma.done.wait (%p11718_p8), [#allocation33], 64  }
 0x202   : > { %13092 = vsyncadd (%p11718_p8), [#allocation33], 4294967232 }
 0x203   : > { %13094 = dma.done.wait (%p11718_p8), [#allocation36], 8224  }
 0x204   : > { %13096 = vsyncadd (%p11718_p8), [#allocation36], 4294959072 }
 0x205   : > { %13098 = dma.done.wait (%p11718_p8), [#allocation39], 8224  }
 0x206   : > { %13100 = vsyncadd (%p11718_p8), [#allocation39], 4294959072 }
 0x207   : > { %13102 = dma.done.wait (%p11718_p8), [#allocation42], 2080  }
 0x208   : > { %13104 = vsyncadd (%p11718_p8), [#allocation42], 4294965216  ;;  %s14795_s18 = sld [smem:[#allocation63_spill]]  ;;  %p1857_p9 = scmp.lt.s32.totalorder %s13471_s28, 1  ;;  %v1884_v15 = vld [vmem:[#allocation2 + $0x8] sm:$0xff]  ;;  %v1883_v18 = vld [vmem:[#allocation2] sm:$0xff] }
 0x209   : > { %s14796_s11 = sld [smem:[#allocation60_spill]]  ;;  %v1886_v19 = vld [vmem:[#allocation2 + $0x18] sm:$0xff]  ;;  %v1888_v20 = vld [vmem:[#allocation2 + $0x28] sm:$0xff]  ;;  %v1885_v22 = vld [vmem:[#allocation2 + $0x10] sm:$0xff]  ;;  %vm2578_vm0 = vcmask 130048   ;;  %vm2795_vm1 = vcmask 64512  }
 0x20a   : > { %s13936_s2 = scalar_select %p1857_p9, %s13471_s28, 1  ;;  %v1890_v21 = vld [vmem:[#allocation2 + $0x38] sm:$0xff]  ;;  %v1887_v23 = vld [vmem:[#allocation2 + $0x20] sm:$0xff]  ;;  %v1892_v24 = vld [vmem:[#allocation2 + $0x48] sm:$0xff] }
 0x20b   : > { %v1889_v25 = vld [vmem:[#allocation2 + $0x30] sm:$0xff]  ;;  %v1896_v26 = vld [vmem:[#allocation2 + $0x68] sm:$0xff]  ;;  %v1898_v27 = vld [vmem:[#allocation2 + $0x78] sm:$0xff]  ;;  %s14797_s3 = sld [smem:[#allocation66_spill]] }
 0x20c   : > { %s14706_s26 = sshll.u32 %s13936_s2, 3  ;;  %v1891_v28 = vld [vmem:[#allocation2 + $0x40] sm:$0xff]  ;;  %v1897_v30 = vld [vmem:[#allocation2 + $0x70] sm:$0xff]  ;;  %v1894_v31 = vld [vmem:[#allocation2 + $0x58] sm:$0xff]  ;;  %s14798_s8 = sld [smem:[#allocation65_spill]] }
 0x20d   : > { %v1895_v29 = vld [vmem:[#allocation2 + $0x60] sm:$0xff]  ;;  %v1893_v32 = vld [vmem:[#allocation2 + $0x50] sm:$0xff]  ;;  %v1900_v33 = vld [vmem:[#allocation5 + $0x8] sm:$0xff]  ;;  %s14799_s23 = sld [smem:[#allocation67_spill]] }
 0x20e   : > { %v1868_v0 = vld [vmem:[%s14795_s18 + $0x8] sm:$0xff]  ;;  %v1874_v2 = vld [vmem:[%s14795_s18 + $0x38] sm:$0xff]  ;;  %v1867_v3 = vld [vmem:[%s14795_s18] sm:$0xff]  ;;  %s14801_s15 = sld [smem:[#allocation68_spill]] }
 0x20f   : > { %v1872_v1 = vld [vmem:[%s14795_s18 + $0x28] sm:$0xff]  ;;  %2064 = vmatpush.xpose.msra.mxu1 %v1868_v0  ;;  %2124 = vmatpush.xpose.msra.mxu3 %v1874_v2  ;;  %v1871_v4 = vld [vmem:[%s14795_s18 + $0x20] sm:$0xff]  ;;  %s13947_s10 = scalar_lea.vmem %s14796_s11, %s14706_s26  ;;  %v1873_v5 = vld [vmem:[%s14795_s18 + $0x30] sm:$0xff]  ;;  %s14802_s6 = sld [smem:[#allocation69_spill]] }
 0x210   : > { %2104 = vmatpush.xpose.msra.mxu2 %v1872_v1  ;;  %v1870_v6 = vld [vmem:[%s14795_s18 + $0x18] sm:$0xff]  ;;  %v1876_v7 = vld [vmem:[%s14795_s18 + $0x48] sm:$0xff]  ;;  %v13954_v9 = vld [vmem:[%s13947_s10] sm:$0xff]  ;;  %s14803_s9 = sld [smem:[#allocation70_spill]] }
 0x211   : > { %v1882_v8 = vld [vmem:[%s14795_s18 + $0x78] sm:$0xff]  ;;  %v1869_v10 = vld [vmem:[%s14795_s18 + $0x10] sm:$0xff]  ;;  %v1875_v11 = vld [vmem:[%s14795_s18 + $0x40] sm:$0xff]  ;;  %s14804_s22 = sld [smem:[#allocation72_spill]] }
 0x212   : > { %v1881_v12 = vld [vmem:[%s14795_s18 + $0x70] sm:$0xff]  ;;  %v1878_v13 = vld [vmem:[%s14795_s18 + $0x58] sm:$0xff]  ;;  %v1880_v14 = vld [vmem:[%s14795_s18 + $0x68] sm:$0xff]  ;;  %s14806_s11 = sld [smem:[#allocation74_spill]] }
 0x213   : > { %2065 = vmatpush.xpose.msra.mxu1 %v1867_v3  ;;  %2125 = vmatpush.xpose.msra.mxu3 %v1873_v5  ;;  %v1877_v16 = vld [vmem:[%s14795_s18 + $0x50] sm:$0xff]  ;;  %v1879_v17 = vld [vmem:[%s14795_s18 + $0x60] sm:$0xff]  ;;  %v1906_v34 = vld [vmem:[#allocation5 + $0x38] sm:$0xff]  ;;  %s14800_s16 = smov %s14799_s23 }
 0x214   : > { %2105 = vmatpush.xpose.msra.mxu2 %v1871_v4  ;;  %v1902_v35 = vld [vmem:[#allocation5 + $0x18] sm:$0xff]  ;;  %v1899_v36 = vld [vmem:[#allocation5] sm:$0xff]  ;;  %v1905_v37 = vld [vmem:[#allocation5 + $0x30] sm:$0xff] }
 0x215   : > { %v1901_v38 = vld [vmem:[#allocation5 + $0x10] sm:$0xff]  ;;  %v1904_v39 = vld [vmem:[#allocation5 + $0x28] sm:$0xff]  ;;  %v1910_v41 = vld [vmem:[#allocation5 + $0x58] sm:$0xff] }
 0x216   : > { %2066 = vmatmul.f32.vlgmr.msra.gmra.mxu1 %v13954_v9  ;;  %2126 = vmatmul.f32.vlgmr.msra.gmra.mxu3 %v13954_v9  ;;  %v1908_v40 = vld [vmem:[#allocation5 + $0x48] sm:$0xff]  ;;  %v1903_v42 = vld [vmem:[#allocation5 + $0x20] sm:$0xff]  ;;  %v1909_v44 = vld [vmem:[#allocation5 + $0x50] sm:$0xff] }
 0x217   : > { %2084 = vmatpush.xpose.msrb.mxu1 %v1870_v6  ;;  %2204 = vmatpush.xpose.msrb.mxu3 %v1882_v8  ;;  %v1907_v43 = vld [vmem:[#allocation5 + $0x40] sm:$0xff]  ;;  %v1912_v45 = vld [vmem:[#allocation5 + $0x68] sm:$0xff]  ;;  %v1914_v46 = vld [vmem:[#allocation5 + $0x78] sm:$0xff]  ;;  %s14805_s7 = smov %s14804_s22 }
 0x218   : > { %2144 = vmatpush.xpose.msrb.mxu2 %v1876_v7  ;;  %v1911_v47 = vld [vmem:[#allocation5 + $0x60] sm:$0xff]  ;;  %v1913_v48 = vld [vmem:[#allocation5 + $0x70] sm:$0xff] }
 0x219   : > { %2106 = vmatmul.f32.vlgmr.msra.gmra.mxu2 %v13954_v9  ;;  %v11867_v56 = vld [vmem:[%s14797_s3] ss:$0 sm:$0xff]  ;;  %v11866_v57 = vld [vmem:[%s14797_s3 + $0x1] ss:$0 sm:$0xff]  ;;  %v11868_v3 = vld [vmem:[%s14797_s3 + $0x2] ss:$0 sm:$0xff] }
 0x21a   : > { %v11861_v58 = vld [vmem:[%s14798_s8 + $0x1] ss:$0 sm:$0xff]  ;;  %v11858_v60 = vld [vmem:[%s14798_s8] ss:$0 sm:$0xff]  ;;  %v11869_v4 = vld [vmem:[%s14797_s3 + $0x3] ss:$0 sm:$0xff] }
 0x21b   : > { %2085 = vmatpush.xpose.msrb.mxu1 %v1869_v10  ;;  %2205 = vmatpush.xpose.msrb.mxu3 %v1881_v12  ;;  %v11870_v5 = vld [vmem:[%s14797_s3 + $0x4] ss:$0 sm:$0xff]  ;;  %v11859_v6 = vld [vmem:[%s14798_s8 + $0x2] ss:$0 sm:$0xff]  ;;  %v11860_v8 = vld [vmem:[%s14798_s8 + $0x3] ss:$0 sm:$0xff] }
 0x21c   : > { %2145 = vmatpush.xpose.msrb.mxu2 %v1875_v11  ;;  %v11862_v11 = vld [vmem:[%s14798_s8 + $0x4] ss:$0 sm:$0xff] }
 0x21e   : > { %2086 = vmatmul.f32.vlgmr.msrb.gmra.mxu1 %v13954_v9  ;;  %2206 = vmatmul.f32.vlgmr.msrb.gmra.mxu3 %v13954_v9 }
 0x21f   : > { %2164 = vmatpush.xpose.msra.mxu1 %v1878_v13  ;;  %2248 = vmatpush.xpose.msra.mxu3 %v1884_v15 }
 0x220   : > { %2184 = vmatpush.xpose.msra.mxu2 %v1880_v14 }
 0x221   : > { %2146 = vmatmul.f32.vlgmr.msrb.gmra.mxu2 %v13954_v9 }
 0x223   : > { %2165 = vmatpush.xpose.msra.mxu1 %v1877_v16  ;;  %2249 = vmatpush.xpose.msra.mxu3 %v1883_v18 }
 0x224   : > { %2185 = vmatpush.xpose.msra.mxu2 %v1879_v17  ;;  %v11871_v17 = vld [vmem:[%s14797_s3 + $0x6] ss:$0 sm:$0xff] }
 0x226   : > { %2166 = vmatmul.f32.vlgmr.msra.gmra.mxu1 %v13954_v9  ;;  %2250 = vmatmul.f32.vlgmr.msra.gmra.mxu3 %v13954_v9 }
 0x227   : > { %2268 = vmatpush.xpose.msrb.mxu1 %v1886_v19  ;;  %2308 = vmatpush.xpose.msrb.mxu3 %v1890_v21  ;;  %v11872_v19 = vld [vmem:[%s14797_s3 + $0x7] ss:$0 sm:$0xff]  ;;  %v11865_v21 = vld [vmem:[%s14798_s8 + $0x6] ss:$0 sm:$0xff] }
 0x228   : > { %2288 = vmatpush.xpose.msrb.mxu2 %v1888_v20  ;;  %v11873_v20 = vld [vmem:[%s14797_s3 + $0x5] ss:$0 sm:$0xff] }
 0x229   : > { %2186 = vmatmul.f32.vlgmr.msra.gmra.mxu2 %v13954_v9 }
 0x22b   : > { %2269 = vmatpush.xpose.msrb.mxu1 %v1885_v22  ;;  %2309 = vmatpush.xpose.msrb.mxu3 %v1889_v25 }
 0x22c   : > { %2289 = vmatpush.xpose.msrb.mxu2 %v1887_v23  ;;  %v11863_v23 = vld [vmem:[%s14798_s8 + $0x7] ss:$0 sm:$0xff] }
 0x22e   : > { %2270 = vmatmul.f32.vlgmr.msrb.gmra.mxu1 %v13954_v9  ;;  %2310 = vmatmul.f32.vlgmr.msrb.gmra.mxu3 %v13954_v9 }
 0x22f   : > { %2328 = vmatpush.xpose.msra.mxu1 %v1892_v24  ;;  %2388 = vmatpush.xpose.msra.mxu3 %v1898_v27 }
 0x230   : > { %2368 = vmatpush.xpose.msra.mxu2 %v1896_v26  ;;  %v11864_v26 = vld [vmem:[%s14798_s8 + $0x5] ss:$0 sm:$0xff] }
 0x231   : > { %2290 = vmatmul.f32.vlgmr.msrb.gmra.mxu2 %v13954_v9 }
 0x233   : > { %2329 = vmatpush.xpose.msra.mxu1 %v1891_v28  ;;  %2389 = vmatpush.xpose.msra.mxu3 %v1897_v30 }
 0x234   : > { %2369 = vmatpush.xpose.msra.mxu2 %v1895_v29 }
 0x236   : > { %2330 = vmatmul.f32.vlgmr.msra.gmra.mxu1 %v13954_v9  ;;  %2390 = vmatmul.f32.vlgmr.msra.gmra.mxu3 %v13954_v9 }
 0x237   : > { %2348 = vmatpush.xpose.msrb.mxu1 %v1894_v31  ;;  %2492 = vmatpush.xpose.msrb.mxu3 %v1906_v34 }
 0x238   : > { %2432 = vmatpush.xpose.msrb.mxu2 %v1900_v33  ;;  %v11874_v33 = vld [vmem:[%s14799_s23 + $0x1] ss:$0 sm:$0xff]  ;;  %s14808_s23 = sld [smem:[#allocation76_spill]] }
 0x239   : > { %2370 = vmatmul.f32.vlgmr.msra.gmra.mxu2 %v13954_v9 }
 0x23b   : > { %2349 = vmatpush.xpose.msrb.mxu1 %v1893_v32  ;;  %2493 = vmatpush.xpose.msrb.mxu3 %v1905_v37  ;;  %v11876_v37 = vld [vmem:[%s14800_s16 + $0x3] ss:$0 sm:$0xff] }
 0x23c   : > { %2433 = vmatpush.xpose.msrb.mxu2 %v1899_v36  ;;  %v11875_v36 = vld [vmem:[%s14800_s16] ss:$0 sm:$0xff] }
 0x23e   : > { %2350 = vmatmul.f32.vlgmr.msrb.gmra.mxu1 %v13954_v9  ;;  %2494 = vmatmul.f32.vlgmr.msrb.gmra.mxu3 %v13954_v9  ;;  %s14809_s26 = smov %s14808_s23 }
 0x23f   : > { %2452 = vmatpush.xpose.msra.mxu1 %v1902_v35  ;;  %2512 = vmatpush.xpose.msra.mxu3 %v1908_v40 }
 0x240   : > { %2472 = vmatpush.xpose.msra.mxu2 %v1904_v39 }
 0x241   : > { %2434 = vmatmul.f32.vlgmr.msrb.gmra.mxu2 %v13954_v9 }
 0x243   : > { %2453 = vmatpush.xpose.msra.mxu1 %v1901_v38  ;;  %2513 = vmatpush.xpose.msra.mxu3 %v1907_v43 }
 0x244   : > { %2473 = vmatpush.xpose.msra.mxu2 %v1903_v42  ;;  %v11877_v42 = vld [vmem:[%s14800_s16 + $0x5] ss:$0 sm:$0xff] }
 0x246   : > { %2454 = vmatmul.f32.vlgmr.msra.gmra.mxu1 %v13954_v9  ;;  %2514 = vmatmul.f32.vlgmr.msra.gmra.mxu3 %v13954_v9 }
 0x247   : > { %2532 = vmatpush.xpose.msrb.mxu1 %v1910_v41  ;;  %2572 = vmatpush.xpose.msrb.mxu3 %v1914_v46  ;;  %v11879_v46 = vld [vmem:[%s14800_s16 + $0x4] ss:$0 sm:$0xff] }
 0x248   : > { %2552 = vmatpush.xpose.msrb.mxu2 %v1912_v45  ;;  %v11878_v45 = vld [vmem:[%s14800_s16 + $0x2] ss:$0 sm:$0xff] }
 0x249   : > { %2474 = vmatmul.f32.vlgmr.msra.gmra.mxu2 %v13954_v9 }
 0x24b   : > { %2533 = vmatpush.xpose.msrb.mxu1 %v1909_v44  ;;  %2573 = vmatpush.xpose.msrb.mxu3 %v1913_v48 }
 0x24c   : > { %2553 = vmatpush.xpose.msrb.mxu2 %v1911_v47 }
 0x24e   : > { %2534 = vmatmul.f32.vlgmr.msrb.gmra.mxu1 %v13954_v9  ;;  %2574 = vmatmul.f32.vlgmr.msrb.gmra.mxu3 %v13954_v9 }
 0x251   : > { %2554 = vmatmul.f32.vlgmr.msrb.gmra.mxu2 %v13954_v9 }
 0x293   : > { %v2067_v49 = vpop.f32.mrf.mxu1 }
 0x294   : > { %v2068_v2 = vadd.f32 %v11858_v60, %v2067_v49 }
 0x299   : > { %v2127_v51 = vpop.f32.mrf.mxu3 }
 0x29a   : > { %v2128_v16 = vadd.f32 %v11860_v8, %v2127_v51  ;;  %v11880_v51 = vld [vmem:[%s14800_s16 + $0x6] ss:$0 sm:$0xff] }
 0x29b   : > { %v2087_v52 = vpop.f32.mrf.mxu1 }
 0x29c   : > { %v2107_v50 = vpop.f32.mrf.mxu2  ;;  %v2088_v1 = vadd.f32 %v11861_v58, %v2087_v52  ;;  %v11881_v52 = vld [vmem:[%s14800_s16 + $0x7] ss:$0 sm:$0xff] }
 0x29d   : > { %v2108_v15 = vadd.f32 %v11859_v6, %v2107_v50 }
 0x2a1   : > { %v2207_v54 = vpop.f32.mrf.mxu3 }
 0x2a2   : > { %v2208_v31 = vadd.f32 %v11863_v23, %v2207_v54 }
 0x2a3   : > { %v2167_v55 = vpop.f32.mrf.mxu1 }
 0x2a4   : > { %v2147_v53 = vpop.f32.mrf.mxu2  ;;  %v2168_v32 = vadd.f32 %v11864_v26, %v2167_v55 }
 0x2a5   : > { %v2148_v18 = vadd.f32 %v11862_v11, %v2147_v53 }
 0x2a9   : > { %v2251_v61 = vpop.f32.mrf.mxu3 }
 0x2aa   : > { %v2252_v63 = vadd.f32 %v11867_v56, %v2251_v61 }
 0x2ab   : > { %v2271_v62 = vpop.f32.mrf.mxu1 }
 0x2ac   : > { %v2187_v59 = vpop.f32.mrf.mxu2  ;;  %v2272_v0 = vadd.f32 %v11866_v57, %v2271_v62  ;;  %11308 = vmatpush.xpose.msk.msra.mxu0 %vm2578_vm0, %v2252_v63 }
 0x2ad   : > { %v2188_v30 = vadd.f32 %v11865_v21, %v2187_v59 }
 0x2ae   : > { %11310 = vmatpush.xpose.msk.msra.mxu1 %vm2578_vm0, %v2272_v0 }
 0x2af   : > { %11309 = vmatmul.msk.f32.vlgmr.msra.gmra.mxu0 %vm2578_vm0, %v2068_v2 }
 0x2b1   : > { %11311 = vmatmul.msk.f32.vlgmr.msra.gmra.mxu1 %vm2578_vm0, %v2088_v1  ;;  %v2311_v10 = vpop.f32.mrf.mxu3 }
 0x2b2   : > { %v2312_v12 = vadd.f32 %v11869_v4, %v2311_v10 }
 0x2b3   : > { %v2331_v13 = vpop.f32.mrf.mxu1 }
 0x2b4   : > { %v2291_v7 = vpop.f32.mrf.mxu2  ;;  %v2332_v14 = vadd.f32 %v11870_v5, %v2331_v13  ;;  %11314 = vmatpush.xpose.msk.msra.mxu3 %vm2578_vm0, %v2312_v12 }
 0x2b5   : > { %v2292_v9 = vadd.f32 %v11868_v3, %v2291_v7 }
 0x2b6   : > { %11316 = vmatpush.xpose.msk.msrb.mxu0 %vm2578_vm0, %v2332_v14 }
 0x2b7   : > { %11312 = vmatpush.xpose.msk.msra.mxu2 %vm2578_vm0, %v2292_v9  ;;  %11315 = vmatmul.msk.f32.vlgmr.msra.gmra.mxu3 %vm2578_vm0, %v2128_v16 }
 0x2b9   : > { %11317 = vmatmul.msk.f32.vlgmr.msrb.gmra.mxu0 %vm2578_vm0, %v2148_v18  ;;  %v2391_v25 = vpop.f32.mrf.mxu3 }
 0x2ba   : > { %11313 = vmatmul.msk.f32.vlgmr.msra.gmra.mxu2 %vm2578_vm0, %v2108_v15  ;;  %v2392_v27 = vadd.f32 %v11872_v19, %v2391_v25 }
 0x2bb   : > { %v2351_v28 = vpop.f32.mrf.mxu1 }
 0x2bc   : > { %v2371_v22 = vpop.f32.mrf.mxu2  ;;  %v2352_v29 = vadd.f32 %v11873_v20, %v2351_v28  ;;  %11322 = vmatpush.xpose.msk.msrb.mxu3 %vm2578_vm0, %v2392_v27 }
 0x2bd   : > { %v2372_v24 = vadd.f32 %v11871_v17, %v2371_v22 }
 0x2be   : > { %11318 = vmatpush.xpose.msk.msrb.mxu1 %vm2578_vm0, %v2352_v29 }
 0x2bf   : > { %11320 = vmatpush.xpose.msk.msrb.mxu2 %vm2578_vm0, %v2372_v24  ;;  %11323 = vmatmul.msk.f32.vlgmr.msrb.gmra.mxu3 %vm2578_vm0, %v2208_v31 }
 0x2c1   : > { %11319 = vmatmul.msk.f32.vlgmr.msrb.gmra.mxu1 %vm2578_vm0, %v2168_v32  ;;  %v2495_v39 = vpop.f32.mrf.mxu3 }
 0x2c2   : > { %11321 = vmatmul.msk.f32.vlgmr.msrb.gmra.mxu2 %vm2578_vm0, %v2188_v30  ;;  %v2496_v41 = vadd.f32 %v11876_v37, %v2495_v39 }
 0x2c3   : > { %v2455_v34 = vpop.f32.mrf.mxu1 }
 0x2c4   : > { %v2456_v35 = vadd.f32 %v11874_v33, %v2455_v34  ;;  %v2435_v38 = vpop.f32.mrf.mxu2  ;;  %2971 = vmatpush.msra.mxu3 %v2496_v41 }
 0x2c5   : > { %v2436_v40 = vadd.f32 %v11875_v36, %v2435_v38 }
 0x2c6   : > { %2925 = vmatpush.msra.mxu1 %v2456_v35 }
 0x2c7   : > { %2902 = vmatpush.msra.mxu0 %v2436_v40 }
 0x2c9   : > { %v2515_v48 = vpop.f32.mrf.mxu3 }
 0x2ca   : > { %v2516_v50 = vadd.f32 %v11879_v46, %v2515_v48 }
 0x2cb   : > { %v2535_v43 = vpop.f32.mrf.mxu1 }
 0x2cc   : > { %v2536_v44 = vadd.f32 %v11877_v42, %v2535_v43  ;;  %v2475_v47 = vpop.f32.mrf.mxu2  ;;  %2994 = vmatpush.msrb.mxu0 %v2516_v50 }
 0x2cd   : > { %v2476_v49 = vadd.f32 %v11878_v45, %v2475_v47 }
 0x2ce   : > { %3017 = vmatpush.msrb.mxu1 %v2536_v44 }
 0x2cf   : > { %2948 = vmatpush.msra.mxu2 %v2476_v49 }
 0x2d1   : > { %v2575_v54 = vpop.f32.mrf.mxu3 }
 0x2d2   : > { %v2576_v56 = vadd.f32 %v11881_v52, %v2575_v54 }
 0x2d4   : > { %v2555_v53 = vpop.f32.mrf.mxu2  ;;  %3063 = vmatpush.msrb.mxu3 %v2576_v56 }
 0x2d5   : > { %v2556_v55 = vadd.f32 %v11880_v51, %v2555_v53 }
 0x2d7   : > { %3040 = vmatpush.msrb.mxu2 %v2556_v55 }
 0x32c   : > { %v2602_v57 = vpop.f32.mrf.mxu0 }
 0x32d   : > { %v2787_v59 = vmul.f32 0.25, %v2602_v57 }
 0x32e   : > { %v2628_v58 = vpop.f32.mrf.mxu1 }
 0x32f   : > { %v2788_v60 = vmul.f32 0.25, %v2628_v58  ;;  %v2796_v61 = vsel %vm2795_vm1, %v2787_v59, -inf }
 0x330   : > { %2797 = vmax.xlane.f32.xlu1 %v2796_v61  ;;  %v1940_v61 = vld [vmem:[#allocation7 + $0x8] sm:$0xff] }
 0x331   : > { %v2799_v62 = vsel %vm2795_vm1, %v2788_v60, -inf }
 0x332   : > { %2800 = vmax.xlane.f32.xlu2 %v2799_v62 }
 0x336   : > { %v2706_v10 = vpop.f32.mrf.mxu0 }
 0x337   : > { %v2791_v13 = vmul.f32 0.25, %v2706_v10 }
 0x339   : > { %v2808_v16 = vsel %vm2795_vm1, %v2791_v13, -inf }
 0x33a   : > { %v2680_v0 = vpop.f32.mrf.mxu3 }
 0x33b   : > { %v2790_v3 = vmul.f32 0.25, %v2680_v0 }
 0x33d   : > { %v2654_v63 = vpop.f32.mrf.mxu2  ;;  %v2805_v8 = vsel %vm2795_vm1, %v2790_v3, -inf }
 0x33e   : > { %v2789_v1 = vmul.f32 0.25, %v2654_v63  ;;  %v2732_v11 = vpop.f32.mrf.mxu1 }
 0x33f   : > { %v2792_v14 = vmul.f32 0.25, %v2732_v11 }
 0x340   : > { %v2802_v2 = vsel %vm2795_vm1, %v2789_v1, -inf }
 0x341   : > { %2803 = vmax.xlane.f32.xlu0 %v2802_v2  ;;  %v2811_v15 = vsel %vm2795_vm1, %v2792_v14, -inf }
 0x342   : > { %v2784_v6 = vpop.f32.mrf.mxu3 }
 0x343   : > { %v2794_v7 = vmul.f32 0.25, %v2784_v6 }
 0x345   : > { %v2758_v4 = vpop.f32.mrf.mxu2  ;;  %v2817_v12 = vsel %vm2795_vm1, %v2794_v7, -inf }
 0x346   : > { %v2793_v5 = vmul.f32 0.25, %v2758_v4  ;;  %2818 = vmax.xlane.f32.xlu2 %v2817_v12 }
 0x348   : > { %v2814_v9 = vsel %vm2795_vm1, %v2793_v5, -inf }
 0x349   : > { %2806 = vmax.xlane.f32.xlu0 %v2805_v8  ;;  %2815 = vmax.xlane.f32.xlu1 %v2814_v9 }
 0x351   : > { %2812 = vmax.xlane.f32.xlu1 %v2811_v15  ;;  %2809 = vmax.xlane.f32.xlu0 %v2808_v16 }
 0x3a3   : > { %v2798_v17 = vpop.xlane.xlu1 %2797 }
 0x3a4   : > { %v2820_v18 = vsub.f32 %v2787_v59, %v2798_v17 }
 0x3a5   : > { %v2801_v23 = vpop.xlane.xlu2 %2800 }
 0x3a6   : > { %v2828_v19 = vmul.f32 1.442695, %v2820_v18  ;;  %v2821_v33 = vsub.f32 %v2788_v60, %v2801_v23  ;;  %v1939_v18 = vld [vmem:[#allocation7] sm:$0xff]  ;;  %v1942_v23 = vld [vmem:[#allocation7 + $0x18] sm:$0xff] }
 0x3a8   : > { %12033 = vpow2.f32 %v2828_v19  ;;  %v2830_v38 = vmul.f32 1.442695, %v2821_v33  ;;  %v1944_v19 = vld [vmem:[#allocation7 + $0x28] sm:$0xff]  ;;  %v1949_v33 = vld [vmem:[#allocation7 + $0x50] sm:$0xff] }
 0x3ae   : > { %v12034_v20 = vpop.eup %12033 }
 0x3af   : > { %v2844_v21 = vsel %vm2795_vm1, %v12034_v20, 0.0 }
 0x3b0   : > { %2845 = vadd.xlane.f32.xlu1 %v2844_v21  ;;  %v1946_v21 = vld [vmem:[#allocation7 + $0x38] sm:$0xff] }
 0x3b4   : > { %v2804_v22 = vpop.xlane.xlu0 %2803 }
 0x3b5   : > { %v2822_v24 = vsub.f32 %v2789_v1, %v2804_v22  ;;  %v1952_v22 = vld [vmem:[#allocation7 + $0x68] sm:$0xff] }
 0x3b7   : > { %v2832_v25 = vmul.f32 1.442695, %v2822_v24  ;;  %v1945_v24 = vld [vmem:[#allocation7 + $0x30] sm:$0xff] }
 0x3b9   : > { %12035 = vpow2.f32 %v2832_v25  ;;  %v2819_v29 = vpop.xlane.xlu2 %2818  ;;  %v1948_v25 = vld [vmem:[#allocation7 + $0x48] sm:$0xff] }
 0x3ba   : > { %v2827_v31 = vsub.f32 %v2794_v7, %v2819_v29 }
 0x3bc   : > { %v2807_v26 = vpop.xlane.xlu0 %2806  ;;  %v2816_v27 = vpop.xlane.xlu1 %2815  ;;  %v2842_v36 = vmul.f32 1.442695, %v2827_v31  ;;  %v1950_v31 = vld [vmem:[#allocation7 + $0x58] sm:$0xff] }
 0x3bd   : > { %v2823_v28 = vsub.f32 %v2790_v3, %v2807_v26  ;;  %v2826_v30 = vsub.f32 %v2793_v5, %v2816_v27  ;;  %v1951_v26 = vld [vmem:[#allocation7 + $0x60] sm:$0xff]  ;;  %v1941_v27 = vld [vmem:[#allocation7 + $0x10] sm:$0xff] }
 0x3bf   : > { %v12036_v32 = vpop.eup %12035  ;;  %v2834_v34 = vmul.f32 1.442695, %v2823_v28  ;;  %v2840_v35 = vmul.f32 1.442695, %v2826_v30  ;;  %v1947_v28 = vld [vmem:[#allocation7 + $0x40] sm:$0xff]  ;;  %v1954_v30 = vld [vmem:[#allocation7 + $0x78] sm:$0xff] }
 0x3c0   : > { %v2850_v37 = vsel %vm2795_vm1, %v12036_v32, 0.0 }
 0x3c1   : > { %12037 = vpow2.f32 %v2834_v34  ;;  %2851 = vadd.xlane.f32.xlu2 %v2850_v37 }
 0x3c2   : > { %12039 = vpow2.f32 %v2842_v36 }
 0x3c3   : > { %12041 = vpow2.f32 %v2840_v35 }
 0x3c4   : > { %v2813_v39 = vpop.xlane.xlu1 %2812  ;;  %v2810_v40 = vpop.xlane.xlu0 %2809  ;;  %12043 = vpow2.f32 %v2830_v38 }
 0x3c5   : > { %v2824_v41 = vsub.f32 %v2791_v13, %v2810_v40  ;;  %v2825_v43 = vsub.f32 %v2792_v14, %v2813_v39 }
 0x3c7   : > { %v12038_v42 = vpop.eup %12037  ;;  %v2836_v44 = vmul.f32 1.442695, %v2824_v41  ;;  %v2838_v50 = vmul.f32 1.442695, %v2825_v43 }
 0x3c8   : > { %v12040_v45 = vpop.eup %12039  ;;  %v2853_v46 = vsel %vm2795_vm1, %v12038_v42, 0.0 }
 0x3c9   : > { %v12042_v47 = vpop.eup %12041  ;;  %v2865_v48 = vsel %vm2795_vm1, %v12040_v45, 0.0  ;;  %2854 = vadd.xlane.f32.xlu0 %v2853_v46  ;;  %12045 = vpow2.f32 %v2836_v44 }
 0x3ca   : > { %2866 = vadd.xlane.f32.xlu1 %v2865_v48  ;;  %v2862_v49 = vsel %vm2795_vm1, %v12042_v47, 0.0  ;;  %v12044_v51 = vpop.eup %12043  ;;  %12047 = vpow2.f32 %v2838_v50 }
 0x3cb   : > { %2863 = vadd.xlane.f32.xlu2 %v2862_v49  ;;  %v2847_v53 = vsel %vm2795_vm1, %v12044_v51, 0.0 }
 0x3cf   : > { %v12046_v52 = vpop.eup %12045 }
 0x3d0   : > { %v2856_v54 = vsel %vm2795_vm1, %v12046_v52, 0.0  ;;  %v12048_v55 = vpop.eup %12047 }
 0x3d1   : > { %2848 = vadd.xlane.f32.xlu0 %v2847_v53  ;;  %v2859_v56 = vsel %vm2795_vm1, %v12048_v55, 0.0 }
 0x3d3   : > { %2857 = vadd.xlane.f32.xlu2 %v2856_v54  ;;  %v11882_v54 = vld [vmem:[%s14801_s15] ss:$0 sm:$0xff] }
 0x3d9   : > { %2860 = vadd.xlane.f32.xlu0 %v2859_v56 }
 0x423   : > { %v2846_v57 = vpop.xlane.xlu1 %2845 }
 0x424   : > { %12049 = vrcp.f32 %v2846_v57 }
 0x42a   : > { %v12050_v58 = vpop.eup %12049 }
 0x42b   : > { %v2876_v59 = vmul.f32 %v12050_v58, %v12034_v20  ;;  %v1943_v20 = vld [vmem:[#allocation7 + $0x20] sm:$0xff] }
 0x42c   : > { %v12247_v58 = vld [vmem:[%s13947_s10] sm:$0xff]  ;;  %s14807_s10 = sld [smem:[#allocation75_spill]] }
 0x42d   : > { %11324 = vmatmul.msk.f32.vlgmr.msra.gmra.mxu0 %vm2795_vm1, %v2876_v59 }
 0x42e   : > { %3085 = vmatpush.msra.mxu0 %v1940_v61  ;;  %v1973_v61 = vld [vmem:[#allocation8 + $0x78] sm:$0xff] }
 0x430   : > { %3086 = vmatpush.msra.mxu0 %v1939_v18 }
 0x434   : > { %v2852_v60 = vpop.xlane.xlu2 %2851 }
 0x435   : > { %12051 = vrcp.f32 %v2852_v60  ;;  %v13204_v60 = vmov 128.0  }
 0x43b   : > { %v12052_v62 = vpop.eup %12051 }
 0x43c   : > { %v2878_v63 = vmul.f32 %v12052_v62, %v12036_v32  ;;  %v2855_v0 = vpop.xlane.xlu0 %2854  ;;  %v1953_v32 = vld [vmem:[#allocation7 + $0x70] sm:$0xff]  ;;  %v1989_v62 = vld [vmem:[#allocation8 + $0xf8] sm:$0xff] }
 0x43d   : > { %12053 = vrcp.f32 %v2855_v0  ;;  %v2867_v2 = vpop.xlane.xlu1 %2866  ;;  %v1988_v0 = vld [vmem:[#allocation8 + $0xf0] sm:$0xff] }
 0x43e   : > { %v2864_v1 = vpop.xlane.xlu2 %2863  ;;  %11326 = vmatmul.msk.f32.vlgmr.msra.gmra.mxu2 %vm2795_vm1, %v2878_v63  ;;  %v1972_v63 = vld [vmem:[#allocation8 + $0x70] sm:$0xff] }
 0x43f   : > { %12055 = vrcp.f32 %v2864_v1  ;;  %3131 = vmatpush.msra.mxu2 %v1944_v19  ;;  %v1966_v19 = vld [vmem:[#allocation8 + $0x40] sm:$0xff] }
 0x440   : > { %12057 = vrcp.f32 %v2867_v2  ;;  %v1971_v2 = vld [vmem:[#allocation8 + $0x68] sm:$0xff] }
 0x441   : > { %3132 = vmatpush.msra.mxu2 %v1943_v20  ;;  %v1982_v20 = vld [vmem:[#allocation8 + $0xc0] sm:$0xff] }
 0x443   : > { %v12054_v3 = vpop.eup %12053 }
 0x444   : > { %v2879_v4 = vmul.f32 %v12054_v3, %v12038_v42  ;;  %v2849_v5 = vpop.xlane.xlu0 %2848  ;;  %v1987_v3 = vld [vmem:[#allocation8 + $0xe8] sm:$0xff] }
 0x445   : > { %v12056_v6 = vpop.eup %12055  ;;  %12059 = vrcp.f32 %v2849_v5  ;;  %v1970_v5 = vld [vmem:[#allocation8 + $0x60] sm:$0xff] }
 0x446   : > { %v2882_v7 = vmul.f32 %v12056_v6, %v12042_v47  ;;  %v2858_v8 = vpop.xlane.xlu2 %2857  ;;  %11327 = vmatmul.msk.f32.vlgmr.msra.gmra.mxu3 %vm2795_vm1, %v2879_v4  ;;  %v12058_v9 = vpop.eup %12057  ;;  %v1986_v6 = vld [vmem:[#allocation8 + $0xe0] sm:$0xff] }
 0x447   : > { %12061 = vrcp.f32 %v2858_v8  ;;  %v2883_v11 = vmul.f32 %v12058_v9, %v12040_v45  ;;  %3154 = vmatpush.msra.mxu3 %v1946_v21  ;;  %v1969_v8 = vld [vmem:[#allocation8 + $0x58] sm:$0xff] }
 0x448   : > { %11330 = vmatmul.msk.f32.vlgmr.msrb.gmra.mxu2 %vm2795_vm1, %v2882_v7  ;;  %v1985_v9 = vld [vmem:[#allocation8 + $0xd8] sm:$0xff] }
 0x449   : > { %3223 = vmatpush.msrb.mxu2 %v1952_v22  ;;  %3155 = vmatpush.msra.mxu3 %v1945_v24  ;;  %v1981_v24 = vld [vmem:[#allocation8 + $0xb8] sm:$0xff] }
 0x44b   : > { %v12060_v10 = vpop.eup %12059  ;;  %3224 = vmatpush.msrb.mxu2 %v1951_v26  ;;  %v1980_v26 = vld [vmem:[#allocation8 + $0xb0] sm:$0xff] }
 0x44c   : > { %v2877_v12 = vmul.f32 %v12060_v10, %v12044_v51  ;;  %v2861_v13 = vpop.xlane.xlu0 %2860 }
 0x44d   : > { %v12062_v14 = vpop.eup %12061  ;;  %12063 = vrcp.f32 %v2861_v13 }
 0x44e   : > { %v2880_v15 = vmul.f32 %v12062_v14, %v12046_v52  ;;  %11325 = vmatmul.msk.f32.vlgmr.msra.gmra.mxu1 %vm2795_vm1, %v2877_v12  ;;  %11331 = vmatmul.msk.f32.vlgmr.msrb.gmra.mxu3 %vm2795_vm1, %v2883_v11  ;;  %12065 = vrcp.f32 %v13204_v60  ;;  %v1968_v11 = vld [vmem:[#allocation8 + $0x50] sm:$0xff]  ;;  %v1967_v14 = vld [vmem:[#allocation8 + $0x48] sm:$0xff]  ;;  %v2010_v60 = vld [vmem:[#allocation10 + $0x98] sm:$0xff] }
 0x44f   : > { %3108 = vmatpush.msra.mxu1 %v1942_v23  ;;  %3246 = vmatpush.msrb.mxu3 %v1954_v30  ;;  %v1984_v12 = vld [vmem:[#allocation8 + $0xd0] sm:$0xff]  ;;  %v1965_v23 = vld [vmem:[#allocation8 + $0x38] sm:$0xff]  ;;  %v1978_v30 = vld [vmem:[#allocation8 + $0xa0] sm:$0xff] }
 0x450   : > { %11328 = vmatmul.msk.f32.vlgmr.msrb.gmra.mxu0 %vm2795_vm1, %v2880_v15  ;;  %v1983_v15 = vld [vmem:[#allocation8 + $0xc8] sm:$0xff] }
 0x451   : > { %3177 = vmatpush.msrb.mxu0 %v1948_v25  ;;  %3109 = vmatpush.msra.mxu1 %v1941_v27  ;;  %v1964_v25 = vld [vmem:[#allocation8 + $0x30] sm:$0xff]  ;;  %v1963_v27 = vld [vmem:[#allocation8 + $0x28] sm:$0xff] }
 0x452   : > { %3247 = vmatpush.msrb.mxu3 %v1953_v32  ;;  %v1977_v32 = vld [vmem:[#allocation8 + $0x98] sm:$0xff] }
 0x453   : > { %v12064_v16 = vpop.eup %12063  ;;  %3178 = vmatpush.msrb.mxu0 %v1947_v28  ;;  %v1979_v28 = vld [vmem:[#allocation8 + $0xa8] sm:$0xff] }
 0x454   : > { %v2881_v17 = vmul.f32 %v12064_v16, %v12048_v55  ;;  %v12066_v1 = vpop.eup %12065 }
 0x455   : > { %v3267_v4 = vmul.f32 128.0, %v12066_v1  ;;  %vm3271_vm2 = vweird.f32 %v12066_v1 }
 0x456   : > { %11329 = vmatmul.msk.f32.vlgmr.msrb.gmra.mxu1 %vm2795_vm1, %v2881_v17 }
 0x457   : > { %3200 = vmatpush.msrb.mxu1 %v1950_v31  ;;  %v3268_v7 = vsub.f32 1.0, %v3267_v4  ;;  %v1961_v31 = vld [vmem:[#allocation8 + $0x18] sm:$0xff] }
 0x459   : > { %3201 = vmatpush.msrb.mxu1 %v1949_v33  ;;  %v3269_v10 = vmul.f32 %v12066_v1, %v3268_v7  ;;  %v1960_v33 = vld [vmem:[#allocation8 + $0x10] sm:$0xff]  ;;  %v2006_v7 = vld [vmem:[#allocation10 + $0x78] sm:$0xff] }
 0x45b   : > { %v3270_v13 = vadd.f32 %v12066_v1, %v3269_v10  ;;  %v2001_v10 = vld [vmem:[#allocation10 + $0x50] sm:$0xff] }
 0x45d   : > { %v14061_v16 = vsel %vm3271_vm2, %v12066_v1, %v3270_v13  ;;  %v11884_v1 = vld [vmem:[%s14803_s9] ss:$0 sm:$0xff]  ;;  %v2000_v13 = vld [vmem:[#allocation10 + $0x48] sm:$0xff] }
 0x4aa   : > { %v2904_v29 = vpop.f32.mrf.mxu0 }
 0x4ab   : > { %11332 = vmatmul.msk.f32.vlgmr.msra.gmra.mxu0 %vm2578_vm0, %v2904_v29  ;;  %v1962_v29 = vld [vmem:[#allocation8 + $0x20] sm:$0xff] }
 0x4ac   : > { %3304 = vmatpush.xpose.msra.mxu0 %v1973_v61 }
 0x4b0   : > { %3305 = vmatpush.xpose.msra.mxu0 %v1972_v63 }
 0x4b4   : > { %3306 = vmatpush.xpose.msra.mxu0 %v1971_v2  ;;  %v2007_v2 = vld [vmem:[#allocation10 + $0x80] sm:$0xff] }
 0x4b8   : > { %3307 = vmatpush.xpose.msra.mxu0 %v1970_v5 }
 0x4bc   : > { %3308 = vmatpush.xpose.msra.mxu0 %v1969_v8  ;;  %v2003_v8 = vld [vmem:[#allocation10 + $0x60] sm:$0xff] }
 0x4c0   : > { %3309 = vmatpush.xpose.msra.mxu0 %v1968_v11  ;;  %v2002_v11 = vld [vmem:[#allocation10 + $0x58] sm:$0xff] }
 0x4c1   : > { %v2950_v34 = vpop.f32.mrf.mxu2 }
 0x4c2   : > { %11334 = vmatmul.msk.f32.vlgmr.msra.gmra.mxu2 %vm2578_vm0, %v2950_v34  ;;  %v1976_v34 = vld [vmem:[#allocation8 + $0x90] sm:$0xff] }
 0x4c4   : > { %3310 = vmatpush.xpose.msra.mxu0 %v1967_v14  ;;  %v1997_v14 = vld [vmem:[#allocation10 + $0x30] sm:$0xff] }
 0x4c8   : > { %3311 = vmatpush.xpose.msra.mxu0 %v1966_v19  ;;  %v1993_v19 = vld [vmem:[#allocation10 + $0x10] sm:$0xff] }
 0x4c9   : > { %v2973_v35 = vpop.f32.mrf.mxu3 }
 0x4ca   : > { %11335 = vmatmul.msk.f32.vlgmr.msra.gmra.mxu3 %vm2578_vm0, %v2973_v35  ;;  %v1959_v35 = vld [vmem:[#allocation8 + $0x8] sm:$0xff] }
 0x4cb   : > { %v3042_v36 = vpop.f32.mrf.mxu2  ;;  %v2927_v37 = vpop.f32.mrf.mxu1 }
 0x4cc   : > { %11338 = vmatmul.msk.f32.vlgmr.msrb.gmra.mxu2 %vm2578_vm0, %v3042_v36  ;;  %11333 = vmatmul.msk.f32.vlgmr.msra.gmra.mxu1 %vm2578_vm0, %v2927_v37  ;;  %v1975_v36 = vld [vmem:[#allocation8 + $0x88] sm:$0xff]  ;;  %v1958_v37 = vld [vmem:[#allocation8] sm:$0xff] }
 0x4cd   : > { %v2996_v38 = vpop.f32.mrf.mxu0  ;;  %3324 = vmatpush.xpose.msra.mxu1 %v1989_v62  ;;  %3312 = vmatpush.xpose.msra.mxu0 %v1965_v23  ;;  %v11883_v62 = vld [vmem:[%s14802_s6] ss:$0 sm:$0xff] }
 0x4ce   : > { %11336 = vmatmul.msk.f32.vlgmr.msrb.gmra.mxu0 %vm2578_vm0, %v2996_v38  ;;  %v1974_v38 = vld [vmem:[#allocation8 + $0x80] sm:$0xff] }
 0x4cf   : > { %v1990_v23 = vld [vmem:[%s14804_s22] sm:$0x3]  ;;  %s14810_s22 = sld [smem:[#allocation61_spill]] }
 0x4d1   : > { %v3065_v39 = vpop.f32.mrf.mxu3  ;;  %3325 = vmatpush.xpose.msra.mxu1 %v1988_v0  ;;  %3313 = vmatpush.xpose.msra.mxu0 %v1964_v25  ;;  %v3301_v25 = vperm.slane %v1990_v23, 1 }
 0x4d2   : > { %11339 = vmatmul.msk.f32.vlgmr.msrb.gmra.mxu3 %vm2578_vm0, %v3065_v39  ;;  %v2021_v39 = vld [vmem:[#allocation10 + $0xf0] sm:$0xff] }
 0x4d3   : > { %v3019_v40 = vpop.f32.mrf.mxu1  ;;  %3349 = vmatpush.xpose.msra.mxu2 %v2021_v39 }
 0x4d4   : > { %11337 = vmatmul.msk.f32.vlgmr.msrb.gmra.mxu1 %vm2578_vm0, %v3019_v40  ;;  %v2022_v40 = vld [vmem:[#allocation10 + $0xf8] sm:$0xff] }
 0x4d5   : > { %3326 = vmatpush.xpose.msra.mxu1 %v1987_v3  ;;  %3314 = vmatpush.xpose.msra.mxu0 %v1963_v27  ;;  %v2008_v3 = vld [vmem:[#allocation10 + $0x88] sm:$0xff] }
 0x4d6   : > { %3369 = vmatpush.xpose.msra.mxu3 %v2022_v40 }
 0x4d9   : > { %3327 = vmatpush.xpose.msra.mxu1 %v1986_v6  ;;  %3315 = vmatpush.xpose.msra.mxu0 %v1962_v29  ;;  %v2005_v6 = vld [vmem:[#allocation10 + $0x70] sm:$0xff] }
 0x4dd   : > { %3328 = vmatpush.xpose.msra.mxu1 %v1985_v9  ;;  %3316 = vmatpush.xpose.msra.mxu0 %v1961_v31  ;;  %v2004_v9 = vld [vmem:[#allocation10 + $0x68] sm:$0xff] }
 0x4e1   : > { %3329 = vmatpush.xpose.msra.mxu1 %v1984_v12  ;;  %3317 = vmatpush.xpose.msra.mxu0 %v1960_v33  ;;  %v1999_v12 = vld [vmem:[#allocation10 + $0x40] sm:$0xff] }
 0x4e5   : > { %3330 = vmatpush.xpose.msra.mxu1 %v1983_v15  ;;  %3318 = vmatpush.xpose.msra.mxu0 %v1959_v35  ;;  %v1998_v15 = vld [vmem:[#allocation10 + $0x38] sm:$0xff] }
 0x4e9   : > { %3331 = vmatpush.xpose.msra.mxu1 %v1982_v20  ;;  %3319 = vmatpush.xpose.msra.mxu0 %v1958_v37  ;;  %v1994_v20 = vld [vmem:[#allocation10 + $0x18] sm:$0xff] }
 0x4ed   : > { %3332 = vmatpush.xpose.msra.mxu1 %v1981_v24  ;;  %v3300_v24 = vperm.slane %v1990_v23, 0  ;;  %v3446_v23 = vld [vmem:[#allocation2 + $0xd0] sm:$0xff] }
 0x4f1   : > { %3333 = vmatpush.xpose.msra.mxu1 %v1980_v26 }
 0x4f5   : > { %3334 = vmatpush.xpose.msra.mxu1 %v1979_v28 }
 0x4f9   : > { %3335 = vmatpush.xpose.msra.mxu1 %v1978_v30 }
 0x4fd   : > { %3336 = vmatpush.xpose.msra.mxu1 %v1977_v32  ;;  %v11885_v32 = vld [vmem:[%s14806_s11] ss:$0 sm:$0xff] }
 0x501   : > { %3337 = vmatpush.xpose.msra.mxu1 %v1976_v34 }
 0x505   : > { %3338 = vmatpush.xpose.msra.mxu1 %v1975_v36 }
 0x509   : > { %3339 = vmatpush.xpose.msra.mxu1 %v1974_v38 }
 0x528   : > { %v3088_v41 = vpop.f32.mrf.mxu0 }
 0x545   : > { %v3134_v42 = vpop.f32.mrf.mxu2 }
 0x549   : > { %v3111_v43 = vpop.f32.mrf.mxu1 }
 0x54a   : > { %v3252_v44 = vadd.f32 %v3111_v43, %v3088_v41  ;;  %v2019_v41 = vld [vmem:[#allocation10 + $0xe0] sm:$0xff] }
 0x54b   : > { %v3180_v48 = vpop.f32.mrf.mxu0  ;;  %3350 = vmatpush.xpose.msra.mxu2 %v2019_v41 }
 0x54c   : > { %v3253_v45 = vadd.f32 %v3252_v44, %v3134_v42  ;;  %v2020_v42 = vld [vmem:[#allocation10 + $0xe8] sm:$0xff] }
 0x54d   : > { %v3157_v46 = vpop.f32.mrf.mxu3  ;;  %3370 = vmatpush.xpose.msra.mxu3 %v2020_v42  ;;  %v11341_v42 = vld [vmem:[%s14795_s18 + $0x88] sm:$0xff] }
 0x54e   : > { %v3254_v47 = vadd.f32 %v3253_v45, %v3157_v46  ;;  %v2017_v46 = vld [vmem:[#allocation10 + $0xd0] sm:$0xff]  ;;  %3631 = vmatpush.xpose.msrb.mxu0 %v11341_v42 }
 0x54f   : > { %v3226_v52 = vpop.f32.mrf.mxu2  ;;  %3351 = vmatpush.xpose.msra.mxu2 %v2017_v46  ;;  %v11340_v46 = vld [vmem:[%s14795_s18 + $0x80] sm:$0xff] }
 0x550   : > { %v3255_v49 = vadd.f32 %v3254_v47, %v3180_v48  ;;  %v2018_v47 = vld [vmem:[#allocation10 + $0xd8] sm:$0xff]  ;;  %v2015_v48 = vld [vmem:[#allocation10 + $0xc0] sm:$0xff] }
 0x551   : > { %v3203_v50 = vpop.f32.mrf.mxu1  ;;  %3371 = vmatpush.xpose.msra.mxu3 %v2018_v47  ;;  %v11342_v47 = vld [vmem:[%s14795_s18 + $0x90] sm:$0xff] }
 0x552   : > { %v3256_v51 = vadd.f32 %v3255_v49, %v3203_v50  ;;  %v2016_v49 = vld [vmem:[#allocation10 + $0xc8] sm:$0xff]  ;;  %3632 = vmatpush.xpose.msrb.mxu0 %v11340_v46 }
 0x553   : > { %3352 = vmatpush.xpose.msra.mxu2 %v2015_v48  ;;  %v11344_v48 = vld [vmem:[%s14795_s18 + $0xa0] sm:$0xff] }
 0x554   : > { %v3257_v53 = vadd.f32 %v3256_v51, %v3226_v52  ;;  %v2013_v51 = vld [vmem:[#allocation10 + $0xb0] sm:$0xff]  ;;  %v2014_v52 = vld [vmem:[#allocation10 + $0xb8] sm:$0xff] }
 0x555   : > { %v3249_v55 = vpop.f32.mrf.mxu3  ;;  %3372 = vmatpush.xpose.msra.mxu3 %v2016_v49  ;;  %v11346_v49 = vld [vmem:[%s14795_s18 + $0xb0] sm:$0xff] }
 0x556   : > { %v3258_v56 = vadd.f32 %v3257_v53, %v3249_v55  ;;  %v2011_v55 = vld [vmem:[#allocation10 + $0xa0] sm:$0xff] }
 0x557   : > { %3353 = vmatpush.xpose.msra.mxu2 %v2013_v51  ;;  %v11351_v51 = vld [vmem:[%s14795_s18 + $0xd8] sm:$0xff] }
 0x558   : > { %v3262_v57 = vadd.f32 %v11882_v54, %v3258_v56  ;;  %v2012_v56 = vld [vmem:[#allocation10 + $0xa8] sm:$0xff] }
 0x559   : > { %3373 = vmatpush.xpose.msra.mxu3 %v2014_v52  ;;  %v11353_v52 = vld [vmem:[%s14795_s18 + $0xe8] sm:$0xff] }
 0x55a   : > { %v3263_v59 = vadd.f32 %v12247_v58, %v3262_v57 }
 0x55b   : > { %3354 = vmatpush.xpose.msra.mxu2 %v2011_v55  ;;  %v11348_v55 = vld [vmem:[%s14795_s18 + $0xc0] sm:$0xff] }
 0x55c   : > { %3264 = vadd.xlane.f32.xlu1 %v3263_v59 }
 0x55d   : > { %3374 = vmatpush.xpose.msra.mxu3 %v2012_v56  ;;  %v11350_v56 = vld [vmem:[%s14795_s18 + $0xd0] sm:$0xff] }
 0x561   : > { %3375 = vmatpush.xpose.msra.mxu3 %v2010_v60 }
 0x565   : > { %3376 = vmatpush.xpose.msra.mxu3 %v2008_v3  ;;  %v11886_v3 = vld [vmem:[%s14807_s10] ss:$0 sm:$0xff] }
 0x569   : > { %3377 = vmatpush.xpose.msra.mxu3 %v2006_v7 }
 0x56d   : > { %3378 = vmatpush.xpose.msra.mxu3 %v2004_v9  ;;  %v3437_v9 = vld [vmem:[#allocation2 + $0x88] sm:$0xff] }
 0x571   : > { %3379 = vmatpush.xpose.msra.mxu3 %v2002_v11  ;;  %v3441_v11 = vld [vmem:[#allocation2 + $0xa8] sm:$0xff] }
 0x575   : > { %3380 = vmatpush.xpose.msra.mxu3 %v2000_v13  ;;  %v3436_v13 = vld [vmem:[#allocation2 + $0x80] sm:$0xff] }
 0x579   : > { %3381 = vmatpush.xpose.msra.mxu3 %v1998_v15  ;;  %v3440_v15 = vld [vmem:[#allocation2 + $0xa0] sm:$0xff] }
 0x5cf   : > { %v3265_v17 = vpop.xlane.xlu1 %3264 }
 0x5d0   : > { %v3273_v18 = vmul.f32 %v14061_v16, %v3265_v17  ;;  %v1995_v17 = vld [vmem:[#allocation10 + $0x20] sm:$0xff] }
 0x5d2   : > { %v14064_v21 = vsub.f32 %v3263_v59, %v3273_v18  ;;  %v2009_v59 = vld [vmem:[#allocation10 + $0x90] sm:$0xff]  ;;  %v1996_v18 = vld [vmem:[#allocation10 + $0x28] sm:$0xff] }
 0x5d3   : > { %3355 = vmatpush.xpose.msra.mxu2 %v2009_v59  ;;  %3382 = vmatpush.xpose.msra.mxu3 %v1996_v18  ;;  %v11354_v59 = vld [vmem:[%s14795_s18 + $0xf0] sm:$0xff]  ;;  %v3445_v18 = vld [vmem:[#allocation2 + $0xc8] sm:$0xff] }
 0x5d4   : > { %v3275_v22 = vmul.f32 %v14064_v21, %v14064_v21 }
 0x5d6   : > { %3276 = vadd.xlane.f32.xlu2 %v3275_v22  ;;  %v1992_v22 = vld [vmem:[#allocation10 + $0x8] sm:$0xff] }
 0x5d7   : > { %3356 = vmatpush.xpose.msra.mxu2 %v2007_v2  ;;  %3383 = vmatpush.xpose.msra.mxu3 %v1994_v20  ;;  %v3449_v20 = vld [vmem:[#allocation2 + $0xe8] sm:$0xff] }
 0x5db   : > { %3357 = vmatpush.xpose.msra.mxu2 %v2005_v6  ;;  %3384 = vmatpush.xpose.msra.mxu3 %v1992_v22  ;;  %v3444_v22 = vld [vmem:[#allocation2 + $0xc0] sm:$0xff] }
 0x5df   : > { %3358 = vmatpush.xpose.msra.mxu2 %v2003_v8 }
 0x5e3   : > { %3359 = vmatpush.xpose.msra.mxu2 %v2001_v10  ;;  %v3439_v10 = vld [vmem:[#allocation2 + $0x98] sm:$0xff] }
 0x5e7   : > { %3360 = vmatpush.xpose.msra.mxu2 %v1999_v12  ;;  %v3443_v12 = vld [vmem:[#allocation2 + $0xb8] sm:$0xff] }
 0x5eb   : > { %3361 = vmatpush.xpose.msra.mxu2 %v1997_v14  ;;  %v3438_v14 = vld [vmem:[#allocation2 + $0x90] sm:$0xff] }
 0x5ef   : > { %3362 = vmatpush.xpose.msra.mxu2 %v1995_v17  ;;  %v3442_v17 = vld [vmem:[#allocation2 + $0xb0] sm:$0xff] }
 0x5f3   : > { %3363 = vmatpush.xpose.msra.mxu2 %v1993_v19  ;;  %v3447_v19 = vld [vmem:[#allocation2 + $0xd8] sm:$0xff] }
 0x649   : > { %v3277_v43 = vpop.xlane.xlu2 %3276 }
 0x64a   : > { %v3278_v44 = vmul.f32 %v3277_v43, %v14061_v16  ;;  %v11343_v43 = vld [vmem:[%s14795_s18 + $0x98] sm:$0xff] }
 0x64b   : > { %3651 = vmatpush.xpose.msrb.mxu1 %v11343_v43 }
 0x64c   : > { %v3279_v45 = vadd.f32 1e-06, %v3278_v44  ;;  %v11345_v44 = vld [vmem:[%s14795_s18 + $0xa8] sm:$0xff] }
 0x64e   : > { %12067 = vrsqrt.f32 %v3279_v45  ;;  %vm3286_vm4 = vweird.f32 %v3279_v45 }
 0x64f   : > { %3652 = vmatpush.xpose.msrb.mxu1 %v11342_v47 }
 0x654   : > { %v12068_v50 = vpop.eup %12067 }
 0x655   : > { %v3281_v53 = vmul.f32 %v12068_v50, %v3279_v45  ;;  %vm3287_vm3 = vweird.f32 %v12068_v50  ;;  %v11347_v45 = vld [vmem:[%s14795_s18 + $0xb8] sm:$0xff] }
 0x656   : > { %vm3288_vm5 = vmor %vm3286_vm4, %vm3287_vm3  ;;  %3691 = vmatpush.xpose.msrb.mxu3 %v11347_v45 }
 0x657   : > { %v3282_v54 = vmul.f32 %v12068_v50, %v3281_v53  ;;  %v11355_v53 = vld [vmem:[%s14795_s18 + $0xf8] sm:$0xff] }
 0x659   : > { %v3283_v57 = vmul.f32 0.5, %v3282_v54 }
 0x65a   : > { %3692 = vmatpush.xpose.msrb.mxu3 %v11346_v49  ;;  %v11897_v49 = vld [vmem:[%s14797_s3 + $0x9] ss:$0 sm:$0xff] }
 0x65b   : > { %v3284_v58 = vsub.f32 1.5, %v3283_v57 }
 0x65d   : > { %v3285_v61 = vmul.f32 %v12068_v50, %v3284_v58  ;;  %v11352_v58 = vld [vmem:[%s14795_s18 + $0xe0] sm:$0xff] }
 0x65f   : > { %v3289_v63 = vsel %vm3288_vm5, %v12068_v50, %v3285_v61  ;;  %v11349_v50 = vld [vmem:[%s14795_s18 + $0xc8] sm:$0xff] }
 0x660   : > { %v3290_v0 = vmul.f32 %v3289_v63, %v14064_v21  ;;  %v1991_v21 = vld [vmem:[#allocation10] sm:$0xff] }
 0x661   : > { %3364 = vmatpush.xpose.msra.mxu2 %v1991_v21  ;;  %v3451_v21 = vld [vmem:[#allocation2 + $0xf8] sm:$0xff] }
 0x662   : > { %v3294_v4 = vmul.f32 %v11883_v62, %v3290_v0 }
 0x664   : > { %v3298_v5 = vadd.f32 %v11884_v1, %v3294_v4 }
 0x665   : > { %3671 = vmatpush.xpose.msrb.mxu2 %v11345_v44 }
 0x666   : > { %3320 = vmatmul.f32.vlgmr.msra.gmra.mxu0 %v3298_v5  ;;  %3340 = vmatmul.f32.vlgmr.msra.gmra.mxu1 %v3298_v5 }
 0x667   : > { %3711 = vmatpush.xpose.msra.mxu0 %v11349_v50  ;;  %3731 = vmatpush.xpose.msra.mxu1 %v11351_v51 }
 0x669   : > { %3672 = vmatpush.xpose.msrb.mxu2 %v11344_v48  ;;  %v11896_v48 = vld [vmem:[%s14797_s3 + $0x8] ss:$0 sm:$0xff] }
 0x66b   : > { %3712 = vmatpush.xpose.msra.mxu0 %v11348_v55  ;;  %3732 = vmatpush.xpose.msra.mxu1 %v11350_v56 }
 0x6e3   : > { %v3321_v26 = vpop.f32.mrf.mxu0  ;;  %v3341_v27 = vpop.f32.mrf.mxu1 }
 0x6e4   : > { %v3322_v28 = vadd.f32 %v3321_v26, %v3300_v24  ;;  %v3342_v29 = vadd.f32 %v3341_v27, %v3301_v25  ;;  %v3448_v24 = vld [vmem:[#allocation2 + $0xe0] sm:$0xff]  ;;  %v3450_v25 = vld [vmem:[#allocation2 + $0xf0] sm:$0xff]  ;;  %v3454_v26 = vld [vmem:[#allocation5 + $0x88] sm:$0xff] }
 0x6e5   : > { %v3456_v27 = vld [vmem:[#allocation5 + $0x98] sm:$0xff] }
 0x6e6   : > { %v3344_v30 = vmax.f32 %v3322_v28, 0.0  ;;  %v3345_v31 = vmax.f32 %v3342_v29, 0.0  ;;  %v3458_v28 = vld [vmem:[#allocation5 + $0xa8] sm:$0xff]  ;;  %v3460_v29 = vld [vmem:[#allocation5 + $0xb8] sm:$0xff] }
 0x6e8   : > { %3365 = vmatmul.f32.vlgmr.msra.gmra.mxu2 %v3344_v30  ;;  %3385 = vmatmul.f32.vlgmr.msra.gmra.mxu3 %v3345_v31  ;;  %v3453_v30 = vld [vmem:[#allocation5 + $0x80] sm:$0xff]  ;;  %v3455_v31 = vld [vmem:[#allocation5 + $0x90] sm:$0xff] }
 0x6e9   : > { %3751 = vmatpush.xpose.msra.mxu2 %v11353_v52  ;;  %3771 = vmatpush.xpose.msra.mxu3 %v11355_v53  ;;  %v11888_v52 = vld [vmem:[%s14798_s8 + $0x8] ss:$0 sm:$0xff]  ;;  %v11889_v53 = vld [vmem:[%s14798_s8 + $0x9] ss:$0 sm:$0xff] }
 0x6ed   : > { %3752 = vmatpush.xpose.msra.mxu2 %v11352_v58  ;;  %3772 = vmatpush.xpose.msra.mxu3 %v11354_v59 }
 0x76b   : > { %v3366_v33 = vpop.f32.mrf.mxu2  ;;  %v3386_v35 = vpop.f32.mrf.mxu3 }
 0x76c   : > { %v3367_v34 = vadd.f32 %v11885_v32, %v3366_v33  ;;  %v3457_v32 = vld [vmem:[#allocation5 + $0xa0] sm:$0xff]  ;;  %v3459_v33 = vld [vmem:[#allocation5 + $0xb0] sm:$0xff] }
 0x76e   : > { %v3387_v36 = vadd.f32 %v3386_v35, %v3367_v34  ;;  %v3462_v34 = vld [vmem:[#allocation5 + $0xc8] sm:$0xff]  ;;  %v3464_v35 = vld [vmem:[#allocation5 + $0xd8] sm:$0xff] }
 0x770   : > { %v3389_v37 = vadd.f32 %v3387_v36, %v3298_v5  ;;  %v11887_v5 = vld [vmem:[%s14808_s23] ss:$0 sm:$0xff]  ;;  %v3466_v36 = vld [vmem:[#allocation5 + $0xe8] sm:$0xff]  ;;  %s14811_s23 = sshll.u32 %s13936_s2, 3  ;;  %s14813_s2 = sld [smem:[#allocation80_spill]] }
 0x771   : > { %s1864_s1 = scalar_lea.vmem %s14810_s22, %s14811_s23  ;;  %s14814_s22 = sld [smem:[#allocation82_spill]] }
 0x772   : > { %3390 = vadd.xlane.f32.xlu0 %v3389_v37  ;;  %s14816_s23 = sld [smem:[#allocation62_spill]] }
 0x778   : > { %s14817_s4 = smov %s14816_s23 }
 0x7e5   : > { %v3391_v38 = vpop.xlane.xlu0 %3390 }
 0x7e6   : > { %v3392_v39 = vmul.f32 %v3391_v38, %v14061_v16  ;;  %v3461_v38 = vld [vmem:[#allocation5 + $0xc0] sm:$0xff] }
 0x7e8   : > { %v3393_v40 = vsub.f32 %v3389_v37, %v3392_v39  ;;  %v3468_v37 = vld [vmem:[#allocation5 + $0xf8] sm:$0xff]  ;;  %v3463_v39 = vld [vmem:[#allocation5 + $0xd0] sm:$0xff] }
 0x7ea   : > { %v3394_v41 = vmul.f32 %v3393_v40, %v3393_v40 }
 0x7ec   : > { %3395 = vadd.xlane.f32.xlu1 %v3394_v41  ;;  %v3467_v41 = vld [vmem:[#allocation5 + $0xf0] sm:$0xff] }
 0x85f   : > { %v3396_v54 = vpop.xlane.xlu1 %3395 }
 0x860   : > { %v3397_v57 = vmul.f32 %v3396_v54, %v14061_v16 }
 0x862   : > { %v3398_v60 = vadd.f32 1e-06, %v3397_v57 }
 0x864   : > { %12069 = vrsqrt.f32 %v3398_v60  ;;  %vm3405_vm7 = vweird.f32 %v3398_v60 }
 0x86a   : > { %v12070_v61 = vpop.eup %12069 }
 0x86b   : > { %v3400_v62 = vmul.f32 %v12070_v61, %v3398_v60  ;;  %vm3406_vm6 = vweird.f32 %v12070_v61  ;;  %v11898_v60 = vld [vmem:[%s14797_s3 + $0xa] ss:$0 sm:$0xff] }
 0x86c   : > { %vm3407_vm8 = vmor %vm3405_vm7, %vm3406_vm6 }
 0x86d   : > { %v3401_v63 = vmul.f32 %v12070_v61, %v3400_v62  ;;  %v11900_v62 = vld [vmem:[%s14797_s3 + $0xc] ss:$0 sm:$0xff] }
 0x86f   : > { %v3402_v0 = vmul.f32 0.5, %v3401_v63  ;;  %v11901_v63 = vld [vmem:[%s14797_s3 + $0xd] ss:$0 sm:$0xff] }
 0x871   : > { %v3403_v1 = vsub.f32 1.5, %v3402_v0  ;;  %v11890_v0 = vld [vmem:[%s14798_s8 + $0xa] ss:$0 sm:$0xff] }
 0x873   : > { %v3404_v2 = vmul.f32 %v12070_v61, %v3403_v1  ;;  %v11891_v1 = vld [vmem:[%s14798_s8 + $0xb] ss:$0 sm:$0xff] }
 0x875   : > { %v3408_v4 = vsel %vm3407_vm8, %v12070_v61, %v3404_v2  ;;  %v11899_v61 = vld [vmem:[%s14797_s3 + $0xb] ss:$0 sm:$0xff] }
 0x876   : > { %v3409_v6 = vmul.f32 %v3408_v4, %v3393_v40  ;;  %v3465_v40 = vld [vmem:[#allocation5 + $0xe0] sm:$0xff]  ;;  %v11892_v4 = vld [vmem:[%s14798_s8 + $0xc] ss:$0 sm:$0xff] }
 0x878   : > { %v3413_v7 = vmul.f32 %v11886_v3, %v3409_v6 }
 0x87a   : > { %v14094_v8 = vadd.f32 %v11887_v5, %v3413_v7  ;;  %v11893_v5 = vld [vmem:[%s14798_s8 + $0xd] ss:$0 sm:$0xff] }
 0x87c   : > { %3633 = vmatmul.f32.vlgmr.msrb.gmra.mxu0 %v14094_v8  ;;  %3653 = vmatmul.f32.vlgmr.msrb.gmra.mxu1 %v14094_v8 }
 0x87d   : > { %3673 = vmatmul.f32.vlgmr.msrb.gmra.mxu2 %v14094_v8  ;;  %3693 = vmatmul.f32.vlgmr.msrb.gmra.mxu3 %v14094_v8 }
 0x87e   : > { %3815 = vmatpush.xpose.msrb.mxu0 %v3437_v9  ;;  %3835 = vmatpush.xpose.msrb.mxu1 %v3439_v10 }
 0x87f   : > { %3855 = vmatpush.xpose.msrb.mxu2 %v3441_v11  ;;  %3875 = vmatpush.xpose.msrb.mxu3 %v3443_v12 }
 0x882   : > { %3816 = vmatpush.xpose.msrb.mxu0 %v3436_v13  ;;  %3836 = vmatpush.xpose.msrb.mxu1 %v3438_v14 }
 0x883   : > { %3856 = vmatpush.xpose.msrb.mxu2 %v3440_v15  ;;  %3876 = vmatpush.xpose.msrb.mxu3 %v3442_v17 }
 0x884   : > { %3713 = vmatmul.f32.vlgmr.msra.gmra.mxu0 %v14094_v8  ;;  %3733 = vmatmul.f32.vlgmr.msra.gmra.mxu1 %v14094_v8 }
 0x885   : > { %3753 = vmatmul.f32.vlgmr.msra.gmra.mxu2 %v14094_v8  ;;  %3773 = vmatmul.f32.vlgmr.msra.gmra.mxu3 %v14094_v8 }
 0x886   : > { %3895 = vmatpush.xpose.msra.mxu0 %v3445_v18  ;;  %3915 = vmatpush.xpose.msra.mxu1 %v3447_v19  ;;  %v11902_v18 = vld [vmem:[%s14797_s3 + $0xe] ss:$0 sm:$0xff]  ;;  %v11903_v19 = vld [vmem:[%s14797_s3 + $0xf] ss:$0 sm:$0xff]  ;;  %s14815_s3 = smov %s14814_s22 }
 0x887   : > { %3935 = vmatpush.xpose.msra.mxu2 %v3449_v20  ;;  %3955 = vmatpush.xpose.msra.mxu3 %v3451_v21  ;;  %v11904_v20 = vld [vmem:[%s14800_s16 + $0x8] ss:$0 sm:$0xff]  ;;  %v11905_v21 = vld [vmem:[%s14800_s16 + $0x9] ss:$0 sm:$0xff] }
 0x88a   : > { %3896 = vmatpush.xpose.msra.mxu0 %v3444_v22  ;;  %3916 = vmatpush.xpose.msra.mxu1 %v3446_v23  ;;  %v11894_v22 = vld [vmem:[%s14798_s8 + $0xe] ss:$0 sm:$0xff]  ;;  %v11895_v23 = vld [vmem:[%s14798_s8 + $0xf] ss:$0 sm:$0xff] }
 0x88b   : > { %3936 = vmatpush.xpose.msra.mxu2 %v3448_v24  ;;  %3956 = vmatpush.xpose.msra.mxu3 %v3450_v25 }
 0x88c   : > { %3817 = vmatmul.f32.vlgmr.msrb.gmra.mxu0 %v14094_v8  ;;  %3837 = vmatmul.f32.vlgmr.msrb.gmra.mxu1 %v14094_v8 }
 0x88d   : > { %3857 = vmatmul.f32.vlgmr.msrb.gmra.mxu2 %v14094_v8  ;;  %3877 = vmatmul.f32.vlgmr.msrb.gmra.mxu3 %v14094_v8 }
 0x88e   : > { %3999 = vmatpush.xpose.msrb.mxu0 %v3454_v26  ;;  %4019 = vmatpush.xpose.msrb.mxu1 %v3456_v27 }
 0x88f   : > { %4039 = vmatpush.xpose.msrb.mxu2 %v3458_v28  ;;  %4059 = vmatpush.xpose.msrb.mxu3 %v3460_v29 }
 0x892   : > { %4000 = vmatpush.xpose.msrb.mxu0 %v3453_v30  ;;  %4020 = vmatpush.xpose.msrb.mxu1 %v3455_v31 }
 0x893   : > { %4040 = vmatpush.xpose.msrb.mxu2 %v3457_v32  ;;  %4060 = vmatpush.xpose.msrb.mxu3 %v3459_v33 }
 0x894   : > { %3897 = vmatmul.f32.vlgmr.msra.gmra.mxu0 %v14094_v8  ;;  %3917 = vmatmul.f32.vlgmr.msra.gmra.mxu1 %v14094_v8 }
 0x895   : > { %3937 = vmatmul.f32.vlgmr.msra.gmra.mxu2 %v14094_v8  ;;  %3957 = vmatmul.f32.vlgmr.msra.gmra.mxu3 %v14094_v8 }
 0x896   : > { %4079 = vmatpush.xpose.msra.mxu0 %v3462_v34  ;;  %4099 = vmatpush.xpose.msra.mxu1 %v3464_v35  ;;  %v11906_v34 = vld [vmem:[%s14800_s16 + $0xa] ss:$0 sm:$0xff]  ;;  %v11907_v35 = vld [vmem:[%s14800_s16 + $0xb] ss:$0 sm:$0xff] }
 0x897   : > { %4119 = vmatpush.xpose.msra.mxu2 %v3466_v36  ;;  %4139 = vmatpush.xpose.msra.mxu3 %v3468_v37  ;;  %v11908_v36 = vld [vmem:[%s14800_s16 + $0xc] ss:$0 sm:$0xff]  ;;  %v11909_v37 = vld [vmem:[%s14800_s16 + $0xd] ss:$0 sm:$0xff] }
 0x89a   : > { %4080 = vmatpush.xpose.msra.mxu0 %v3461_v38  ;;  %4100 = vmatpush.xpose.msra.mxu1 %v3463_v39 }
 0x89b   : > { %4120 = vmatpush.xpose.msra.mxu2 %v3465_v40  ;;  %4140 = vmatpush.xpose.msra.mxu3 %v3467_v41 }
 0x89c   : > { %4001 = vmatmul.f32.vlgmr.msrb.gmra.mxu0 %v14094_v8  ;;  %4021 = vmatmul.f32.vlgmr.msrb.gmra.mxu1 %v14094_v8 }
 0x89d   : > { %4041 = vmatmul.f32.vlgmr.msrb.gmra.mxu2 %v14094_v8  ;;  %4061 = vmatmul.f32.vlgmr.msrb.gmra.mxu3 %v14094_v8 }
 0x8a4   : > { %4081 = vmatmul.f32.vlgmr.msra.gmra.mxu0 %v14094_v8  ;;  %4101 = vmatmul.f32.vlgmr.msra.gmra.mxu1 %v14094_v8 }
 0x8a5   : > { %4121 = vmatmul.f32.vlgmr.msra.gmra.mxu2 %v14094_v8  ;;  %4141 = vmatmul.f32.vlgmr.msra.gmra.mxu3 %v14094_v8 }
 0x8f9   : > { %v3634_v42 = vpop.f32.mrf.mxu0  ;;  %v3654_v43 = vpop.f32.mrf.mxu1 }
 0x8fa   : > { %v3635_v58 = vadd.f32 %v11888_v52, %v3634_v42  ;;  %v3655_v59 = vadd.f32 %v11889_v53, %v3654_v43 }
 0x900   : > { %v3674_v44 = vpop.f32.mrf.mxu2  ;;  %v3694_v45 = vpop.f32.mrf.mxu3 }
 0x901   : > { %v3714_v46 = vpop.f32.mrf.mxu0  ;;  %v3734_v47 = vpop.f32.mrf.mxu1  ;;  %v3675_v13 = vadd.f32 %v11890_v0, %v3674_v44  ;;  %v3695_v14 = vadd.f32 %v11891_v1, %v3694_v45 }
 0x902   : > { %v3715_v15 = vadd.f32 %v11892_v4, %v3714_v46  ;;  %v3735_v17 = vadd.f32 %v11893_v5, %v3734_v47  ;;  %v11910_v46 = vld [vmem:[%s14800_s16 + $0xe] ss:$0 sm:$0xff]  ;;  %v11911_v47 = vld [vmem:[%s14800_s16 + $0xf] ss:$0 sm:$0xff] }
 0x908   : > { %v3754_v50 = vpop.f32.mrf.mxu2  ;;  %v3774_v51 = vpop.f32.mrf.mxu3 }
 0x909   : > { %v3818_v54 = vpop.f32.mrf.mxu0  ;;  %v3838_v55 = vpop.f32.mrf.mxu1  ;;  %v3755_v32 = vadd.f32 %v11894_v22, %v3754_v50  ;;  %v3775_v33 = vadd.f32 %v11895_v23, %v3774_v51 }
 0x90a   : > { %v3819_v56 = vadd.f32 %v11896_v48, %v3818_v54  ;;  %v3839_v57 = vadd.f32 %v11897_v49, %v3838_v55 }
 0x90c   : > { %11387 = vmatpush.xpose.msk.msrb.mxu0 %vm2578_vm0, %v3819_v56  ;;  %11389 = vmatpush.xpose.msk.msrb.mxu1 %vm2578_vm0, %v3839_v57 }
 0x90f   : > { %11388 = vmatmul.msk.f32.vlgmr.msrb.gmra.mxu0 %vm2578_vm0, %v3635_v58  ;;  %11390 = vmatmul.msk.f32.vlgmr.msrb.gmra.mxu1 %vm2578_vm0, %v3655_v59 }
 0x910   : > { %v3858_v2 = vpop.f32.mrf.mxu2  ;;  %v3878_v3 = vpop.f32.mrf.mxu3 }
 0x911   : > { %v3859_v6 = vadd.f32 %v11898_v60, %v3858_v2  ;;  %v3879_v7 = vadd.f32 %v11899_v61, %v3878_v3  ;;  %v3898_v9 = vpop.f32.mrf.mxu0  ;;  %v3918_v10 = vpop.f32.mrf.mxu1 }
 0x912   : > { %v3899_v11 = vadd.f32 %v11900_v62, %v3898_v9  ;;  %v3919_v12 = vadd.f32 %v11901_v63, %v3918_v10 }
 0x913   : > { %11391 = vmatpush.xpose.msk.msrb.mxu2 %vm2578_vm0, %v3859_v6  ;;  %11393 = vmatpush.xpose.msk.msrb.mxu3 %vm2578_vm0, %v3879_v7 }
 0x914   : > { %11395 = vmatpush.xpose.msk.msra.mxu0 %vm2578_vm0, %v3899_v11  ;;  %11397 = vmatpush.xpose.msk.msra.mxu1 %vm2578_vm0, %v3919_v12 }
 0x916   : > { %11392 = vmatmul.msk.f32.vlgmr.msrb.gmra.mxu2 %vm2578_vm0, %v3675_v13  ;;  %11394 = vmatmul.msk.f32.vlgmr.msrb.gmra.mxu3 %vm2578_vm0, %v3695_v14 }
 0x917   : > { %11396 = vmatmul.msk.f32.vlgmr.msra.gmra.mxu0 %vm2578_vm0, %v3715_v15  ;;  %11398 = vmatmul.msk.f32.vlgmr.msra.gmra.mxu1 %vm2578_vm0, %v3735_v17 }
 0x918   : > { %v3938_v24 = vpop.f32.mrf.mxu2  ;;  %v3958_v25 = vpop.f32.mrf.mxu3 }
 0x919   : > { %v3939_v26 = vadd.f32 %v11902_v18, %v3938_v24  ;;  %v3959_v27 = vadd.f32 %v11903_v19, %v3958_v25  ;;  %v4002_v28 = vpop.f32.mrf.mxu0  ;;  %v4022_v29 = vpop.f32.mrf.mxu1 }
 0x91a   : > { %v4003_v30 = vadd.f32 %v11904_v20, %v4002_v28  ;;  %v4023_v31 = vadd.f32 %v11905_v21, %v4022_v29 }
 0x91b   : > { %11399 = vmatpush.xpose.msk.msra.mxu2 %vm2578_vm0, %v3939_v26  ;;  %11401 = vmatpush.xpose.msk.msra.mxu3 %vm2578_vm0, %v3959_v27 }
 0x91c   : > { %4467 = vmatpush.msrb.mxu0 %v4003_v30  ;;  %4490 = vmatpush.msrb.mxu1 %v4023_v31 }
 0x91e   : > { %11400 = vmatmul.msk.f32.vlgmr.msra.gmra.mxu2 %vm2578_vm0, %v3755_v32  ;;  %11402 = vmatmul.msk.f32.vlgmr.msra.gmra.mxu3 %vm2578_vm0, %v3775_v33 }
 0x920   : > { %v4042_v38 = vpop.f32.mrf.mxu2  ;;  %v4062_v39 = vpop.f32.mrf.mxu3 }
 0x921   : > { %v4043_v40 = vadd.f32 %v11906_v34, %v4042_v38  ;;  %v4063_v41 = vadd.f32 %v11907_v35, %v4062_v39  ;;  %v4082_v42 = vpop.f32.mrf.mxu0  ;;  %v4102_v43 = vpop.f32.mrf.mxu1 }
 0x922   : > { %v4083_v44 = vadd.f32 %v11908_v36, %v4082_v42  ;;  %v4103_v45 = vadd.f32 %v11909_v37, %v4102_v43 }
 0x923   : > { %4513 = vmatpush.msrb.mxu2 %v4043_v40  ;;  %4536 = vmatpush.msrb.mxu3 %v4063_v41 }
 0x924   : > { %4559 = vmatpush.msra.mxu0 %v4083_v44  ;;  %4582 = vmatpush.msra.mxu1 %v4103_v45 }
 0x928   : > { %v4122_v48 = vpop.f32.mrf.mxu2  ;;  %v4142_v49 = vpop.f32.mrf.mxu3 }
 0x929   : > { %v4123_v50 = vadd.f32 %v11910_v46, %v4122_v48  ;;  %v4143_v51 = vadd.f32 %v11911_v47, %v4142_v49 }
 0x92b   : > { %4605 = vmatpush.msra.mxu2 %v4123_v50  ;;  %4628 = vmatpush.msra.mxu3 %v4143_v51 }
 0x98c   : > { %v4168_v52 = vpop.f32.mrf.mxu0  ;;  %v4194_v59 = vpop.f32.mrf.mxu1 }
 0x98d   : > { %v4353_v53 = vmul.f32 0.25, %v4168_v52  ;;  %v4354_v62 = vmul.f32 0.25, %v4194_v59 }
 0x98f   : > { %v4361_v54 = vsel %vm2795_vm1, %v4353_v53, -inf  ;;  %v4364_v4 = vsel %vm2795_vm1, %v4354_v62, -inf }
 0x990   : > { %4362 = vmax.xlane.f32.xlu1 %v4361_v54 }
 0x994   : > { %v4272_v6 = vpop.f32.mrf.mxu0  ;;  %v4298_v7 = vpop.f32.mrf.mxu1 }
 0x995   : > { %v4357_v9 = vmul.f32 0.25, %v4272_v6  ;;  %v4358_v10 = vmul.f32 0.25, %v4298_v7 }
 0x997   : > { %v4376_v11 = vsel %vm2795_vm1, %v4358_v10, -inf  ;;  %v4373_v12 = vsel %vm2795_vm1, %v4357_v9, -inf }
 0x999   : > { %v4220_v55 = vpop.f32.mrf.mxu2  ;;  %v4246_v56 = vpop.f32.mrf.mxu3 }
 0x99a   : > { %v4355_v57 = vmul.f32 0.25, %v4220_v55  ;;  %v4356_v58 = vmul.f32 0.25, %v4246_v56 }
 0x99c   : > { %v4370_v60 = vsel %vm2795_vm1, %v4356_v58, -inf  ;;  %v4367_v61 = vsel %vm2795_vm1, %v4355_v57, -inf }
 0x99d   : > { %4371 = vmax.xlane.f32.xlu0 %v4370_v60  ;;  %4368 = vmax.xlane.f32.xlu2 %v4367_v61 }
 0x9a1   : > { %v4324_v63 = vpop.f32.mrf.mxu2  ;;  %v4350_v0 = vpop.f32.mrf.mxu3 }
 0x9a2   : > { %v4359_v1 = vmul.f32 0.25, %v4324_v63  ;;  %v4360_v2 = vmul.f32 0.25, %v4350_v0 }
 0x9a4   : > { %v4379_v3 = vsel %vm2795_vm1, %v4359_v1, -inf  ;;  %v4382_v5 = vsel %vm2795_vm1, %v4360_v2, -inf }
 0x9a5   : > { %4380 = vmax.xlane.f32.xlu2 %v4379_v3  ;;  %4365 = vmax.xlane.f32.xlu0 %v4364_v4 }
 0x9a6   : > { %4383 = vmax.xlane.f32.xlu1 %v4382_v5 }
 0x9ad   : > { %4377 = vmax.xlane.f32.xlu0 %v4376_v11  ;;  %4374 = vmax.xlane.f32.xlu2 %v4373_v12 }
 0xa03   : > { %v4363_v13 = vpop.xlane.xlu1 %4362 }
 0xa04   : > { %v4385_v14 = vsub.f32 %v4353_v53, %v4363_v13 }
 0xa06   : > { %v4393_v15 = vmul.f32 1.442695, %v4385_v14 }
 0xa08   : > { %12071 = vpow2.f32 %v4393_v15 }
 0xa0e   : > { %v12072_v17 = vpop.eup %12071 }
 0xa0f   : > { %v4409_v18 = vsel %vm2795_vm1, %v12072_v17, 0.0 }
 0xa10   : > { %v4372_v19 = vpop.xlane.xlu0 %4371  ;;  %v4369_v20 = vpop.xlane.xlu2 %4368  ;;  %4410 = vadd.xlane.f32.xlu0 %v4409_v18  ;;  %v3502_v18 = vld [vmem:[#allocation7 + $0xa8] sm:$0xff] }
 0xa11   : > { %v4388_v21 = vsub.f32 %v4356_v58, %v4372_v19  ;;  %v4387_v22 = vsub.f32 %v4355_v57, %v4369_v20  ;;  %v3498_v57 = vld [vmem:[#allocation7 + $0x88] sm:$0xff]  ;;  %v3504_v19 = vld [vmem:[#allocation7 + $0xb8] sm:$0xff] }
 0xa12   : > { %v3500_v20 = vld [vmem:[#allocation7 + $0x98] sm:$0xff] }
 0xa13   : > { %v4399_v23 = vmul.f32 1.442695, %v4388_v21  ;;  %v4397_v24 = vmul.f32 1.442695, %v4387_v22  ;;  %v3501_v21 = vld [vmem:[#allocation7 + $0xa0] sm:$0xff]  ;;  %v3503_v22 = vld [vmem:[#allocation7 + $0xb0] sm:$0xff] }
 0xa15   : > { %12073 = vpow2.f32 %v4399_v23  ;;  %v3499_v23 = vld [vmem:[#allocation7 + $0x90] sm:$0xff] }
 0xa16   : > { %12075 = vpow2.f32 %v4397_v24  ;;  %v3510_v24 = vld [vmem:[#allocation7 + $0xe8] sm:$0xff] }
 0xa18   : > { %v4381_v25 = vpop.xlane.xlu2 %4380  ;;  %v4366_v26 = vpop.xlane.xlu0 %4365 }
 0xa19   : > { %v4391_v27 = vsub.f32 %v4359_v1, %v4381_v25  ;;  %v4386_v28 = vsub.f32 %v4354_v62, %v4366_v26  ;;  %v4384_v29 = vpop.xlane.xlu1 %4383  ;;  %v3512_v25 = vld [vmem:[#allocation7 + $0xf8] sm:$0xff]  ;;  %v3506_v26 = vld [vmem:[#allocation7 + $0xc8] sm:$0xff] }
 0xa1a   : > { %v4392_v30 = vsub.f32 %v4360_v2, %v4384_v29  ;;  %v3511_v29 = vld [vmem:[#allocation7 + $0xf0] sm:$0xff] }
 0xa1b   : > { %v12074_v31 = vpop.eup %12073  ;;  %v4405_v32 = vmul.f32 1.442695, %v4391_v27  ;;  %v4395_v33 = vmul.f32 1.442695, %v4386_v28  ;;  %v3508_v27 = vld [vmem:[#allocation7 + $0xd8] sm:$0xff]  ;;  %v3509_v28 = vld [vmem:[#allocation7 + $0xe0] sm:$0xff] }
 0xa1c   : > { %v12076_v34 = vpop.eup %12075  ;;  %v4407_v35 = vmul.f32 1.442695, %v4392_v30  ;;  %v4418_v36 = vsel %vm2795_vm1, %v12074_v31, 0.0  ;;  %v3505_v30 = vld [vmem:[#allocation7 + $0xc0] sm:$0xff] }
 0xa1d   : > { %12077 = vpow2.f32 %v4405_v32  ;;  %v4415_v37 = vsel %vm2795_vm1, %v12076_v34, 0.0  ;;  %4419 = vadd.xlane.f32.xlu2 %v4418_v36 }
 0xa1e   : > { %12079 = vpow2.f32 %v4395_v33  ;;  %4416 = vadd.xlane.f32.xlu1 %v4415_v37 }
 0xa1f   : > { %12081 = vpow2.f32 %v4407_v35 }
 0xa20   : > { %v4378_v38 = vpop.xlane.xlu0 %4377  ;;  %v4375_v39 = vpop.xlane.xlu2 %4374 }
 0xa21   : > { %v4390_v40 = vsub.f32 %v4358_v10, %v4378_v38  ;;  %v4389_v41 = vsub.f32 %v4357_v9, %v4375_v39 }
 0xa23   : > { %v12078_v42 = vpop.eup %12077  ;;  %v4403_v43 = vmul.f32 1.442695, %v4390_v40  ;;  %v4401_v44 = vmul.f32 1.442695, %v4389_v41 }
 0xa24   : > { %v12080_v45 = vpop.eup %12079  ;;  %v4427_v46 = vsel %vm2795_vm1, %v12078_v42, 0.0 }
 0xa25   : > { %v12082_v47 = vpop.eup %12081  ;;  %12083 = vpow2.f32 %v4403_v43  ;;  %v4412_v48 = vsel %vm2795_vm1, %v12080_v45, 0.0 }
 0xa26   : > { %12085 = vpow2.f32 %v4401_v44  ;;  %4428 = vadd.xlane.f32.xlu1 %v4427_v46  ;;  %v4430_v49 = vsel %vm2795_vm1, %v12082_v47, 0.0  ;;  %4413 = vadd.xlane.f32.xlu2 %v4412_v48 }
 0xa27   : > { %4431 = vadd.xlane.f32.xlu0 %v4430_v49 }
 0xa2b   : > { %v12084_v50 = vpop.eup %12083 }
 0xa2c   : > { %v12086_v51 = vpop.eup %12085  ;;  %v4424_v52 = vsel %vm2795_vm1, %v12084_v50, 0.0 }
 0xa2d   : > { %v4421_v53 = vsel %vm2795_vm1, %v12086_v51, 0.0 }
 0xa2e   : > { %4425 = vadd.xlane.f32.xlu2 %v4424_v52  ;;  %4422 = vadd.xlane.f32.xlu1 %v4421_v53  ;;  %v11912_v53 = vld [vmem:[%s14801_s15 + $0x1] ss:$0 sm:$0xff] }
 0xa83   : > { %v4411_v54 = vpop.xlane.xlu0 %4410 }
 0xa84   : > { %12087 = vrcp.f32 %v4411_v54 }
 0xa8a   : > { %v12088_v55 = vpop.eup %12087 }
 0xa8b   : > { %v4441_v56 = vmul.f32 %v12088_v55, %v12072_v17  ;;  %v3497_v17 = vld [vmem:[#allocation7 + $0x80] sm:$0xff] }
 0xa8d   : > { %11403 = vmatmul.msk.f32.vlgmr.msrb.gmra.mxu0 %vm2795_vm1, %v4441_v56 }
 0xa8e   : > { %4650 = vmatpush.msrb.mxu0 %v3498_v57 }
 0xa90   : > { %v4420_v58 = vpop.xlane.xlu2 %4419  ;;  %4651 = vmatpush.msrb.mxu0 %v3497_v17  ;;  %v3526_v17 = vld [vmem:[#allocation8 + $0x130] sm:$0xff] }
 0xa91   : > { %v4417_v59 = vpop.xlane.xlu1 %4416  ;;  %12089 = vrcp.f32 %v4420_v58  ;;  %v3535_v58 = vld [vmem:[#allocation8 + $0x178] sm:$0xff] }
 0xa92   : > { %12091 = vrcp.f32 %v4417_v59  ;;  %v3551_v59 = vld [vmem:[#allocation8 + $0x1f8] sm:$0xff] }
 0xa97   : > { %v12090_v60 = vpop.eup %12089 }
 0xa98   : > { %v12092_v61 = vpop.eup %12091  ;;  %v4444_v62 = vmul.f32 %v12090_v60, %v12074_v31  ;;  %v3507_v31 = vld [vmem:[#allocation7 + $0xd0] sm:$0xff] }
 0xa99   : > { %v4443_v63 = vmul.f32 %v12092_v61, %v12076_v34  ;;  %v4429_v0 = vpop.xlane.xlu1 %4428  ;;  %v4414_v1 = vpop.xlane.xlu2 %4413  ;;  %v3534_v60 = vld [vmem:[#allocation8 + $0x170] sm:$0xff] }
 0xa9a   : > { %v4432_v2 = vpop.xlane.xlu0 %4431  ;;  %12093 = vrcp.f32 %v4429_v0  ;;  %11406 = vmatmul.msk.f32.vlgmr.msrb.gmra.mxu3 %vm2795_vm1, %v4444_v62  ;;  %v3550_v61 = vld [vmem:[#allocation8 + $0x1f0] sm:$0xff]  ;;  %v3533_v62 = vld [vmem:[#allocation8 + $0x168] sm:$0xff]  ;;  %v3532_v0 = vld [vmem:[#allocation8 + $0x160] sm:$0xff] }
 0xa9b   : > { %12095 = vrcp.f32 %v4432_v2  ;;  %11405 = vmatmul.msk.f32.vlgmr.msrb.gmra.mxu2 %vm2795_vm1, %v4443_v63  ;;  %4719 = vmatpush.msrb.mxu3 %v3504_v19  ;;  %v3549_v63 = vld [vmem:[#allocation8 + $0x1e8] sm:$0xff]  ;;  %v3531_v2 = vld [vmem:[#allocation8 + $0x158] sm:$0xff] }
 0xa9c   : > { %12097 = vrcp.f32 %v4414_v1  ;;  %4696 = vmatpush.msrb.mxu2 %v3502_v18  ;;  %v3548_v1 = vld [vmem:[#allocation8 + $0x1e0] sm:$0xff]  ;;  %v3542_v18 = vld [vmem:[#allocation8 + $0x1b0] sm:$0xff]  ;;  %v3525_v19 = vld [vmem:[#allocation8 + $0x128] sm:$0xff] }
 0xa9d   : > { %4720 = vmatpush.msrb.mxu3 %v3503_v22  ;;  %v3540_v22 = vld [vmem:[#allocation8 + $0x1a0] sm:$0xff] }
 0xa9e   : > { %4697 = vmatpush.msrb.mxu2 %v3501_v21  ;;  %v3524_v21 = vld [vmem:[#allocation8 + $0x120] sm:$0xff] }
 0xaa0   : > { %v12094_v3 = vpop.eup %12093 }
 0xaa1   : > { %v12096_v4 = vpop.eup %12095  ;;  %v4447_v5 = vmul.f32 %v12094_v3, %v12078_v42  ;;  %v4423_v6 = vpop.xlane.xlu1 %4422  ;;  %v3547_v3 = vld [vmem:[#allocation8 + $0x1d8] sm:$0xff] }
 0xaa2   : > { %v4426_v7 = vpop.xlane.xlu2 %4425  ;;  %v12098_v9 = vpop.eup %12097  ;;  %v4448_v10 = vmul.f32 %v12096_v4, %v12082_v47  ;;  %12099 = vrcp.f32 %v4423_v6  ;;  %v3546_v4 = vld [vmem:[#allocation8 + $0x1d0] sm:$0xff]  ;;  %v3545_v6 = vld [vmem:[#allocation8 + $0x1c8] sm:$0xff] }
 0xaa3   : > { %v4442_v11 = vmul.f32 %v12098_v9, %v12080_v45  ;;  %12101 = vrcp.f32 %v4426_v7  ;;  %11409 = vmatmul.msk.f32.vlgmr.msra.gmra.mxu2 %vm2795_vm1, %v4447_v5  ;;  %v3529_v5 = vld [vmem:[#allocation8 + $0x148] sm:$0xff] }
 0xaa4   : > { %11410 = vmatmul.msk.f32.vlgmr.msra.gmra.mxu3 %vm2795_vm1, %v4448_v10  ;;  %4788 = vmatpush.msra.mxu2 %v3510_v24  ;;  %v3528_v10 = vld [vmem:[#allocation8 + $0x140] sm:$0xff]  ;;  %v3539_v24 = vld [vmem:[#allocation8 + $0x198] sm:$0xff] }
 0xaa5   : > { %11404 = vmatmul.msk.f32.vlgmr.msrb.gmra.mxu1 %vm2795_vm1, %v4442_v11  ;;  %4811 = vmatpush.msra.mxu3 %v3512_v25  ;;  %v3544_v11 = vld [vmem:[#allocation8 + $0x1c0] sm:$0xff]  ;;  %v3522_v25 = vld [vmem:[#allocation8 + $0x110] sm:$0xff] }
 0xaa6   : > { %4673 = vmatpush.msrb.mxu1 %v3500_v20  ;;  %4789 = vmatpush.msra.mxu2 %v3509_v28  ;;  %v3541_v20 = vld [vmem:[#allocation8 + $0x1a8] sm:$0xff] }
 0xaa7   : > { %4812 = vmatpush.msra.mxu3 %v3511_v29  ;;  %v3537_v28 = vld [vmem:[#allocation8 + $0x188] sm:$0xff]  ;;  %v3520_v29 = vld [vmem:[#allocation8 + $0x100] sm:$0xff] }
 0xaa8   : > { %v12100_v12 = vpop.eup %12099  ;;  %4674 = vmatpush.msrb.mxu1 %v3499_v23  ;;  %v3523_v23 = vld [vmem:[#allocation8 + $0x118] sm:$0xff] }
 0xaa9   : > { %v12102_v13 = vpop.eup %12101  ;;  %v4445_v14 = vmul.f32 %v12100_v12, %v12086_v51 }
 0xaaa   : > { %v4446_v15 = vmul.f32 %v12102_v13, %v12084_v50 }
 0xaab   : > { %11407 = vmatmul.msk.f32.vlgmr.msra.gmra.mxu0 %vm2795_vm1, %v4445_v14  ;;  %v3527_v14 = vld [vmem:[#allocation8 + $0x138] sm:$0xff] }
 0xaac   : > { %4742 = vmatpush.msra.mxu0 %v3506_v26  ;;  %v3538_v26 = vld [vmem:[#allocation8 + $0x190] sm:$0xff] }
 0xaad   : > { %11408 = vmatmul.msk.f32.vlgmr.msra.gmra.mxu1 %vm2795_vm1, %v4446_v15  ;;  %v3543_v15 = vld [vmem:[#allocation8 + $0x1b8] sm:$0xff] }
 0xaae   : > { %4765 = vmatpush.msra.mxu1 %v3508_v27  ;;  %4743 = vmatpush.msra.mxu0 %v3505_v30  ;;  %v3521_v27 = vld [vmem:[#allocation8 + $0x108] sm:$0xff]  ;;  %v3536_v30 = vld [vmem:[#allocation8 + $0x180] sm:$0xff] }
 0xab0   : > { %4766 = vmatpush.msra.mxu1 %v3507_v31  ;;  %v4978_v31 = vld [vmem:[#allocation11 + $0x8] sm:$0xff] }
 0xb0a   : > { %v4469_v32 = vpop.f32.mrf.mxu0 }
 0xb0b   : > { %11411 = vmatmul.msk.f32.vlgmr.msrb.gmra.mxu0 %vm2578_vm0, %v4469_v32  ;;  %v4977_v32 = vld [vmem:[#allocation11] sm:$0xff] }
 0xb0c   : > { %4862 = vmatpush.xpose.msrb.mxu0 %v3535_v58  ;;  %v14205_v58 = vld [vmem:[%s1864_s1] sm:$0xff]  ;;  %s14812_s1 = sld [smem:[#allocation81_spill]] }
 0xb10   : > { %4863 = vmatpush.xpose.msrb.mxu0 %v3534_v60  ;;  %v3577_v60 = vld [vmem:[#allocation10 + $0x1b0] sm:$0xff] }
 0xb14   : > { %4864 = vmatpush.xpose.msrb.mxu0 %v3533_v62  ;;  %v4993_v62 = vld [vmem:[#allocation13] sm:$0xff] }
 0xb18   : > { %4865 = vmatpush.xpose.msrb.mxu0 %v3532_v0  ;;  %v3576_v0 = vld [vmem:[#allocation10 + $0x1a8] sm:$0xff] }
 0xb1c   : > { %4866 = vmatpush.xpose.msrb.mxu0 %v3531_v2  ;;  %v3574_v2 = vld [vmem:[#allocation10 + $0x198] sm:$0xff] }
 0xb1d   : > { %v4538_v33 = vpop.f32.mrf.mxu3 }
 0xb1e   : > { %v4515_v34 = vpop.f32.mrf.mxu2  ;;  %11414 = vmatmul.msk.f32.vlgmr.msrb.gmra.mxu3 %vm2578_vm0, %v4538_v33 }
 0xb1f   : > { %11413 = vmatmul.msk.f32.vlgmr.msrb.gmra.mxu2 %vm2578_vm0, %v4515_v34 }
 0xb22   : > { %v4492_v35 = vpop.f32.mrf.mxu1 }
 0xb23   : > { %11412 = vmatmul.msk.f32.vlgmr.msrb.gmra.mxu1 %vm2578_vm0, %v4492_v35 }
 0xb24   : > { %4882 = vmatpush.xpose.msrb.mxu1 %v3551_v59  ;;  %v4994_v59 = vld [vmem:[#allocation13 + $0x8] sm:$0xff] }
 0xb26   : > { %v4607_v36 = vpop.f32.mrf.mxu2 }
 0xb27   : > { %v4630_v37 = vpop.f32.mrf.mxu3  ;;  %11417 = vmatmul.msk.f32.vlgmr.msra.gmra.mxu2 %vm2578_vm0, %v4607_v36 }
 0xb28   : > { %11418 = vmatmul.msk.f32.vlgmr.msra.gmra.mxu3 %vm2578_vm0, %v4630_v37  ;;  %v4561_v38 = vpop.f32.mrf.mxu0  ;;  %4883 = vmatpush.xpose.msrb.mxu1 %v3550_v61  ;;  %v3578_v61 = vld [vmem:[#allocation10 + $0x1b8] sm:$0xff] }
 0xb29   : > { %11415 = vmatmul.msk.f32.vlgmr.msra.gmra.mxu0 %vm2578_vm0, %v4561_v38 }
 0xb2a   : > { %v4584_v39 = vpop.f32.mrf.mxu1 }
 0xb2b   : > { %11416 = vmatmul.msk.f32.vlgmr.msra.gmra.mxu1 %vm2578_vm0, %v4584_v39 }
 0xb2c   : > { %4884 = vmatpush.xpose.msrb.mxu1 %v3549_v63  ;;  %v3575_v63 = vld [vmem:[#allocation10 + $0x1a0] sm:$0xff] }
 0xb30   : > { %4885 = vmatpush.xpose.msrb.mxu1 %v3548_v1  ;;  %v3573_v1 = vld [vmem:[#allocation10 + $0x190] sm:$0xff] }
 0xb34   : > { %4886 = vmatpush.xpose.msrb.mxu1 %v3547_v3  ;;  %v3571_v3 = vld [vmem:[#allocation10 + $0x180] sm:$0xff] }
 0xb38   : > { %4887 = vmatpush.xpose.msrb.mxu1 %v3546_v4  ;;  %v3569_v4 = vld [vmem:[#allocation10 + $0x170] sm:$0xff] }
 0xb3c   : > { %4888 = vmatpush.xpose.msrb.mxu1 %v3545_v6  ;;  %v3567_v6 = vld [vmem:[#allocation10 + $0x160] sm:$0xff] }
 0xb40   : > { %4889 = vmatpush.xpose.msrb.mxu1 %v3544_v11  ;;  %v3563_v11 = vld [vmem:[#allocation10 + $0x140] sm:$0xff] }
 0xb44   : > { %4890 = vmatpush.xpose.msrb.mxu1 %v3543_v15  ;;  %v3559_v15 = vld [vmem:[#allocation10 + $0x120] sm:$0xff] }
 0xb48   : > { %4891 = vmatpush.xpose.msrb.mxu1 %v3542_v18  ;;  %v3557_v18 = vld [vmem:[#allocation10 + $0x110] sm:$0xff] }
 0xb4c   : > { %4892 = vmatpush.xpose.msrb.mxu1 %v3541_v20  ;;  %v3555_v20 = vld [vmem:[#allocation10 + $0x100] sm:$0xff] }
 0xb50   : > { %4893 = vmatpush.xpose.msrb.mxu1 %v3540_v22  ;;  %v4982_v22 = vld [vmem:[#allocation11 + $0x28] sm:$0xff] }
 0xb54   : > { %4894 = vmatpush.xpose.msrb.mxu1 %v3539_v24  ;;  %v5002_v24 = vld [vmem:[#allocation13 + $0x48] sm:$0xff] }
 0xb58   : > { %4895 = vmatpush.xpose.msrb.mxu1 %v3538_v26  ;;  %v4981_v26 = vld [vmem:[#allocation11 + $0x20] sm:$0xff] }
 0xb5c   : > { %4896 = vmatpush.xpose.msrb.mxu1 %v3537_v28  ;;  %v5001_v28 = vld [vmem:[#allocation13 + $0x40] sm:$0xff] }
 0xb60   : > { %4897 = vmatpush.xpose.msrb.mxu1 %v3536_v30  ;;  %v5010_v30 = vld [vmem:[#allocation14 + $0x8] sm:$0xff] }
 0xb88   : > { %v4653_v40 = vpop.f32.mrf.mxu0 }
 0xba0   : > { %v4676_v41 = vpop.f32.mrf.mxu1 }
 0xba1   : > { %v4817_v42 = vadd.f32 %v4676_v41, %v4653_v40  ;;  %v4722_v44 = vpop.f32.mrf.mxu3 }
 0xba2   : > { %v4699_v43 = vpop.f32.mrf.mxu2 }
 0xba3   : > { %v4818_v45 = vadd.f32 %v4817_v42, %v4699_v43  ;;  %v11913_v42 = vld [vmem:[%s14802_s6 + $0x1] ss:$0 sm:$0xff]  ;;  %v3585_v43 = vld [vmem:[#allocation10 + $0x1f0] sm:$0xff] }
 0xba4   : > { %4907 = vmatpush.xpose.msrb.mxu2 %v3585_v43 }
 0xba5   : > { %v4819_v46 = vadd.f32 %v4818_v45, %v4722_v44  ;;  %v3586_v44 = vld [vmem:[#allocation10 + $0x1f8] sm:$0xff] }
 0xba6   : > { %v4745_v47 = vpop.f32.mrf.mxu0  ;;  %4927 = vmatpush.xpose.msrb.mxu3 %v3586_v44  ;;  %v5003_v44 = vld [vmem:[#allocation13 + $0x50] sm:$0xff] }
 0xba7   : > { %v4820_v48 = vadd.f32 %v4819_v46, %v4745_v47  ;;  %v11914_v47 = vld [vmem:[%s14803_s9 + $0x1] ss:$0 sm:$0xff] }
 0xba8   : > { %v4768_v49 = vpop.f32.mrf.mxu1 }
 0xba9   : > { %v4821_v50 = vadd.f32 %v4820_v48, %v4768_v49  ;;  %v3583_v48 = vld [vmem:[#allocation10 + $0x1e0] sm:$0xff]  ;;  %v3584_v49 = vld [vmem:[#allocation10 + $0x1e8] sm:$0xff] }
 0xbaa   : > { %v4791_v51 = vpop.f32.mrf.mxu2  ;;  %4908 = vmatpush.xpose.msrb.mxu2 %v3583_v48  ;;  %4928 = vmatpush.xpose.msrb.mxu3 %v3584_v49  ;;  %v4990_v49 = vld [vmem:[#allocation11 + $0x68] sm:$0xff] }
 0xbab   : > { %v4822_v52 = vadd.f32 %v4821_v50, %v4791_v51  ;;  %v4814_v54 = vpop.f32.mrf.mxu3 }
 0xbad   : > { %v4823_v55 = vadd.f32 %v4822_v52, %v4814_v54  ;;  %v4986_v52 = vld [vmem:[#allocation11 + $0x48] sm:$0xff]  ;;  %v3582_v54 = vld [vmem:[#allocation10 + $0x1d8] sm:$0xff] }
 0xbae   : > { %4929 = vmatpush.xpose.msrb.mxu3 %v3582_v54 }
 0xbaf   : > { %v4827_v56 = vadd.f32 %v11912_v53, %v4823_v55  ;;  %v3581_v53 = vld [vmem:[#allocation10 + $0x1d0] sm:$0xff]  ;;  %v4985_v55 = vld [vmem:[#allocation11 + $0x40] sm:$0xff] }
 0xbb0   : > { %4909 = vmatpush.xpose.msrb.mxu2 %v3581_v53  ;;  %v4991_v53 = vld [vmem:[#allocation11 + $0x70] sm:$0xff] }
 0xbb1   : > { %v4828_v57 = vadd.f32 %v4827_v56, %v14094_v8  ;;  %v3530_v8 = vld [vmem:[#allocation8 + $0x150] sm:$0xff]  ;;  %v3579_v56 = vld [vmem:[#allocation10 + $0x1c0] sm:$0xff] }
 0xbb2   : > { %4867 = vmatpush.xpose.msrb.mxu0 %v3530_v8  ;;  %v3572_v8 = vld [vmem:[#allocation10 + $0x188] sm:$0xff] }
 0xbb3   : > { %4829 = vadd.xlane.f32.xlu0 %v4828_v57 }
 0xbb4   : > { %4910 = vmatpush.xpose.msrb.mxu2 %v3579_v56  ;;  %v5000_v56 = vld [vmem:[#allocation13 + $0x38] sm:$0xff] }
 0xbb6   : > { %4868 = vmatpush.xpose.msrb.mxu0 %v3529_v5  ;;  %v3570_v5 = vld [vmem:[#allocation10 + $0x178] sm:$0xff] }
 0xbb8   : > { %4911 = vmatpush.xpose.msrb.mxu2 %v3577_v60 }
 0xbba   : > { %4869 = vmatpush.xpose.msrb.mxu0 %v3528_v10  ;;  %v3566_v10 = vld [vmem:[#allocation10 + $0x158] sm:$0xff] }
 0xbbc   : > { %4912 = vmatpush.xpose.msrb.mxu2 %v3575_v63  ;;  %v11917_v63 = vld [vmem:[%s14812_s1] ss:$0 sm:$0xff] }
 0xbbe   : > { %4870 = vmatpush.xpose.msrb.mxu0 %v3527_v14  ;;  %v3562_v14 = vld [vmem:[#allocation10 + $0x138] sm:$0xff] }
 0xbc0   : > { %4913 = vmatpush.xpose.msrb.mxu2 %v3573_v1  ;;  %v5005_v1 = vld [vmem:[#allocation13 + $0x60] sm:$0xff] }
 0xbc2   : > { %4871 = vmatpush.xpose.msrb.mxu0 %v3526_v17  ;;  %v3560_v17 = vld [vmem:[#allocation10 + $0x128] sm:$0xff] }
 0xbc4   : > { %4914 = vmatpush.xpose.msrb.mxu2 %v3571_v3 }
 0xbc6   : > { %4872 = vmatpush.xpose.msrb.mxu0 %v3525_v19  ;;  %v3558_v19 = vld [vmem:[#allocation10 + $0x118] sm:$0xff] }
 0xbc8   : > { %4915 = vmatpush.xpose.msrb.mxu2 %v3569_v4 }
 0xbca   : > { %4873 = vmatpush.xpose.msrb.mxu0 %v3524_v21  ;;  %v3556_v21 = vld [vmem:[#allocation10 + $0x108] sm:$0xff] }
 0xbcc   : > { %4916 = vmatpush.xpose.msrb.mxu2 %v3567_v6  ;;  %v11919_v6 = vld [vmem:[%s14812_s1 + $0x4] ss:$0 sm:$0xff] }
 0xbce   : > { %4874 = vmatpush.xpose.msrb.mxu0 %v3523_v23  ;;  %v4984_v23 = vld [vmem:[#allocation11 + $0x38] sm:$0xff] }
 0xbd2   : > { %4875 = vmatpush.xpose.msrb.mxu0 %v3522_v25  ;;  %v4980_v25 = vld [vmem:[#allocation11 + $0x18] sm:$0xff] }
 0xbd3   : > { %5285 = vmatpush.xpose.msra.mxu1 %v4980_v25 }
 0xbd6   : > { %4876 = vmatpush.xpose.msrb.mxu0 %v3521_v27  ;;  %v4983_v27 = vld [vmem:[#allocation11 + $0x30] sm:$0xff] }
 0xbda   : > { %4877 = vmatpush.xpose.msrb.mxu0 %v3520_v29  ;;  %v4979_v29 = vld [vmem:[#allocation11 + $0x10] sm:$0xff] }
 0xbdb   : > { %5286 = vmatpush.xpose.msra.mxu1 %v4979_v29  ;;  %v5023_v29 = vld [vmem:[#allocation14 + $0x70] sm:$0xff] }
 0xbde   : > { %5265 = vmatpush.xpose.msra.mxu0 %v4978_v31  ;;  %v4988_v31 = vld [vmem:[#allocation11 + $0x58] sm:$0xff] }
 0xbe2   : > { %5266 = vmatpush.xpose.msra.mxu0 %v4977_v32  ;;  %v5009_v32 = vld [vmem:[#allocation14] sm:$0xff] }
 0xc26   : > { %v4830_v7 = vpop.xlane.xlu0 %4829 }
 0xc27   : > { %v4831_v9 = vmul.f32 %v4830_v7, %v14061_v16  ;;  %v3568_v7 = vld [vmem:[#allocation10 + $0x168] sm:$0xff] }
 0xc29   : > { %v4832_v12 = vsub.f32 %v4828_v57, %v4831_v9  ;;  %v3580_v57 = vld [vmem:[#allocation10 + $0x1c8] sm:$0xff]  ;;  %v3565_v9 = vld [vmem:[#allocation10 + $0x150] sm:$0xff] }
 0xc2a   : > { %4930 = vmatpush.xpose.msrb.mxu3 %v3580_v57  ;;  %4917 = vmatpush.xpose.msrb.mxu2 %v3565_v9  ;;  %v4997_v57 = vld [vmem:[#allocation13 + $0x20] sm:$0xff]  ;;  %v5012_v9 = vld [vmem:[#allocation14 + $0x18] sm:$0xff] }
 0xc2b   : > { %v4833_v13 = vmul.f32 %v4832_v12, %v4832_v12 }
 0xc2d   : > { %4834 = vadd.xlane.f32.xlu1 %v4833_v13  ;;  %v3561_v13 = vld [vmem:[#allocation10 + $0x130] sm:$0xff] }
 0xc2e   : > { %4931 = vmatpush.xpose.msrb.mxu3 %v3578_v61  ;;  %4918 = vmatpush.xpose.msrb.mxu2 %v3563_v11  ;;  %v5006_v61 = vld [vmem:[#allocation13 + $0x68] sm:$0xff] }
 0xc2f   : > { %v5014_v11 = vld [vmem:[#allocation14 + $0x28] sm:$0xff] }
 0xc32   : > { %4932 = vmatpush.xpose.msrb.mxu3 %v3576_v0  ;;  %4919 = vmatpush.xpose.msrb.mxu2 %v3561_v13  ;;  %v11915_v0 = vld [vmem:[%s14813_s2] ss:$0 sm:$0xff] }
 0xc36   : > { %4933 = vmatpush.xpose.msrb.mxu3 %v3574_v2  ;;  %4920 = vmatpush.xpose.msrb.mxu2 %v3559_v15  ;;  %v5007_v2 = vld [vmem:[#allocation13 + $0x70] sm:$0xff] }
 0xc37   : > { %v5011_v15 = vld [vmem:[#allocation14 + $0x10] sm:$0xff] }
 0xc3a   : > { %4934 = vmatpush.xpose.msrb.mxu3 %v3572_v8  ;;  %4921 = vmatpush.xpose.msrb.mxu2 %v3557_v18  ;;  %v5013_v18 = vld [vmem:[#allocation14 + $0x20] sm:$0xff] }
 0xc3e   : > { %4935 = vmatpush.xpose.msrb.mxu3 %v3570_v5  ;;  %4922 = vmatpush.xpose.msrb.mxu2 %v3555_v20  ;;  %v11916_v5 = vld [vmem:[%s14813_s2 + $0x4] ss:$0 sm:$0xff]  ;;  %v5020_v20 = vld [vmem:[#allocation14 + $0x58] sm:$0xff] }
 0xc42   : > { %4936 = vmatpush.xpose.msrb.mxu3 %v3568_v7  ;;  %5305 = vmatpush.xpose.msra.mxu2 %v4982_v22 }
 0xc46   : > { %4937 = vmatpush.xpose.msrb.mxu3 %v3566_v10  ;;  %5306 = vmatpush.xpose.msra.mxu2 %v4981_v26  ;;  %v5019_v26 = vld [vmem:[#allocation14 + $0x50] sm:$0xff] }
 0xca0   : > { %v4835_v33 = vpop.xlane.xlu1 %4834 }
 0xca1   : > { %v4836_v34 = vmul.f32 %v4835_v33, %v14061_v16  ;;  %v4987_v33 = vld [vmem:[#allocation11 + $0x50] sm:$0xff] }
 0xca3   : > { %v4837_v35 = vadd.f32 1e-06, %v4836_v34  ;;  %v5018_v34 = vld [vmem:[#allocation14 + $0x48] sm:$0xff] }
 0xca5   : > { %12103 = vrsqrt.f32 %v4837_v35  ;;  %vm4844_vm10 = vweird.f32 %v4837_v35 }
 0xcab   : > { %v12104_v36 = vpop.eup %12103 }
 0xcac   : > { %v4839_v37 = vmul.f32 %v12104_v36, %v4837_v35  ;;  %vm4845_vm9 = vweird.f32 %v12104_v36  ;;  %v4996_v35 = vld [vmem:[#allocation13 + $0x18] sm:$0xff] }
 0xcad   : > { %vm4846_vm11 = vmor %vm4844_vm10, %vm4845_vm9 }
 0xcae   : > { %v4840_v38 = vmul.f32 %v12104_v36, %v4839_v37  ;;  %v4995_v37 = vld [vmem:[#allocation13 + $0x10] sm:$0xff] }
 0xcb0   : > { %v4841_v39 = vmul.f32 0.5, %v4840_v38  ;;  %v11383_v38 = vld [vmem:[%s14805_s7 + $0x2] sm:$0x3] }
 0xcb2   : > { %v4842_v40 = vsub.f32 1.5, %v4841_v39  ;;  %v4858_v39 = vperm.slane %v11383_v38, 0 }
 0xcb4   : > { %v4843_v41 = vmul.f32 %v12104_v36, %v4842_v40  ;;  %v4859_v40 = vperm.slane %v11383_v38, 1 }
 0xcb6   : > { %v4847_v45 = vsel %vm4846_vm11, %v12104_v36, %v4843_v41  ;;  %v5017_v36 = vld [vmem:[#allocation14 + $0x40] sm:$0xff]  ;;  %v5004_v41 = vld [vmem:[#allocation13 + $0x58] sm:$0xff] }
 0xcb7   : > { %v4848_v46 = vmul.f32 %v4847_v45, %v4832_v12  ;;  %v3564_v12 = vld [vmem:[#allocation10 + $0x148] sm:$0xff] }
 0xcb8   : > { %4938 = vmatpush.xpose.msrb.mxu3 %v3564_v12  ;;  %v5016_v12 = vld [vmem:[#allocation14 + $0x38] sm:$0xff] }
 0xcb9   : > { %v4852_v50 = vmul.f32 %v11913_v42, %v4848_v46 }
 0xcbb   : > { %v14198_v51 = vadd.f32 %v11914_v47, %v4852_v50  ;;  %v4992_v50 = vld [vmem:[#allocation11 + $0x78] sm:$0xff] }
 0xcbc   : > { %4939 = vmatpush.xpose.msrb.mxu3 %v3562_v14 }
 0xcbd   : > { %4878 = vmatmul.f32.vlgmr.msrb.gmra.mxu0 %v14198_v51  ;;  %4898 = vmatmul.f32.vlgmr.msrb.gmra.mxu1 %v14198_v51 }
 0xcbe   : > { %5345 = vmatpush.xpose.msrb.mxu0 %v4986_v52  ;;  %5365 = vmatpush.xpose.msrb.mxu1 %v4988_v31  ;;  %v4989_v52 = vld [vmem:[#allocation11 + $0x60] sm:$0xff] }
 0xcc0   : > { %4940 = vmatpush.xpose.msrb.mxu3 %v3560_v17  ;;  %v11923_v17 = vld [vmem:[%s14814_s22] ss:$0 sm:$0xff]  ;;  %s14818_s22 = sld [smem:[#allocation93_spill]] }
 0xcc2   : > { %5346 = vmatpush.xpose.msrb.mxu0 %v4985_v55  ;;  %5366 = vmatpush.xpose.msrb.mxu1 %v4987_v33  ;;  %v4998_v55 = vld [vmem:[#allocation13 + $0x28] sm:$0xff] }
 0xcc4   : > { %4941 = vmatpush.xpose.msrb.mxu3 %v3558_v19  ;;  %v5015_v19 = vld [vmem:[#allocation14 + $0x30] sm:$0xff] }
 0xcc5   : > { %5267 = vmatmul.f32.vlgmr.msra.gmra.mxu0 %v14205_v58  ;;  %5287 = vmatmul.f32.vlgmr.msra.gmra.mxu1 %v14205_v58 }
 0xcc6   : > { %5449 = vmatpush.xpose.msra.mxu0 %v4994_v59  ;;  %5469 = vmatpush.xpose.msra.mxu1 %v4996_v35  ;;  %v4999_v59 = vld [vmem:[#allocation13 + $0x30] sm:$0xff]  ;;  %v11920_v35 = vld [vmem:[%s14813_s2 + $0x1] ss:$0 sm:$0xff]  ;;  %s14819_s5 = smov %s14818_s22 }
 0xcc8   : > { %4942 = vmatpush.xpose.msrb.mxu3 %v3556_v21 }
 0xcca   : > { %5450 = vmatpush.xpose.msra.mxu0 %v4993_v62  ;;  %5470 = vmatpush.xpose.msra.mxu1 %v4995_v37  ;;  %v5008_v62 = vld [vmem:[#allocation13 + $0x78] sm:$0xff]  ;;  %v11931_v37 = vld [vmem:[%s14812_s1 + $0x5] ss:$0 sm:$0xff] }
 0xccc   : > { %5325 = vmatpush.xpose.msra.mxu3 %v4984_v23  ;;  %v5022_v23 = vld [vmem:[#allocation14 + $0x68] sm:$0xff] }
 0xccd   : > { %5347 = vmatmul.f32.vlgmr.msrb.gmra.mxu0 %v14205_v58  ;;  %5367 = vmatmul.f32.vlgmr.msrb.gmra.mxu1 %v14205_v58 }
 0xcce   : > { %5529 = vmatpush.xpose.msrb.mxu0 %v5002_v24  ;;  %5549 = vmatpush.xpose.msrb.mxu1 %v5004_v41  ;;  %v5024_v24 = vld [vmem:[#allocation14 + $0x78] sm:$0xff] }
 0xcd0   : > { %5326 = vmatpush.xpose.msra.mxu3 %v4983_v27  ;;  %v11927_v27 = vld [vmem:[%s14815_s3 + $0x4] ss:$0 sm:$0xff] }
 0xcd2   : > { %5530 = vmatpush.xpose.msrb.mxu0 %v5001_v28  ;;  %5550 = vmatpush.xpose.msrb.mxu1 %v5003_v44  ;;  %v5021_v28 = vld [vmem:[#allocation14 + $0x60] sm:$0xff] }
 0xcd5   : > { %5451 = vmatmul.f32.vlgmr.msra.gmra.mxu0 %v14205_v58  ;;  %5471 = vmatmul.f32.vlgmr.msra.gmra.mxu1 %v14205_v58 }
 0xcd6   : > { %5633 = vmatpush.xpose.msra.mxu0 %v5010_v30  ;;  %5653 = vmatpush.xpose.msra.mxu1 %v5012_v9  ;;  %v11928_v30 = vld [vmem:[%s14812_s1 + $0x1] ss:$0 sm:$0xff] }
 0xcda   : > { %5634 = vmatpush.xpose.msra.mxu0 %v5009_v32  ;;  %5654 = vmatpush.xpose.msra.mxu1 %v5011_v15  ;;  %v11937_v15 = vld [vmem:[%s14815_s3 + $0x3] ss:$0 sm:$0xff] }
 0xcdd   : > { %5531 = vmatmul.f32.vlgmr.msrb.gmra.mxu0 %v14205_v58  ;;  %5551 = vmatmul.f32.vlgmr.msrb.gmra.mxu1 %v14205_v58 }
 0xcde   : > { %5713 = vmatpush.xpose.msrb.mxu0 %v5018_v34  ;;  %5733 = vmatpush.xpose.msrb.mxu1 %v5020_v20 }
 0xce2   : > { %5714 = vmatpush.xpose.msrb.mxu0 %v5017_v36  ;;  %5734 = vmatpush.xpose.msrb.mxu1 %v5019_v26 }
 0xce5   : > { %5635 = vmatmul.f32.vlgmr.msra.gmra.mxu0 %v14205_v58  ;;  %5655 = vmatmul.f32.vlgmr.msra.gmra.mxu1 %v14205_v58 }
 0xced   : > { %5715 = vmatmul.f32.vlgmr.msrb.gmra.mxu0 %v14205_v58  ;;  %5735 = vmatmul.f32.vlgmr.msrb.gmra.mxu1 %v14205_v58 }
 0xd3a   : > { %v4879_v42 = vpop.f32.mrf.mxu0  ;;  %v4899_v43 = vpop.f32.mrf.mxu1 }
 0xd3b   : > { %v4880_v45 = vadd.f32 %v4879_v42, %v4858_v39  ;;  %v4900_v46 = vadd.f32 %v4899_v43, %v4859_v40  ;;  %v11924_v39 = vld [vmem:[%s14813_s2 + $0x5] ss:$0 sm:$0xff] }
 0xd3d   : > { %v4902_v47 = vmax.f32 %v4880_v45, 0.0  ;;  %v4903_v48 = vmax.f32 %v4900_v46, 0.0 }
 0xd3f   : > { %4923 = vmatmul.f32.vlgmr.msrb.gmra.mxu2 %v4902_v47  ;;  %4943 = vmatmul.f32.vlgmr.msrb.gmra.mxu3 %v4903_v48 }
 0xd40   : > { %5385 = vmatpush.xpose.msrb.mxu2 %v4990_v49  ;;  %5405 = vmatpush.xpose.msrb.mxu3 %v4992_v50  ;;  %v14255_v49 = vld [vmem:[%s14816_s23] sm:$0xff]  ;;  %s14820_s23 = sld [smem:[#allocation96_spill]] }
 0xd42   : > { %v5268_v54 = vpop.f32.mrf.mxu0  ;;  %v5288_v10 = vpop.f32.mrf.mxu1 }
 0xd43   : > { %v5269_v4 = vadd.f32 %v11915_v0, %v5268_v54  ;;  %v5289_v36 = vadd.f32 %v11920_v35, %v5288_v10 }
 0xd44   : > { %5386 = vmatpush.xpose.msrb.mxu2 %v4989_v52  ;;  %5406 = vmatpush.xpose.msrb.mxu3 %v4991_v53  ;;  %v11929_v52 = vld [vmem:[%s14812_s1 + $0x2] ss:$0 sm:$0xff]  ;;  %v11930_v53 = vld [vmem:[%s14812_s1 + $0x3] ss:$0 sm:$0xff] }
 0xd46   : > { %s14821_s6 = smov %s14820_s23 }
 0xd47   : > { %5307 = vmatmul.f32.vlgmr.msra.gmra.mxu2 %v14205_v58  ;;  %5327 = vmatmul.f32.vlgmr.msra.gmra.mxu3 %v14205_v58 }
 0xd48   : > { %5489 = vmatpush.xpose.msra.mxu2 %v4998_v55  ;;  %5509 = vmatpush.xpose.msra.mxu3 %v5000_v56  ;;  %v11921_v55 = vld [vmem:[%s14813_s2 + $0x2] ss:$0 sm:$0xff]  ;;  %v11922_v56 = vld [vmem:[%s14813_s2 + $0x3] ss:$0 sm:$0xff] }
 0xd4a   : > { %v5348_v60 = vpop.f32.mrf.mxu0  ;;  %v5368_v22 = vpop.f32.mrf.mxu1 }
 0xd4b   : > { %v5349_v14 = vadd.f32 %v11916_v5, %v5348_v60  ;;  %v5369_v43 = vadd.f32 %v11924_v39, %v5368_v22 }
 0xd4c   : > { %5490 = vmatpush.xpose.msra.mxu2 %v4997_v57  ;;  %5510 = vmatpush.xpose.msra.mxu3 %v4999_v59 }
 0xd4f   : > { %5387 = vmatmul.f32.vlgmr.msrb.gmra.mxu2 %v14205_v58  ;;  %5407 = vmatmul.f32.vlgmr.msrb.gmra.mxu3 %v14205_v58 }
 0xd50   : > { %5569 = vmatpush.xpose.msrb.mxu2 %v5006_v61  ;;  %5589 = vmatpush.xpose.msrb.mxu3 %v5008_v62 }
 0xd52   : > { %v5452_v3 = vpop.f32.mrf.mxu0  ;;  %v5472_v32 = vpop.f32.mrf.mxu1 }
 0xd53   : > { %v5453_v8 = vadd.f32 %v11917_v63, %v5452_v3  ;;  %v5473_v34 = vadd.f32 %v11928_v30, %v5472_v32  ;;  %v11925_v3 = vld [vmem:[%s14813_s2 + $0x6] ss:$0 sm:$0xff] }
 0xd54   : > { %5570 = vmatpush.xpose.msrb.mxu2 %v5005_v1  ;;  %5590 = vmatpush.xpose.msrb.mxu3 %v5007_v2  ;;  %v11932_v1 = vld [vmem:[%s14812_s1 + $0x6] ss:$0 sm:$0xff]  ;;  %v11933_v2 = vld [vmem:[%s14812_s1 + $0x7] ss:$0 sm:$0xff] }
 0xd55   : > { %11419 = vmatpush.xpose.msk.msra.mxu0 %vm2578_vm0, %v5453_v8  ;;  %11421 = vmatpush.xpose.msk.msra.mxu1 %vm2578_vm0, %v5473_v34  ;;  %v11926_v8 = vld [vmem:[%s14813_s2 + $0x7] ss:$0 sm:$0xff] }
 0xd57   : > { %5491 = vmatmul.f32.vlgmr.msra.gmra.mxu2 %v14205_v58  ;;  %5511 = vmatmul.f32.vlgmr.msra.gmra.mxu3 %v14205_v58 }
 0xd58   : > { %11420 = vmatmul.msk.f32.vlgmr.msra.gmra.mxu0 %vm2578_vm0, %v5269_v4  ;;  %5673 = vmatpush.xpose.msra.mxu2 %v5014_v11  ;;  %v11934_v11 = vld [vmem:[%s14815_s3 + $0x1] ss:$0 sm:$0xff] }
 0xd59   : > { %5693 = vmatpush.xpose.msra.mxu3 %v5016_v12  ;;  %11422 = vmatmul.msk.f32.vlgmr.msra.gmra.mxu1 %vm2578_vm0, %v5289_v36 }
 0xd5a   : > { %v5532_v7 = vpop.f32.mrf.mxu0  ;;  %v5552_v38 = vpop.f32.mrf.mxu1 }
 0xd5b   : > { %v5533_v13 = vadd.f32 %v11919_v6, %v5532_v7  ;;  %v5553_v40 = vadd.f32 %v11931_v37, %v5552_v38 }
 0xd5c   : > { %5674 = vmatpush.xpose.msra.mxu2 %v5013_v18 }
 0xd5d   : > { %11427 = vmatpush.xpose.msk.msrb.mxu0 %vm2578_vm0, %v5533_v13  ;;  %5694 = vmatpush.xpose.msra.mxu3 %v5015_v19 }
 0xd5e   : > { %11429 = vmatpush.xpose.msk.msrb.mxu1 %vm2578_vm0, %v5553_v40 }
 0xd5f   : > { %5571 = vmatmul.f32.vlgmr.msrb.gmra.mxu2 %v14205_v58  ;;  %5591 = vmatmul.f32.vlgmr.msrb.gmra.mxu3 %v14205_v58 }
 0xd60   : > { %11428 = vmatmul.msk.f32.vlgmr.msrb.gmra.mxu0 %vm2578_vm0, %v5349_v14  ;;  %5753 = vmatpush.xpose.msrb.mxu2 %v5022_v23  ;;  %v11936_v14 = vld [vmem:[%s14815_s3 + $0x2] ss:$0 sm:$0xff] }
 0xd61   : > { %5773 = vmatpush.xpose.msrb.mxu3 %v5024_v24  ;;  %11430 = vmatmul.msk.f32.vlgmr.msrb.gmra.mxu1 %vm2578_vm0, %v5369_v43  ;;  %v11938_v24 = vld [vmem:[%s14815_s3 + $0x6] ss:$0 sm:$0xff] }
 0xd62   : > { %v5636_v21 = vpop.f32.mrf.mxu0  ;;  %v5656_v12 = vpop.f32.mrf.mxu1 }
 0xd63   : > { %v5637_v25 = vadd.f32 %v11923_v17, %v5636_v21  ;;  %v5657_v13 = vadd.f32 %v11934_v11, %v5656_v12  ;;  %v11935_v17 = vld [vmem:[%s14815_s3 + $0x5] ss:$0 sm:$0xff] }
 0xd64   : > { %5754 = vmatpush.xpose.msrb.mxu2 %v5021_v28 }
 0xd65   : > { %6109 = vmatpush.msra.mxu0 %v5637_v25  ;;  %5774 = vmatpush.xpose.msrb.mxu3 %v5023_v29  ;;  %v11939_v25 = vld [vmem:[%s14815_s3 + $0x7] ss:$0 sm:$0xff] }
 0xd66   : > { %6132 = vmatpush.msra.mxu1 %v5657_v13 }
 0xd67   : > { %5675 = vmatmul.f32.vlgmr.msra.gmra.mxu2 %v14205_v58  ;;  %5695 = vmatmul.f32.vlgmr.msra.gmra.mxu3 %v14205_v58 }
 0xd6a   : > { %v5716_v31 = vpop.f32.mrf.mxu0  ;;  %v5736_v20 = vpop.f32.mrf.mxu1 }
 0xd6b   : > { %v5717_v33 = vadd.f32 %v11927_v27, %v5716_v31  ;;  %v5737_v23 = vadd.f32 %v11935_v17, %v5736_v20 }
 0xd6d   : > { %6201 = vmatpush.msrb.mxu0 %v5717_v33  ;;  %6224 = vmatpush.msrb.mxu1 %v5737_v23 }
 0xd6f   : > { %5755 = vmatmul.f32.vlgmr.msrb.gmra.mxu2 %v14205_v58  ;;  %5775 = vmatmul.f32.vlgmr.msrb.gmra.mxu3 %v14205_v58 }
 0xdc2   : > { %v14249_v41 = vpop.f32.mrf.mxu2  ;;  %v14251_v42 = vpop.f32.mrf.mxu3 }
 0xdca   : > { %v5308_v44 = vpop.f32.mrf.mxu2  ;;  %v5328_v45 = vpop.f32.mrf.mxu3 }
 0xdcb   : > { %v5309_v63 = vadd.f32 %v11921_v55, %v5308_v44  ;;  %v5329_v0 = vadd.f32 %v11922_v56, %v5328_v45 }
 0xdd2   : > { %v5388_v46 = vpop.f32.mrf.mxu2  ;;  %v5408_v47 = vpop.f32.mrf.mxu3 }
 0xdd3   : > { %v5389_v9 = vadd.f32 %v11925_v3, %v5388_v46  ;;  %v5409_v10 = vadd.f32 %v11926_v8, %v5408_v47 }
 0xdd5   : > { %v5802_v48 = vpop.f32.mrf.mxu0 }
 0xdd6   : > { %v5987_v50 = vmul.f32 0.25, %v5802_v48  ;;  %v5828_v30 = vpop.f32.mrf.mxu1 }
 0xdd7   : > { %v5988_v37 = vmul.f32 0.25, %v5828_v30 }
 0xdd8   : > { %v14260_v54 = vadd.f32 %v5987_v50, %v14255_v49 }
 0xdd9   : > { %v5996_v48 = vadd.f32 %v5988_v37, %v14255_v49 }
 0xdda   : > { %v5492_v57 = vpop.f32.mrf.mxu2  ;;  %v5512_v59 = vpop.f32.mrf.mxu3  ;;  %v6003_v60 = vsel %vm2795_vm1, %v14260_v54, -inf }
 0xddb   : > { %v5493_v61 = vadd.f32 %v11929_v52, %v5492_v57  ;;  %v5513_v62 = vadd.f32 %v11930_v53, %v5512_v59  ;;  %6004 = vmax.xlane.f32.xlu1 %v6003_v60  ;;  %v6006_v60 = vsel %vm2795_vm1, %v5996_v48, -inf }
 0xddd   : > { %11423 = vmatpush.xpose.msk.msra.mxu2 %vm2578_vm0, %v5493_v61  ;;  %11425 = vmatpush.xpose.msk.msra.mxu3 %vm2578_vm0, %v5513_v62  ;;  %v5906_v45 = vpop.f32.mrf.mxu0 }
 0xdde   : > { %v5932_v50 = vpop.f32.mrf.mxu1  ;;  %v5991_v56 = vmul.f32 0.25, %v5906_v45 }
 0xddf   : > { %v5992_v57 = vmul.f32 0.25, %v5932_v50  ;;  %v5049_v50 = vld [vmem:[#allocation16] sm:$0xff] }
 0xde0   : > { %11424 = vmatmul.msk.f32.vlgmr.msra.gmra.mxu2 %vm2578_vm0, %v5309_v63  ;;  %11426 = vmatmul.msk.f32.vlgmr.msra.gmra.mxu3 %vm2578_vm0, %v5329_v0  ;;  %v5999_v63 = vadd.f32 %v5991_v56, %v14255_v49 }
 0xde1   : > { %v6000_v0 = vadd.f32 %v5992_v57, %v14255_v49 }
 0xde2   : > { %v5572_v4 = vpop.f32.mrf.mxu2  ;;  %v5592_v5 = vpop.f32.mrf.mxu3 }
 0xde3   : > { %v5573_v6 = vadd.f32 %v11932_v1, %v5572_v4  ;;  %v5593_v7 = vadd.f32 %v11933_v2, %v5592_v5  ;;  %v6015_v1 = vsel %vm2795_vm1, %v5999_v63, -inf }
 0xde5   : > { %11431 = vmatpush.xpose.msk.msrb.mxu2 %vm2578_vm0, %v5573_v6  ;;  %11433 = vmatpush.xpose.msk.msrb.mxu3 %vm2578_vm0, %v5593_v7 }
 0xde8   : > { %11432 = vmatmul.msk.f32.vlgmr.msrb.gmra.mxu2 %vm2578_vm0, %v5389_v9  ;;  %11434 = vmatmul.msk.f32.vlgmr.msrb.gmra.mxu3 %vm2578_vm0, %v5409_v10 }
 0xdea   : > { %v5676_v18 = vpop.f32.mrf.mxu2  ;;  %v5696_v19 = vpop.f32.mrf.mxu3 }
 0xdeb   : > { %v5677_v21 = vadd.f32 %v11936_v14, %v5676_v18  ;;  %v5697_v22 = vadd.f32 %v11937_v15, %v5696_v19 }
 0xded   : > { %6155 = vmatpush.msra.mxu2 %v5677_v21  ;;  %6178 = vmatpush.msra.mxu3 %v5697_v22 }
 0xdf2   : > { %v5756_v26 = vpop.f32.mrf.mxu2  ;;  %v5776_v27 = vpop.f32.mrf.mxu3 }
 0xdf3   : > { %v5757_v28 = vadd.f32 %v11938_v24, %v5756_v26  ;;  %v5777_v29 = vadd.f32 %v11939_v25, %v5776_v27 }
 0xdf5   : > { %6247 = vmatpush.msrb.mxu2 %v5757_v28  ;;  %6270 = vmatpush.msrb.mxu3 %v5777_v29 }
 0xe4e   : > { %v6005_v44 = vpop.xlane.xlu1 %6004 }
 0xe4f   : > { %v6027_v55 = vsub.f32 %v14260_v54, %v6005_v44  ;;  %v6018_v54 = vsel %vm2795_vm1, %v6000_v0, -inf }
 0xe51   : > { %v6035_v62 = vmul.f32 1.442695, %v6027_v55 }
 0xe53   : > { %12105 = vpow2.f32 %v6035_v62 }
 0xe59   : > { %v12106_v2 = vpop.eup %12105 }
 0xe5a   : > { %v6051_v3 = vsel %vm2795_vm1, %v12106_v2, 0.0 }
 0xe63   : > { %v5854_v31 = vpop.f32.mrf.mxu2  ;;  %v5880_v32 = vpop.f32.mrf.mxu3 }
 0xe64   : > { %v5989_v33 = vmul.f32 0.25, %v5854_v31  ;;  %v5990_v34 = vmul.f32 0.25, %v5880_v32 }
 0xe66   : > { %v5998_v35 = vadd.f32 %v5990_v34, %v14255_v49  ;;  %v5997_v36 = vadd.f32 %v5989_v33, %v14255_v49 }
 0xe68   : > { %v6012_v38 = vsel %vm2795_vm1, %v5998_v35, -inf  ;;  %v6009_v39 = vsel %vm2795_vm1, %v5997_v36, -inf }
 0xe69   : > { %6013 = vmax.xlane.f32.xlu0 %v6012_v38  ;;  %6010 = vmax.xlane.f32.xlu2 %v6009_v39 }
 0xe6b   : > { %v5958_v40 = vpop.f32.mrf.mxu2  ;;  %v5984_v43 = vpop.f32.mrf.mxu3 }
 0xe6c   : > { %v5993_v46 = vmul.f32 0.25, %v5958_v40  ;;  %v5994_v47 = vmul.f32 0.25, %v5984_v43 }
 0xe6e   : > { %v6001_v52 = vadd.f32 %v5993_v46, %v14255_v49  ;;  %v6002_v53 = vadd.f32 %v5994_v47, %v14255_v49 }
 0xe70   : > { %v6021_v59 = vsel %vm2795_vm1, %v6001_v52, -inf  ;;  %v6024_v61 = vsel %vm2795_vm1, %v6002_v53, -inf }
 0xe71   : > { %6022 = vmax.xlane.f32.xlu2 %v6021_v59  ;;  %6007 = vmax.xlane.f32.xlu0 %v6006_v60 }
 0xe72   : > { %6025 = vmax.xlane.f32.xlu1 %v6024_v61  ;;  %v5054_v61 = vld [vmem:[#allocation16 + $0x28] sm:$0xff] }
 0xe79   : > { %6016 = vmax.xlane.f32.xlu2 %v6015_v1  ;;  %6019 = vmax.xlane.f32.xlu0 %v6018_v54 }
 0xe81   : > { %6052 = vadd.xlane.f32.xlu0 %v6051_v3 }
 0xedc   : > { %v6014_v8 = vpop.xlane.xlu0 %6013  ;;  %v6011_v4 = vpop.xlane.xlu2 %6010 }
 0xedd   : > { %v6030_v5 = vsub.f32 %v5998_v35, %v6014_v8  ;;  %v6029_v6 = vsub.f32 %v5997_v36, %v6011_v4  ;;  %v11918_v35 = vld [vmem:[%s14806_s11 + $0x1] ss:$0 sm:$0xff] }
 0xede   : > { %v4925_v39 = vadd.f32 %v11918_v35, %v14249_v41 }
 0xedf   : > { %v6041_v7 = vmul.f32 1.442695, %v6030_v5  ;;  %v6039_v9 = vmul.f32 1.442695, %v6029_v6 }
 0xee0   : > { %v4945_v45 = vadd.f32 %v14251_v42, %v4925_v39  ;;  %v5056_v42 = vld [vmem:[#allocation16 + $0x38] sm:$0xff] }
 0xee1   : > { %12107 = vpow2.f32 %v6041_v7 }
 0xee2   : > { %12109 = vpow2.f32 %v6039_v9  ;;  %v14312_v47 = vadd.f32 %v4945_v45, %v14198_v51 }
 0xee4   : > { %v6023_v49 = vpop.xlane.xlu2 %6022  ;;  %v6008_v10 = vpop.xlane.xlu0 %6007 }
 0xee5   : > { %v6033_v11 = vsub.f32 %v6001_v52, %v6023_v49  ;;  %v6028_v12 = vsub.f32 %v5996_v48, %v6008_v10  ;;  %v6026_v13 = vpop.xlane.xlu1 %6025  ;;  %v5050_v48 = vld [vmem:[#allocation16 + $0x8] sm:$0xff]  ;;  %v5052_v49 = vld [vmem:[#allocation16 + $0x18] sm:$0xff]  ;;  %v5053_v10 = vld [vmem:[#allocation16 + $0x20] sm:$0xff] }
 0xee6   : > { %v6034_v14 = vsub.f32 %v6002_v53, %v6026_v13  ;;  %v5062_v13 = vld [vmem:[#allocation16 + $0x68] sm:$0xff] }
 0xee7   : > { %v12108_v15 = vpop.eup %12107  ;;  %v6047_v17 = vmul.f32 1.442695, %v6033_v11  ;;  %v6037_v18 = vmul.f32 1.442695, %v6028_v12  ;;  %v5055_v11 = vld [vmem:[#allocation16 + $0x30] sm:$0xff] }
 0xee8   : > { %v12110_v19 = vpop.eup %12109  ;;  %v6049_v20 = vmul.f32 1.442695, %v6034_v14  ;;  %v6060_v21 = vsel %vm2795_vm1, %v12108_v15, 0.0  ;;  %v5051_v12 = vld [vmem:[#allocation16 + $0x10] sm:$0xff]  ;;  %v5064_v14 = vld [vmem:[#allocation16 + $0x78] sm:$0xff] }
 0xee9   : > { %12111 = vpow2.f32 %v6047_v17  ;;  %6061 = vadd.xlane.f32.xlu2 %v6060_v21  ;;  %v6057_v22 = vsel %vm2795_vm1, %v12110_v19, 0.0  ;;  %v5060_v17 = vld [vmem:[#allocation16 + $0x58] sm:$0xff]  ;;  %v5059_v21 = vld [vmem:[#allocation16 + $0x50] sm:$0xff] }
 0xeea   : > { %12113 = vpow2.f32 %v6037_v18  ;;  %6058 = vadd.xlane.f32.xlu1 %v6057_v22  ;;  %v5061_v18 = vld [vmem:[#allocation16 + $0x60] sm:$0xff] }
 0xeeb   : > { %12115 = vpow2.f32 %v6049_v20  ;;  %v5057_v20 = vld [vmem:[#allocation16 + $0x40] sm:$0xff] }
 0xeec   : > { %v6017_v23 = vpop.xlane.xlu2 %6016  ;;  %v6020_v24 = vpop.xlane.xlu0 %6019 }
 0xeed   : > { %v6031_v25 = vsub.f32 %v5999_v63, %v6017_v23  ;;  %v6032_v26 = vsub.f32 %v6000_v0, %v6020_v24 }
 0xeef   : > { %v12112_v27 = vpop.eup %12111  ;;  %v6043_v28 = vmul.f32 1.442695, %v6031_v25  ;;  %v6045_v29 = vmul.f32 1.442695, %v6032_v26 }
 0xef0   : > { %v12114_v30 = vpop.eup %12113  ;;  %v6069_v31 = vsel %vm2795_vm1, %v12112_v27, 0.0 }
 0xef1   : > { %v12116_v32 = vpop.eup %12115  ;;  %12117 = vpow2.f32 %v6043_v28  ;;  %v6054_v33 = vsel %vm2795_vm1, %v12114_v30, 0.0 }
 0xef2   : > { %12119 = vpow2.f32 %v6045_v29  ;;  %6055 = vadd.xlane.f32.xlu2 %v6054_v33  ;;  %6070 = vadd.xlane.f32.xlu1 %v6069_v31  ;;  %v6072_v34 = vsel %vm2795_vm1, %v12116_v32, 0.0 }
 0xef3   : > { %6073 = vadd.xlane.f32.xlu0 %v6072_v34 }
 0xef4   : > { %v6053_v36 = vpop.xlane.xlu0 %6052 }
 0xef5   : > { %12121 = vrcp.f32 %v6053_v36 }
 0xef7   : > { %v12118_v37 = vpop.eup %12117 }
 0xef8   : > { %v12120_v38 = vpop.eup %12119  ;;  %v6063_v40 = vsel %vm2795_vm1, %v12118_v37, 0.0 }
 0xef9   : > { %v6066_v43 = vsel %vm2795_vm1, %v12120_v38, 0.0 }
 0xefa   : > { %6067 = vadd.xlane.f32.xlu2 %v6066_v43  ;;  %6064 = vadd.xlane.f32.xlu1 %v6063_v40 }
 0xefb   : > { %v12122_v44 = vpop.eup %12121 }
 0xefc   : > { %v6083_v46 = vmul.f32 %v12122_v44, %v12106_v2  ;;  %v11940_v44 = vld [vmem:[#allocation17] ss:$0 sm:$0xff] }
 0xefe   : > { %11435 = vmatmul.msk.f32.vlgmr.msra.gmra.mxu0 %vm2795_vm1, %v6083_v46 }
 0xeff   : > { %6292 = vmatpush.msra.mxu0 %v5050_v48 }
 0xf01   : > { %6293 = vmatpush.msra.mxu0 %v5049_v50 }
 0xf02   : > { %4948 = vadd.xlane.f32.xlu1 %v14312_v47 }
 0xf5c   : > { %v6062_v41 = vpop.xlane.xlu2 %6061 }
 0xf5d   : > { %12123 = vrcp.f32 %v6062_v41  ;;  %v6059_v52 = vpop.xlane.xlu1 %6058 }
 0xf5e   : > { %12125 = vrcp.f32 %v6059_v52 }
 0xf63   : > { %v12124_v53 = vpop.eup %12123 }
 0xf64   : > { %v12126_v55 = vpop.eup %12125  ;;  %v6086_v56 = vmul.f32 %v12124_v53, %v12108_v15  ;;  %v5058_v15 = vld [vmem:[#allocation16 + $0x48] sm:$0xff] }
 0xf65   : > { %v6085_v57 = vmul.f32 %v12126_v55, %v12110_v19  ;;  %v6056_v59 = vpop.xlane.xlu2 %6055  ;;  %v6071_v60 = vpop.xlane.xlu1 %6070  ;;  %v5063_v19 = vld [vmem:[#allocation16 + $0x70] sm:$0xff] }
 0xf66   : > { %12127 = vrcp.f32 %v6056_v59  ;;  %v6074_v51 = vpop.xlane.xlu0 %6073  ;;  %11438 = vmatmul.msk.f32.vlgmr.msra.gmra.mxu3 %vm2795_vm1, %v6086_v56 }
 0xf67   : > { %12129 = vrcp.f32 %v6074_v51  ;;  %11437 = vmatmul.msk.f32.vlgmr.msra.gmra.mxu2 %vm2795_vm1, %v6085_v57  ;;  %6361 = vmatpush.msra.mxu3 %v5056_v42  ;;  %v5073_v51 = vld [vmem:[#allocation22 + $0x28] sm:$0xff] }
 0xf68   : > { %12131 = vrcp.f32 %v6071_v60  ;;  %6338 = vmatpush.msra.mxu2 %v5054_v61  ;;  %v5069_v60 = vld [vmem:[#allocation22 + $0x8] sm:$0xff]  ;;  %v5071_v61 = vld [vmem:[#allocation22 + $0x18] sm:$0xff] }
 0xf69   : > { %6362 = vmatpush.msra.mxu3 %v5055_v11  ;;  %v5082_v11 = vld [vmem:[#allocation22 + $0x70] sm:$0xff] }
 0xf6a   : > { %6339 = vmatpush.msra.mxu2 %v5053_v10  ;;  %v5080_v10 = vld [vmem:[#allocation22 + $0x60] sm:$0xff] }
 0xf6c   : > { %v12128_v62 = vpop.eup %12127 }
 0xf6d   : > { %v12130_v63 = vpop.eup %12129  ;;  %v6084_v0 = vmul.f32 %v12128_v62, %v12114_v30  ;;  %v6068_v1 = vpop.xlane.xlu2 %6067  ;;  %v5068_v62 = vld [vmem:[#allocation22] sm:$0xff] }
 0xf6e   : > { %v6065_v54 = vpop.xlane.xlu1 %6064  ;;  %v12132_v2 = vpop.eup %12131  ;;  %v6090_v3 = vmul.f32 %v12130_v63, %v12116_v32  ;;  %12133 = vrcp.f32 %v6068_v1  ;;  %v5070_v63 = vld [vmem:[#allocation22 + $0x10] sm:$0xff] }
 0xf6f   : > { %v6089_v8 = vmul.f32 %v12132_v2, %v12112_v27  ;;  %12135 = vrcp.f32 %v6065_v54  ;;  %11436 = vmatmul.msk.f32.vlgmr.msra.gmra.mxu1 %vm2795_vm1, %v6084_v0  ;;  %v5072_v0 = vld [vmem:[#allocation22 + $0x20] sm:$0xff]  ;;  %v5074_v1 = vld [vmem:[#allocation22 + $0x30] sm:$0xff]  ;;  %v5077_v2 = vld [vmem:[#allocation22 + $0x48] sm:$0xff] }
 0xf70   : > { %11442 = vmatmul.msk.f32.vlgmr.msrb.gmra.mxu3 %vm2795_vm1, %v6090_v3  ;;  %6315 = vmatpush.msra.mxu1 %v5052_v49  ;;  %v5079_v3 = vld [vmem:[#allocation22 + $0x58] sm:$0xff] }
 0xf71   : > { %11441 = vmatmul.msk.f32.vlgmr.msrb.gmra.mxu2 %vm2795_vm1, %v6089_v8  ;;  %6453 = vmatpush.msrb.mxu3 %v5064_v14  ;;  %v5081_v8 = vld [vmem:[#allocation22 + $0x68] sm:$0xff] }
 0xf72   : > { %6316 = vmatpush.msra.mxu1 %v5051_v12  ;;  %6430 = vmatpush.msrb.mxu2 %v5062_v13 }
 0xf73   : > { %6454 = vmatpush.msrb.mxu3 %v5063_v19 }
 0xf74   : > { %v12134_v4 = vpop.eup %12133  ;;  %6431 = vmatpush.msrb.mxu2 %v5061_v18 }
 0xf75   : > { %v12136_v5 = vpop.eup %12135  ;;  %v6088_v6 = vmul.f32 %v12134_v4, %v12120_v38 }
 0xf76   : > { %v6087_v7 = vmul.f32 %v12136_v5, %v12118_v37  ;;  %v4949_v48 = vpop.xlane.xlu1 %4948  ;;  %v5083_v5 = vld [vmem:[#allocation22 + $0x78] sm:$0xff] }
 0xf77   : > { %11440 = vmatmul.msk.f32.vlgmr.msrb.gmra.mxu1 %vm2795_vm1, %v6088_v6  ;;  %v4950_v41 = vmul.f32 %v4949_v48, %v14061_v16  ;;  %v5097_v48 = vld [vmem:[#allocation23 + $0x68] sm:$0xff] }
 0xf78   : > { %11439 = vmatmul.msk.f32.vlgmr.msrb.gmra.mxu0 %vm2795_vm1, %v6087_v7  ;;  %6407 = vmatpush.msrb.mxu1 %v5060_v17  ;;  %v5076_v7 = vld [vmem:[#allocation22 + $0x40] sm:$0xff] }
 0xf79   : > { %6384 = vmatpush.msrb.mxu0 %v5058_v15  ;;  %v14333_v53 = vsub.f32 %v14312_v47, %v4950_v41  ;;  %v11942_v41 = vld [vmem:[%s14809_s26 + $0x1] ss:$0 sm:$0xff] }
 0xf7a   : > { %6408 = vmatpush.msrb.mxu1 %v5059_v21 }
 0xf7b   : > { %v6111_v9 = vpop.f32.mrf.mxu0  ;;  %6385 = vmatpush.msrb.mxu0 %v5057_v20  ;;  %v4952_v55 = vmul.f32 %v14333_v53, %v14333_v53 }
 0xf80   : > { %11443 = vmatmul.msk.f32.vlgmr.msra.gmra.mxu0 %vm2578_vm0, %v6111_v9  ;;  %v5078_v9 = vld [vmem:[#allocation22 + $0x50] sm:$0xff] }
 0xf81   : > { %6537 = vmatpush.xpose.msra.mxu0 %v5069_v60  ;;  %v5103_v60 = vld [vmem:[#allocation25 + $0x18] sm:$0xff] }
 0xf85   : > { %6538 = vmatpush.xpose.msra.mxu0 %v5068_v62  ;;  %v5104_v62 = vld [vmem:[#allocation25 + $0x20] sm:$0xff] }
 0xfe9   : > { %v6180_v22 = vpop.f32.mrf.mxu3 }
 0xfea   : > { %v6157_v23 = vpop.f32.mrf.mxu2  ;;  %11446 = vmatmul.msk.f32.vlgmr.msra.gmra.mxu3 %vm2578_vm0, %v6180_v22 }
 0xfeb   : > { %11445 = vmatmul.msk.f32.vlgmr.msra.gmra.mxu2 %vm2578_vm0, %v6157_v23 }
 0xfec   : > { %v6134_v24 = vpop.f32.mrf.mxu1  ;;  %6577 = vmatpush.xpose.msra.mxu2 %v5073_v51  ;;  %v5107_v51 = vld [vmem:[#allocation25 + $0x38] sm:$0xff] }
 0xfed   : > { %11444 = vmatmul.msk.f32.vlgmr.msra.gmra.mxu1 %vm2578_vm0, %v6134_v24  ;;  %v11943_v24 = vld [vmem:[#allocation19] ss:$0 sm:$0xff] }
 0xfee   : > { %6557 = vmatpush.xpose.msra.mxu1 %v5071_v61  ;;  %v5105_v61 = vld [vmem:[#allocation25 + $0x28] sm:$0xff] }
 0xff0   : > { %6578 = vmatpush.xpose.msra.mxu2 %v5072_v0  ;;  %v5109_v0 = vld [vmem:[#allocation25 + $0x48] sm:$0xff] }
 0xff2   : > { %6558 = vmatpush.xpose.msra.mxu1 %v5070_v63  ;;  %v5106_v63 = vld [vmem:[#allocation25 + $0x30] sm:$0xff] }
 0xff3   : > { %v6272_v25 = vpop.f32.mrf.mxu3 }
 0xff4   : > { %v6249_v26 = vpop.f32.mrf.mxu2  ;;  %11450 = vmatmul.msk.f32.vlgmr.msrb.gmra.mxu3 %vm2578_vm0, %v6272_v25  ;;  %v6226_v27 = vpop.f32.mrf.mxu1 }
 0xff5   : > { %11449 = vmatmul.msk.f32.vlgmr.msrb.gmra.mxu2 %vm2578_vm0, %v6249_v26  ;;  %v6203_v28 = vpop.f32.mrf.mxu0  ;;  %11448 = vmatmul.msk.f32.vlgmr.msrb.gmra.mxu1 %vm2578_vm0, %v6226_v27  ;;  %v11944_v26 = vld [vmem:[#allocation20] ss:$0 sm:$0xff] }
 0xff6   : > { %11447 = vmatmul.msk.f32.vlgmr.msrb.gmra.mxu0 %vm2578_vm0, %v6203_v28  ;;  %6637 = vmatpush.xpose.msrb.mxu1 %v5079_v3  ;;  %v5108_v3 = vld [vmem:[#allocation25 + $0x40] sm:$0xff] }
 0xff7   : > { %6617 = vmatpush.xpose.msrb.mxu0 %v5077_v2  ;;  %6657 = vmatpush.xpose.msrb.mxu2 %v5081_v8  ;;  %v5115_v2 = vld [vmem:[#allocation25 + $0x78] sm:$0xff]  ;;  %v5110_v8 = vld [vmem:[#allocation25 + $0x50] sm:$0xff] }
 0xffa   : > { %6638 = vmatpush.xpose.msrb.mxu1 %v5078_v9 }
 0xffb   : > { %6618 = vmatpush.xpose.msrb.mxu0 %v5076_v7  ;;  %6658 = vmatpush.xpose.msrb.mxu2 %v5080_v10 }
 0xffd   : > { %v6295_v30 = vpop.f32.mrf.mxu0 }
0x106a   : > { %v6318_v29 = vpop.f32.mrf.mxu1 }
0x106b   : > { %v6459_v31 = vadd.f32 %v6318_v29, %v6295_v30 }
0x106d   : > { %v6364_v34 = vpop.f32.mrf.mxu3 }
0x106e   : > { %v6341_v32 = vpop.f32.mrf.mxu2 }
0x106f   : > { %v6460_v33 = vadd.f32 %v6459_v31, %v6341_v32  ;;  %v5085_v32 = vld [vmem:[#allocation23 + $0x8] sm:$0xff] }
0x1071   : > { %v6461_v35 = vadd.f32 %v6460_v33, %v6364_v34  ;;  %v5087_v33 = vld [vmem:[#allocation23 + $0x18] sm:$0xff]  ;;  %v5089_v34 = vld [vmem:[#allocation23 + $0x28] sm:$0xff] }
0x1072   : > { %v6410_v38 = vpop.f32.mrf.mxu1 }
0x1073   : > { %v6387_v36 = vpop.f32.mrf.mxu0 }
0x1074   : > { %v6462_v37 = vadd.f32 %v6461_v35, %v6387_v36  ;;  %v5091_v35 = vld [vmem:[#allocation23 + $0x38] sm:$0xff] }
0x1076   : > { %v6463_v39 = vadd.f32 %v6462_v37, %v6410_v38  ;;  %v5084_v37 = vld [vmem:[#allocation23] sm:$0xff]  ;;  %v5086_v38 = vld [vmem:[#allocation23 + $0x10] sm:$0xff] }
0x1077   : > { %v6456_v45 = vpop.f32.mrf.mxu3 }
0x1078   : > { %v6433_v40 = vpop.f32.mrf.mxu2 }
0x1079   : > { %v6464_v43 = vadd.f32 %v6463_v39, %v6433_v40  ;;  %v5088_v39 = vld [vmem:[#allocation23 + $0x20] sm:$0xff]  ;;  %v5090_v40 = vld [vmem:[#allocation23 + $0x30] sm:$0xff] }
0x107b   : > { %v6465_v46 = vadd.f32 %v6464_v43, %v6456_v45  ;;  %v11941_v43 = vld [vmem:[%s14807_s10 + $0x1] ss:$0 sm:$0xff]  ;;  %v5093_v45 = vld [vmem:[#allocation23 + $0x48] sm:$0xff] }
0x107d   : > { %v6469_v50 = vadd.f32 %v11940_v44, %v6465_v46  ;;  %v5095_v46 = vld [vmem:[#allocation23 + $0x58] sm:$0xff] }
0x107f   : > { %v6470_v52 = vadd.f32 %v6469_v50, %v14205_v58  ;;  %v5075_v58 = vld [vmem:[#allocation22 + $0x38] sm:$0xff] }
0x1080   : > { %6597 = vmatpush.xpose.msra.mxu3 %v5075_v58  ;;  %v5099_v50 = vld [vmem:[#allocation23 + $0x78] sm:$0xff]  ;;  %v5100_v58 = vld [vmem:[#allocation25] sm:$0xff] }
0x1081   : > { %6471 = vadd.xlane.f32.xlu0 %v6470_v52 }
0x1084   : > { %6598 = vmatpush.xpose.msra.mxu3 %v5074_v1  ;;  %v5111_v1 = vld [vmem:[#allocation25 + $0x58] sm:$0xff] }
0x1088   : > { %6677 = vmatpush.xpose.msrb.mxu3 %v5083_v5  ;;  %v5114_v5 = vld [vmem:[#allocation25 + $0x70] sm:$0xff] }
0x1089   : > { %4953 = vadd.xlane.f32.xlu0 %v4952_v55  ;;  %v5094_v55 = vld [vmem:[#allocation23 + $0x50] sm:$0xff] }
0x108c   : > { %6678 = vmatpush.xpose.msrb.mxu3 %v5082_v11 }
0x10f4   : > { %v6472_v56 = vpop.xlane.xlu0 %6471 }
0x10f5   : > { %v6473_v42 = vmul.f32 %v6472_v56, %v14061_v16  ;;  %v5096_v56 = vld [vmem:[#allocation23 + $0x60] sm:$0xff] }
0x10f7   : > { %v6474_v57 = vsub.f32 %v6470_v52, %v6473_v42  ;;  %v5098_v42 = vld [vmem:[#allocation23 + $0x70] sm:$0xff] }
0x10f9   : > { %v6475_v59 = vmul.f32 %v6474_v57, %v6474_v57 }
0x10fb   : > { %6476 = vadd.xlane.f32.xlu2 %v6475_v59  ;;  %v5101_v59 = vld [vmem:[#allocation25 + $0x8] sm:$0xff] }
0x10fc   : > { %v4954_v47 = vpop.xlane.xlu0 %4953 }
0x10fd   : > { %v4955_v54 = vmul.f32 %v4954_v47, %v14061_v16  ;;  %v5102_v47 = vld [vmem:[#allocation25 + $0x10] sm:$0xff] }
0x10ff   : > { %v4956_v4 = vadd.f32 1e-06, %v4955_v54  ;;  %v5113_v54 = vld [vmem:[#allocation25 + $0x68] sm:$0xff] }
0x1101   : > { %12137 = vrsqrt.f32 %v4956_v4  ;;  %vm4963_vm2 = vweird.f32 %v4956_v4 }
0x1107   : > { %v12138_v13 = vpop.eup %12137 }
0x1108   : > { %v4958_v15 = vmul.f32 %v12138_v13, %v4956_v4  ;;  %vm4964_vm15 = vweird.f32 %v12138_v13  ;;  %v5112_v4 = vld [vmem:[#allocation25 + $0x60] sm:$0xff] }
0x1109   : > { %vm4965_vm3 = vmor %vm4963_vm2, %vm4964_vm15 }
0x110a   : > { %v4959_v19 = vmul.f32 %v12138_v13, %v4958_v15 }
0x110c   : > { %v4960_v22 = vmul.f32 0.5, %v4959_v19 }
0x110e   : > { %v4961_v28 = vsub.f32 1.5, %v4960_v22 }
0x1110   : > { %v4962_v31 = vmul.f32 %v12138_v13, %v4961_v28  ;;  %v11958_v28 = vld [vmem:[#allocation28 + $0x5] ss:$0 sm:$0xff] }
0x1112   : > { %v4966_v36 = vsel %vm4965_vm3, %v12138_v13, %v4962_v31  ;;  %v11954_v13 = vld [vmem:[#allocation28 + $0x1] ss:$0 sm:$0xff]  ;;  %v11948_v31 = vld [vmem:[#allocation26 + $0x3] ss:$0 sm:$0xff] }
0x1113   : > { %v4967_v44 = vmul.f32 %v4966_v36, %v14333_v53  ;;  %v5092_v53 = vld [vmem:[#allocation23 + $0x40] sm:$0xff] }
0x1115   : > { %v4971_v52 = vmul.f32 %v11941_v43, %v4967_v44 }
0x116e   : > { %v6477_v6 = vpop.xlane.xlu2 %6476 }
0x116f   : > { %v6478_v49 = vmul.f32 %v6477_v6, %v14061_v16 }
0x1171   : > { %v6479_v12 = vadd.f32 1e-06, %v6478_v49 }
0x1173   : > { %12139 = vrsqrt.f32 %v6479_v12  ;;  %vm6486_vm13 = vweird.f32 %v6479_v12 }
0x1179   : > { %v12140_v14 = vpop.eup %12139 }
0x117a   : > { %v6481_v17 = vmul.f32 %v12140_v14, %v6479_v12  ;;  %vm6487_vm12 = vweird.f32 %v12140_v14  ;;  %v11953_v12 = vld [vmem:[#allocation28] ss:$0 sm:$0xff] }
0x117b   : > { %vm6488_vm14 = vmor %vm6486_vm13, %vm6487_vm12 }
0x117c   : > { %v6482_v18 = vmul.f32 %v12140_v14, %v6481_v17  ;;  %v11945_v17 = vld [vmem:[#allocation26] ss:$0 sm:$0xff] }
0x117e   : > { %v6483_v20 = vmul.f32 0.5, %v6482_v18  ;;  %v11946_v18 = vld [vmem:[#allocation26 + $0x1] ss:$0 sm:$0xff] }
0x1180   : > { %v6484_v21 = vsub.f32 1.5, %v6483_v20 }
0x1182   : > { %v6485_v23 = vmul.f32 %v12140_v14, %v6484_v21 }
0x1184   : > { %v6489_v25 = vsel %vm6488_vm14, %v12140_v14, %v6485_v23 }
0x1185   : > { %v6490_v27 = vmul.f32 %v6489_v25, %v6474_v57  ;;  %v14353_v57 = vadd.f32 %v11942_v41, %v4971_v52  ;;  %v11955_v25 = vld [vmem:[#allocation28 + $0x2] ss:$0 sm:$0xff]  ;;  %v11960_v41 = vld [vmem:[#allocation28 + $0x7] ss:$0 sm:$0xff]  ;;  %v11961_v52 = vld [vmem:[#allocation29] ss:$0 sm:$0xff] }
0x1187   : > { %v6494_v29 = vmul.f32 %v11943_v24, %v6490_v27  ;;  %v11957_v27 = vld [vmem:[#allocation28 + $0x4] ss:$0 sm:$0xff] }
0x1189   : > { %v14340_v30 = vadd.f32 %v11944_v26, %v6494_v29  ;;  %v11956_v26 = vld [vmem:[#allocation28 + $0x3] ss:$0 sm:$0xff]  ;;  %v11947_v29 = vld [vmem:[#allocation26 + $0x2] ss:$0 sm:$0xff] }
0x118b   : > { %6539 = vmatmul.f32.vlgmr.msra.gmra.mxu0 %v14340_v30  ;;  %6559 = vmatmul.f32.vlgmr.msra.gmra.mxu1 %v14340_v30 }
0x118c   : > { %6579 = vmatmul.f32.vlgmr.msra.gmra.mxu2 %v14340_v30  ;;  %6599 = vmatmul.f32.vlgmr.msra.gmra.mxu3 %v14340_v30 }
0x118d   : > { %6721 = vmatpush.xpose.msra.mxu0 %v5085_v32  ;;  %6741 = vmatpush.xpose.msra.mxu1 %v5087_v33 }
0x118e   : > { %6761 = vmatpush.xpose.msra.mxu2 %v5089_v34  ;;  %6781 = vmatpush.xpose.msra.mxu3 %v5091_v35  ;;  %v11949_v34 = vld [vmem:[#allocation26 + $0x4] ss:$0 sm:$0xff]  ;;  %v11950_v35 = vld [vmem:[#allocation26 + $0x5] ss:$0 sm:$0xff] }
0x1191   : > { %6722 = vmatpush.xpose.msra.mxu0 %v5084_v37  ;;  %6742 = vmatpush.xpose.msra.mxu1 %v5086_v38 }
0x1192   : > { %6762 = vmatpush.xpose.msra.mxu2 %v5088_v39  ;;  %6782 = vmatpush.xpose.msra.mxu3 %v5090_v40 }
0x1193   : > { %6619 = vmatmul.f32.vlgmr.msrb.gmra.mxu0 %v14340_v30  ;;  %6639 = vmatmul.f32.vlgmr.msrb.gmra.mxu1 %v14340_v30 }
0x1194   : > { %6659 = vmatmul.f32.vlgmr.msrb.gmra.mxu2 %v14340_v30  ;;  %6679 = vmatmul.f32.vlgmr.msrb.gmra.mxu3 %v14340_v30 }
0x1195   : > { %6801 = vmatpush.xpose.msrb.mxu0 %v5093_v45  ;;  %6821 = vmatpush.xpose.msrb.mxu1 %v5095_v46 }
0x1196   : > { %6841 = vmatpush.xpose.msrb.mxu2 %v5097_v48  ;;  %6861 = vmatpush.xpose.msrb.mxu3 %v5099_v50  ;;  %v11959_v50 = vld [vmem:[#allocation28 + $0x6] ss:$0 sm:$0xff] }
0x1199   : > { %6802 = vmatpush.xpose.msrb.mxu0 %v5092_v53  ;;  %6822 = vmatpush.xpose.msrb.mxu1 %v5094_v55  ;;  %v11962_v53 = vld [vmem:[#allocation29 + $0x1] ss:$0 sm:$0xff]  ;;  %v11951_v55 = vld [vmem:[#allocation26 + $0x6] ss:$0 sm:$0xff] }
0x119a   : > { %6842 = vmatpush.xpose.msrb.mxu2 %v5096_v56  ;;  %6862 = vmatpush.xpose.msrb.mxu3 %v5098_v42  ;;  %v11952_v56 = vld [vmem:[#allocation26 + $0x7] ss:$0 sm:$0xff] }
0x119b   : > { %6723 = vmatmul.f32.vlgmr.msra.gmra.mxu0 %v14353_v57  ;;  %6743 = vmatmul.f32.vlgmr.msra.gmra.mxu1 %v14353_v57 }
0x119c   : > { %6763 = vmatmul.f32.vlgmr.msra.gmra.mxu2 %v14353_v57  ;;  %6783 = vmatmul.f32.vlgmr.msra.gmra.mxu3 %v14353_v57 }
0x119d   : > { %6905 = vmatpush.xpose.msra.mxu0 %v5101_v59  ;;  %6925 = vmatpush.xpose.msra.mxu1 %v5103_v60 }
0x119e   : > { %6945 = vmatpush.xpose.msra.mxu2 %v5105_v61  ;;  %6965 = vmatpush.xpose.msra.mxu3 %v5107_v51 }
0x11a1   : > { %6906 = vmatpush.xpose.msra.mxu0 %v5100_v58  ;;  %6926 = vmatpush.xpose.msra.mxu1 %v5102_v47 }
0x11a2   : > { %6946 = vmatpush.xpose.msra.mxu2 %v5104_v62  ;;  %6966 = vmatpush.xpose.msra.mxu3 %v5106_v63 }
0x11a3   : > { %6803 = vmatmul.f32.vlgmr.msrb.gmra.mxu0 %v14353_v57  ;;  %6823 = vmatmul.f32.vlgmr.msrb.gmra.mxu1 %v14353_v57 }
0x11a4   : > { %6843 = vmatmul.f32.vlgmr.msrb.gmra.mxu2 %v14353_v57  ;;  %6863 = vmatmul.f32.vlgmr.msrb.gmra.mxu3 %v14353_v57 }
0x11a5   : > { %6985 = vmatpush.xpose.msrb.mxu0 %v5109_v0  ;;  %7005 = vmatpush.xpose.msrb.mxu1 %v5111_v1  ;;  %v11963_v1 = vld [vmem:[#allocation29 + $0x2] ss:$0 sm:$0xff] }
0x11a6   : > { %7025 = vmatpush.xpose.msrb.mxu2 %v5113_v54  ;;  %7045 = vmatpush.xpose.msrb.mxu3 %v5115_v2  ;;  %v11964_v54 = vld [vmem:[#allocation29 + $0x3] ss:$0 sm:$0xff]  ;;  %v11965_v2 = vld [vmem:[#allocation29 + $0x4] ss:$0 sm:$0xff] }
0x11a9   : > { %6986 = vmatpush.xpose.msrb.mxu0 %v5108_v3  ;;  %7006 = vmatpush.xpose.msrb.mxu1 %v5110_v8  ;;  %v11966_v3 = vld [vmem:[#allocation29 + $0x5] ss:$0 sm:$0xff] }
0x11aa   : > { %7026 = vmatpush.xpose.msrb.mxu2 %v5112_v4  ;;  %7046 = vmatpush.xpose.msrb.mxu3 %v5114_v5 }
0x11ab   : > { %6907 = vmatmul.f32.vlgmr.msra.gmra.mxu0 %v14353_v57  ;;  %6927 = vmatmul.f32.vlgmr.msra.gmra.mxu1 %v14353_v57 }
0x11ac   : > { %6947 = vmatmul.f32.vlgmr.msra.gmra.mxu2 %v14353_v57  ;;  %6967 = vmatmul.f32.vlgmr.msra.gmra.mxu3 %v14353_v57 }
0x11b3   : > { %6987 = vmatmul.f32.vlgmr.msrb.gmra.mxu0 %v14353_v57  ;;  %7007 = vmatmul.f32.vlgmr.msrb.gmra.mxu1 %v14353_v57 }
0x11b4   : > { %7027 = vmatmul.f32.vlgmr.msrb.gmra.mxu2 %v14353_v57  ;;  %7047 = vmatmul.f32.vlgmr.msrb.gmra.mxu3 %v14353_v57 }
0x1208   : > { %v6540_v6 = vpop.f32.mrf.mxu0  ;;  %v6560_v7 = vpop.f32.mrf.mxu1 }
0x1209   : > { %v6541_v23 = vadd.f32 %v11945_v17, %v6540_v6  ;;  %v6561_v24 = vadd.f32 %v11946_v18, %v6560_v7 }
0x120f   : > { %v6580_v9 = vpop.f32.mrf.mxu2  ;;  %v6600_v49 = vpop.f32.mrf.mxu3 }
0x1210   : > { %v6620_v10 = vpop.f32.mrf.mxu0  ;;  %v6640_v11 = vpop.f32.mrf.mxu1  ;;  %v6581_v44 = vadd.f32 %v11947_v29, %v6580_v9  ;;  %v6601_v45 = vadd.f32 %v11948_v31, %v6600_v49 }
0x1211   : > { %v6621_v46 = vadd.f32 %v11949_v34, %v6620_v10  ;;  %v6641_v48 = vadd.f32 %v11950_v35, %v6640_v11  ;;  %v11967_v11 = vld [vmem:[#allocation29 + $0x6] ss:$0 sm:$0xff] }
0x1217   : > { %v6660_v14 = vpop.f32.mrf.mxu2  ;;  %v6680_v15 = vpop.f32.mrf.mxu3 }
0x1218   : > { %v6724_v19 = vpop.f32.mrf.mxu0  ;;  %v6744_v20 = vpop.f32.mrf.mxu1  ;;  %v6661_v63 = vadd.f32 %v11951_v55, %v6660_v14  ;;  %v6681_v0 = vadd.f32 %v11952_v56, %v6680_v15 }
0x1219   : > { %v6725_v21 = vadd.f32 %v11953_v12, %v6724_v19  ;;  %v6745_v22 = vadd.f32 %v11954_v13, %v6744_v20  ;;  %v11968_v12 = vld [vmem:[#allocation29 + $0x7] ss:$0 sm:$0xff] }
0x121b   : > { %11451 = vmatpush.xpose.msk.msra.mxu0 %vm2578_vm0, %v6725_v21  ;;  %11453 = vmatpush.xpose.msk.msra.mxu1 %vm2578_vm0, %v6745_v22 }
0x121e   : > { %11452 = vmatmul.msk.f32.vlgmr.msra.gmra.mxu0 %vm2578_vm0, %v6541_v23  ;;  %11454 = vmatmul.msk.f32.vlgmr.msra.gmra.mxu1 %vm2578_vm0, %v6561_v24 }
0x121f   : > { %v6764_v32 = vpop.f32.mrf.mxu2  ;;  %v6784_v33 = vpop.f32.mrf.mxu3 }
0x1220   : > { %v6765_v36 = vadd.f32 %v11955_v25, %v6764_v32  ;;  %v6785_v37 = vadd.f32 %v11956_v26, %v6784_v33  ;;  %v6804_v38 = vpop.f32.mrf.mxu0  ;;  %v6824_v39 = vpop.f32.mrf.mxu1 }
0x1221   : > { %v6805_v40 = vadd.f32 %v11957_v27, %v6804_v38  ;;  %v6825_v43 = vadd.f32 %v11958_v28, %v6824_v39 }
0x1222   : > { %11455 = vmatpush.xpose.msk.msra.mxu2 %vm2578_vm0, %v6765_v36  ;;  %11457 = vmatpush.xpose.msk.msra.mxu3 %vm2578_vm0, %v6785_v37 }
0x1223   : > { %11459 = vmatpush.xpose.msk.msrb.mxu0 %vm2578_vm0, %v6805_v40  ;;  %11461 = vmatpush.xpose.msk.msrb.mxu1 %vm2578_vm0, %v6825_v43 }
0x1225   : > { %11456 = vmatmul.msk.f32.vlgmr.msra.gmra.mxu2 %vm2578_vm0, %v6581_v44  ;;  %11458 = vmatmul.msk.f32.vlgmr.msra.gmra.mxu3 %vm2578_vm0, %v6601_v45 }
0x1226   : > { %11460 = vmatmul.msk.f32.vlgmr.msrb.gmra.mxu0 %vm2578_vm0, %v6621_v46  ;;  %11462 = vmatmul.msk.f32.vlgmr.msrb.gmra.mxu1 %vm2578_vm0, %v6641_v48 }
0x1227   : > { %v6844_v42 = vpop.f32.mrf.mxu2  ;;  %v6864_v59 = vpop.f32.mrf.mxu3 }
0x1228   : > { %v6845_v60 = vadd.f32 %v11959_v50, %v6844_v42  ;;  %v6865_v61 = vadd.f32 %v11960_v41, %v6864_v59  ;;  %v6908_v51 = vpop.f32.mrf.mxu0  ;;  %v6928_v58 = vpop.f32.mrf.mxu1 }
0x1229   : > { %v6909_v47 = vadd.f32 %v11961_v52, %v6908_v51  ;;  %v6929_v62 = vadd.f32 %v11962_v53, %v6928_v58 }
0x122a   : > { %11463 = vmatpush.xpose.msk.msrb.mxu2 %vm2578_vm0, %v6845_v60  ;;  %11465 = vmatpush.xpose.msk.msrb.mxu3 %vm2578_vm0, %v6865_v61 }
0x122b   : > { %7373 = vmatpush.msra.mxu0 %v6909_v47  ;;  %7396 = vmatpush.msra.mxu1 %v6929_v62 }
0x122d   : > { %11464 = vmatmul.msk.f32.vlgmr.msrb.gmra.mxu2 %vm2578_vm0, %v6661_v63  ;;  %11466 = vmatmul.msk.f32.vlgmr.msrb.gmra.mxu3 %vm2578_vm0, %v6681_v0 }
0x122f   : > { %v6948_v8 = vpop.f32.mrf.mxu2  ;;  %v6968_v4 = vpop.f32.mrf.mxu3 }
0x1230   : > { %v6949_v5 = vadd.f32 %v11963_v1, %v6948_v8  ;;  %v6969_v6 = vadd.f32 %v11964_v54, %v6968_v4  ;;  %v6988_v7 = vpop.f32.mrf.mxu0  ;;  %v7008_v9 = vpop.f32.mrf.mxu1 }
0x1231   : > { %v6989_v49 = vadd.f32 %v11965_v2, %v6988_v7  ;;  %v7009_v10 = vadd.f32 %v11966_v3, %v7008_v9 }
0x1232   : > { %7419 = vmatpush.msra.mxu2 %v6949_v5  ;;  %7442 = vmatpush.msra.mxu3 %v6969_v6 }
0x1233   : > { %7465 = vmatpush.msrb.mxu0 %v6989_v49  ;;  %7488 = vmatpush.msrb.mxu1 %v7009_v10 }
0x1237   : > { %v7028_v13 = vpop.f32.mrf.mxu2  ;;  %v7048_v14 = vpop.f32.mrf.mxu3 }
0x1238   : > { %v7029_v15 = vadd.f32 %v11967_v11, %v7028_v13  ;;  %v7049_v17 = vadd.f32 %v11968_v12, %v7048_v14 }
0x123a   : > { %7511 = vmatpush.msrb.mxu2 %v7029_v15  ;;  %7534 = vmatpush.msrb.mxu3 %v7049_v17 }
0x129b   : > { %v7074_v18 = vpop.f32.mrf.mxu0  ;;  %v7100_v25 = vpop.f32.mrf.mxu1 }
0x129c   : > { %v7259_v19 = vmul.f32 0.25, %v7074_v18  ;;  %v7260_v28 = vmul.f32 0.25, %v7100_v25 }
0x129e   : > { %v7267_v20 = vsel %vm2795_vm1, %v7259_v19, -inf  ;;  %v7270_v35 = vsel %vm2795_vm1, %v7260_v28, -inf }
0x129f   : > { %7268 = vmax.xlane.f32.xlu0 %v7267_v20 }
0x12a3   : > { %v7178_v37 = vpop.f32.mrf.mxu0  ;;  %v7204_v38 = vpop.f32.mrf.mxu1 }
0x12a4   : > { %v7263_v39 = vmul.f32 0.25, %v7178_v37  ;;  %v7264_v40 = vmul.f32 0.25, %v7204_v38 }
0x12a6   : > { %v7282_v43 = vsel %vm2795_vm1, %v7264_v40, -inf  ;;  %v7279_v44 = vsel %vm2795_vm1, %v7263_v39, -inf }
0x12a8   : > { %v7126_v21 = vpop.f32.mrf.mxu2  ;;  %v7152_v22 = vpop.f32.mrf.mxu3 }
0x12a9   : > { %v7261_v23 = vmul.f32 0.25, %v7126_v21  ;;  %v7262_v24 = vmul.f32 0.25, %v7152_v22 }
0x12ab   : > { %v7276_v26 = vsel %vm2795_vm1, %v7262_v24, -inf  ;;  %v7273_v27 = vsel %vm2795_vm1, %v7261_v23, -inf }
0x12ac   : > { %7277 = vmax.xlane.f32.xlu2 %v7276_v26  ;;  %7274 = vmax.xlane.f32.xlu1 %v7273_v27 }
0x12b0   : > { %v7230_v29 = vpop.f32.mrf.mxu2  ;;  %v7256_v31 = vpop.f32.mrf.mxu3 }
0x12b1   : > { %v7265_v32 = vmul.f32 0.25, %v7230_v29  ;;  %v7266_v33 = vmul.f32 0.25, %v7256_v31 }
0x12b3   : > { %v7285_v34 = vsel %vm2795_vm1, %v7265_v32, -inf  ;;  %v7288_v36 = vsel %vm2795_vm1, %v7266_v33, -inf }
0x12b4   : > { %7286 = vmax.xlane.f32.xlu1 %v7285_v34  ;;  %7271 = vmax.xlane.f32.xlu2 %v7270_v35 }
0x12b5   : > { %7289 = vmax.xlane.f32.xlu0 %v7288_v36 }
0x12bc   : > { %7283 = vmax.xlane.f32.xlu2 %v7282_v43  ;;  %7280 = vmax.xlane.f32.xlu1 %v7279_v44 }
0x1312   : > { %v7269_v45 = vpop.xlane.xlu0 %7268 }
0x1313   : > { %v7291_v46 = vsub.f32 %v7259_v19, %v7269_v45 }
0x1315   : > { %v7299_v48 = vmul.f32 1.442695, %v7291_v46 }
0x1317   : > { %12141 = vpow2.f32 %v7299_v48 }
0x131d   : > { %v12142_v50 = vpop.eup %12141 }
0x131e   : > { %v7315_v41 = vsel %vm2795_vm1, %v12142_v50, 0.0 }
0x131f   : > { %v7278_v52 = vpop.xlane.xlu2 %7277  ;;  %v7275_v53 = vpop.xlane.xlu1 %7274  ;;  %7316 = vadd.xlane.f32.xlu2 %v7315_v41  ;;  %v5140_v41 = vld [vmem:[#allocation31] sm:$0xff] }
0x1320   : > { %v7294_v55 = vsub.f32 %v7262_v24, %v7278_v52  ;;  %v7293_v56 = vsub.f32 %v7261_v23, %v7275_v53  ;;  %v5141_v24 = vld [vmem:[#allocation31 + $0x8] sm:$0xff]  ;;  %v5147_v53 = vld [vmem:[#allocation31 + $0x38] sm:$0xff] }
0x1321   : > { %v5145_v52 = vld [vmem:[#allocation31 + $0x28] sm:$0xff] }
0x1322   : > { %v7305_v42 = vmul.f32 1.442695, %v7294_v55  ;;  %v7303_v59 = vmul.f32 1.442695, %v7293_v56  ;;  %v5143_v55 = vld [vmem:[#allocation31 + $0x18] sm:$0xff]  ;;  %v5144_v56 = vld [vmem:[#allocation31 + $0x20] sm:$0xff] }
0x1324   : > { %12143 = vpow2.f32 %v7305_v42  ;;  %v5146_v42 = vld [vmem:[#allocation31 + $0x30] sm:$0xff] }
0x1325   : > { %12145 = vpow2.f32 %v7303_v59  ;;  %v5142_v59 = vld [vmem:[#allocation31 + $0x10] sm:$0xff] }
0x1327   : > { %v7287_v60 = vpop.xlane.xlu1 %7286  ;;  %v7272_v61 = vpop.xlane.xlu2 %7271 }
0x1328   : > { %v7297_v51 = vsub.f32 %v7265_v32, %v7287_v60  ;;  %v7292_v58 = vsub.f32 %v7260_v28, %v7272_v61  ;;  %v7290_v47 = vpop.xlane.xlu0 %7289  ;;  %v5153_v60 = vld [vmem:[#allocation31 + $0x68] sm:$0xff]  ;;  %v5155_v61 = vld [vmem:[#allocation31 + $0x78] sm:$0xff] }
0x1329   : > { %v7298_v62 = vsub.f32 %v7266_v33, %v7290_v47  ;;  %v5152_v47 = vld [vmem:[#allocation31 + $0x60] sm:$0xff] }
0x132a   : > { %v12144_v63 = vpop.eup %12143  ;;  %v7311_v0 = vmul.f32 1.442695, %v7297_v51  ;;  %v7301_v1 = vmul.f32 1.442695, %v7292_v58  ;;  %v5149_v51 = vld [vmem:[#allocation31 + $0x48] sm:$0xff]  ;;  %v5151_v58 = vld [vmem:[#allocation31 + $0x58] sm:$0xff] }
0x132b   : > { %v12146_v54 = vpop.eup %12145  ;;  %v7313_v2 = vmul.f32 1.442695, %v7298_v62  ;;  %v7324_v3 = vsel %vm2795_vm1, %v12144_v63, 0.0  ;;  %v5154_v62 = vld [vmem:[#allocation31 + $0x70] sm:$0xff] }
0x132c   : > { %12147 = vpow2.f32 %v7311_v0  ;;  %v7321_v8 = vsel %vm2795_vm1, %v12146_v54, 0.0  ;;  %7325 = vadd.xlane.f32.xlu1 %v7324_v3  ;;  %v5150_v0 = vld [vmem:[#allocation31 + $0x50] sm:$0xff] }
0x132d   : > { %12149 = vpow2.f32 %v7301_v1  ;;  %7322 = vadd.xlane.f32.xlu0 %v7321_v8 }
0x132e   : > { %12151 = vpow2.f32 %v7313_v2 }
0x132f   : > { %v7284_v4 = vpop.xlane.xlu2 %7283  ;;  %v7281_v5 = vpop.xlane.xlu1 %7280 }
0x1330   : > { %v7296_v6 = vsub.f32 %v7264_v40, %v7284_v4  ;;  %v7295_v7 = vsub.f32 %v7263_v39, %v7281_v5 }
0x1332   : > { %v12148_v9 = vpop.eup %12147  ;;  %v7309_v49 = vmul.f32 1.442695, %v7296_v6  ;;  %v7307_v10 = vmul.f32 1.442695, %v7295_v7 }
0x1333   : > { %v12150_v11 = vpop.eup %12149  ;;  %v7333_v12 = vsel %vm2795_vm1, %v12148_v9, 0.0 }
0x1334   : > { %v12152_v13 = vpop.eup %12151  ;;  %12153 = vpow2.f32 %v7309_v49  ;;  %v7318_v14 = vsel %vm2795_vm1, %v12150_v11, 0.0 }
0x1335   : > { %12155 = vpow2.f32 %v7307_v10  ;;  %7334 = vadd.xlane.f32.xlu0 %v7333_v12  ;;  %v7336_v15 = vsel %vm2795_vm1, %v12152_v13, 0.0  ;;  %7319 = vadd.xlane.f32.xlu1 %v7318_v14 }
0x1336   : > { %7337 = vadd.xlane.f32.xlu2 %v7336_v15 }
0x133a   : > { %v12154_v17 = vpop.eup %12153 }
0x133b   : > { %v12156_v18 = vpop.eup %12155  ;;  %v7330_v19 = vsel %vm2795_vm1, %v12154_v17, 0.0 }
0x133c   : > { %v7327_v20 = vsel %vm2795_vm1, %v12156_v18, 0.0 }
0x133d   : > { %7331 = vadd.xlane.f32.xlu1 %v7330_v19  ;;  %7328 = vadd.xlane.f32.xlu0 %v7327_v20 }
0x1392   : > { %v7317_v21 = vpop.xlane.xlu2 %7316 }
0x1393   : > { %12157 = vrcp.f32 %v7317_v21  ;;  %v11969_v21 = vld [vmem:[#allocation32] ss:$0 sm:$0xff] }
0x1399   : > { %v12158_v22 = vpop.eup %12157 }
0x139a   : > { %v7347_v23 = vmul.f32 %v12158_v22, %v12142_v50 }
0x139c   : > { %11467 = vmatmul.msk.f32.vlgmr.msra.gmra.mxu0 %vm2795_vm1, %v7347_v23 }
0x139d   : > { %7556 = vmatpush.msra.mxu0 %v5141_v24 }
0x139f   : > { %v7326_v25 = vpop.xlane.xlu1 %7325  ;;  %7557 = vmatpush.msra.mxu0 %v5140_v41  ;;  %v5182_v41 = vld [vmem:[#allocation37 + $0xb8] sm:$0xff] }
0x13a0   : > { %v7323_v26 = vpop.xlane.xlu0 %7322  ;;  %12159 = vrcp.f32 %v7326_v25 }
0x13a1   : > { %12161 = vrcp.f32 %v7323_v26  ;;  %v5174_v26 = vld [vmem:[#allocation37 + $0x78] sm:$0xff] }
0x13a6   : > { %v12160_v27 = vpop.eup %12159 }
0x13a7   : > { %v12162_v28 = vpop.eup %12161  ;;  %v7350_v29 = vmul.f32 %v12160_v27, %v12144_v63  ;;  %v5148_v63 = vld [vmem:[#allocation31 + $0x40] sm:$0xff] }
0x13a8   : > { %v7349_v31 = vmul.f32 %v12162_v28, %v12146_v54  ;;  %v7335_v32 = vpop.xlane.xlu0 %7334  ;;  %v7320_v33 = vpop.xlane.xlu1 %7319  ;;  %v5190_v27 = vld [vmem:[#allocation37 + $0xf8] sm:$0xff]  ;;  %v5173_v28 = vld [vmem:[#allocation37 + $0x70] sm:$0xff] }
0x13a9   : > { %v7338_v34 = vpop.xlane.xlu2 %7337  ;;  %12163 = vrcp.f32 %v7335_v32  ;;  %11470 = vmatmul.msk.f32.vlgmr.msra.gmra.mxu3 %vm2795_vm1, %v7350_v29  ;;  %v5189_v29 = vld [vmem:[#allocation37 + $0xf0] sm:$0xff]  ;;  %v5188_v32 = vld [vmem:[#allocation37 + $0xe8] sm:$0xff] }
0x13aa   : > { %12165 = vrcp.f32 %v7338_v34  ;;  %11469 = vmatmul.msk.f32.vlgmr.msra.gmra.mxu2 %vm2795_vm1, %v7349_v31  ;;  %7625 = vmatpush.msra.mxu3 %v5147_v53  ;;  %v5172_v31 = vld [vmem:[#allocation37 + $0x68] sm:$0xff]  ;;  %v5187_v34 = vld [vmem:[#allocation37 + $0xe0] sm:$0xff]  ;;  %v5181_v53 = vld [vmem:[#allocation37 + $0xb0] sm:$0xff] }
0x13ab   : > { %12167 = vrcp.f32 %v7320_v33  ;;  %7602 = vmatpush.msra.mxu2 %v5145_v52  ;;  %v5171_v33 = vld [vmem:[#allocation37 + $0x60] sm:$0xff]  ;;  %v5165_v52 = vld [vmem:[#allocation37 + $0x30] sm:$0xff] }
0x13ac   : > { %7626 = vmatpush.msra.mxu3 %v5146_v42  ;;  %v5163_v42 = vld [vmem:[#allocation37 + $0x20] sm:$0xff] }
0x13ad   : > { %7603 = vmatpush.msra.mxu2 %v5144_v56  ;;  %v5180_v56 = vld [vmem:[#allocation37 + $0xa8] sm:$0xff] }
0x13af   : > { %v12164_v35 = vpop.eup %12163 }
0x13b0   : > { %v12166_v36 = vpop.eup %12165  ;;  %v7353_v37 = vmul.f32 %v12164_v35, %v12148_v9  ;;  %v7329_v38 = vpop.xlane.xlu0 %7328  ;;  %v5170_v35 = vld [vmem:[#allocation37 + $0x58] sm:$0xff] }
0x13b1   : > { %v7332_v39 = vpop.xlane.xlu1 %7331  ;;  %v12168_v40 = vpop.eup %12167  ;;  %v7354_v43 = vmul.f32 %v12166_v36, %v12152_v13  ;;  %12169 = vrcp.f32 %v7329_v38  ;;  %v5186_v36 = vld [vmem:[#allocation37 + $0xd8] sm:$0xff]  ;;  %v5168_v38 = vld [vmem:[#allocation37 + $0x48] sm:$0xff] }
0x13b2   : > { %v7348_v44 = vmul.f32 %v12168_v40, %v12150_v11  ;;  %12171 = vrcp.f32 %v7332_v39  ;;  %11473 = vmatmul.msk.f32.vlgmr.msrb.gmra.mxu2 %vm2795_vm1, %v7353_v37  ;;  %v5185_v37 = vld [vmem:[#allocation37 + $0xd0] sm:$0xff]  ;;  %v5184_v39 = vld [vmem:[#allocation37 + $0xc8] sm:$0xff] }
0x13b3   : > { %11474 = vmatmul.msk.f32.vlgmr.msrb.gmra.mxu3 %vm2795_vm1, %v7354_v43  ;;  %7694 = vmatpush.msrb.mxu2 %v5153_v60  ;;  %v5162_v60 = vld [vmem:[#allocation37 + $0x18] sm:$0xff] }
0x13b4   : > { %11468 = vmatmul.msk.f32.vlgmr.msra.gmra.mxu1 %vm2795_vm1, %v7348_v44  ;;  %7717 = vmatpush.msrb.mxu3 %v5155_v61  ;;  %v5167_v44 = vld [vmem:[#allocation37 + $0x40] sm:$0xff]  ;;  %v5178_v61 = vld [vmem:[#allocation37 + $0x98] sm:$0xff] }
0x13b5   : > { %7579 = vmatpush.msra.mxu1 %v5143_v55  ;;  %7695 = vmatpush.msrb.mxu2 %v5152_v47  ;;  %v5164_v55 = vld [vmem:[#allocation37 + $0x28] sm:$0xff] }
0x13b6   : > { %7718 = vmatpush.msrb.mxu3 %v5154_v62  ;;  %v5160_v47 = vld [vmem:[#allocation37 + $0x8] sm:$0xff] }
0x13b7   : > { %v12170_v45 = vpop.eup %12169  ;;  %7580 = vmatpush.msra.mxu1 %v5142_v59  ;;  %v5179_v59 = vld [vmem:[#allocation37 + $0xa0] sm:$0xff]  ;;  %v5176_v62 = vld [vmem:[#allocation37 + $0x88] sm:$0xff] }
0x13b8   : > { %v12172_v46 = vpop.eup %12171  ;;  %v7351_v48 = vmul.f32 %v12170_v45, %v12156_v18  ;;  %v5183_v45 = vld [vmem:[#allocation37 + $0xc0] sm:$0xff] }
0x13b9   : > { %v7352_v50 = vmul.f32 %v12172_v46, %v12154_v17 }
0x13ba   : > { %11471 = vmatmul.msk.f32.vlgmr.msrb.gmra.mxu0 %vm2795_vm1, %v7351_v48 }
0x13bb   : > { %7648 = vmatpush.msrb.mxu0 %v5149_v51  ;;  %v5161_v51 = vld [vmem:[#allocation37 + $0x10] sm:$0xff] }
0x13bc   : > { %11472 = vmatmul.msk.f32.vlgmr.msrb.gmra.mxu1 %vm2795_vm1, %v7352_v50  ;;  %v5166_v50 = vld [vmem:[#allocation37 + $0x38] sm:$0xff] }
0x13bd   : > { %7671 = vmatpush.msrb.mxu1 %v5151_v58  ;;  %7649 = vmatpush.msrb.mxu0 %v5148_v63  ;;  %v5177_v58 = vld [vmem:[#allocation37 + $0x90] sm:$0xff]  ;;  %v5159_v63 = vld [vmem:[#allocation37] sm:$0xff] }
0x13bf   : > { %7672 = vmatpush.msrb.mxu1 %v5150_v0  ;;  %v5175_v0 = vld [vmem:[#allocation37 + $0x80] sm:$0xff] }
0x1419   : > { %v7375_v1 = vpop.f32.mrf.mxu0 }
0x141a   : > { %11475 = vmatmul.msk.f32.vlgmr.msra.gmra.mxu0 %vm2578_vm0, %v7375_v1  ;;  %v5222_v1 = vld [vmem:[#allocation38 + $0xf0] sm:$0xff] }
0x141b   : > { %7768 = vmatpush.xpose.msra.mxu0 %v5174_v26  ;;  %v11971_v26 = vld [vmem:[#allocation35] ss:$0 sm:$0xff] }
0x141f   : > { %7769 = vmatpush.xpose.msra.mxu0 %v5173_v28  ;;  %v5209_v28 = vld [vmem:[#allocation38 + $0x88] sm:$0xff] }
0x1423   : > { %7770 = vmatpush.xpose.msra.mxu0 %v5172_v31 }
0x1427   : > { %7771 = vmatpush.xpose.msra.mxu0 %v5171_v33  ;;  %v5207_v33 = vld [vmem:[#allocation38 + $0x78] sm:$0xff] }
0x142b   : > { %7772 = vmatpush.xpose.msra.mxu0 %v5170_v35  ;;  %v5205_v35 = vld [vmem:[#allocation38 + $0x68] sm:$0xff] }
0x142c   : > { %v7444_v54 = vpop.f32.mrf.mxu3 }
0x142d   : > { %v7421_v2 = vpop.f32.mrf.mxu2  ;;  %11478 = vmatmul.msk.f32.vlgmr.msra.gmra.mxu3 %vm2578_vm0, %v7444_v54  ;;  %v5223_v54 = vld [vmem:[#allocation38 + $0xf8] sm:$0xff] }
0x142e   : > { %11477 = vmatmul.msk.f32.vlgmr.msra.gmra.mxu2 %vm2578_vm0, %v7421_v2  ;;  %7833 = vmatpush.xpose.msra.mxu3 %v5223_v54  ;;  %v5220_v2 = vld [vmem:[#allocation38 + $0xe0] sm:$0xff] }
0x142f   : > { %7813 = vmatpush.xpose.msra.mxu2 %v5222_v1 }
0x1431   : > { %v7398_v3 = vpop.f32.mrf.mxu1 }
0x1432   : > { %11476 = vmatmul.msk.f32.vlgmr.msra.gmra.mxu1 %vm2578_vm0, %v7398_v3  ;;  %v5221_v3 = vld [vmem:[#allocation38 + $0xe8] sm:$0xff] }
0x1433   : > { %7788 = vmatpush.xpose.msra.mxu1 %v5190_v27  ;;  %7814 = vmatpush.xpose.msra.mxu2 %v5220_v2  ;;  %v5208_v27 = vld [vmem:[#allocation38 + $0x80] sm:$0xff] }
0x1434   : > { %7834 = vmatpush.xpose.msra.mxu3 %v5221_v3 }
0x1435   : > { %v7513_v8 = vpop.f32.mrf.mxu2 }
0x1436   : > { %v7536_v4 = vpop.f32.mrf.mxu3  ;;  %11481 = vmatmul.msk.f32.vlgmr.msrb.gmra.mxu2 %vm2578_vm0, %v7513_v8 }
0x1437   : > { %11482 = vmatmul.msk.f32.vlgmr.msrb.gmra.mxu3 %vm2578_vm0, %v7536_v4  ;;  %v7467_v5 = vpop.f32.mrf.mxu0  ;;  %7789 = vmatpush.xpose.msra.mxu1 %v5189_v29 }
0x1438   : > { %11479 = vmatmul.msk.f32.vlgmr.msrb.gmra.mxu0 %vm2578_vm0, %v7467_v5 }
0x1439   : > { %v7490_v6 = vpop.f32.mrf.mxu1 }
0x143a   : > { %11480 = vmatmul.msk.f32.vlgmr.msrb.gmra.mxu1 %vm2578_vm0, %v7490_v6  ;;  %v5218_v6 = vld [vmem:[#allocation38 + $0xd0] sm:$0xff] }
0x143b   : > { %7790 = vmatpush.xpose.msra.mxu1 %v5188_v32  ;;  %7815 = vmatpush.xpose.msra.mxu2 %v5218_v6  ;;  %v5206_v32 = vld [vmem:[#allocation38 + $0x70] sm:$0xff]  ;;  %v7890_v6 = vld [vmem:[#allocation11 + $0xb8] sm:$0xff] }
0x143f   : > { %7791 = vmatpush.xpose.msra.mxu1 %v5187_v34  ;;  %v5204_v34 = vld [vmem:[#allocation38 + $0x60] sm:$0xff] }
0x1443   : > { %7792 = vmatpush.xpose.msra.mxu1 %v5186_v36  ;;  %v5202_v36 = vld [vmem:[#allocation38 + $0x50] sm:$0xff] }
0x1447   : > { %7793 = vmatpush.xpose.msra.mxu1 %v5185_v37  ;;  %v5200_v37 = vld [vmem:[#allocation38 + $0x40] sm:$0xff] }
0x144b   : > { %7794 = vmatpush.xpose.msra.mxu1 %v5184_v39  ;;  %v5198_v39 = vld [vmem:[#allocation38 + $0x30] sm:$0xff] }
0x144f   : > { %7795 = vmatpush.xpose.msra.mxu1 %v5183_v45  ;;  %v5194_v45 = vld [vmem:[#allocation38 + $0x10] sm:$0xff] }
0x1453   : > { %7796 = vmatpush.xpose.msra.mxu1 %v5182_v41  ;;  %v5191_v41 = vld [vmem:[%s14818_s22] sm:$0x3]  ;;  %s1854_s22 = sand.u32 1, %s13115_s0  }
0x1457   : > { %7797 = vmatpush.xpose.msra.mxu1 %v5181_v53  ;;  %v7765_v53 = vperm.slane %v5191_v41, 1 }
0x145b   : > { %7798 = vmatpush.xpose.msra.mxu1 %v5180_v56 }
0x145f   : > { %7799 = vmatpush.xpose.msra.mxu1 %v5179_v59 }
0x1463   : > { %7800 = vmatpush.xpose.msra.mxu1 %v5178_v61 }
0x1467   : > { %7801 = vmatpush.xpose.msra.mxu1 %v5177_v58 }
0x146b   : > { %7802 = vmatpush.xpose.msra.mxu1 %v5176_v62 }
0x146f   : > { %7803 = vmatpush.xpose.msra.mxu1 %v5175_v0 }
0x1497   : > { %v7559_v7 = vpop.f32.mrf.mxu0 }
0x14af   : > { %v7582_v9 = vpop.f32.mrf.mxu1 }
0x14b0   : > { %v7723_v49 = vadd.f32 %v7582_v9, %v7559_v7  ;;  %v7628_v11 = vpop.f32.mrf.mxu3  ;;  %v5219_v7 = vld [vmem:[#allocation38 + $0xd8] sm:$0xff]  ;;  %v5216_v9 = vld [vmem:[#allocation38 + $0xc0] sm:$0xff] }
0x14b1   : > { %v7605_v10 = vpop.f32.mrf.mxu2  ;;  %7835 = vmatpush.xpose.msra.mxu3 %v5219_v7  ;;  %7816 = vmatpush.xpose.msra.mxu2 %v5216_v9  ;;  %v7883_v7 = vld [vmem:[#allocation11 + $0x80] sm:$0xff]  ;;  %v7885_v9 = vld [vmem:[#allocation11 + $0x90] sm:$0xff] }
0x14b2   : > { %v7724_v12 = vadd.f32 %v7723_v49, %v7605_v10  ;;  %v5217_v49 = vld [vmem:[#allocation38 + $0xc8] sm:$0xff] }
0x14b4   : > { %v7725_v13 = vadd.f32 %v7724_v12, %v7628_v11  ;;  %v5214_v11 = vld [vmem:[#allocation38 + $0xb0] sm:$0xff]  ;;  %v5215_v12 = vld [vmem:[#allocation38 + $0xb8] sm:$0xff] }
0x14b5   : > { %v7651_v14 = vpop.f32.mrf.mxu0  ;;  %7836 = vmatpush.xpose.msra.mxu3 %v5217_v49  ;;  %7817 = vmatpush.xpose.msra.mxu2 %v5214_v11  ;;  %v7887_v49 = vld [vmem:[#allocation11 + $0xa0] sm:$0xff]  ;;  %v7892_v11 = vld [vmem:[#allocation11 + $0xc8] sm:$0xff] }
0x14b6   : > { %v7726_v15 = vadd.f32 %v7725_v13, %v7651_v14 }
0x14b7   : > { %v7674_v17 = vpop.f32.mrf.mxu1 }
0x14b8   : > { %v7727_v18 = vadd.f32 %v7726_v15, %v7674_v17  ;;  %v5212_v15 = vld [vmem:[#allocation38 + $0xa0] sm:$0xff]  ;;  %v5213_v17 = vld [vmem:[#allocation38 + $0xa8] sm:$0xff] }
0x14b9   : > { %v7697_v19 = vpop.f32.mrf.mxu2  ;;  %7837 = vmatpush.xpose.msra.mxu3 %v5215_v12  ;;  %7818 = vmatpush.xpose.msra.mxu2 %v5212_v15  ;;  %v7894_v12 = vld [vmem:[#allocation11 + $0xd8] sm:$0xff] }
0x14ba   : > { %v7728_v20 = vadd.f32 %v7727_v18, %v7697_v19  ;;  %v7720_v22 = vpop.f32.mrf.mxu3 }
0x14bc   : > { %v7729_v23 = vadd.f32 %v7728_v20, %v7720_v22  ;;  %v5210_v20 = vld [vmem:[#allocation38 + $0x90] sm:$0xff] }
0x14bd   : > { %7838 = vmatpush.xpose.msra.mxu3 %v5213_v17  ;;  %7819 = vmatpush.xpose.msra.mxu2 %v5210_v20  ;;  %v7891_v17 = vld [vmem:[#allocation11 + $0xc0] sm:$0xff] }
0x14be   : > { %v7733_v24 = vadd.f32 %v11969_v21, %v7729_v23  ;;  %v5211_v21 = vld [vmem:[#allocation38 + $0x98] sm:$0xff]  ;;  %v7895_v20 = vld [vmem:[#allocation11 + $0xe0] sm:$0xff] }
0x14bf   : > { %v11970_v23 = vld [vmem:[#allocation34] ss:$0 sm:$0xff] }
0x14c0   : > { %v7734_v25 = vadd.f32 %v7733_v24, %v14340_v30  ;;  %v5169_v30 = vld [vmem:[#allocation37 + $0x50] sm:$0xff] }
0x14c1   : > { %7773 = vmatpush.xpose.msra.mxu0 %v5169_v30  ;;  %7839 = vmatpush.xpose.msra.mxu3 %v5211_v21  ;;  %v5203_v30 = vld [vmem:[#allocation38 + $0x58] sm:$0xff] }
0x14c2   : > { %7735 = vadd.xlane.f32.xlu2 %v7734_v25  ;;  %7820 = vmatpush.xpose.msra.mxu2 %v5208_v27  ;;  %v7897_v21 = vld [vmem:[#allocation11 + $0xf0] sm:$0xff] }
0x14c5   : > { %7774 = vmatpush.xpose.msra.mxu0 %v5168_v38  ;;  %7840 = vmatpush.xpose.msra.mxu3 %v5209_v28  ;;  %v5201_v38 = vld [vmem:[#allocation38 + $0x48] sm:$0xff] }
0x14c6   : > { %7821 = vmatpush.xpose.msra.mxu2 %v5206_v32  ;;  %v11974_v32 = vld [vmem:[#allocation41] ss:$0 sm:$0xff] }
0x14c9   : > { %7775 = vmatpush.xpose.msra.mxu0 %v5167_v44  ;;  %7841 = vmatpush.xpose.msra.mxu3 %v5207_v33  ;;  %v5197_v44 = vld [vmem:[#allocation38 + $0x28] sm:$0xff] }
0x14ca   : > { %7822 = vmatpush.xpose.msra.mxu2 %v5204_v34 }
0x14cd   : > { %7776 = vmatpush.xpose.msra.mxu0 %v5166_v50  ;;  %7842 = vmatpush.xpose.msra.mxu3 %v5205_v35  ;;  %v5193_v50 = vld [vmem:[#allocation38 + $0x8] sm:$0xff] }
0x14ce   : > { %7823 = vmatpush.xpose.msra.mxu2 %v5202_v36  ;;  %v7901_v36 = vld [vmem:[#allocation13 + $0x88] sm:$0xff] }
0x14d1   : > { %7777 = vmatpush.xpose.msra.mxu0 %v5165_v52  ;;  %7843 = vmatpush.xpose.msra.mxu3 %v5203_v30  ;;  %v7764_v52 = vperm.slane %v5191_v41, 0  ;;  %v7903_v30 = vld [vmem:[#allocation13 + $0x98] sm:$0xff]  ;;  %v7908_v41 = vld [vmem:[#allocation13 + $0xc0] sm:$0xff] }
0x14d2   : > { %7824 = vmatpush.xpose.msra.mxu2 %v5200_v37  ;;  %v7905_v37 = vld [vmem:[#allocation13 + $0xa8] sm:$0xff] }
0x14d5   : > { %7778 = vmatpush.xpose.msra.mxu0 %v5164_v55  ;;  %7844 = vmatpush.xpose.msra.mxu3 %v5201_v38  ;;  %v7907_v38 = vld [vmem:[#allocation13 + $0xb8] sm:$0xff] }
0x14d6   : > { %7825 = vmatpush.xpose.msra.mxu2 %v5198_v39  ;;  %v7900_v39 = vld [vmem:[#allocation13 + $0x80] sm:$0xff] }
0x14d9   : > { %7779 = vmatpush.xpose.msra.mxu0 %v5163_v42 }
0x14dd   : > { %7780 = vmatpush.xpose.msra.mxu0 %v5162_v60 }
0x14e1   : > { %7781 = vmatpush.xpose.msra.mxu0 %v5161_v51  ;;  %v11972_v51 = vld [vmem:[#allocation40] ss:$0 sm:$0xff] }
0x14e5   : > { %7782 = vmatpush.xpose.msra.mxu0 %v5160_v47 }
0x14e9   : > { %7783 = vmatpush.xpose.msra.mxu0 %v5159_v63 }
0x1535   : > { %v7736_v40 = vpop.xlane.xlu2 %7735 }
0x1536   : > { %v7737_v43 = vmul.f32 %v7736_v40, %v14061_v16  ;;  %v5199_v40 = vld [vmem:[#allocation38 + $0x38] sm:$0xff] }
0x1537   : > { %7845 = vmatpush.xpose.msra.mxu3 %v5199_v40  ;;  %v7902_v40 = vld [vmem:[#allocation13 + $0x90] sm:$0xff] }
0x1538   : > { %v14421_v46 = vsub.f32 %v7734_v25, %v7737_v43  ;;  %v5196_v43 = vld [vmem:[#allocation38 + $0x20] sm:$0xff] }
0x1539   : > { %7826 = vmatpush.xpose.msra.mxu2 %v5196_v43  ;;  %v7904_v43 = vld [vmem:[#allocation13 + $0xa0] sm:$0xff] }
0x153a   : > { %v7739_v48 = vmul.f32 %v14421_v46, %v14421_v46 }
0x153b   : > { %7846 = vmatpush.xpose.msra.mxu3 %v5197_v44  ;;  %v7906_v44 = vld [vmem:[#allocation13 + $0xb0] sm:$0xff] }
0x153c   : > { %7740 = vadd.xlane.f32.xlu0 %v7739_v48  ;;  %v5192_v48 = vld [vmem:[#allocation38] sm:$0xff] }
0x153d   : > { %7827 = vmatpush.xpose.msra.mxu2 %v5194_v45  ;;  %v7909_v45 = vld [vmem:[#allocation13 + $0xc8] sm:$0xff] }
0x1541   : > { %7828 = vmatpush.xpose.msra.mxu2 %v5192_v48  ;;  %v7913_v48 = vld [vmem:[#allocation13 + $0xe8] sm:$0xff] }
0x15af   : > { %v7741_v8 = vpop.xlane.xlu0 %7740 }
0x15b0   : > { %v7742_v4 = vmul.f32 %v7741_v8, %v14061_v16  ;;  %v7884_v8 = vld [vmem:[#allocation11 + $0x88] sm:$0xff] }
0x15b1   : > { %8196 = vmatpush.xpose.msrb.mxu0 %v7884_v8  ;;  %v7931_v8 = vld [vmem:[#allocation14 + $0xf0] sm:$0xff] }
0x15b2   : > { %v7743_v5 = vadd.f32 1e-06, %v7742_v4  ;;  %v7886_v4 = vld [vmem:[#allocation11 + $0x98] sm:$0xff] }
0x15b3   : > { %8216 = vmatpush.xpose.msrb.mxu1 %v7886_v4 }
0x15b4   : > { %12173 = vrsqrt.f32 %v7743_v5  ;;  %vm7750_vm5 = vweird.f32 %v7743_v5 }
0x15b5   : > { %8197 = vmatpush.xpose.msrb.mxu0 %v7883_v7 }
0x15b7   : > { %8217 = vmatpush.xpose.msrb.mxu1 %v7885_v9 }
0x15ba   : > { %v12174_v10 = vpop.eup %12173 }
0x15bb   : > { %v7745_v13 = vmul.f32 %v12174_v10, %v7743_v5  ;;  %vm7751_vm4 = vweird.f32 %v12174_v10  ;;  %v7888_v5 = vld [vmem:[#allocation11 + $0xa8] sm:$0xff] }
0x15bc   : > { %vm7752_vm6 = vmor %vm7750_vm5, %vm7751_vm4  ;;  %8236 = vmatpush.xpose.msrb.mxu2 %v7888_v5 }
0x15bd   : > { %v7746_v14 = vmul.f32 %v12174_v10, %v7745_v13  ;;  %v7896_v13 = vld [vmem:[#allocation11 + $0xe8] sm:$0xff] }
0x15bf   : > { %v7747_v18 = vmul.f32 0.5, %v7746_v14  ;;  %v7898_v14 = vld [vmem:[#allocation11 + $0xf8] sm:$0xff] }
0x15c0   : > { %8237 = vmatpush.xpose.msrb.mxu2 %v7887_v49 }
0x15c1   : > { %v7748_v19 = vsub.f32 1.5, %v7747_v18  ;;  %v7893_v18 = vld [vmem:[#allocation11 + $0xd0] sm:$0xff] }
0x15c3   : > { %v7749_v22 = vmul.f32 %v12174_v10, %v7748_v19 }
0x15c5   : > { %v7753_v24 = vsel %vm7752_vm6, %v12174_v10, %v7749_v22  ;;  %v7889_v10 = vld [vmem:[#allocation11 + $0xb0] sm:$0xff] }
0x15c6   : > { %v7754_v25 = vmul.f32 %v7753_v24, %v14421_v46  ;;  %v5195_v46 = vld [vmem:[#allocation38 + $0x18] sm:$0xff] }
0x15c7   : > { %7847 = vmatpush.xpose.msra.mxu3 %v5195_v46  ;;  %v7911_v46 = vld [vmem:[#allocation13 + $0xd8] sm:$0xff] }
0x15c8   : > { %v7758_v29 = vmul.f32 %v11970_v23, %v7754_v25 }
0x15ca   : > { %v7762_v31 = vadd.f32 %v11971_v26, %v7758_v29  ;;  %v11973_v29 = vld [vmem:[%s14820_s23] ss:$0 sm:$0xff]  ;;  %s11305_s23 = sshll.u32 %s1854_s22, 3 }
0x15cb   : > { %7848 = vmatpush.xpose.msra.mxu3 %v5193_v50  ;;  %v7915_v50 = vld [vmem:[#allocation13 + $0xf8] sm:$0xff] }
0x15cc   : > { %7784 = vmatmul.f32.vlgmr.msra.gmra.mxu0 %v7762_v31  ;;  %7804 = vmatmul.f32.vlgmr.msra.gmra.mxu1 %v7762_v31 }
0x15cd   : > { %8276 = vmatpush.xpose.msra.mxu0 %v7892_v11  ;;  %8296 = vmatpush.xpose.msra.mxu1 %v7894_v12  ;;  %v11984_v11 = vld [vmem:[%s14812_s1 + $0x9] ss:$0 sm:$0xff] }
0x15cf   : > { %8256 = vmatpush.xpose.msrb.mxu3 %v7890_v6 }
0x15d1   : > { %8277 = vmatpush.xpose.msra.mxu0 %v7891_v17  ;;  %8297 = vmatpush.xpose.msra.mxu1 %v7893_v18 }
0x15d3   : > { %8257 = vmatpush.xpose.msrb.mxu3 %v7889_v10  ;;  %v11983_v10 = vld [vmem:[%s14812_s1 + $0x8] ss:$0 sm:$0xff] }
0x1649   : > { %v7785_v55 = vpop.f32.mrf.mxu0  ;;  %v7805_v56 = vpop.f32.mrf.mxu1 }
0x164a   : > { %v7786_v42 = vadd.f32 %v7785_v55, %v7764_v52  ;;  %v7806_v59 = vadd.f32 %v7805_v56, %v7765_v53  ;;  %v7910_v52 = vld [vmem:[#allocation13 + $0xd0] sm:$0xff]  ;;  %v7912_v53 = vld [vmem:[#allocation13 + $0xe0] sm:$0xff]  ;;  %v7918_v56 = vld [vmem:[#allocation14 + $0x88] sm:$0xff] }
0x164b   : > { %v7914_v55 = vld [vmem:[#allocation13 + $0xf0] sm:$0xff] }
0x164c   : > { %v7808_v60 = vmax.f32 %v7786_v42, 0.0  ;;  %v7809_v61 = vmax.f32 %v7806_v59, 0.0  ;;  %v7920_v42 = vld [vmem:[#allocation14 + $0x98] sm:$0xff]  ;;  %v7922_v59 = vld [vmem:[#allocation14 + $0xa8] sm:$0xff] }
0x164e   : > { %7829 = vmatmul.f32.vlgmr.msra.gmra.mxu2 %v7808_v60  ;;  %7849 = vmatmul.f32.vlgmr.msra.gmra.mxu3 %v7809_v61  ;;  %v7924_v60 = vld [vmem:[#allocation14 + $0xb8] sm:$0xff]  ;;  %v7917_v61 = vld [vmem:[#allocation14 + $0x80] sm:$0xff] }
0x164f   : > { %8316 = vmatpush.xpose.msra.mxu2 %v7896_v13  ;;  %8336 = vmatpush.xpose.msra.mxu3 %v7898_v14  ;;  %v11975_v14 = vld [vmem:[%s14813_s2 + $0x8] ss:$0 sm:$0xff] }
0x1653   : > { %8317 = vmatpush.xpose.msra.mxu2 %v7895_v20  ;;  %8337 = vmatpush.xpose.msra.mxu3 %v7897_v21 }
0x16d1   : > { %v7830_v58 = vpop.f32.mrf.mxu2  ;;  %v7850_v62 = vpop.f32.mrf.mxu3 }
0x16d2   : > { %v7831_v47 = vadd.f32 %v11972_v51, %v7830_v58  ;;  %v7919_v51 = vld [vmem:[#allocation14 + $0x90] sm:$0xff]  ;;  %v7921_v58 = vld [vmem:[#allocation14 + $0xa0] sm:$0xff] }
0x16d4   : > { %v7851_v63 = vadd.f32 %v7850_v62, %v7831_v47  ;;  %v7923_v47 = vld [vmem:[#allocation14 + $0xb0] sm:$0xff]  ;;  %v7926_v62 = vld [vmem:[#allocation14 + $0xc8] sm:$0xff] }
0x16d6   : > { %v7853_v0 = vadd.f32 %v7851_v63, %v7762_v31  ;;  %v7928_v63 = vld [vmem:[#allocation14 + $0xd8] sm:$0xff] }
0x16d8   : > { %7854 = vadd.xlane.f32.xlu1 %v7853_v0 }
0x174b   : > { %v7855_v1 = vpop.xlane.xlu1 %7854 }
0x174c   : > { %v7856_v54 = vmul.f32 %v7855_v1, %v14061_v16  ;;  %v7932_v1 = vld [vmem:[#allocation14 + $0xf8] sm:$0xff] }
0x174e   : > { %v7857_v2 = vsub.f32 %v7853_v0, %v7856_v54  ;;  %v7930_v0 = vld [vmem:[#allocation14 + $0xe8] sm:$0xff]  ;;  %v7925_v54 = vld [vmem:[#allocation14 + $0xc0] sm:$0xff] }
0x1750   : > { %v7858_v3 = vmul.f32 %v7857_v2, %v7857_v2 }
0x1752   : > { %7859 = vadd.xlane.f32.xlu2 %v7858_v3  ;;  %v7929_v3 = vld [vmem:[#allocation14 + $0xe0] sm:$0xff] }
0x17c5   : > { %v7860_v15 = vpop.xlane.xlu2 %7859 }
0x17c6   : > { %v7861_v19 = vmul.f32 %v7860_v15, %v14061_v16  ;;  %v11976_v15 = vld [vmem:[%s14813_s2 + $0x9] ss:$0 sm:$0xff] }
0x17c8   : > { %v7862_v22 = vadd.f32 1e-06, %v7861_v19 }
0x17ca   : > { %12175 = vrsqrt.f32 %v7862_v22  ;;  %vm7869_vm8 = vweird.f32 %v7862_v22 }
0x17d0   : > { %v12176_v23 = vpop.eup %12175 }
0x17d1   : > { %v7864_v24 = vmul.f32 %v12176_v23, %v7862_v22  ;;  %vm7870_vm7 = vweird.f32 %v12176_v23 }
0x17d2   : > { %vm7871_vm9 = vmor %vm7869_vm8, %vm7870_vm7 }
0x17d3   : > { %v7865_v25 = vmul.f32 %v12176_v23, %v7864_v24  ;;  %v11986_v24 = vld [vmem:[%s14812_s1 + $0xb] ss:$0 sm:$0xff] }
0x17d5   : > { %v7866_v26 = vmul.f32 0.5, %v7865_v25  ;;  %v11987_v25 = vld [vmem:[%s14812_s1 + $0xc] ss:$0 sm:$0xff] }
0x17d7   : > { %v7867_v27 = vsub.f32 1.5, %v7866_v26  ;;  %v11988_v26 = vld [vmem:[%s14812_s1 + $0xd] ss:$0 sm:$0xff] }
0x17d9   : > { %v7868_v28 = vmul.f32 %v12176_v23, %v7867_v27  ;;  %v11977_v27 = vld [vmem:[%s14813_s2 + $0xa] ss:$0 sm:$0xff] }
0x17db   : > { %v7872_v31 = vsel %vm7871_vm9, %v12176_v23, %v7868_v28  ;;  %v11985_v23 = vld [vmem:[%s14812_s1 + $0xa] ss:$0 sm:$0xff]  ;;  %v11978_v28 = vld [vmem:[%s14813_s2 + $0xb] ss:$0 sm:$0xff] }
0x17dc   : > { %v7873_v33 = vmul.f32 %v7872_v31, %v7857_v2  ;;  %v7927_v2 = vld [vmem:[#allocation14 + $0xd0] sm:$0xff] }
0x17de   : > { %v7877_v34 = vmul.f32 %v11973_v29, %v7873_v33  ;;  %v11980_v33 = vld [vmem:[%s14813_s2 + $0xd] ss:$0 sm:$0xff] }
0x17e0   : > { %v14431_v35 = vadd.f32 %v11974_v32, %v7877_v34  ;;  %v11979_v32 = vld [vmem:[%s14813_s2 + $0xc] ss:$0 sm:$0xff] }
0x17e2   : > { %8198 = vmatmul.f32.vlgmr.msrb.gmra.mxu0 %v14431_v35  ;;  %8218 = vmatmul.f32.vlgmr.msrb.gmra.mxu1 %v14431_v35 }
0x17e3   : > { %8238 = vmatmul.f32.vlgmr.msrb.gmra.mxu2 %v14431_v35  ;;  %8258 = vmatmul.f32.vlgmr.msrb.gmra.mxu3 %v14431_v35 }
0x17e4   : > { %8380 = vmatpush.xpose.msrb.mxu0 %v7901_v36  ;;  %8400 = vmatpush.xpose.msrb.mxu1 %v7903_v30 }
0x17e5   : > { %8420 = vmatpush.xpose.msrb.mxu2 %v7905_v37  ;;  %8440 = vmatpush.xpose.msrb.mxu3 %v7907_v38 }
0x17e8   : > { %8381 = vmatpush.xpose.msrb.mxu0 %v7900_v39  ;;  %8401 = vmatpush.xpose.msrb.mxu1 %v7902_v40 }
0x17e9   : > { %8421 = vmatpush.xpose.msrb.mxu2 %v7904_v43  ;;  %8441 = vmatpush.xpose.msrb.mxu3 %v7906_v44 }
0x17ea   : > { %8278 = vmatmul.f32.vlgmr.msra.gmra.mxu0 %v14431_v35  ;;  %8298 = vmatmul.f32.vlgmr.msra.gmra.mxu1 %v14431_v35 }
0x17eb   : > { %8318 = vmatmul.f32.vlgmr.msra.gmra.mxu2 %v14431_v35  ;;  %8338 = vmatmul.f32.vlgmr.msra.gmra.mxu3 %v14431_v35 }
0x17ec   : > { %8460 = vmatpush.xpose.msra.mxu0 %v7909_v45  ;;  %8480 = vmatpush.xpose.msra.mxu1 %v7911_v46  ;;  %v11989_v46 = vld [vmem:[%s14812_s1 + $0xe] ss:$0 sm:$0xff] }
0x17ed   : > { %8500 = vmatpush.xpose.msra.mxu2 %v7913_v48  ;;  %8520 = vmatpush.xpose.msra.mxu3 %v7915_v50  ;;  %v11990_v48 = vld [vmem:[%s14812_s1 + $0xf] ss:$0 sm:$0xff]  ;;  %v11991_v50 = vld [vmem:[%s14815_s3 + $0x8] ss:$0 sm:$0xff]  ;;  %s11574_s1 = sshll.u32 %s13471_s28, 3  ;;  %s13025_s28 = scalar_lea.hbm %s13448_s29, 16 }
0x17f0   : > { %8461 = vmatpush.xpose.msra.mxu0 %v7908_v41  ;;  %8481 = vmatpush.xpose.msra.mxu1 %v7910_v52  ;;  %v11992_v41 = vld [vmem:[%s14815_s3 + $0x9] ss:$0 sm:$0xff]  ;;  %v11981_v52 = vld [vmem:[%s14813_s2 + $0xe] ss:$0 sm:$0xff] }
0x17f1   : > { %8501 = vmatpush.xpose.msra.mxu2 %v7912_v53  ;;  %8521 = vmatpush.xpose.msra.mxu3 %v7914_v55  ;;  %v11982_v53 = vld [vmem:[%s14813_s2 + $0xf] ss:$0 sm:$0xff] }
0x17f2   : > { %8382 = vmatmul.f32.vlgmr.msrb.gmra.mxu0 %v14431_v35  ;;  %8402 = vmatmul.f32.vlgmr.msrb.gmra.mxu1 %v14431_v35 }
0x17f3   : > { %8422 = vmatmul.f32.vlgmr.msrb.gmra.mxu2 %v14431_v35  ;;  %8442 = vmatmul.f32.vlgmr.msrb.gmra.mxu3 %v14431_v35 }
0x17f4   : > { %8564 = vmatpush.xpose.msrb.mxu0 %v7918_v56  ;;  %8584 = vmatpush.xpose.msrb.mxu1 %v7920_v42 }
0x17f5   : > { %8604 = vmatpush.xpose.msrb.mxu2 %v7922_v59  ;;  %8624 = vmatpush.xpose.msrb.mxu3 %v7924_v60 }
0x17f8   : > { %8565 = vmatpush.xpose.msrb.mxu0 %v7917_v61  ;;  %8585 = vmatpush.xpose.msrb.mxu1 %v7919_v51 }
0x17f9   : > { %8605 = vmatpush.xpose.msrb.mxu2 %v7921_v58  ;;  %8625 = vmatpush.xpose.msrb.mxu3 %v7923_v47 }
0x17fa   : > { %8462 = vmatmul.f32.vlgmr.msra.gmra.mxu0 %v14431_v35  ;;  %8482 = vmatmul.f32.vlgmr.msra.gmra.mxu1 %v14431_v35 }
0x17fb   : > { %8502 = vmatmul.f32.vlgmr.msra.gmra.mxu2 %v14431_v35  ;;  %8522 = vmatmul.f32.vlgmr.msra.gmra.mxu3 %v14431_v35 }
0x17fc   : > { %8644 = vmatpush.xpose.msra.mxu0 %v7926_v62  ;;  %8664 = vmatpush.xpose.msra.mxu1 %v7928_v63  ;;  %v11993_v63 = vld [vmem:[%s14815_s3 + $0xa] ss:$0 sm:$0xff] }
0x17fd   : > { %8684 = vmatpush.xpose.msra.mxu2 %v7930_v0  ;;  %8704 = vmatpush.xpose.msra.mxu3 %v7932_v1  ;;  %v11994_v0 = vld [vmem:[%s14815_s3 + $0xb] ss:$0 sm:$0xff]  ;;  %v11995_v1 = vld [vmem:[%s14815_s3 + $0xc] ss:$0 sm:$0xff] }
0x1800   : > { %8645 = vmatpush.xpose.msra.mxu0 %v7925_v54  ;;  %8665 = vmatpush.xpose.msra.mxu1 %v7927_v2  ;;  %v11996_v54 = vld [vmem:[%s14815_s3 + $0xd] ss:$0 sm:$0xff] }
0x1801   : > { %8685 = vmatpush.xpose.msra.mxu2 %v7929_v3  ;;  %8705 = vmatpush.xpose.msra.mxu3 %v7931_v8 }
0x1802   : > { %8566 = vmatmul.f32.vlgmr.msrb.gmra.mxu0 %v14431_v35  ;;  %8586 = vmatmul.f32.vlgmr.msrb.gmra.mxu1 %v14431_v35 }
0x1803   : > { %8606 = vmatmul.f32.vlgmr.msrb.gmra.mxu2 %v14431_v35  ;;  %8626 = vmatmul.f32.vlgmr.msrb.gmra.mxu3 %v14431_v35 }
0x180a   : > { %8646 = vmatmul.f32.vlgmr.msra.gmra.mxu0 %v14431_v35  ;;  %8666 = vmatmul.f32.vlgmr.msra.gmra.mxu1 %v14431_v35 }
0x180b   : > { %8686 = vmatmul.f32.vlgmr.msra.gmra.mxu2 %v14431_v35  ;;  %8706 = vmatmul.f32.vlgmr.msra.gmra.mxu3 %v14431_v35 }
0x185f   : > { %v8199_v4 = vpop.f32.mrf.mxu0  ;;  %v8219_v5 = vpop.f32.mrf.mxu1 }
0x1860   : > { %v8200_v21 = vadd.f32 %v11975_v14, %v8199_v4  ;;  %v8220_v22 = vadd.f32 %v11976_v15, %v8219_v5 }
0x1866   : > { %v8239_v6 = vpop.f32.mrf.mxu2  ;;  %v8259_v7 = vpop.f32.mrf.mxu3 }
0x1867   : > { %v8279_v9 = vpop.f32.mrf.mxu0  ;;  %v8299_v49 = vpop.f32.mrf.mxu1  ;;  %v8240_v40 = vadd.f32 %v11977_v27, %v8239_v6  ;;  %v8260_v43 = vadd.f32 %v11978_v28, %v8259_v7 }
0x1868   : > { %v8280_v44 = vadd.f32 %v11979_v32, %v8279_v9  ;;  %v8300_v45 = vadd.f32 %v11980_v33, %v8299_v49  ;;  %v11997_v49 = vld [vmem:[%s14815_s3 + $0xe] ss:$0 sm:$0xff] }
0x186e   : > { %v8319_v12 = vpop.f32.mrf.mxu2  ;;  %v8339_v13 = vpop.f32.mrf.mxu3 }
0x186f   : > { %v8383_v17 = vpop.f32.mrf.mxu0  ;;  %v8403_v18 = vpop.f32.mrf.mxu1  ;;  %v8320_v47 = vadd.f32 %v11981_v52, %v8319_v12  ;;  %v8340_v62 = vadd.f32 %v11982_v53, %v8339_v13 }
0x1870   : > { %v8384_v19 = vadd.f32 %v11983_v10, %v8383_v17  ;;  %v8404_v20 = vadd.f32 %v11984_v11, %v8403_v18  ;;  %v11998_v10 = vld [vmem:[%s14815_s3 + $0xf] ss:$0 sm:$0xff]  ;;  %v12248_v18 = vld [vmem:[%s14817_s4] sm:$0xff]  ;;  %s10865_s3 = scalar_lea.hbm %s13448_s29, %s11574_s1  ;;  %s1856_s4 = scalar_lea.vmem [#allocation44], %s11305_s23 }
0x1871   : > { %s10869_s7 = sshll.u32 %s10865_s3, 4  ;;  %s10870_s7 = int_to_ptr.hbm [resolvable:$true] %s10869_s7 }
0x1872   : > { %11509 = vmatpush.xpose.msk.msrb.mxu0 %vm2578_vm0, %v8384_v19  ;;  %11511 = vmatpush.xpose.msk.msrb.mxu1 %vm2578_vm0, %v8404_v20  ;;  %s13019_s8 = sshra.s32 %s10870_s7, 4  ;;  %s13020_s8 = int_to_ptr.hbm [resolvable:$true] %s13019_s8 }
0x1873   : > { %s13021_s9 = scalar_lea.hbm %s13020_s8, 8  ;;  %p13026_p13 = scmp.lt.s32.totalorder %s13020_s8, %s13448_s29 }
0x1874   : > { %p13022_p10 = scmp.ne.s32.totalorder %s13020_s8, %s13021_s9  ;;  %p13027_p0 = scmp.lt.s32.totalorder %s13025_s28, %s13021_s9 }
0x1875   : > { %11510 = vmatmul.msk.f32.vlgmr.msrb.gmra.mxu0 %vm2578_vm0, %v8200_v21  ;;  %11512 = vmatmul.msk.f32.vlgmr.msrb.gmra.mxu1 %vm2578_vm0, %v8220_v22 }
0x1876   : > { %v8423_v29 = vpop.f32.mrf.mxu2  ;;  %v8443_v31 = vpop.f32.mrf.mxu3  ;;  %p13023_p11 = pnand %p13022_p10, %p13488_p5  ;;  %p13028_p1 = por %p13027_p0, %p13026_p13 }
0x1877   : > { %v8424_v34 = vadd.f32 %v11985_v23, %v8423_v29  ;;  %v8444_v36 = vadd.f32 %v11986_v24, %v8443_v31  ;;  %v8463_v30 = vpop.f32.mrf.mxu0  ;;  %v8483_v37 = vpop.f32.mrf.mxu1 }
0x1878   : > { %v8464_v38 = vadd.f32 %v11987_v25, %v8463_v30  ;;  %v8484_v39 = vadd.f32 %v11988_v26, %v8483_v37  ;;  %p13024_p12 = pneg %p13023_p11 }
0x1879   : > { %11513 = vmatpush.xpose.msk.msrb.mxu2 %vm2578_vm0, %v8424_v34  ;;  %11515 = vmatpush.xpose.msk.msrb.mxu3 %vm2578_vm0, %v8444_v36 }
0x187a   : > { %11517 = vmatpush.xpose.msk.msra.mxu0 %vm2578_vm0, %v8464_v38  ;;  %11519 = vmatpush.xpose.msk.msra.mxu1 %vm2578_vm0, %v8484_v39  ;;  %p13029_p2 = pnand %p13028_p1, %p13024_p12 }
0x187c   : > { %11514 = vmatmul.msk.f32.vlgmr.msrb.gmra.mxu2 %vm2578_vm0, %v8240_v40  ;;  %11516 = vmatmul.msk.f32.vlgmr.msrb.gmra.mxu3 %vm2578_vm0, %v8260_v43 }
0x187d   : > { %11518 = vmatmul.msk.f32.vlgmr.msra.gmra.mxu0 %vm2578_vm0, %v8280_v44  ;;  %11520 = vmatmul.msk.f32.vlgmr.msra.gmra.mxu1 %vm2578_vm0, %v8300_v45 }
0x187e   : > { %v8503_v55 = vpop.f32.mrf.mxu2  ;;  %v8523_v56 = vpop.f32.mrf.mxu3 }
0x187f   : > { %v8504_v42 = vadd.f32 %v11989_v46, %v8503_v55  ;;  %v8524_v59 = vadd.f32 %v11990_v48, %v8523_v56  ;;  %v8567_v60 = vpop.f32.mrf.mxu0  ;;  %v8587_v61 = vpop.f32.mrf.mxu1 }
0x1880   : > { %v8568_v51 = vadd.f32 %v11991_v50, %v8567_v60  ;;  %v8588_v58 = vadd.f32 %v11992_v41, %v8587_v61 }
0x1881   : > { %11521 = vmatpush.xpose.msk.msra.mxu2 %vm2578_vm0, %v8504_v42  ;;  %11523 = vmatpush.xpose.msk.msra.mxu3 %vm2578_vm0, %v8524_v59 }
0x1882   : > { %9040 = vmatpush.msrb.mxu0 %v8568_v51  ;;  %9063 = vmatpush.msrb.mxu1 %v8588_v58 }
0x1884   : > { %11522 = vmatmul.msk.f32.vlgmr.msra.gmra.mxu2 %vm2578_vm0, %v8320_v47  ;;  %11524 = vmatmul.msk.f32.vlgmr.msra.gmra.mxu3 %vm2578_vm0, %v8340_v62 }
0x1886   : > { %v8607_v2 = vpop.f32.mrf.mxu2  ;;  %v8627_v3 = vpop.f32.mrf.mxu3 }
0x1887   : > { %v8608_v8 = vadd.f32 %v11993_v63, %v8607_v2  ;;  %v8628_v4 = vadd.f32 %v11994_v0, %v8627_v3  ;;  %v8647_v5 = vpop.f32.mrf.mxu0  ;;  %v8667_v6 = vpop.f32.mrf.mxu1 }
0x1888   : > { %v8648_v7 = vadd.f32 %v11995_v1, %v8647_v5  ;;  %v8668_v9 = vadd.f32 %v11996_v54, %v8667_v6 }
0x1889   : > { %9086 = vmatpush.msrb.mxu2 %v8608_v8  ;;  %9109 = vmatpush.msrb.mxu3 %v8628_v4 }
0x188a   : > { %9132 = vmatpush.msra.mxu0 %v8648_v7  ;;  %9155 = vmatpush.msra.mxu1 %v8668_v9 }
0x188e   : > { %v8687_v11 = vpop.f32.mrf.mxu2  ;;  %v8707_v12 = vpop.f32.mrf.mxu3 }
0x188f   : > { %v8688_v13 = vadd.f32 %v11997_v49, %v8687_v11  ;;  %v8708_v14 = vadd.f32 %v11998_v10, %v8707_v12 }
0x1891   : > { %9178 = vmatpush.msra.mxu2 %v8688_v13  ;;  %9201 = vmatpush.msra.mxu3 %v8708_v14 }
0x18f2   : > { %v8733_v15 = vpop.f32.mrf.mxu0  ;;  %v8759_v21 = vpop.f32.mrf.mxu1 }
0x18f3   : > { %v8918_v17 = vmul.f32 0.25, %v8733_v15  ;;  %v8919_v28 = vmul.f32 0.25, %v8759_v21 }
0x18f5   : > { %v8926_v19 = vadd.f32 %v12248_v18, %v8918_v17  ;;  %v8927_v34 = vadd.f32 %v12248_v18, %v8919_v28 }
0x18f7   : > { %v8934_v20 = vsel %vm2795_vm1, %v8926_v19, -inf  ;;  %v8937_v43 = vsel %vm2795_vm1, %v8927_v34, -inf }
0x18f8   : > { %8935 = vmax.xlane.f32.xlu2 %v8934_v20 }
0x18fa   : > { %v8837_v37 = vpop.f32.mrf.mxu0  ;;  %v8863_v38 = vpop.f32.mrf.mxu1 }
0x18fb   : > { %v8922_v44 = vmul.f32 0.25, %v8837_v37  ;;  %v8923_v45 = vmul.f32 0.25, %v8863_v38 }
0x18fd   : > { %v8931_v50 = vadd.f32 %v12248_v18, %v8923_v45  ;;  %v8930_v41 = vadd.f32 %v12248_v18, %v8922_v44 }
0x18ff   : > { %v8785_v22 = vpop.f32.mrf.mxu2  ;;  %v8811_v23 = vpop.f32.mrf.mxu3  ;;  %v8949_v52 = vsel %vm2795_vm1, %v8931_v50, -inf  ;;  %v8946_v53 = vsel %vm2795_vm1, %v8930_v41, -inf }
0x1900   : > { %v8920_v24 = vmul.f32 0.25, %v8785_v22  ;;  %v8921_v25 = vmul.f32 0.25, %v8811_v23 }
0x1902   : > { %v8929_v26 = vadd.f32 %v12248_v18, %v8921_v25  ;;  %v8928_v27 = vadd.f32 %v12248_v18, %v8920_v24 }
0x1904   : > { %v8943_v29 = vsel %vm2795_vm1, %v8929_v26, -inf  ;;  %v8940_v31 = vsel %vm2795_vm1, %v8928_v27, -inf }
0x1905   : > { %8944 = vmax.xlane.f32.xlu1 %v8943_v29  ;;  %8941 = vmax.xlane.f32.xlu0 %v8940_v31 }
0x1907   : > { %v8889_v32 = vpop.f32.mrf.mxu2  ;;  %v8915_v33 = vpop.f32.mrf.mxu3 }
0x1908   : > { %v8924_v36 = vmul.f32 0.25, %v8889_v32  ;;  %v8925_v30 = vmul.f32 0.25, %v8915_v33  ;;  %v7962_v32 = vld [vmem:[#allocation16 + $0x88] sm:$0xff] }
0x190a   : > { %v8932_v39 = vadd.f32 %v12248_v18, %v8924_v36  ;;  %v8933_v40 = vadd.f32 %v12248_v18, %v8925_v30 }
0x190c   : > { %v8952_v46 = vsel %vm2795_vm1, %v8932_v39, -inf  ;;  %v8955_v48 = vsel %vm2795_vm1, %v8933_v40, -inf }
0x190d   : > { %8953 = vmax.xlane.f32.xlu0 %v8952_v46  ;;  %8938 = vmax.xlane.f32.xlu1 %v8937_v43 }
0x190e   : > { %8956 = vmax.xlane.f32.xlu2 %v8955_v48 }
0x1915   : > { %8950 = vmax.xlane.f32.xlu1 %v8949_v52  ;;  %8947 = vmax.xlane.f32.xlu0 %v8946_v53 }
0x196b   : > { %v8936_v55 = vpop.xlane.xlu2 %8935 }
0x196c   : > { %v8958_v56 = vsub.f32 %v8926_v19, %v8936_v55 }
0x196e   : > { %v8966_v42 = vmul.f32 1.442695, %v8958_v56 }
0x1970   : > { %12177 = vpow2.f32 %v8966_v42 }
0x1976   : > { %v12178_v59 = vpop.eup %12177 }
0x1977   : > { %v8982_v60 = vsel %vm2795_vm1, %v12178_v59, 0.0 }
0x1978   : > { %v8945_v61 = vpop.xlane.xlu1 %8944  ;;  %v8942_v51 = vpop.xlane.xlu0 %8941  ;;  %8983 = vadd.xlane.f32.xlu1 %v8982_v60  ;;  %v7961_v60 = vld [vmem:[#allocation16 + $0x80] sm:$0xff] }
0x1979   : > { %v8961_v58 = vsub.f32 %v8929_v26, %v8945_v61  ;;  %v8960_v47 = vsub.f32 %v8928_v27, %v8942_v51  ;;  %v7966_v61 = vld [vmem:[#allocation16 + $0xa8] sm:$0xff]  ;;  %v7968_v51 = vld [vmem:[#allocation16 + $0xb8] sm:$0xff] }
0x197b   : > { %v8972_v62 = vmul.f32 1.442695, %v8961_v58  ;;  %v8970_v63 = vmul.f32 1.442695, %v8960_v47  ;;  %v7964_v58 = vld [vmem:[#allocation16 + $0x98] sm:$0xff]  ;;  %v7965_v47 = vld [vmem:[#allocation16 + $0xa0] sm:$0xff] }
0x197d   : > { %12179 = vpow2.f32 %v8972_v62  ;;  %v7967_v62 = vld [vmem:[#allocation16 + $0xb0] sm:$0xff] }
0x197e   : > { %12181 = vpow2.f32 %v8970_v63  ;;  %v7963_v63 = vld [vmem:[#allocation16 + $0x90] sm:$0xff] }
0x1980   : > { %v8954_v0 = vpop.xlane.xlu0 %8953  ;;  %v8939_v1 = vpop.xlane.xlu1 %8938 }
0x1981   : > { %v8964_v54 = vsub.f32 %v8932_v39, %v8954_v0  ;;  %v8959_v2 = vsub.f32 %v8927_v34, %v8939_v1  ;;  %v8957_v3 = vpop.xlane.xlu2 %8956  ;;  %v7974_v0 = vld [vmem:[#allocation16 + $0xe8] sm:$0xff]  ;;  %v7976_v1 = vld [vmem:[#allocation16 + $0xf8] sm:$0xff] }
0x1982   : > { %v8965_v8 = vsub.f32 %v8933_v40, %v8957_v3  ;;  %v7973_v3 = vld [vmem:[#allocation16 + $0xe0] sm:$0xff] }
0x1983   : > { %v12180_v4 = vpop.eup %12179  ;;  %v8978_v5 = vmul.f32 1.442695, %v8964_v54  ;;  %v8968_v6 = vmul.f32 1.442695, %v8959_v2  ;;  %v7970_v54 = vld [vmem:[#allocation16 + $0xc8] sm:$0xff]  ;;  %v7972_v2 = vld [vmem:[#allocation16 + $0xd8] sm:$0xff] }
0x1984   : > { %v12182_v7 = vpop.eup %12181  ;;  %v8980_v9 = vmul.f32 1.442695, %v8965_v8  ;;  %v8991_v49 = vsel %vm2795_vm1, %v12180_v4, 0.0  ;;  %v7975_v8 = vld [vmem:[#allocation16 + $0xf0] sm:$0xff] }
0x1985   : > { %12183 = vpow2.f32 %v8978_v5  ;;  %v8988_v10 = vsel %vm2795_vm1, %v12182_v7, 0.0  ;;  %8992 = vadd.xlane.f32.xlu0 %v8991_v49  ;;  %v7971_v5 = vld [vmem:[#allocation16 + $0xd0] sm:$0xff] }
0x1986   : > { %12185 = vpow2.f32 %v8968_v6  ;;  %8989 = vadd.xlane.f32.xlu2 %v8988_v10 }
0x1987   : > { %12187 = vpow2.f32 %v8980_v9 }
0x1988   : > { %v8951_v11 = vpop.xlane.xlu1 %8950  ;;  %v8948_v12 = vpop.xlane.xlu0 %8947 }
0x1989   : > { %v8963_v13 = vsub.f32 %v8931_v50, %v8951_v11  ;;  %v8962_v14 = vsub.f32 %v8930_v41, %v8948_v12 }
0x198b   : > { %v12184_v15 = vpop.eup %12183  ;;  %v8976_v17 = vmul.f32 1.442695, %v8963_v13  ;;  %v8974_v18 = vmul.f32 1.442695, %v8962_v14 }
0x198c   : > { %v12186_v19 = vpop.eup %12185  ;;  %v9000_v20 = vsel %vm2795_vm1, %v12184_v15, 0.0 }
0x198d   : > { %v12188_v21 = vpop.eup %12187  ;;  %12189 = vpow2.f32 %v8976_v17  ;;  %v8985_v22 = vsel %vm2795_vm1, %v12186_v19, 0.0 }
0x198e   : > { %12191 = vpow2.f32 %v8974_v18  ;;  %9001 = vadd.xlane.f32.xlu2 %v9000_v20  ;;  %v9003_v23 = vsel %vm2795_vm1, %v12188_v21, 0.0  ;;  %8986 = vadd.xlane.f32.xlu0 %v8985_v22 }
0x198f   : > { %9004 = vadd.xlane.f32.xlu1 %v9003_v23 }
0x1993   : > { %v12190_v24 = vpop.eup %12189 }
0x1994   : > { %v12192_v25 = vpop.eup %12191  ;;  %v8997_v26 = vsel %vm2795_vm1, %v12190_v24, 0.0 }
0x1995   : > { %v8994_v27 = vsel %vm2795_vm1, %v12192_v25, 0.0 }
0x1996   : > { %8998 = vadd.xlane.f32.xlu0 %v8997_v26  ;;  %8995 = vadd.xlane.f32.xlu2 %v8994_v27 }
0x19eb   : > { %v8984_v28 = vpop.xlane.xlu1 %8983 }
0x19ec   : > { %12193 = vrcp.f32 %v8984_v28  ;;  %v11999_v28 = vld [vmem:[#allocation17 + $0x1] ss:$0 sm:$0xff] }
0x19f2   : > { %v12194_v29 = vpop.eup %12193 }
0x19f3   : > { %v9014_v31 = vmul.f32 %v12194_v29, %v12178_v59 }
0x19f5   : > { %11525 = vmatmul.msk.f32.vlgmr.msrb.gmra.mxu0 %vm2795_vm1, %v9014_v31 }
0x19f6   : > { %9223 = vmatpush.msrb.mxu0 %v7962_v32 }
0x19f8   : > { %v8993_v33 = vpop.xlane.xlu0 %8992  ;;  %9224 = vmatpush.msrb.mxu0 %v7961_v60  ;;  %v7998_v60 = vld [vmem:[#allocation22 + $0xf0] sm:$0xff] }
0x19f9   : > { %v8990_v34 = vpop.xlane.xlu2 %8989  ;;  %12195 = vrcp.f32 %v8993_v33 }
0x19fa   : > { %12197 = vrcp.f32 %v8990_v34 }
0x19ff   : > { %v12196_v36 = vpop.eup %12195 }
0x1a00   : > { %v12198_v30 = vpop.eup %12197  ;;  %v9017_v37 = vmul.f32 %v12196_v36, %v12180_v4  ;;  %v7969_v4 = vld [vmem:[#allocation16 + $0xc0] sm:$0xff] }
0x1a01   : > { %v9016_v38 = vmul.f32 %v12198_v30, %v12182_v7  ;;  %v9002_v39 = vpop.xlane.xlu2 %9001  ;;  %v8987_v40 = vpop.xlane.xlu0 %8986 }
0x1a02   : > { %v9005_v43 = vpop.xlane.xlu1 %9004  ;;  %12199 = vrcp.f32 %v9002_v39  ;;  %11528 = vmatmul.msk.f32.vlgmr.msrb.gmra.mxu3 %vm2795_vm1, %v9017_v37  ;;  %v7987_v39 = vld [vmem:[#allocation22 + $0x98] sm:$0xff] }
0x1a03   : > { %12201 = vrcp.f32 %v9005_v43  ;;  %11527 = vmatmul.msk.f32.vlgmr.msrb.gmra.mxu2 %vm2795_vm1, %v9016_v38  ;;  %9292 = vmatpush.msrb.mxu3 %v7968_v51  ;;  %v7985_v38 = vld [vmem:[#allocation22 + $0x88] sm:$0xff]  ;;  %v7991_v43 = vld [vmem:[#allocation22 + $0xb8] sm:$0xff] }
0x1a04   : > { %12203 = vrcp.f32 %v8987_v40  ;;  %9269 = vmatpush.msrb.mxu2 %v7966_v61  ;;  %v7989_v40 = vld [vmem:[#allocation22 + $0xa8] sm:$0xff] }
0x1a05   : > { %9293 = vmatpush.msrb.mxu3 %v7967_v62 }
0x1a06   : > { %9270 = vmatpush.msrb.mxu2 %v7965_v47 }
0x1a08   : > { %v12200_v44 = vpop.eup %12199 }
0x1a09   : > { %v12202_v45 = vpop.eup %12201  ;;  %v9020_v46 = vmul.f32 %v12200_v44, %v12184_v15  ;;  %v8996_v48 = vpop.xlane.xlu2 %8995  ;;  %v7984_v44 = vld [vmem:[#allocation22 + $0x80] sm:$0xff] }
0x1a0a   : > { %v8999_v50 = vpop.xlane.xlu0 %8998  ;;  %v12204_v41 = vpop.eup %12203  ;;  %v9021_v52 = vmul.f32 %v12202_v45, %v12188_v21  ;;  %12205 = vrcp.f32 %v8996_v48  ;;  %v7986_v45 = vld [vmem:[#allocation22 + $0x90] sm:$0xff]  ;;  %v7993_v48 = vld [vmem:[#allocation22 + $0xc8] sm:$0xff] }
0x1a0b   : > { %v9015_v53 = vmul.f32 %v12204_v41, %v12186_v19  ;;  %12207 = vrcp.f32 %v8999_v50  ;;  %11531 = vmatmul.msk.f32.vlgmr.msra.gmra.mxu2 %vm2795_vm1, %v9020_v46  ;;  %v7988_v46 = vld [vmem:[#allocation22 + $0xa0] sm:$0xff]  ;;  %v7995_v50 = vld [vmem:[#allocation22 + $0xd8] sm:$0xff]  ;;  %v7997_v41 = vld [vmem:[#allocation22 + $0xe8] sm:$0xff] }
0x1a0c   : > { %11532 = vmatmul.msk.f32.vlgmr.msra.gmra.mxu3 %vm2795_vm1, %v9021_v52  ;;  %9361 = vmatpush.msra.mxu2 %v7974_v0  ;;  %v7999_v52 = vld [vmem:[#allocation22 + $0xf8] sm:$0xff] }
0x1a0d   : > { %11526 = vmatmul.msk.f32.vlgmr.msrb.gmra.mxu1 %vm2795_vm1, %v9015_v53  ;;  %9384 = vmatpush.msra.mxu3 %v7976_v1  ;;  %v12000_v1 = vld [vmem:[#allocation19 + $0x1] ss:$0 sm:$0xff] }
0x1a0e   : > { %9246 = vmatpush.msrb.mxu1 %v7964_v58  ;;  %9362 = vmatpush.msra.mxu2 %v7973_v3 }
0x1a0f   : > { %9385 = vmatpush.msra.mxu3 %v7975_v8 }
0x1a10   : > { %v12206_v55 = vpop.eup %12205  ;;  %9247 = vmatpush.msrb.mxu1 %v7963_v63 }
0x1a11   : > { %v12208_v56 = vpop.eup %12207  ;;  %v9018_v42 = vmul.f32 %v12206_v55, %v12192_v25  ;;  %v7992_v55 = vld [vmem:[#allocation22 + $0xc0] sm:$0xff] }
0x1a12   : > { %v9019_v59 = vmul.f32 %v12208_v56, %v12190_v24  ;;  %v7994_v56 = vld [vmem:[#allocation22 + $0xd0] sm:$0xff] }
0x1a13   : > { %11529 = vmatmul.msk.f32.vlgmr.msra.gmra.mxu0 %vm2795_vm1, %v9018_v42 }
0x1a14   : > { %9315 = vmatpush.msra.mxu0 %v7970_v54 }
0x1a15   : > { %11530 = vmatmul.msk.f32.vlgmr.msra.gmra.mxu1 %vm2795_vm1, %v9019_v59  ;;  %v7996_v59 = vld [vmem:[#allocation22 + $0xe0] sm:$0xff] }
0x1a16   : > { %9338 = vmatpush.msra.mxu1 %v7972_v2  ;;  %9316 = vmatpush.msra.mxu0 %v7969_v4  ;;  %v12001_v2 = vld [vmem:[#allocation20 + $0x1] ss:$0 sm:$0xff] }
0x1a18   : > { %9339 = vmatpush.msra.mxu1 %v7971_v5  ;;  %v8002_v5 = vld [vmem:[#allocation23 + $0x88] sm:$0xff] }
0x1a72   : > { %v9042_v6 = vpop.f32.mrf.mxu0 }
0x1a73   : > { %11533 = vmatmul.msk.f32.vlgmr.msrb.gmra.mxu0 %vm2578_vm0, %v9042_v6  ;;  %v8004_v6 = vld [vmem:[#allocation23 + $0x98] sm:$0xff] }
0x1a74   : > { %9468 = vmatpush.xpose.msrb.mxu0 %v7985_v38  ;;  %v8032_v38 = vld [vmem:[#allocation25 + $0xf0] sm:$0xff] }
0x1a78   : > { %9469 = vmatpush.xpose.msrb.mxu0 %v7984_v44 }
0x1a85   : > { %v9111_v7 = vpop.f32.mrf.mxu3 }
0x1a86   : > { %v9088_v9 = vpop.f32.mrf.mxu2  ;;  %11536 = vmatmul.msk.f32.vlgmr.msrb.gmra.mxu3 %vm2578_vm0, %v9111_v7  ;;  %v8006_v7 = vld [vmem:[#allocation23 + $0xa8] sm:$0xff] }
0x1a87   : > { %11535 = vmatmul.msk.f32.vlgmr.msrb.gmra.mxu2 %vm2578_vm0, %v9088_v9  ;;  %9528 = vmatpush.xpose.msrb.mxu3 %v7991_v43  ;;  %v8008_v9 = vld [vmem:[#allocation23 + $0xb8] sm:$0xff] }
0x1a88   : > { %9508 = vmatpush.xpose.msrb.mxu2 %v7989_v40 }
0x1a8a   : > { %v9065_v49 = vpop.f32.mrf.mxu1 }
0x1a8b   : > { %11534 = vmatmul.msk.f32.vlgmr.msrb.gmra.mxu1 %vm2578_vm0, %v9065_v49  ;;  %v8001_v49 = vld [vmem:[#allocation23 + $0x80] sm:$0xff] }
0x1a8c   : > { %9488 = vmatpush.xpose.msrb.mxu1 %v7987_v39  ;;  %9509 = vmatpush.xpose.msrb.mxu2 %v7988_v46 }
0x1a8e   : > { %v9180_v10 = vpop.f32.mrf.mxu2 }
0x1a8f   : > { %v9203_v11 = vpop.f32.mrf.mxu3  ;;  %11539 = vmatmul.msk.f32.vlgmr.msra.gmra.mxu2 %vm2578_vm0, %v9180_v10  ;;  %v8003_v10 = vld [vmem:[#allocation23 + $0x90] sm:$0xff] }
0x1a90   : > { %11540 = vmatmul.msk.f32.vlgmr.msra.gmra.mxu3 %vm2578_vm0, %v9203_v11  ;;  %v9134_v12 = vpop.f32.mrf.mxu0  ;;  %9489 = vmatpush.xpose.msrb.mxu1 %v7986_v45  ;;  %v8005_v11 = vld [vmem:[#allocation23 + $0xa0] sm:$0xff] }
0x1a91   : > { %11537 = vmatmul.msk.f32.vlgmr.msra.gmra.mxu0 %vm2578_vm0, %v9134_v12  ;;  %9588 = vmatpush.xpose.msra.mxu2 %v7997_v41  ;;  %v8007_v12 = vld [vmem:[#allocation23 + $0xb0] sm:$0xff] }
0x1a92   : > { %v9157_v13 = vpop.f32.mrf.mxu1  ;;  %9548 = vmatpush.xpose.msra.mxu0 %v7993_v48  ;;  %v12011_v48 = vld [vmem:[#allocation28 + $0x9] ss:$0 sm:$0xff] }
0x1a93   : > { %11538 = vmatmul.msk.f32.vlgmr.msra.gmra.mxu1 %vm2578_vm0, %v9157_v13  ;;  %v8010_v13 = vld [vmem:[#allocation23 + $0xc8] sm:$0xff] }
0x1a94   : > { %9568 = vmatpush.xpose.msra.mxu1 %v7995_v50 }
0x1a95   : > { %9589 = vmatpush.xpose.msra.mxu2 %v7996_v59 }
0x1a96   : > { %9549 = vmatpush.xpose.msra.mxu0 %v7992_v55 }
0x1a98   : > { %9569 = vmatpush.xpose.msra.mxu1 %v7994_v56 }
0x1af0   : > { %v9226_v14 = vpop.f32.mrf.mxu0 }
0x1b08   : > { %v9249_v15 = vpop.f32.mrf.mxu1 }
0x1b09   : > { %v9390_v17 = vadd.f32 %v9249_v15, %v9226_v14  ;;  %v9295_v19 = vpop.f32.mrf.mxu3  ;;  %v8012_v14 = vld [vmem:[#allocation23 + $0xd8] sm:$0xff]  ;;  %v8014_v15 = vld [vmem:[#allocation23 + $0xe8] sm:$0xff] }
0x1b0a   : > { %v9272_v18 = vpop.f32.mrf.mxu2 }
0x1b0b   : > { %v9391_v20 = vadd.f32 %v9390_v17, %v9272_v18  ;;  %v8016_v17 = vld [vmem:[#allocation23 + $0xf8] sm:$0xff]  ;;  %v8009_v18 = vld [vmem:[#allocation23 + $0xc0] sm:$0xff] }
0x1b0d   : > { %v9392_v21 = vadd.f32 %v9391_v20, %v9295_v19  ;;  %v8011_v19 = vld [vmem:[#allocation23 + $0xd0] sm:$0xff]  ;;  %v8013_v20 = vld [vmem:[#allocation23 + $0xe0] sm:$0xff] }
0x1b0e   : > { %v9318_v22 = vpop.f32.mrf.mxu0 }
0x1b0f   : > { %v9393_v23 = vadd.f32 %v9392_v21, %v9318_v22  ;;  %v8015_v21 = vld [vmem:[#allocation23 + $0xf0] sm:$0xff]  ;;  %v8019_v22 = vld [vmem:[#allocation25 + $0x88] sm:$0xff] }
0x1b10   : > { %v9341_v24 = vpop.f32.mrf.mxu1 }
0x1b11   : > { %v9394_v25 = vadd.f32 %v9393_v23, %v9341_v24  ;;  %v8021_v23 = vld [vmem:[#allocation25 + $0x98] sm:$0xff]  ;;  %v8023_v24 = vld [vmem:[#allocation25 + $0xa8] sm:$0xff] }
0x1b12   : > { %v9364_v26 = vpop.f32.mrf.mxu2 }
0x1b13   : > { %v9395_v27 = vadd.f32 %v9394_v25, %v9364_v26  ;;  %v9387_v29 = vpop.f32.mrf.mxu3  ;;  %v8025_v25 = vld [vmem:[#allocation25 + $0xb8] sm:$0xff]  ;;  %v8018_v26 = vld [vmem:[#allocation25 + $0x80] sm:$0xff] }
0x1b15   : > { %v9396_v31 = vadd.f32 %v9395_v27, %v9387_v29  ;;  %v8020_v27 = vld [vmem:[#allocation25 + $0x90] sm:$0xff] }
0x1b16   : > { %v8024_v29 = vld [vmem:[#allocation25 + $0xb0] sm:$0xff] }
0x1b17   : > { %v9400_v32 = vadd.f32 %v11999_v28, %v9396_v31  ;;  %v8022_v28 = vld [vmem:[#allocation25 + $0xa0] sm:$0xff]  ;;  %v8027_v31 = vld [vmem:[#allocation25 + $0xc8] sm:$0xff] }
0x1b19   : > { %v9401_v33 = vadd.f32 %v9400_v32, %v14431_v35  ;;  %v7990_v35 = vld [vmem:[#allocation22 + $0xb0] sm:$0xff]  ;;  %v8029_v32 = vld [vmem:[#allocation25 + $0xd8] sm:$0xff] }
0x1b1a   : > { %9529 = vmatpush.xpose.msrb.mxu3 %v7990_v35  ;;  %v12010_v35 = vld [vmem:[#allocation28 + $0x8] ss:$0 sm:$0xff] }
0x1b1b   : > { %9402 = vadd.xlane.f32.xlu1 %v9401_v33 }
0x1b1e   : > { %9608 = vmatpush.xpose.msra.mxu3 %v7999_v52  ;;  %v12002_v52 = vld [vmem:[#allocation26 + $0x8] ss:$0 sm:$0xff] }
0x1b22   : > { %9609 = vmatpush.xpose.msra.mxu3 %v7998_v60 }
0x1b8e   : > { %v9403_v34 = vpop.xlane.xlu1 %9402 }
0x1b8f   : > { %v9404_v36 = vmul.f32 %v9403_v34, %v14061_v16  ;;  %v8033_v34 = vld [vmem:[#allocation25 + $0xf8] sm:$0xff] }
0x1b91   : > { %v9405_v30 = vsub.f32 %v9401_v33, %v9404_v36  ;;  %v8031_v33 = vld [vmem:[#allocation25 + $0xe8] sm:$0xff]  ;;  %v8026_v36 = vld [vmem:[#allocation25 + $0xc0] sm:$0xff] }
0x1b93   : > { %v9406_v37 = vmul.f32 %v9405_v30, %v9405_v30 }
0x1b95   : > { %9407 = vadd.xlane.f32.xlu2 %v9406_v37  ;;  %v8030_v37 = vld [vmem:[#allocation25 + $0xe0] sm:$0xff] }
0x1c08   : > { %v9408_v53 = vpop.xlane.xlu2 %9407 }
0x1c09   : > { %v9409_v42 = vmul.f32 %v9408_v53, %v14061_v16  ;;  %v12003_v53 = vld [vmem:[#allocation26 + $0x9] ss:$0 sm:$0xff] }
0x1c0b   : > { %v9410_v61 = vadd.f32 1e-06, %v9409_v42 }
0x1c0d   : > { %12209 = vrsqrt.f32 %v9410_v61  ;;  %vm9417_vm11 = vweird.f32 %v9410_v61 }
0x1c13   : > { %v12210_v51 = vpop.eup %12209 }
0x1c14   : > { %v9412_v58 = vmul.f32 %v12210_v51, %v9410_v61  ;;  %vm9418_vm10 = vweird.f32 %v12210_v51  ;;  %v12012_v61 = vld [vmem:[#allocation28 + $0xa] ss:$0 sm:$0xff] }
0x1c15   : > { %vm9419_vm12 = vmor %vm9417_vm11, %vm9418_vm10 }
0x1c16   : > { %v9413_v47 = vmul.f32 %v12210_v51, %v9412_v58  ;;  %v12014_v58 = vld [vmem:[#allocation28 + $0xc] ss:$0 sm:$0xff] }
0x1c18   : > { %v9414_v62 = vmul.f32 0.5, %v9413_v47  ;;  %v12015_v47 = vld [vmem:[#allocation28 + $0xd] ss:$0 sm:$0xff] }
0x1c1a   : > { %v9415_v63 = vsub.f32 1.5, %v9414_v62  ;;  %v12004_v62 = vld [vmem:[#allocation26 + $0xa] ss:$0 sm:$0xff] }
0x1c1c   : > { %v9416_v0 = vmul.f32 %v12210_v51, %v9415_v63  ;;  %v12005_v63 = vld [vmem:[#allocation26 + $0xb] ss:$0 sm:$0xff] }
0x1c1e   : > { %v9420_v54 = vsel %vm9419_vm12, %v12210_v51, %v9416_v0  ;;  %v12013_v51 = vld [vmem:[#allocation28 + $0xb] ss:$0 sm:$0xff] }
0x1c1f   : > { %v9421_v3 = vmul.f32 %v9420_v54, %v9405_v30  ;;  %v8028_v30 = vld [vmem:[#allocation25 + $0xd0] sm:$0xff]  ;;  %v12006_v54 = vld [vmem:[#allocation26 + $0xc] ss:$0 sm:$0xff] }
0x1c21   : > { %v9425_v8 = vmul.f32 %v12000_v1, %v9421_v3 }
0x1c23   : > { %v14533_v4 = vadd.f32 %v12001_v2, %v9425_v8  ;;  %v12007_v2 = vld [vmem:[#allocation26 + $0xd] ss:$0 sm:$0xff] }
0x1c25   : > { %9470 = vmatmul.f32.vlgmr.msrb.gmra.mxu0 %v14533_v4  ;;  %9490 = vmatmul.f32.vlgmr.msrb.gmra.mxu1 %v14533_v4 }
0x1c26   : > { %9510 = vmatmul.f32.vlgmr.msrb.gmra.mxu2 %v14533_v4  ;;  %9530 = vmatmul.f32.vlgmr.msrb.gmra.mxu3 %v14533_v4 }
0x1c27   : > { %9652 = vmatpush.xpose.msrb.mxu0 %v8002_v5  ;;  %9672 = vmatpush.xpose.msrb.mxu1 %v8004_v6 }
0x1c28   : > { %9692 = vmatpush.xpose.msrb.mxu2 %v8006_v7  ;;  %9712 = vmatpush.xpose.msrb.mxu3 %v8008_v9 }
0x1c2b   : > { %9653 = vmatpush.xpose.msrb.mxu0 %v8001_v49  ;;  %9673 = vmatpush.xpose.msrb.mxu1 %v8003_v10 }
0x1c2c   : > { %9693 = vmatpush.xpose.msrb.mxu2 %v8005_v11  ;;  %9713 = vmatpush.xpose.msrb.mxu3 %v8007_v12 }
0x1c2d   : > { %9550 = vmatmul.f32.vlgmr.msra.gmra.mxu0 %v14533_v4  ;;  %9570 = vmatmul.f32.vlgmr.msra.gmra.mxu1 %v14533_v4 }
0x1c2e   : > { %9590 = vmatmul.f32.vlgmr.msra.gmra.mxu2 %v14533_v4  ;;  %9610 = vmatmul.f32.vlgmr.msra.gmra.mxu3 %v14533_v4 }
0x1c2f   : > { %9732 = vmatpush.xpose.msra.mxu0 %v8010_v13  ;;  %9752 = vmatpush.xpose.msra.mxu1 %v8012_v14  ;;  %v12016_v13 = vld [vmem:[#allocation28 + $0xe] ss:$0 sm:$0xff]  ;;  %v12017_v14 = vld [vmem:[#allocation28 + $0xf] ss:$0 sm:$0xff] }
0x1c30   : > { %9772 = vmatpush.xpose.msra.mxu2 %v8014_v15  ;;  %9792 = vmatpush.xpose.msra.mxu3 %v8016_v17  ;;  %v12018_v15 = vld [vmem:[#allocation29 + $0x8] ss:$0 sm:$0xff]  ;;  %v12019_v17 = vld [vmem:[#allocation29 + $0x9] ss:$0 sm:$0xff] }
0x1c33   : > { %9733 = vmatpush.xpose.msra.mxu0 %v8009_v18  ;;  %9753 = vmatpush.xpose.msra.mxu1 %v8011_v19  ;;  %v12008_v18 = vld [vmem:[#allocation26 + $0xe] ss:$0 sm:$0xff]  ;;  %v12009_v19 = vld [vmem:[#allocation26 + $0xf] ss:$0 sm:$0xff] }
0x1c34   : > { %9773 = vmatpush.xpose.msra.mxu2 %v8013_v20  ;;  %9793 = vmatpush.xpose.msra.mxu3 %v8015_v21 }
0x1c35   : > { %9654 = vmatmul.f32.vlgmr.msrb.gmra.mxu0 %v14353_v57  ;;  %9674 = vmatmul.f32.vlgmr.msrb.gmra.mxu1 %v14353_v57 }
0x1c36   : > { %9694 = vmatmul.f32.vlgmr.msrb.gmra.mxu2 %v14353_v57  ;;  %9714 = vmatmul.f32.vlgmr.msrb.gmra.mxu3 %v14353_v57 }
0x1c37   : > { %9836 = vmatpush.xpose.msrb.mxu0 %v8019_v22  ;;  %9856 = vmatpush.xpose.msrb.mxu1 %v8021_v23 }
0x1c38   : > { %9876 = vmatpush.xpose.msrb.mxu2 %v8023_v24  ;;  %9896 = vmatpush.xpose.msrb.mxu3 %v8025_v25 }
0x1c3b   : > { %9837 = vmatpush.xpose.msrb.mxu0 %v8018_v26  ;;  %9857 = vmatpush.xpose.msrb.mxu1 %v8020_v27 }
0x1c3c   : > { %9877 = vmatpush.xpose.msrb.mxu2 %v8022_v28  ;;  %9897 = vmatpush.xpose.msrb.mxu3 %v8024_v29 }
0x1c3d   : > { %9734 = vmatmul.f32.vlgmr.msra.gmra.mxu0 %v14353_v57  ;;  %9754 = vmatmul.f32.vlgmr.msra.gmra.mxu1 %v14353_v57 }
0x1c3e   : > { %9774 = vmatmul.f32.vlgmr.msra.gmra.mxu2 %v14353_v57  ;;  %9794 = vmatmul.f32.vlgmr.msra.gmra.mxu3 %v14353_v57 }
0x1c3f   : > { %9916 = vmatpush.xpose.msra.mxu0 %v8027_v31  ;;  %9936 = vmatpush.xpose.msra.mxu1 %v8029_v32  ;;  %v12020_v31 = vld [vmem:[#allocation29 + $0xa] ss:$0 sm:$0xff]  ;;  %v12021_v32 = vld [vmem:[#allocation29 + $0xb] ss:$0 sm:$0xff] }
0x1c40   : > { %9956 = vmatpush.xpose.msra.mxu2 %v8031_v33  ;;  %9976 = vmatpush.xpose.msra.mxu3 %v8033_v34  ;;  %v12022_v33 = vld [vmem:[#allocation29 + $0xc] ss:$0 sm:$0xff]  ;;  %v12023_v34 = vld [vmem:[#allocation29 + $0xd] ss:$0 sm:$0xff] }
0x1c43   : > { %9917 = vmatpush.xpose.msra.mxu0 %v8026_v36  ;;  %9937 = vmatpush.xpose.msra.mxu1 %v8028_v30 }
0x1c44   : > { %9957 = vmatpush.xpose.msra.mxu2 %v8030_v37  ;;  %9977 = vmatpush.xpose.msra.mxu3 %v8032_v38 }
0x1c45   : > { %9838 = vmatmul.f32.vlgmr.msrb.gmra.mxu0 %v14353_v57  ;;  %9858 = vmatmul.f32.vlgmr.msrb.gmra.mxu1 %v14353_v57 }
0x1c46   : > { %9878 = vmatmul.f32.vlgmr.msrb.gmra.mxu2 %v14353_v57  ;;  %9898 = vmatmul.f32.vlgmr.msrb.gmra.mxu3 %v14353_v57 }
0x1c4d   : > { %9918 = vmatmul.f32.vlgmr.msra.gmra.mxu0 %v14353_v57  ;;  %9938 = vmatmul.f32.vlgmr.msra.gmra.mxu1 %v14353_v57 }
0x1c4e   : > { %9958 = vmatmul.f32.vlgmr.msra.gmra.mxu2 %v14353_v57  ;;  %9978 = vmatmul.f32.vlgmr.msra.gmra.mxu3 %v14353_v57 }
0x1ca2   : > { %v9471_v39 = vpop.f32.mrf.mxu0  ;;  %v9491_v40 = vpop.f32.mrf.mxu1 }
0x1ca3   : > { %v9472_v57 = vadd.f32 %v12002_v52, %v9471_v39  ;;  %v9492_v60 = vadd.f32 %v12003_v53, %v9491_v40 }
0x1ca9   : > { %v9511_v43 = vpop.f32.mrf.mxu2  ;;  %v9531_v44 = vpop.f32.mrf.mxu3 }
0x1caa   : > { %v9551_v45 = vpop.f32.mrf.mxu0  ;;  %v9571_v46 = vpop.f32.mrf.mxu1  ;;  %v9512_v49 = vadd.f32 %v12004_v62, %v9511_v43  ;;  %v9532_v10 = vadd.f32 %v12005_v63, %v9531_v44 }
0x1cab   : > { %v9552_v11 = vadd.f32 %v12006_v54, %v9551_v45  ;;  %v9572_v12 = vadd.f32 %v12007_v2, %v9571_v46  ;;  %v12024_v45 = vld [vmem:[#allocation29 + $0xe] ss:$0 sm:$0xff]  ;;  %v12025_v46 = vld [vmem:[#allocation29 + $0xf] ss:$0 sm:$0xff] }
0x1cb1   : > { %v9591_v50 = vpop.f32.mrf.mxu2  ;;  %v9611_v41 = vpop.f32.mrf.mxu3 }
0x1cb2   : > { %v9655_v55 = vpop.f32.mrf.mxu0  ;;  %v9675_v56 = vpop.f32.mrf.mxu1  ;;  %v9592_v28 = vadd.f32 %v12008_v18, %v9591_v50  ;;  %v9612_v29 = vadd.f32 %v12009_v19, %v9611_v41 }
0x1cb3   : > { %v9656_v42 = vadd.f32 %v12010_v35, %v9655_v55  ;;  %v9676_v59 = vadd.f32 %v12011_v48, %v9675_v56 }
0x1cb5   : > { %11541 = vmatpush.xpose.msk.msrb.mxu0 %vm2578_vm0, %v9656_v42  ;;  %11543 = vmatpush.xpose.msk.msrb.mxu1 %vm2578_vm0, %v9676_v59 }
0x1cb8   : > { %11542 = vmatmul.msk.f32.vlgmr.msrb.gmra.mxu0 %vm2578_vm0, %v9472_v57  ;;  %11544 = vmatmul.msk.f32.vlgmr.msrb.gmra.mxu1 %vm2578_vm0, %v9492_v60 }
0x1cb9   : > { %v9695_v0 = vpop.f32.mrf.mxu2  ;;  %v9715_v1 = vpop.f32.mrf.mxu3 }
0x1cba   : > { %v9696_v3 = vadd.f32 %v12012_v61, %v9695_v0  ;;  %v9716_v8 = vadd.f32 %v12013_v51, %v9715_v1  ;;  %v9735_v5 = vpop.f32.mrf.mxu0  ;;  %v9755_v6 = vpop.f32.mrf.mxu1 }
0x1cbb   : > { %v9736_v7 = vadd.f32 %v12014_v58, %v9735_v5  ;;  %v9756_v9 = vadd.f32 %v12015_v47, %v9755_v6 }
0x1cbc   : > { %11545 = vmatpush.xpose.msk.msrb.mxu2 %vm2578_vm0, %v9696_v3  ;;  %11547 = vmatpush.xpose.msk.msrb.mxu3 %vm2578_vm0, %v9716_v8 }
0x1cbd   : > { %11549 = vmatpush.xpose.msk.msra.mxu0 %vm2578_vm0, %v9736_v7  ;;  %11551 = vmatpush.xpose.msk.msra.mxu1 %vm2578_vm0, %v9756_v9 }
0x1cbf   : > { %11546 = vmatmul.msk.f32.vlgmr.msrb.gmra.mxu2 %vm2578_vm0, %v9512_v49  ;;  %11548 = vmatmul.msk.f32.vlgmr.msrb.gmra.mxu3 %vm2578_vm0, %v9532_v10 }
0x1cc0   : > { %11550 = vmatmul.msk.f32.vlgmr.msra.gmra.mxu0 %vm2578_vm0, %v9552_v11  ;;  %11552 = vmatmul.msk.f32.vlgmr.msra.gmra.mxu1 %vm2578_vm0, %v9572_v12 }
0x1cc1   : > { %v9775_v20 = vpop.f32.mrf.mxu2  ;;  %v9795_v21 = vpop.f32.mrf.mxu3 }
0x1cc2   : > { %v9776_v22 = vadd.f32 %v12016_v13, %v9775_v20  ;;  %v9796_v23 = vadd.f32 %v12017_v14, %v9795_v21  ;;  %v9839_v24 = vpop.f32.mrf.mxu0  ;;  %v9859_v25 = vpop.f32.mrf.mxu1 }
0x1cc3   : > { %v9840_v26 = vadd.f32 %v12018_v15, %v9839_v24  ;;  %v9860_v27 = vadd.f32 %v12019_v17, %v9859_v25 }
0x1cc4   : > { %11553 = vmatpush.xpose.msk.msra.mxu2 %vm2578_vm0, %v9776_v22  ;;  %11555 = vmatpush.xpose.msk.msra.mxu3 %vm2578_vm0, %v9796_v23 }
0x1cc5   : > { %10304 = vmatpush.msrb.mxu0 %v9840_v26  ;;  %10327 = vmatpush.msrb.mxu1 %v9860_v27 }
0x1cc7   : > { %11554 = vmatmul.msk.f32.vlgmr.msra.gmra.mxu2 %vm2578_vm0, %v9592_v28  ;;  %11556 = vmatmul.msk.f32.vlgmr.msra.gmra.mxu3 %vm2578_vm0, %v9612_v29 }
0x1cc9   : > { %v9879_v36 = vpop.f32.mrf.mxu2  ;;  %v9899_v30 = vpop.f32.mrf.mxu3 }
0x1cca   : > { %v9880_v37 = vadd.f32 %v12020_v31, %v9879_v36  ;;  %v9900_v38 = vadd.f32 %v12021_v32, %v9899_v30  ;;  %v9919_v39 = vpop.f32.mrf.mxu0  ;;  %v9939_v40 = vpop.f32.mrf.mxu1 }
0x1ccb   : > { %v9920_v43 = vadd.f32 %v12022_v33, %v9919_v39  ;;  %v9940_v44 = vadd.f32 %v12023_v34, %v9939_v40 }
0x1ccc   : > { %10350 = vmatpush.msrb.mxu2 %v9880_v37  ;;  %10373 = vmatpush.msrb.mxu3 %v9900_v38 }
0x1ccd   : > { %10396 = vmatpush.msra.mxu0 %v9920_v43  ;;  %10419 = vmatpush.msra.mxu1 %v9940_v44 }
0x1cd1   : > { %v9959_v35 = vpop.f32.mrf.mxu2  ;;  %v9979_v48 = vpop.f32.mrf.mxu3 }
0x1cd2   : > { %v9960_v50 = vadd.f32 %v12024_v45, %v9959_v35  ;;  %v9980_v41 = vadd.f32 %v12025_v46, %v9979_v48 }
0x1cd4   : > { %10442 = vmatpush.msra.mxu2 %v9960_v50  ;;  %10465 = vmatpush.msra.mxu3 %v9980_v41 }
0x1d35   : > { %v10005_v52 = vpop.f32.mrf.mxu0  ;;  %v10031_v60 = vpop.f32.mrf.mxu1 }
0x1d36   : > { %v10190_v53 = vmul.f32 0.25, %v10005_v52  ;;  %v10191_v58 = vmul.f32 0.25, %v10031_v60 }
0x1d38   : > { %v10198_v55 = vsel %vm2795_vm1, %v10190_v53, -inf  ;;  %v10201_v54 = vsel %vm2795_vm1, %v10191_v58, -inf }
0x1d39   : > { %10199 = vmax.xlane.f32.xlu2 %v10198_v55 }
0x1d3d   : > { %v10109_v3 = vpop.f32.mrf.mxu0  ;;  %v10135_v8 = vpop.f32.mrf.mxu1 }
0x1d3e   : > { %v10194_v5 = vmul.f32 0.25, %v10109_v3  ;;  %v10195_v6 = vmul.f32 0.25, %v10135_v8 }
0x1d40   : > { %v10213_v7 = vsel %vm2795_vm1, %v10195_v6, -inf  ;;  %v10210_v9 = vsel %vm2795_vm1, %v10194_v5, -inf }
0x1d42   : > { %v10057_v56 = vpop.f32.mrf.mxu2  ;;  %v10083_v42 = vpop.f32.mrf.mxu3 }
0x1d43   : > { %v10192_v59 = vmul.f32 0.25, %v10057_v56  ;;  %v10193_v57 = vmul.f32 0.25, %v10083_v42 }
0x1d45   : > { %v10207_v61 = vsel %vm2795_vm1, %v10193_v57, -inf  ;;  %v10204_v51 = vsel %vm2795_vm1, %v10192_v59, -inf }
0x1d46   : > { %10208 = vmax.xlane.f32.xlu1 %v10207_v61  ;;  %10205 = vmax.xlane.f32.xlu0 %v10204_v51 }
0x1d4a   : > { %v10161_v47 = vpop.f32.mrf.mxu2  ;;  %v10187_v62 = vpop.f32.mrf.mxu3 }
0x1d4b   : > { %v10196_v63 = vmul.f32 0.25, %v10161_v47  ;;  %v10197_v0 = vmul.f32 0.25, %v10187_v62 }
0x1d4d   : > { %v10216_v1 = vsel %vm2795_vm1, %v10196_v63, -inf  ;;  %v10219_v2 = vsel %vm2795_vm1, %v10197_v0, -inf }
0x1d4e   : > { %10217 = vmax.xlane.f32.xlu0 %v10216_v1  ;;  %10202 = vmax.xlane.f32.xlu1 %v10201_v54 }
0x1d4f   : > { %10220 = vmax.xlane.f32.xlu2 %v10219_v2 }
0x1d56   : > { %10214 = vmax.xlane.f32.xlu1 %v10213_v7  ;;  %10211 = vmax.xlane.f32.xlu0 %v10210_v9 }
0x1dac   : > { %v10200_v49 = vpop.xlane.xlu2 %10199 }
0x1dad   : > { %v10222_v10 = vsub.f32 %v10190_v53, %v10200_v49 }
0x1daf   : > { %v10230_v11 = vmul.f32 1.442695, %v10222_v10 }
0x1db1   : > { %12211 = vpow2.f32 %v10230_v11 }
0x1db7   : > { %v12212_v12 = vpop.eup %12211 }
0x1db8   : > { %v10246_v13 = vsel %vm2795_vm1, %v12212_v12, 0.0 }
0x1db9   : > { %v10209_v14 = vpop.xlane.xlu1 %10208  ;;  %v10206_v15 = vpop.xlane.xlu0 %10205  ;;  %10247 = vadd.xlane.f32.xlu1 %v10246_v13  ;;  %v8067_v13 = vld [vmem:[#allocation31 + $0xa8] sm:$0xff] }
0x1dba   : > { %v10225_v17 = vsub.f32 %v10193_v57, %v10209_v14  ;;  %v10224_v18 = vsub.f32 %v10192_v59, %v10206_v15  ;;  %v8063_v59 = vld [vmem:[#allocation31 + $0x88] sm:$0xff]  ;;  %v8069_v14 = vld [vmem:[#allocation31 + $0xb8] sm:$0xff] }
0x1dbb   : > { %v8065_v15 = vld [vmem:[#allocation31 + $0x98] sm:$0xff] }
0x1dbc   : > { %v10236_v19 = vmul.f32 1.442695, %v10225_v17  ;;  %v10234_v20 = vmul.f32 1.442695, %v10224_v18  ;;  %v8066_v17 = vld [vmem:[#allocation31 + $0xa0] sm:$0xff]  ;;  %v8068_v18 = vld [vmem:[#allocation31 + $0xb0] sm:$0xff] }
0x1dbe   : > { %12213 = vpow2.f32 %v10236_v19  ;;  %v8064_v19 = vld [vmem:[#allocation31 + $0x90] sm:$0xff] }
0x1dbf   : > { %12215 = vpow2.f32 %v10234_v20  ;;  %v8075_v20 = vld [vmem:[#allocation31 + $0xe8] sm:$0xff] }
0x1dc1   : > { %v10218_v21 = vpop.xlane.xlu0 %10217  ;;  %v10203_v22 = vpop.xlane.xlu1 %10202 }
0x1dc2   : > { %v10228_v23 = vsub.f32 %v10196_v63, %v10218_v21  ;;  %v10223_v24 = vsub.f32 %v10191_v58, %v10203_v22  ;;  %v10221_v25 = vpop.xlane.xlu2 %10220  ;;  %v8077_v21 = vld [vmem:[#allocation31 + $0xf8] sm:$0xff]  ;;  %v8071_v22 = vld [vmem:[#allocation31 + $0xc8] sm:$0xff] }
0x1dc3   : > { %v10229_v26 = vsub.f32 %v10197_v0, %v10221_v25  ;;  %v8076_v25 = vld [vmem:[#allocation31 + $0xf0] sm:$0xff] }
0x1dc4   : > { %v12214_v27 = vpop.eup %12213  ;;  %v10242_v28 = vmul.f32 1.442695, %v10228_v23  ;;  %v10232_v29 = vmul.f32 1.442695, %v10223_v24  ;;  %v8073_v23 = vld [vmem:[#allocation31 + $0xd8] sm:$0xff]  ;;  %v8074_v24 = vld [vmem:[#allocation31 + $0xe0] sm:$0xff] }
0x1dc5   : > { %v12216_v31 = vpop.eup %12215  ;;  %v10244_v32 = vmul.f32 1.442695, %v10229_v26  ;;  %v10255_v33 = vsel %vm2795_vm1, %v12214_v27, 0.0  ;;  %v8070_v26 = vld [vmem:[#allocation31 + $0xc0] sm:$0xff] }
0x1dc6   : > { %12217 = vpow2.f32 %v10242_v28  ;;  %v10252_v34 = vsel %vm2795_vm1, %v12216_v31, 0.0  ;;  %10256 = vadd.xlane.f32.xlu0 %v10255_v33 }
0x1dc7   : > { %12219 = vpow2.f32 %v10232_v29  ;;  %10253 = vadd.xlane.f32.xlu2 %v10252_v34 }
0x1dc8   : > { %12221 = vpow2.f32 %v10244_v32 }
0x1dc9   : > { %v10215_v36 = vpop.xlane.xlu1 %10214  ;;  %v10212_v30 = vpop.xlane.xlu0 %10211 }
0x1dca   : > { %v10227_v37 = vsub.f32 %v10195_v6, %v10215_v36  ;;  %v10226_v38 = vsub.f32 %v10194_v5, %v10212_v30 }
0x1dcc   : > { %v12218_v39 = vpop.eup %12217  ;;  %v10240_v40 = vmul.f32 1.442695, %v10227_v37  ;;  %v10238_v43 = vmul.f32 1.442695, %v10226_v38 }
0x1dcd   : > { %v12220_v44 = vpop.eup %12219  ;;  %v10264_v45 = vsel %vm2795_vm1, %v12218_v39, 0.0 }
0x1dce   : > { %v12222_v46 = vpop.eup %12221  ;;  %12223 = vpow2.f32 %v10240_v40  ;;  %v10249_v35 = vsel %vm2795_vm1, %v12220_v44, 0.0 }
0x1dcf   : > { %12225 = vpow2.f32 %v10238_v43  ;;  %10265 = vadd.xlane.f32.xlu2 %v10264_v45  ;;  %v10267_v48 = vsel %vm2795_vm1, %v12222_v46, 0.0  ;;  %10250 = vadd.xlane.f32.xlu0 %v10249_v35 }
0x1dd0   : > { %10268 = vadd.xlane.f32.xlu1 %v10267_v48 }
0x1dd4   : > { %v12224_v50 = vpop.eup %12223 }
0x1dd5   : > { %v12226_v41 = vpop.eup %12225  ;;  %v10261_v52 = vsel %vm2795_vm1, %v12224_v50, 0.0 }
0x1dd6   : > { %v10258_v53 = vsel %vm2795_vm1, %v12226_v41, 0.0 }
0x1dd7   : > { %10262 = vadd.xlane.f32.xlu0 %v10261_v52  ;;  %10259 = vadd.xlane.f32.xlu2 %v10258_v53  ;;  %v12026_v53 = vld [vmem:[#allocation32 + $0x1] ss:$0 sm:$0xff] }
0x1e2c   : > { %v10248_v55 = vpop.xlane.xlu1 %10247 }
0x1e2d   : > { %12227 = vrcp.f32 %v10248_v55 }
0x1e33   : > { %v12228_v56 = vpop.eup %12227 }
0x1e34   : > { %v10278_v42 = vmul.f32 %v12228_v56, %v12212_v12  ;;  %v8062_v12 = vld [vmem:[#allocation31 + $0x80] sm:$0xff] }
0x1e36   : > { %11557 = vmatmul.msk.f32.vlgmr.msrb.gmra.mxu0 %vm2795_vm1, %v10278_v42 }
0x1e37   : > { %10487 = vmatpush.msrb.mxu0 %v8063_v59 }
0x1e39   : > { %v10257_v57 = vpop.xlane.xlu0 %10256  ;;  %10488 = vmatpush.msrb.mxu0 %v8062_v12  ;;  %v8091_v12 = vld [vmem:[#allocation37 + $0x130] sm:$0xff] }
0x1e3a   : > { %v10254_v60 = vpop.xlane.xlu2 %10253  ;;  %12229 = vrcp.f32 %v10257_v57  ;;  %v8100_v57 = vld [vmem:[#allocation37 + $0x178] sm:$0xff] }
0x1e3b   : > { %12231 = vrcp.f32 %v10254_v60  ;;  %v8116_v60 = vld [vmem:[#allocation37 + $0x1f8] sm:$0xff] }
0x1e40   : > { %v12230_v61 = vpop.eup %12229 }
0x1e41   : > { %v12232_v51 = vpop.eup %12231  ;;  %v10281_v58 = vmul.f32 %v12230_v61, %v12214_v27  ;;  %v8072_v27 = vld [vmem:[#allocation31 + $0xd0] sm:$0xff] }
0x1e42   : > { %v10280_v47 = vmul.f32 %v12232_v51, %v12216_v31  ;;  %v10266_v62 = vpop.xlane.xlu2 %10265  ;;  %v10251_v63 = vpop.xlane.xlu0 %10250  ;;  %v8099_v61 = vld [vmem:[#allocation37 + $0x170] sm:$0xff] }
0x1e43   : > { %v10269_v0 = vpop.xlane.xlu1 %10268  ;;  %12233 = vrcp.f32 %v10266_v62  ;;  %11560 = vmatmul.msk.f32.vlgmr.msrb.gmra.mxu3 %vm2795_vm1, %v10281_v58  ;;  %v8115_v51 = vld [vmem:[#allocation37 + $0x1f0] sm:$0xff]  ;;  %v8098_v58 = vld [vmem:[#allocation37 + $0x168] sm:$0xff]  ;;  %v8097_v62 = vld [vmem:[#allocation37 + $0x160] sm:$0xff] }
0x1e44   : > { %12235 = vrcp.f32 %v10269_v0  ;;  %11559 = vmatmul.msk.f32.vlgmr.msrb.gmra.mxu2 %vm2795_vm1, %v10280_v47  ;;  %10556 = vmatpush.msrb.mxu3 %v8069_v14  ;;  %v8114_v47 = vld [vmem:[#allocation37 + $0x1e8] sm:$0xff]  ;;  %v8096_v0 = vld [vmem:[#allocation37 + $0x158] sm:$0xff] }
0x1e45   : > { %12237 = vrcp.f32 %v10251_v63  ;;  %10533 = vmatpush.msrb.mxu2 %v8067_v13  ;;  %v8113_v63 = vld [vmem:[#allocation37 + $0x1e0] sm:$0xff]  ;;  %v8107_v13 = vld [vmem:[#allocation37 + $0x1b0] sm:$0xff]  ;;  %v8090_v14 = vld [vmem:[#allocation37 + $0x128] sm:$0xff] }
0x1e46   : > { %10557 = vmatpush.msrb.mxu3 %v8068_v18  ;;  %v8105_v18 = vld [vmem:[#allocation37 + $0x1a0] sm:$0xff] }
0x1e47   : > { %10534 = vmatpush.msrb.mxu2 %v8066_v17  ;;  %v8089_v17 = vld [vmem:[#allocation37 + $0x120] sm:$0xff] }
0x1e49   : > { %v12234_v1 = vpop.eup %12233 }
0x1e4a   : > { %v12236_v54 = vpop.eup %12235  ;;  %v10284_v2 = vmul.f32 %v12234_v1, %v12218_v39  ;;  %v10260_v3 = vpop.xlane.xlu2 %10259  ;;  %v8112_v1 = vld [vmem:[#allocation37 + $0x1d8] sm:$0xff] }
0x1e4b   : > { %v10263_v8 = vpop.xlane.xlu0 %10262  ;;  %v12238_v5 = vpop.eup %12237  ;;  %v10285_v6 = vmul.f32 %v12236_v54, %v12222_v46  ;;  %12239 = vrcp.f32 %v10260_v3  ;;  %v8111_v54 = vld [vmem:[#allocation37 + $0x1d0] sm:$0xff]  ;;  %v8110_v3 = vld [vmem:[#allocation37 + $0x1c8] sm:$0xff] }
0x1e4c   : > { %v10279_v7 = vmul.f32 %v12238_v5, %v12220_v44  ;;  %12241 = vrcp.f32 %v10263_v8  ;;  %11563 = vmatmul.msk.f32.vlgmr.msra.gmra.mxu2 %vm2795_vm1, %v10284_v2  ;;  %v8094_v2 = vld [vmem:[#allocation37 + $0x148] sm:$0xff] }
0x1e4d   : > { %11564 = vmatmul.msk.f32.vlgmr.msra.gmra.mxu3 %vm2795_vm1, %v10285_v6  ;;  %10625 = vmatpush.msra.mxu2 %v8075_v20  ;;  %v8093_v6 = vld [vmem:[#allocation37 + $0x140] sm:$0xff]  ;;  %v8104_v20 = vld [vmem:[#allocation37 + $0x198] sm:$0xff] }
0x1e4e   : > { %11558 = vmatmul.msk.f32.vlgmr.msrb.gmra.mxu1 %vm2795_vm1, %v10279_v7  ;;  %10648 = vmatpush.msra.mxu3 %v8077_v21  ;;  %v8109_v7 = vld [vmem:[#allocation37 + $0x1c0] sm:$0xff]  ;;  %v8087_v21 = vld [vmem:[#allocation37 + $0x110] sm:$0xff] }
0x1e4f   : > { %10510 = vmatpush.msrb.mxu1 %v8065_v15  ;;  %10626 = vmatpush.msra.mxu2 %v8074_v24  ;;  %v8106_v15 = vld [vmem:[#allocation37 + $0x1a8] sm:$0xff] }
0x1e50   : > { %10649 = vmatpush.msra.mxu3 %v8076_v25  ;;  %v8102_v24 = vld [vmem:[#allocation37 + $0x188] sm:$0xff]  ;;  %v8085_v25 = vld [vmem:[#allocation37 + $0x100] sm:$0xff] }
0x1e51   : > { %v12240_v9 = vpop.eup %12239  ;;  %10511 = vmatpush.msrb.mxu1 %v8064_v19  ;;  %v8088_v19 = vld [vmem:[#allocation37 + $0x118] sm:$0xff] }
0x1e52   : > { %v12242_v49 = vpop.eup %12241  ;;  %v10282_v10 = vmul.f32 %v12240_v9, %v12226_v41 }
0x1e53   : > { %v10283_v11 = vmul.f32 %v12242_v49, %v12224_v50 }
0x1e54   : > { %11561 = vmatmul.msk.f32.vlgmr.msra.gmra.mxu0 %vm2795_vm1, %v10282_v10  ;;  %v8092_v10 = vld [vmem:[#allocation37 + $0x138] sm:$0xff] }
0x1e55   : > { %10579 = vmatpush.msra.mxu0 %v8071_v22  ;;  %v8103_v22 = vld [vmem:[#allocation37 + $0x190] sm:$0xff] }
0x1e56   : > { %11562 = vmatmul.msk.f32.vlgmr.msra.gmra.mxu1 %vm2795_vm1, %v10283_v11  ;;  %v8108_v11 = vld [vmem:[#allocation37 + $0x1b8] sm:$0xff] }
0x1e57   : > { %10602 = vmatpush.msra.mxu1 %v8073_v23  ;;  %10580 = vmatpush.msra.mxu0 %v8070_v26  ;;  %v8086_v23 = vld [vmem:[#allocation37 + $0x108] sm:$0xff]  ;;  %v8101_v26 = vld [vmem:[#allocation37 + $0x180] sm:$0xff] }
0x1e59   : > { %10603 = vmatpush.msra.mxu1 %v8072_v27  ;;  %v8150_v27 = vld [vmem:[#allocation38 + $0x1f0] sm:$0xff] }
0x1eb3   : > { %v10306_v28 = vpop.f32.mrf.mxu0 }
0x1eb4   : > { %11565 = vmatmul.msk.f32.vlgmr.msrb.gmra.mxu0 %vm2578_vm0, %v10306_v28  ;;  %v8151_v28 = vld [vmem:[#allocation38 + $0x1f8] sm:$0xff] }
0x1eb5   : > { %10699 = vmatpush.xpose.msrb.mxu0 %v8100_v57  ;;  %v8136_v57 = vld [vmem:[#allocation38 + $0x180] sm:$0xff] }
0x1eb9   : > { %10700 = vmatpush.xpose.msrb.mxu0 %v8099_v61 }
0x1ebd   : > { %10701 = vmatpush.xpose.msrb.mxu0 %v8098_v58  ;;  %v8134_v58 = vld [vmem:[#allocation38 + $0x170] sm:$0xff] }
0x1ec1   : > { %10702 = vmatpush.xpose.msrb.mxu0 %v8097_v62  ;;  %v8132_v62 = vld [vmem:[#allocation38 + $0x160] sm:$0xff] }
0x1ec5   : > { %10703 = vmatpush.xpose.msrb.mxu0 %v8096_v0  ;;  %v8130_v0 = vld [vmem:[#allocation38 + $0x150] sm:$0xff] }
0x1ec6   : > { %v10375_v29 = vpop.f32.mrf.mxu3 }
0x1ec7   : > { %v10352_v31 = vpop.f32.mrf.mxu2  ;;  %11568 = vmatmul.msk.f32.vlgmr.msrb.gmra.mxu3 %vm2578_vm0, %v10375_v29  ;;  %v8148_v29 = vld [vmem:[#allocation38 + $0x1e0] sm:$0xff] }
0x1ec8   : > { %11567 = vmatmul.msk.f32.vlgmr.msrb.gmra.mxu2 %vm2578_vm0, %v10352_v31  ;;  %10764 = vmatpush.xpose.msrb.mxu3 %v8151_v28  ;;  %v8149_v31 = vld [vmem:[#allocation38 + $0x1e8] sm:$0xff] }
0x1ec9   : > { %10744 = vmatpush.xpose.msrb.mxu2 %v8150_v27  ;;  %v10827_v27 = vld [vmem:[#allocation43 + $0x70] sm:$0xff]  ;;  %v10826_v28 = vld [vmem:[#allocation43 + $0x68] sm:$0xff] }
0x1ecb   : > { %v10329_v32 = vpop.f32.mrf.mxu1 }
0x1ecc   : > { %11566 = vmatmul.msk.f32.vlgmr.msrb.gmra.mxu1 %vm2578_vm0, %v10329_v32  ;;  %10765 = vmatpush.xpose.msrb.mxu3 %v8149_v31  ;;  %v10824_v31 = vld [vmem:[#allocation43 + $0x58] sm:$0xff] }
0x1ecd   : > { %10719 = vmatpush.xpose.msrb.mxu1 %v8116_v60  ;;  %10745 = vmatpush.xpose.msrb.mxu2 %v8148_v29  ;;  %v8137_v60 = vld [vmem:[#allocation38 + $0x188] sm:$0xff] }
0x1ece   : > { %v10825_v29 = vld [vmem:[#allocation43 + $0x60] sm:$0xff] }
0x1ecf   : > { %v10444_v33 = vpop.f32.mrf.mxu2 }
0x1ed0   : > { %v10467_v34 = vpop.f32.mrf.mxu3  ;;  %11571 = vmatmul.msk.f32.vlgmr.msra.gmra.mxu2 %vm2578_vm0, %v10444_v33 }
0x1ed1   : > { %11572 = vmatmul.msk.f32.vlgmr.msra.gmra.mxu3 %vm2578_vm0, %v10467_v34  ;;  %v10398_v36 = vpop.f32.mrf.mxu0  ;;  %10720 = vmatpush.xpose.msrb.mxu1 %v8115_v51 }
0x1ed2   : > { %11569 = vmatmul.msk.f32.vlgmr.msra.gmra.mxu0 %vm2578_vm0, %v10398_v36  ;;  %v8146_v36 = vld [vmem:[#allocation38 + $0x1d0] sm:$0xff] }
0x1ed3   : > { %v10421_v30 = vpop.f32.mrf.mxu1  ;;  %10746 = vmatpush.xpose.msrb.mxu2 %v8146_v36 }
0x1ed4   : > { %11570 = vmatmul.msk.f32.vlgmr.msra.gmra.mxu1 %vm2578_vm0, %v10421_v30  ;;  %v8147_v30 = vld [vmem:[#allocation38 + $0x1d8] sm:$0xff] }
0x1ed5   : > { %10721 = vmatpush.xpose.msrb.mxu1 %v8114_v47  ;;  %10766 = vmatpush.xpose.msrb.mxu3 %v8147_v30  ;;  %v8135_v47 = vld [vmem:[#allocation38 + $0x178] sm:$0xff]  ;;  %v10821_v30 = vld [vmem:[#allocation43 + $0x40] sm:$0xff] }
0x1ed9   : > { %10722 = vmatpush.xpose.msrb.mxu1 %v8113_v63  ;;  %v8133_v63 = vld [vmem:[#allocation38 + $0x168] sm:$0xff] }
0x1edd   : > { %10723 = vmatpush.xpose.msrb.mxu1 %v8112_v1  ;;  %v8131_v1 = vld [vmem:[#allocation38 + $0x158] sm:$0xff] }
0x1ee1   : > { %10724 = vmatpush.xpose.msrb.mxu1 %v8111_v54  ;;  %v8129_v54 = vld [vmem:[#allocation38 + $0x148] sm:$0xff] }
0x1ee5   : > { %10725 = vmatpush.xpose.msrb.mxu1 %v8110_v3  ;;  %v8127_v3 = vld [vmem:[#allocation38 + $0x138] sm:$0xff] }
0x1ee9   : > { %10726 = vmatpush.xpose.msrb.mxu1 %v8109_v7  ;;  %v8123_v7 = vld [vmem:[#allocation38 + $0x118] sm:$0xff] }
0x1eed   : > { %10727 = vmatpush.xpose.msrb.mxu1 %v8108_v11 }
0x1ef1   : > { %10728 = vmatpush.xpose.msrb.mxu1 %v8107_v13 }
0x1ef5   : > { %10729 = vmatpush.xpose.msrb.mxu1 %v8106_v15 }
0x1ef9   : > { %10730 = vmatpush.xpose.msrb.mxu1 %v8105_v18 }
0x1efd   : > { %10731 = vmatpush.xpose.msrb.mxu1 %v8104_v20  ;;  %v12029_v20 = vld [vmem:[#allocation40 + $0x1] ss:$0 sm:$0xff] }
0x1f01   : > { %10732 = vmatpush.xpose.msrb.mxu1 %v8103_v22 }
0x1f05   : > { %10733 = vmatpush.xpose.msrb.mxu1 %v8102_v24 }
0x1f09   : > { %10734 = vmatpush.xpose.msrb.mxu1 %v8101_v26  ;;  %v10828_v26 = vld [vmem:[#allocation43 + $0x78] sm:$0xff] }
0x1f31   : > { %v10490_v37 = vpop.f32.mrf.mxu0 }
0x1f49   : > { %v10513_v38 = vpop.f32.mrf.mxu1 }
0x1f4a   : > { %v10654_v39 = vadd.f32 %v10513_v38, %v10490_v37  ;;  %v10559_v43 = vpop.f32.mrf.mxu3  ;;  %v8144_v37 = vld [vmem:[#allocation38 + $0x1c0] sm:$0xff]  ;;  %v8145_v38 = vld [vmem:[#allocation38 + $0x1c8] sm:$0xff] }
0x1f4b   : > { %v10536_v40 = vpop.f32.mrf.mxu2  ;;  %10747 = vmatpush.xpose.msrb.mxu2 %v8144_v37  ;;  %10767 = vmatpush.xpose.msrb.mxu3 %v8145_v38 }
0x1f4c   : > { %v10655_v44 = vadd.f32 %v10654_v39, %v10536_v40  ;;  %v8142_v40 = vld [vmem:[#allocation38 + $0x1b0] sm:$0xff] }
0x1f4e   : > { %v10656_v45 = vadd.f32 %v10655_v44, %v10559_v43  ;;  %v8143_v43 = vld [vmem:[#allocation38 + $0x1b8] sm:$0xff] }
0x1f4f   : > { %v10582_v46 = vpop.f32.mrf.mxu0  ;;  %10748 = vmatpush.xpose.msrb.mxu2 %v8142_v40  ;;  %10768 = vmatpush.xpose.msrb.mxu3 %v8143_v43  ;;  %v10819_v40 = vld [vmem:[#allocation43 + $0x30] sm:$0xff]  ;;  %v10818_v43 = vld [vmem:[#allocation43 + $0x28] sm:$0xff] }
0x1f50   : > { %v10657_v35 = vadd.f32 %v10656_v45, %v10582_v46  ;;  %v8140_v46 = vld [vmem:[#allocation38 + $0x1a0] sm:$0xff] }
0x1f51   : > { %v10605_v48 = vpop.f32.mrf.mxu1 }
0x1f52   : > { %v10658_v50 = vadd.f32 %v10657_v35, %v10605_v48  ;;  %v8141_v35 = vld [vmem:[#allocation38 + $0x1a8] sm:$0xff] }
0x1f53   : > { %v10628_v41 = vpop.f32.mrf.mxu2  ;;  %10749 = vmatpush.xpose.msrb.mxu2 %v8140_v46  ;;  %10769 = vmatpush.xpose.msrb.mxu3 %v8141_v35  ;;  %v10815_v46 = vld [vmem:[#allocation43 + $0x10] sm:$0xff]  ;;  %v10814_v35 = vld [vmem:[#allocation43 + $0x8] sm:$0xff] }
0x1f54   : > { %v10659_v52 = vadd.f32 %v10658_v50, %v10628_v41  ;;  %v10651_v55 = vpop.f32.mrf.mxu3  ;;  %v8138_v41 = vld [vmem:[#allocation38 + $0x190] sm:$0xff] }
0x1f56   : > { %v10660_v56 = vadd.f32 %v10659_v52, %v10651_v55  ;;  %v8139_v52 = vld [vmem:[#allocation38 + $0x198] sm:$0xff] }
0x1f57   : > { %v12027_v55 = vld [vmem:[#allocation34 + $0x1] ss:$0 sm:$0xff]  ;;  %10750 = vmatpush.xpose.msrb.mxu2 %v8138_v41  ;;  %10770 = vmatpush.xpose.msrb.mxu3 %v8139_v52 }
0x1f58   : > { %v10664_v42 = vadd.f32 %v12026_v53, %v10660_v56 }
0x1f5a   : > { %v10665_v59 = vadd.f32 %v10664_v42, %v14533_v4  ;;  %v8095_v4 = vld [vmem:[#allocation37 + $0x150] sm:$0xff] }
0x1f5b   : > { %10704 = vmatpush.xpose.msrb.mxu0 %v8095_v4  ;;  %10751 = vmatpush.xpose.msrb.mxu2 %v8136_v57  ;;  %v8128_v4 = vld [vmem:[#allocation38 + $0x140] sm:$0xff] }
0x1f5c   : > { %10666 = vadd.xlane.f32.xlu1 %v10665_v59  ;;  %10771 = vmatpush.xpose.msrb.mxu3 %v8137_v60  ;;  %v12030_v60 = vld [vmem:[%s14821_s6 + $0x1] ss:$0 sm:$0xff]  ;;  %s10855_s6 = scalar_lea.sflag [#allocation4], %s1854_s22 }
0x1f5f   : > { %10705 = vmatpush.xpose.msrb.mxu0 %v8094_v2  ;;  %10752 = vmatpush.xpose.msrb.mxu2 %v8134_v58  ;;  %v8126_v2 = vld [vmem:[#allocation38 + $0x130] sm:$0xff]  ;;  %v12031_v58 = vld [vmem:[#allocation41 + $0x1] ss:$0 sm:$0xff] }
0x1f60   : > { %10772 = vmatpush.xpose.msrb.mxu3 %v8135_v47 }
0x1f63   : > { %10706 = vmatpush.xpose.msrb.mxu0 %v8093_v6  ;;  %10753 = vmatpush.xpose.msrb.mxu2 %v8132_v62  ;;  %v8122_v6 = vld [vmem:[#allocation38 + $0x110] sm:$0xff]  ;;  %v12032_v62 = vld [vmem:[%s13443_s27] ss:$0 sm:$0xff] }
0x1f64   : > { %10773 = vmatpush.xpose.msrb.mxu3 %v8133_v63 }
0x1f67   : > { %10707 = vmatpush.xpose.msrb.mxu0 %v8092_v10  ;;  %10754 = vmatpush.xpose.msrb.mxu2 %v8130_v0  ;;  %v11507_v10 = vld [vmem:[%s14819_s5 + $0x2] sm:$0x3]  ;;  %s10867_s5 = sshll.u32 %s1856_s4, 4  ;;  %s10868_s5 = int_to_ptr.vmem [resolvable:$true] %s10867_s5 }
0x1f68   : > { %10774 = vmatpush.xpose.msrb.mxu3 %v8131_v1  ;;  %v10695_v11 = vperm.slane %v11507_v10, 0 }
0x1f6b   : > { %10708 = vmatpush.xpose.msrb.mxu0 %v8091_v12  ;;  %10755 = vmatpush.xpose.msrb.mxu2 %v8128_v4  ;;  %v10696_v12 = vperm.slane %v11507_v10, 1 }
0x1f6c   : > { %10775 = vmatpush.xpose.msrb.mxu3 %v8129_v54 }
0x1f6f   : > { %10709 = vmatpush.xpose.msrb.mxu0 %v8090_v14  ;;  %10756 = vmatpush.xpose.msrb.mxu2 %v8126_v2 }
0x1f70   : > { %10776 = vmatpush.xpose.msrb.mxu3 %v8127_v3 }
0x1f73   : > { %10710 = vmatpush.xpose.msrb.mxu0 %v8089_v17 }
0x1f77   : > { %10711 = vmatpush.xpose.msrb.mxu0 %v8088_v19 }
0x1f7b   : > { %10712 = vmatpush.xpose.msrb.mxu0 %v8087_v21 }
0x1f7f   : > { %10713 = vmatpush.xpose.msrb.mxu0 %v8086_v23 }
0x1f83   : > { %10714 = vmatpush.xpose.msrb.mxu0 %v8085_v25 }
0x1f87   : > { %10833 = vmatpush.xpose.msra.mxu0 %v10828_v26 }
0x1f8b   : > { %10834 = vmatpush.xpose.msra.mxu0 %v10827_v27 }
0x1f8f   : > { %10835 = vmatpush.xpose.msra.mxu0 %v10826_v28 }
0x1f93   : > { %10836 = vmatpush.xpose.msra.mxu0 %v10825_v29 }
0x1f97   : > { %10837 = vmatpush.xpose.msra.mxu0 %v10824_v31 }
0x1fcf   : > { %v10667_v8 = vpop.xlane.xlu1 %10666 }
0x1fd0   : > { %v10668_v5 = vmul.f32 %v10667_v8, %v14061_v16  ;;  %v8124_v8 = vld [vmem:[#allocation38 + $0x120] sm:$0xff] }
0x1fd1   : > { %10757 = vmatpush.xpose.msrb.mxu2 %v8124_v8 }
0x1fd2   : > { %v14609_v9 = vsub.f32 %v10665_v59, %v10668_v5  ;;  %v12028_v59 = vld [vmem:[#allocation35 + $0x1] ss:$0 sm:$0xff]  ;;  %v8125_v5 = vld [vmem:[#allocation38 + $0x128] sm:$0xff] }
0x1fd3   : > { %10777 = vmatpush.xpose.msrb.mxu3 %v8125_v5 }
0x1fd4   : > { %v10670_v49 = vmul.f32 %v14609_v9, %v14609_v9 }
0x1fd5   : > { %10758 = vmatpush.xpose.msrb.mxu2 %v8122_v6 }
0x1fd6   : > { %10671 = vadd.xlane.f32.xlu2 %v10670_v49  ;;  %v8121_v49 = vld [vmem:[#allocation38 + $0x108] sm:$0xff] }
0x1fd7   : > { %10778 = vmatpush.xpose.msrb.mxu3 %v8123_v7 }
0x1fdb   : > { %10779 = vmatpush.xpose.msrb.mxu3 %v8121_v49 }
0x2049   : > { %v10672_v32 = vpop.xlane.xlu2 %10671 }
0x204a   : > { %v10673_v33 = vmul.f32 %v10672_v32, %v14061_v16  ;;  %v10823_v32 = vld [vmem:[#allocation43 + $0x50] sm:$0xff] }
0x204b   : > { %10838 = vmatpush.xpose.msra.mxu0 %v10823_v32 }
0x204c   : > { %v10674_v34 = vadd.f32 1e-06, %v10673_v33  ;;  %v10822_v33 = vld [vmem:[#allocation43 + $0x48] sm:$0xff] }
0x204e   : > { %12243 = vrsqrt.f32 %v10674_v34  ;;  %vm10681_vm1 = vweird.f32 %v10674_v34 }
0x204f   : > { %10839 = vmatpush.xpose.msra.mxu0 %v10822_v33 }
0x2053   : > { %10840 = vmatpush.xpose.msra.mxu0 %v10821_v30 }
0x2054   : > { %v12244_v39 = vpop.eup %12243 }
0x2055   : > { %v10676_v44 = vmul.f32 %v12244_v39, %v10674_v34  ;;  %vm10682_vm0 = vweird.f32 %v12244_v39 }
0x2056   : > { %vm10683_vm13 = vmor %vm10681_vm1, %vm10682_vm0 }
0x2057   : > { %v10677_v45 = vmul.f32 %v12244_v39, %v10676_v44  ;;  %v10817_v44 = vld [vmem:[#allocation43 + $0x20] sm:$0xff] }
0x2059   : > { %v10678_v48 = vmul.f32 0.5, %v10677_v45  ;;  %v10816_v45 = vld [vmem:[#allocation43 + $0x18] sm:$0xff] }
0x205b   : > { %v10679_v50 = vsub.f32 1.5, %v10678_v48  ;;  %v10813_v48 = vld [vmem:[#allocation43] sm:$0xff] }
0x205d   : > { %v10680_v53 = vmul.f32 %v12244_v39, %v10679_v50 }
0x205f   : > { %v10684_v56 = vsel %vm10683_vm13, %v12244_v39, %v10680_v53  ;;  %v10820_v39 = vld [vmem:[#allocation43 + $0x38] sm:$0xff] }
0x2060   : > { %v10685_v42 = vmul.f32 %v10684_v56, %v14609_v9  ;;  %v8120_v9 = vld [vmem:[#allocation38 + $0x100] sm:$0xff]  ;;  %10841 = vmatpush.xpose.msra.mxu0 %v10820_v39 }
0x2061   : > { %10759 = vmatpush.xpose.msrb.mxu2 %v8120_v9 }
0x2062   : > { %v10689_v61 = vmul.f32 %v12027_v55, %v10685_v42 }
0x2064   : > { %v10693_v51 = vadd.f32 %v12028_v59, %v10689_v61  ;;  %10842 = vmatpush.xpose.msra.mxu0 %v10819_v40 }
0x2066   : > { %10715 = vmatmul.f32.vlgmr.msrb.gmra.mxu0 %v10693_v51  ;;  %10735 = vmatmul.f32.vlgmr.msrb.gmra.mxu1 %v10693_v51 }
0x2068   : > { %10843 = vmatpush.xpose.msra.mxu0 %v10818_v43 }
0x206c   : > { %10844 = vmatpush.xpose.msra.mxu0 %v10817_v44 }
0x2070   : > { %10845 = vmatpush.xpose.msra.mxu0 %v10816_v45 }
0x2074   : > { %10846 = vmatpush.xpose.msra.mxu0 %v10815_v46 }
0x2078   : > { %10847 = vmatpush.xpose.msra.mxu0 %v10814_v35 }
0x207c   : > { %10848 = vmatpush.xpose.msra.mxu0 %v10813_v48 }
0x20e3   : > { %v10716_v13 = vpop.f32.mrf.mxu0  ;;  %v10736_v14 = vpop.f32.mrf.mxu1 }
0x20e4   : > { %v10717_v15 = vadd.f32 %v10716_v13, %v10695_v11  ;;  %v10737_v17 = vadd.f32 %v10736_v14, %v10696_v12 }
0x20e6   : > { %v10739_v18 = vmax.f32 %v10717_v15, 0.0  ;;  %v10740_v19 = vmax.f32 %v10737_v17, 0.0 }
0x20e8   : > { %10760 = vmatmul.f32.vlgmr.msrb.gmra.mxu2 %v10739_v18  ;;  %10780 = vmatmul.f32.vlgmr.msrb.gmra.mxu3 %v10740_v19 }
0x216b   : > { %v10761_v21 = vpop.f32.mrf.mxu2  ;;  %v10781_v23 = vpop.f32.mrf.mxu3 }
0x216c   : > { %v10762_v22 = vadd.f32 %v12029_v20, %v10761_v21 }
0x216e   : > { %v10782_v24 = vadd.f32 %v10781_v23, %v10762_v22 }
0x2170   : > { %v10784_v25 = vadd.f32 %v10782_v24, %v10693_v51 }
0x2172   : > { %10785 = vadd.xlane.f32.xlu0 %v10784_v25 }
0x21e5   : > { %v10786_v34 = vpop.xlane.xlu0 %10785 }
0x21e6   : > { %v10787_v36 = vmul.f32 %v10786_v34, %v14061_v16 }
0x21e8   : > { %v10788_v37 = vsub.f32 %v10784_v25, %v10787_v36 }
0x21ea   : > { %v10789_v38 = vmul.f32 %v10788_v37, %v10788_v37 }
0x21ec   : > { %10790 = vadd.xlane.f32.xlu1 %v10789_v38 }
0x225f   : > { %v10791_v50 = vpop.xlane.xlu1 %10790 }
0x2260   : > { %v10792_v41 = vmul.f32 %v10791_v50, %v14061_v16 }
0x2262   : > { %v10793_v52 = vadd.f32 1e-06, %v10792_v41 }
0x2264   : > { %12245 = vrsqrt.f32 %v10793_v52  ;;  %vm10800_vm15 = vweird.f32 %v10793_v52 }
0x226a   : > { %v12246_v53 = vpop.eup %12245 }
0x226b   : > { %v10795_v55 = vmul.f32 %v12246_v53, %v10793_v52  ;;  %vm10801_vm14 = vweird.f32 %v12246_v53 }
0x226c   : > { %vm10802_vm2 = vmor %vm10800_vm15, %vm10801_vm14 }
0x226d   : > { %v10796_v56 = vmul.f32 %v12246_v53, %v10795_v55 }
0x226f   : > { %v10797_v42 = vmul.f32 0.5, %v10796_v56 }
0x2271   : > { %v10798_v59 = vsub.f32 1.5, %v10797_v42 }
0x2273   : > { %v10799_v57 = vmul.f32 %v12246_v53, %v10798_v59 }
0x2275   : > { %v10803_v61 = vsel %vm10802_vm2, %v12246_v53, %v10799_v57 }
0x2276   : > { %v10804_v51 = vmul.f32 %v10803_v61, %v10788_v37 }
0x2278   : > { %v10808_v16 = vmul.f32 %v12030_v60, %v10804_v51 }
0x227a   : > { %v10812_v47 = vadd.f32 %v12031_v58, %v10808_v16 }
0x227c   : > { %10849 = vmatmul.f32.vlgmr.msra.gmra.mxu0 %v10812_v47 }
0x22f9   : > { %v10850_v63 = vpop.f32.mrf.mxu0 }
0x22fa   : > { %v10851_v0 = vadd.f32 %v12032_v62, %v10850_v63 }
0x22fc   : > { %10853 = vst [vmem:[%s1856_s4] sm:$0xff] %v10851_v0 }
0x22fd   : > { %13032 = shalt.err (!%p13029_p2)
}
0x22fe   : > { %11685 = dma.vmem_to_hbm [thread:$0]  (%p13488_p5), %s10868_s5, 128, %s10870_s7, %s10855_s6  }
0x22ff PF: > { %s14823_s3 = sld [smem:[#allocation99_spill]] }
0x2300   : > { %s14824_s4 = sld [smem:[#allocation97_spill]] }
0x2305   : > { %p11745_p3 = scmp.ge.s32.totalorder %s14823_s3, 2 }
0x2306   : > { %s10881_s22 = sand.u32 1, %s14824_s4  }
0x2307   : > { %p11688_p4 = pnand %p11745_p3, %p13492_p6  ;;  %s10882_s23 = scalar_lea.sflag [#allocation4], %s10881_s22 }
0x2309   : > { %p11689_p7 = pneg %p11688_p4 }
0x230b   : > { %13106 = dma.done.wait (%p11689_p7), %s10882_s23, 128  }
0x230c   : > { %13108 = vsyncadd (%p11689_p7), %s10882_s23, 4294967168  ;;  %s14826_s8 = sld [smem:[#allocation100_spill]]  ;;  %s14829_s22 = smov %s13115_s0 }
0x230d   : > { %s14827_s9 = sld [smem:[#allocation98_spill]] }
0x230e   : > { %s14828_s23 = sld [smem:[#allocation101_spill]] }
0x2312   : > { %p119_p8 = scmp.ge.s32.totalorder %s14826_s8, 4   ;;  %14831 = sst [smem:[#allocation97_spill]] %s14826_s8 }
0x2313   : > { %s14830_s0 = smov %s14827_s9 }
0x2314   :  { %121 = sbr.rel (!%p119_p8) target bundleno = 106 (0x6a), region = 444 }
0x2319   :  { %10888 = vsyncpa [#allocation3], 1 }
0x231a   :  { %10890 = vsyncpa [#allocation3 + $0x1], 1 }
0x231b   :  { %10891 = vsyncpa [#allocation6], 1 }
0x231c   :  { %10892 = vsyncpa [#allocation9], 1 }
0x231d   :  { %10893 = vsyncpa [#allocation12], 1 }
0x231e   :  { %10894 = vsyncpa [#allocation15], 1 }
0x231f   :  { %10895 = vsyncpa [#allocation18], 1 }
0x2320   :  { %10896 = vsyncpa [#allocation21], 1 }
0x2321   :  { %10897 = vsyncpa [#allocation24], 1 }
0x2322   :  { %10898 = vsyncpa [#allocation27], 1 }
0x2323   :  { %10899 = vsyncpa [#allocation30], 1 }
0x2324   :  { %10900 = vsyncpa [#allocation33], 1 }
0x2325   :  { %10901 = vsyncpa [#allocation36], 1 }
0x2326   :  { %10902 = vsyncpa [#allocation39], 1 }
0x2327   :  { %10903 = vsyncpa [#allocation42], 1 }
0x2328   :  { %10904 = vsyncpa [#allocation4], 1 }
0x2329   :  { %10906 = vsyncpa [#allocation4 + $0x1], 1 }

</bundles_post_ra>
